<compile_context>
chip_gen: v7x
topology: tpu7x:2x2x1
jax: 0.10.0
libtpu: 0.0.40
codegen_flags: <defaults>
</compile_context>

<pallas_src>
import functools

import jax
import jax.numpy as jnp
from jax import lax
from jax.experimental import pallas as pl
from jax.experimental.pallas import tpu as pltpu


# ----------------------------------------------------------------------------
# Pallas kernel: fused  ReLU((M, K) @ (K, N) + bias)  with M tiling.
# ----------------------------------------------------------------------------
def _mm_bias_relu_kernel(x_ref, w_ref, b_ref, o_ref):
    acc = jnp.dot(x_ref[...], w_ref[...], preferred_element_type=jnp.float32)
    acc = acc + b_ref[...].astype(jnp.float32)
    o_ref[...] = jnp.maximum(acc, 0.0).astype(o_ref.dtype)


def _round_up(n, m):
    return ((n + m - 1) // m) * m


def _pad_to_128(n):
    return _round_up(max(n, 128), 128)


def matmul_bias_relu(x, w, b, *, compute_dtype=jnp.float32, out_dtype=None):
    """ReLU(x @ w + b) via a Pallas TPU kernel.

    x: (M, K)   w: (K, N) with N a multiple of 128 (lane-dense)   b: (N,)
    """
    M, K = x.shape
    K2, N = w.shape
    assert K == K2
    assert N % 128 == 0, "output channels must be padded to a multiple of 128"
    if out_dtype is None:
        out_dtype = compute_dtype

    tile_m = min(256, _round_up(M, 8))      # 8-sublane multiples, cap at 256 rows
    Mp = _round_up(M, tile_m)
    if Mp != M:
        x = jnp.pad(x, ((0, Mp - M), (0, 0)))

    x = x.astype(compute_dtype)
    w = w.astype(compute_dtype)
    b2 = b.reshape(1, N).astype(jnp.float32)

    in_bytes = jnp.dtype(compute_dtype).itemsize
    out_bytes = jnp.dtype(out_dtype).itemsize
    cost = pl.CostEstimate(
        flops=2 * Mp * K * N,
        transcendentals=0,
        bytes_accessed=Mp * K * in_bytes + K * N * in_bytes + N * 4 + Mp * N * out_bytes,
    )

    out = pl.pallas_call(
        _mm_bias_relu_kernel,
        out_shape=jax.ShapeDtypeStruct((Mp, N), out_dtype),
        grid=(Mp // tile_m,),
        in_specs=[
            pl.BlockSpec((tile_m, K), lambda i: (i, 0)),   # per-tile activations
            pl.BlockSpec((K, N), lambda i: (0, 0)),        # resident weight
            pl.BlockSpec((1, N), lambda i: (0, 0)),        # resident bias
        ],
        out_specs=pl.BlockSpec((tile_m, N), lambda i: (i, 0)),
        compiler_params=pltpu.CompilerParams(
            dimension_semantics=("parallel",),             # shard M-tiles over TCs
        ),
        cost_estimate=cost,
    )(x, w, b2)

    return out[:M] if Mp != M else out


# ----------------------------------------------------------------------------
# Model definition (matches CNN1D.extractor + adaptor), parameter handling.
# ----------------------------------------------------------------------------
CONV3_SPECS = [            # (c_in, c_out) for the k=3, s=1, p=1 convs
    (64, 64), (64, 64),
    (64, 128), (128, 128),
    (128, 256), (256, 256),
    (256, 512), (512, 512),
]
POOL_AFTER = {1, 3, 5}     # MaxPool1d(4,4) after these k=3 convs (0-indexed)
BN_EPS = 1e-5


def _init_conv_bn(key, c_in, c_out, ks):
    kw, kb, kg, kbe, km, kv = jax.random.split(key, 6)
    fan_in = c_in * ks
    return dict(
        w=jax.random.normal(kw, (c_out, c_in, ks), jnp.float32) * jnp.sqrt(2.0 / fan_in),
        b=jax.random.normal(kb, (c_out,), jnp.float32) * 0.01,
        gamma=1.0 + 0.1 * jax.random.normal(kg, (c_out,), jnp.float32),
        beta=0.1 * jax.random.normal(kbe, (c_out,), jnp.float32),
        mean=0.1 * jax.random.normal(km, (c_out,), jnp.float32),
        var=1.0 + 0.5 * jax.random.uniform(kv, (c_out,), jnp.float32),
    )


def init_raw_params(key, hidden_size):
    n_conv = 1 + len(CONV3_SPECS)
    keys = jax.random.split(key, n_conv + 2)
    convs = [_init_conv_bn(keys[0], 1, 64, 160)]
    for i, (ci, co) in enumerate(CONV3_SPECS):
        convs.append(_init_conv_bn(keys[1 + i], ci, co, 3))
    w_lin = jax.random.normal(keys[n_conv], (hidden_size, 512), jnp.float32) * jnp.sqrt(2.0 / 512)
    b_lin = jax.random.normal(keys[n_conv + 1], (hidden_size,), jnp.float32) * 0.01
    return convs, w_lin, b_lin


def _fold_bn(p):
    # Eval-mode BN folded into conv weight/bias (exact algebra).
    scale = p["gamma"] / jnp.sqrt(p["var"] + BN_EPS)
    w = p["w"] * scale[:, None, None]
    b = (p["b"] - p["mean"]) * scale + p["beta"]
    return w, b


def _pack_conv(w_oik, b_o, c_in_pad, c_out_pad):
    # torch (O, I, Ks) -> matmul weight (Ks * c_in_pad, c_out_pad); K order = (tap, channel).
    o, i, ks = w_oik.shape
    w = jnp.transpose(w_oik, (2, 1, 0))                       # (Ks, I, O)
    w = jnp.pad(w, ((0, 0), (0, c_in_pad - i), (0, c_out_pad - o)))
    return w.reshape(ks * c_in_pad, c_out_pad), jnp.pad(b_o, (0, c_out_pad - o))


def pack_params(raw_convs, w_lin, b_lin, hidden_size):
    packed = {}
    w1, b1 = _fold_bn(raw_convs[0])
    packed["conv1"] = _pack_conv(w1, b1, 1, _pad_to_128(64))
    k3 = []
    for p, (ci, co) in zip(raw_convs[1:], CONV3_SPECS):
        w, b = _fold_bn(p)
        k3.append(_pack_conv(w, b, _pad_to_128(ci), _pad_to_128(co)))
    packed["convs"] = k3
    n_pad = _pad_to_128(hidden_size)
    packed["adaptor"] = (
        jnp.pad(w_lin.T, ((0, 0), (0, n_pad - hidden_size))),   # (512, n_pad)
        jnp.pad(b_lin, (0, n_pad - hidden_size)),
    )
    return packed


def _maxpool_time(h):
    b, t, c = h.shape
    to = t // 4
    return h[:, : to * 4, :].reshape(b, to, 4, c).max(axis=2)


def audio_cnn1d_extractor_forward(x, packed, *, hidden_size, compute_dtype=jnp.float32):
    """x: (B, L) raw waveform. Returns (B, T_out, hidden_size) float32."""
    B, L = x.shape
    assert L % 40 == 0, "window extraction assumes L is a multiple of the conv1 stride (40)"
    # TODO(synk): support L % 40 != 0 (ragged last frame of PyTorch's floor-div length).

    x = x.astype(compute_dtype)

    # ---- Conv1d(1, 64, k=160, s=40, p=80) + BN + ReLU : strided im2col + matmul ----
    xp = jnp.pad(x, ((0, 0), (80, 80)))
    n_chunks = (L + 160) // 40
    chunks = xp.reshape(B, n_chunks, 40)
    T = n_chunks - 3                                   # == L // 40 + 1 (matches PyTorch)
    frames = jnp.concatenate([chunks[:, k:k + T, :] for k in range(4)], axis=-1)  # (B, T, 160)
    w1, b1 = packed["conv1"]
    h = matmul_bias_relu(frames.reshape(B * T, 160), w1, b1,
                         compute_dtype=compute_dtype, out_dtype=compute_dtype)
    h = h.reshape(B, T, w1.shape[1])
    h = _maxpool_time(h)                               # MaxPool1d(4,4); Dropout1d = identity

    # ---- k=3, s=1, p=1 conv stack (channels-last, channels padded to 128 lanes) ----
    for idx, (w, b) in enumerate(packed["convs"]):
        b_, t_, c_ = h.shape
        hp = jnp.pad(h, ((0, 0), (1, 1), (0, 0)))
        taps = jnp.concatenate([hp[:, k:k + t_, :] for k in range(3)], axis=-1)   # (B, T, 3C)
        y = matmul_bias_relu(taps.reshape(b_ * t_, 3 * c_), w, b,
                             compute_dtype=compute_dtype, out_dtype=compute_dtype)
        h = y.reshape(b_, t_, w.shape[1])
        if idx in POOL_AFTER:
            h = _maxpool_time(h)

    # ---- .permute(0, 2, 1) is a no-op: h is already channels-last (B, T, 512) ----
    # ---- adaptor: Linear(512, hidden) + ReLU (Dropout = identity at inference) ----
    wa, ba = packed["adaptor"]
    b_, t_, c_ = h.shape
    y = matmul_bias_relu(h.reshape(b_ * t_, c_), wa, ba,
                         compute_dtype=compute_dtype, out_dtype=jnp.float32)
    return y.reshape(b_, t_, wa.shape[1])[:, :, :hidden_size]


# ----------------------------------------------------------------------------
# Pure-JAX reference (mirrors the PyTorch module directly: conv + BN + ReLU).
# ----------------------------------------------------------------------------
def ref_forward(x, raw_convs, w_lin, b_lin):
    h = x[:, None, :].astype(jnp.float32)              # (B, 1, L), like unsqueeze(1)

    def conv_bn_relu(h, p, stride, pad):
        y = lax.conv_general_dilated(
            h, p["w"], window_strides=(stride,), padding=[(pad, pad)],
            dimension_numbers=("NCH", "OIH", "NCH"),
            precision=lax.Precision.HIGHEST)
        y = y + p["b"][None, :, None]
        y = ((y - p["mean"][None, :, None])
             / jnp.sqrt(p["var"][None, :, None] + BN_EPS)
             * p["gamma"][None, :, None] + p["beta"][None, :, None])
        return jnp.maximum(y, 0.0)

    def pool(h):
        b, c, t = h.shape
        to = t // 4
        return h[:, :, : to * 4].reshape(b, c, to, 4).max(axis=-1)

    h = conv_bn_relu(h, raw_convs[0], 40, 80)
    h = pool(h)
    for i, p in enumerate(raw_convs[1:]):
        h = conv_bn_relu(h, p, 1, 1)
        if i in POOL_AFTER:
            h = pool(h)
    h = jnp.transpose(h, (0, 2, 1))                     # permute(0, 2, 1) -> (B, T, 512)
    y = jnp.einsum("btc,hc->bth", h, w_lin, precision=lax.Precision.HIGHEST) + b_lin
    return jnp.maximum(y, 0.0)


# ----------------------------------------------------------------------------
if __name__ == "__main__":
    B, L, HIDDEN = 2, 40 * 1024, 32     # ~2.56 s of 16 kHz audio per example

    key = jax.random.PRNGKey(0)
    kx, kp = jax.random.split(key)
    x = 0.5 * jax.random.normal(kx, (B, L), dtype=jnp.float32)

    raw_convs, w_lin, b_lin = init_raw_params(kp, HIDDEN)
    packed = pack_params(raw_convs, w_lin, b_lin, HIDDEN)

    # f32 run (correctness check against the pure-JAX reference).
    fwd = jax.jit(functools.partial(audio_cnn1d_extractor_forward,
                                    hidden_size=HIDDEN, compute_dtype=jnp.float32))
    out = jax.block_until_ready(fwd(x, packed))

    ref = jax.block_until_ready(jax.jit(ref_forward)(x, raw_convs, w_lin, b_lin))

    assert out.shape == ref.shape == (B, 4, HIDDEN), (out.shape, ref.shape)
    assert bool(jnp.all(jnp.isfinite(out)))
    assert jnp.allclose(out, ref, atol=1e-2, rtol=1e-2), float(jnp.max(jnp.abs(out - ref)))

    # bf16 compute path (v6e/v7x fast path: halves weight + activation DMA traffic).
    fwd_bf16 = jax.jit(functools.partial(audio_cnn1d_extractor_forward,
                                         hidden_size=HIDDEN, compute_dtype=jnp.bfloat16))
    out_bf16 = jax.block_until_ready(fwd_bf16(x, packed))
    assert out_bf16.shape == out.shape
    assert bool(jnp.all(jnp.isfinite(out_bf16)))

    print("KERNEL_OK")
</pallas_src>

<mosaic_0001>
module attributes {stable_mosaic.version = 11 : i64} {
  func.func @_mm_bias_relu_kernel(%arg0: i32, %arg1: memref<256x160xf32, #tpu.memory_space<vmem>>, %arg2: memref<160x128xf32, #tpu.memory_space<vmem>>, %arg3: memref<1x128xf32, #tpu.memory_space<vmem>>, %arg4: memref<256x128xf32, #tpu.memory_space<vmem>>) attributes {dimension_semantics = [#tpu.dimension_semantics<parallel>], iteration_bounds = array<i64: 9>, scalar_prefetch = 0 : i64, scratch_operands = 0 : i64, tpu.core_type = #tpu.core_type<tc>, window_params = [{transform_indices = @transform_0, window_bounds = array<i64: 256, 160>}, {pipeline_mode = #tpu.pipeline_mode<synchronous>, transform_indices = @transform_1, window_bounds = array<i64: 160, 128>}, {pipeline_mode = #tpu.pipeline_mode<synchronous>, transform_indices = @transform_2, window_bounds = array<i64: 1, 128>}, {transform_indices = @transform_3, window_bounds = array<i64: 256, 128>}]} {
    %c0 = arith.constant 0 : index
    %c0_0 = arith.constant 0 : index
    %0 = vector.load %arg1[%c0, %c0_0] : memref<256x160xf32, #tpu.memory_space<vmem>>, vector<256x160xf32>
    %c0_1 = arith.constant 0 : index
    %c0_2 = arith.constant 0 : index
    %1 = vector.load %arg2[%c0_1, %c0_2] : memref<160x128xf32, #tpu.memory_space<vmem>>, vector<160x128xf32>
    %cst = arith.constant dense<0.000000e+00> : vector<256x128xf32>
    %2 = tpu.matmul %0, %1, %cst {dimension_numbers = #tpu.dot_dimension_numbers<[1], [0], [0], [1], [0, 0, 1, 1], [], []>} : vector<256x160xf32>, vector<160x128xf32>, vector<256x128xf32> -> vector<256x128xf32>
    %c0_3 = arith.constant 0 : index
    %c0_4 = arith.constant 0 : index
    %3 = vector.load %arg3[%c0_3, %c0_4] : memref<1x128xf32, #tpu.memory_space<vmem>>, vector<1x128xf32>
    %4 = vector.broadcast %3 : vector<1x128xf32> to vector<256x128xf32>
    %5 = arith.addf %2, %4 : vector<256x128xf32>
    %cst_5 = arith.constant 0.000000e+00 : f32
    %6 = vector.broadcast %cst_5 : f32 to vector<256x128xf32>
    %7 = arith.maximumf %5, %6 : vector<256x128xf32>
    %c0_6 = arith.constant 0 : index
    %c0_7 = arith.constant 0 : index
    %8 = vector.load %arg4[%c0_6, %c0_7] : memref<256x128xf32, #tpu.memory_space<vmem>>, vector<256x128xf32>
    tpu.vector_store %arg4[%c0_6, %c0_7], %7 {strides = array<i32>} : memref<256x128xf32, #tpu.memory_space<vmem>>, vector<256x128xf32>,
    return
  }
  func.func @transform_0(%arg0: i32) -> (i32, i32) {
    %c0_i32 = arith.constant 0 : i32
    %c0_i32_0 = arith.constant 0 : i32
    return %arg0, %c0_i32 : i32, i32
  }
  func.func @transform_1(%arg0: i32) -> (i32, i32) {
    %c0_i32 = arith.constant 0 : i32
    %c0_i32_0 = arith.constant 0 : i32
    %c0_i32_1 = arith.constant 0 : i32
    return %c0_i32, %c0_i32_0 : i32, i32
  }
  func.func @transform_2(%arg0: i32) -> (i32, i32) {
    %c0_i32 = arith.constant 0 : i32
    %c0_i32_0 = arith.constant 0 : i32
    %c0_i32_1 = arith.constant 0 : i32
    return %c0_i32, %c0_i32_0 : i32, i32
  }
  func.func @transform_3(%arg0: i32) -> (i32, i32) {
    %c0_i32 = arith.constant 0 : i32
    %c0_i32_0 = arith.constant 0 : i32
    return %arg0, %c0_i32 : i32, i32
  }
}

module attributes {stable_mosaic.version = 11 : i64} {
  func.func @_mm_bias_relu_kernel(%arg0: i32, %arg1: memref<256x384xf32, #tpu.memory_space<vmem>>, %arg2: memref<384x128xf32, #tpu.memory_space<vmem>>, %arg3: memref<1x128xf32, #tpu.memory_space<vmem>>, %arg4: memref<256x128xf32, #tpu.memory_space<vmem>>) attributes {dimension_semantics = [#tpu.dimension_semantics<parallel>], iteration_bounds = array<i64: 2>, scalar_prefetch = 0 : i64, scratch_operands = 0 : i64, tpu.core_type = #tpu.core_type<tc>, window_params = [{transform_indices = @transform_0, window_bounds = array<i64: 256, 384>}, {pipeline_mode = #tpu.pipeline_mode<synchronous>, transform_indices = @transform_1, window_bounds = array<i64: 384, 128>}, {pipeline_mode = #tpu.pipeline_mode<synchronous>, transform_indices = @transform_2, window_bounds = array<i64: 1, 128>}, {transform_indices = @transform_3, window_bounds = array<i64: 256, 128>}]} {
    %c0 = arith.constant 0 : index
    %c0_0 = arith.constant 0 : index
    %0 = vector.load %arg1[%c0, %c0_0] : memref<256x384xf32, #tpu.memory_space<vmem>>, vector<256x384xf32>
    %c0_1 = arith.constant 0 : index
    %c0_2 = arith.constant 0 : index
    %1 = vector.load %arg2[%c0_1, %c0_2] : memref<384x128xf32, #tpu.memory_space<vmem>>, vector<384x128xf32>
    %cst = arith.constant dense<0.000000e+00> : vector<256x128xf32>
    %2 = tpu.matmul %0, %1, %cst {dimension_numbers = #tpu.dot_dimension_numbers<[1], [0], [0], [1], [0, 0, 1, 1], [], []>} : vector<256x384xf32>, vector<384x128xf32>, vector<256x128xf32> -> vector<256x128xf32>
    %c0_3 = arith.constant 0 : index
    %c0_4 = arith.constant 0 : index
    %3 = vector.load %arg3[%c0_3, %c0_4] : memref<1x128xf32, #tpu.memory_space<vmem>>, vector<1x128xf32>
    %4 = vector.broadcast %3 : vector<1x128xf32> to vector<256x128xf32>
    %5 = arith.addf %2, %4 : vector<256x128xf32>
    %cst_5 = arith.constant 0.000000e+00 : f32
    %6 = vector.broadcast %cst_5 : f32 to vector<256x128xf32>
    %7 = arith.maximumf %5, %6 : vector<256x128xf32>
    %c0_6 = arith.constant 0 : index
    %c0_7 = arith.constant 0 : index
    %8 = vector.load %arg4[%c0_6, %c0_7] : memref<256x128xf32, #tpu.memory_space<vmem>>, vector<256x128xf32>
    tpu.vector_store %arg4[%c0_6, %c0_7], %7 {strides = array<i32>} : memref<256x128xf32, #tpu.memory_space<vmem>>, vector<256x128xf32>,
    return
  }
  func.func @transform_0(%arg0: i32) -> (i32, i32) {
    %c0_i32 = arith.constant 0 : i32
    %c0_i32_0 = arith.constant 0 : i32
    return %arg0, %c0_i32 : i32, i32
  }
  func.func @transform_1(%arg0: i32) -> (i32, i32) {
    %c0_i32 = arith.constant 0 : i32
    %c0_i32_0 = arith.constant 0 : i32
    %c0_i32_1 = arith.constant 0 : i32
    return %c0_i32, %c0_i32_0 : i32, i32
  }
  func.func @transform_2(%arg0: i32) -> (i32, i32) {
    %c0_i32 = arith.constant 0 : i32
    %c0_i32_0 = arith.constant 0 : i32
    %c0_i32_1 = arith.constant 0 : i32
    return %c0_i32, %c0_i32_0 : i32, i32
  }
  func.func @transform_3(%arg0: i32) -> (i32, i32) {
    %c0_i32 = arith.constant 0 : i32
    %c0_i32_0 = arith.constant 0 : i32
    return %arg0, %c0_i32 : i32, i32
  }
}

module attributes {stable_mosaic.version = 11 : i64} {
  func.func @_mm_bias_relu_kernel(%arg0: i32, %arg1: memref<128x384xf32, #tpu.memory_space<vmem>>, %arg2: memref<384x128xf32, #tpu.memory_space<vmem>>, %arg3: memref<1x128xf32, #tpu.memory_space<vmem>>, %arg4: memref<128x128xf32, #tpu.memory_space<vmem>>) attributes {dimension_semantics = [#tpu.dimension_semantics<parallel>], iteration_bounds = array<i64: 1>, scalar_prefetch = 0 : i64, scratch_operands = 0 : i64, tpu.core_type = #tpu.core_type<tc>, window_params = [{transform_indices = @transform_0, window_bounds = array<i64: 128, 384>}, {pipeline_mode = #tpu.pipeline_mode<synchronous>, transform_indices = @transform_1, window_bounds = array<i64: 384, 128>}, {pipeline_mode = #tpu.pipeline_mode<synchronous>, transform_indices = @transform_2, window_bounds = array<i64: 1, 128>}, {transform_indices = @transform_3, window_bounds = array<i64: 128, 128>}]} {
    %c0 = arith.constant 0 : index
    %c0_0 = arith.constant 0 : index
    %0 = vector.load %arg1[%c0, %c0_0] : memref<128x384xf32, #tpu.memory_space<vmem>>, vector<128x384xf32>
    %c0_1 = arith.constant 0 : index
    %c0_2 = arith.constant 0 : index
    %1 = vector.load %arg2[%c0_1, %c0_2] : memref<384x128xf32, #tpu.memory_space<vmem>>, vector<384x128xf32>
    %cst = arith.constant dense<0.000000e+00> : vector<128x128xf32>
    %2 = tpu.matmul %0, %1, %cst {dimension_numbers = #tpu.dot_dimension_numbers<[1], [0], [0], [1], [0, 0, 1, 1], [], []>} : vector<128x384xf32>, vector<384x128xf32>, vector<128x128xf32> -> vector<128x128xf32>
    %c0_3 = arith.constant 0 : index
    %c0_4 = arith.constant 0 : index
    %3 = vector.load %arg3[%c0_3, %c0_4] : memref<1x128xf32, #tpu.memory_space<vmem>>, vector<1x128xf32>
    %4 = vector.broadcast %3 : vector<1x128xf32> to vector<128x128xf32>
    %5 = arith.addf %2, %4 : vector<128x128xf32>
    %cst_5 = arith.constant 0.000000e+00 : f32
    %6 = vector.broadcast %cst_5 : f32 to vector<128x128xf32>
    %7 = arith.maximumf %5, %6 : vector<128x128xf32>
    %c0_6 = arith.constant 0 : index
    %c0_7 = arith.constant 0 : index
    %8 = vector.load %arg4[%c0_6, %c0_7] : memref<128x128xf32, #tpu.memory_space<vmem>>, vector<128x128xf32>
    tpu.vector_store %arg4[%c0_6, %c0_7], %7 {strides = array<i32>} : memref<128x128xf32, #tpu.memory_space<vmem>>, vector<128x128xf32>,
    return
  }
  func.func @transform_0(%arg0: i32) -> (i32, i32) {
    %c0_i32 = arith.constant 0 : i32
    %c0_i32_0 = arith.constant 0 : i32
    return %arg0, %c0_i32 : i32, i32
  }
  func.func @transform_1(%arg0: i32) -> (i32, i32) {
    %c0_i32 = arith.constant 0 : i32
    %c0_i32_0 = arith.constant 0 : i32
    %c0_i32_1 = arith.constant 0 : i32
    return %c0_i32, %c0_i32_0 : i32, i32
  }
  func.func @transform_2(%arg0: i32) -> (i32, i32) {
    %c0_i32 = arith.constant 0 : i32
    %c0_i32_0 = arith.constant 0 : i32
    %c0_i32_1 = arith.constant 0 : i32
    return %c0_i32, %c0_i32_0 : i32, i32
  }
  func.func @transform_3(%arg0: i32) -> (i32, i32) {
    %c0_i32 = arith.constant 0 : i32
    %c0_i32_0 = arith.constant 0 : i32
    return %arg0, %c0_i32 : i32, i32
  }
}

module attributes {stable_mosaic.version = 11 : i64} {
  func.func @_mm_bias_relu_kernel(%arg0: i32, %arg1: memref<32x384xf32, #tpu.memory_space<vmem>>, %arg2: memref<384x256xf32, #tpu.memory_space<vmem>>, %arg3: memref<1x256xf32, #tpu.memory_space<vmem>>, %arg4: memref<32x256xf32, #tpu.memory_space<vmem>>) attributes {dimension_semantics = [#tpu.dimension_semantics<parallel>], iteration_bounds = array<i64: 1>, scalar_prefetch = 0 : i64, scratch_operands = 0 : i64, tpu.core_type = #tpu.core_type<tc>, window_params = [{transform_indices = @transform_0, window_bounds = array<i64: 32, 384>}, {pipeline_mode = #tpu.pipeline_mode<synchronous>, transform_indices = @transform_1, window_bounds = array<i64: 384, 256>}, {pipeline_mode = #tpu.pipeline_mode<synchronous>, transform_indices = @transform_2, window_bounds = array<i64: 1, 256>}, {transform_indices = @transform_3, window_bounds = array<i64: 32, 256>}]} {
    %c0 = arith.constant 0 : index
    %c0_0 = arith.constant 0 : index
    %0 = vector.load %arg1[%c0, %c0_0] : memref<32x384xf32, #tpu.memory_space<vmem>>, vector<32x384xf32>
    %c0_1 = arith.constant 0 : index
    %c0_2 = arith.constant 0 : index
    %1 = vector.load %arg2[%c0_1, %c0_2] : memref<384x256xf32, #tpu.memory_space<vmem>>, vector<384x256xf32>
    %cst = arith.constant dense<0.000000e+00> : vector<32x256xf32>
    %2 = tpu.matmul %0, %1, %cst {dimension_numbers = #tpu.dot_dimension_numbers<[1], [0], [0], [1], [0, 0, 1, 1], [], []>} : vector<32x384xf32>, vector<384x256xf32>, vector<32x256xf32> -> vector<32x256xf32>
    %c0_3 = arith.constant 0 : index
    %c0_4 = arith.constant 0 : index
    %3 = vector.load %arg3[%c0_3, %c0_4] : memref<1x256xf32, #tpu.memory_space<vmem>>, vector<1x256xf32>
    %4 = vector.broadcast %3 : vector<1x256xf32> to vector<32x256xf32>
    %5 = arith.addf %2, %4 : vector<32x256xf32>
    %cst_5 = arith.constant 0.000000e+00 : f32
    %6 = vector.broadcast %cst_5 : f32 to vector<32x256xf32>
    %7 = arith.maximumf %5, %6 : vector<32x256xf32>
    %c0_6 = arith.constant 0 : index
    %c0_7 = arith.constant 0 : index
    %8 = vector.load %arg4[%c0_6, %c0_7] : memref<32x256xf32, #tpu.memory_space<vmem>>, vector<32x256xf32>
    tpu.vector_store %arg4[%c0_6, %c0_7], %7 {strides = array<i32>} : memref<32x256xf32, #tpu.memory_space<vmem>>, vector<32x256xf32>,
    return
  }
  func.func @transform_0(%arg0: i32) -> (i32, i32) {
    %c0_i32 = arith.constant 0 : i32
    %c0_i32_0 = arith.constant 0 : i32
    return %arg0, %c0_i32 : i32, i32
  }
  func.func @transform_1(%arg0: i32) -> (i32, i32) {
    %c0_i32 = arith.constant 0 : i32
    %c0_i32_0 = arith.constant 0 : i32
    %c0_i32_1 = arith.constant 0 : i32
    return %c0_i32, %c0_i32_0 : i32, i32
  }
  func.func @transform_2(%arg0: i32) -> (i32, i32) {
    %c0_i32 = arith.constant 0 : i32
    %c0_i32_0 = arith.constant 0 : i32
    %c0_i32_1 = arith.constant 0 : i32
    return %c0_i32, %c0_i32_0 : i32, i32
  }
  func.func @transform_3(%arg0: i32) -> (i32, i32) {
    %c0_i32 = arith.constant 0 : i32
    %c0_i32_0 = arith.constant 0 : i32
    return %arg0, %c0_i32 : i32, i32
  }
}

module attributes {stable_mosaic.version = 11 : i64} {
  func.func @_mm_bias_relu_kernel(%arg0: i32, %arg1: memref<32x768xf32, #tpu.memory_space<vmem>>, %arg2: memref<768x256xf32, #tpu.memory_space<vmem>>, %arg3: memref<1x256xf32, #tpu.memory_space<vmem>>, %arg4: memref<32x256xf32, #tpu.memory_space<vmem>>) attributes {dimension_semantics = [#tpu.dimension_semantics<parallel>], iteration_bounds = array<i64: 1>, scalar_prefetch = 0 : i64, scratch_operands = 0 : i64, tpu.core_type = #tpu.core_type<tc>, window_params = [{transform_indices = @transform_0, window_bounds = array<i64: 32, 768>}, {pipeline_mode = #tpu.pipeline_mode<synchronous>, transform_indices = @transform_1, window_bounds = array<i64: 768, 256>}, {pipeline_mode = #tpu.pipeline_mode<synchronous>, transform_indices = @transform_2, window_bounds = array<i64: 1, 256>}, {transform_indices = @transform_3, window_bounds = array<i64: 32, 256>}]} {
    %c0 = arith.constant 0 : index
    %c0_0 = arith.constant 0 : index
    %0 = vector.load %arg1[%c0, %c0_0] : memref<32x768xf32, #tpu.memory_space<vmem>>, vector<32x768xf32>
    %c0_1 = arith.constant 0 : index
    %c0_2 = arith.constant 0 : index
    %1 = vector.load %arg2[%c0_1, %c0_2] : memref<768x256xf32, #tpu.memory_space<vmem>>, vector<768x256xf32>
    %cst = arith.constant dense<0.000000e+00> : vector<32x256xf32>
    %2 = tpu.matmul %0, %1, %cst {dimension_numbers = #tpu.dot_dimension_numbers<[1], [0], [0], [1], [0, 0, 1, 1], [], []>} : vector<32x768xf32>, vector<768x256xf32>, vector<32x256xf32> -> vector<32x256xf32>
    %c0_3 = arith.constant 0 : index
    %c0_4 = arith.constant 0 : index
    %3 = vector.load %arg3[%c0_3, %c0_4] : memref<1x256xf32, #tpu.memory_space<vmem>>, vector<1x256xf32>
    %4 = vector.broadcast %3 : vector<1x256xf32> to vector<32x256xf32>
    %5 = arith.addf %2, %4 : vector<32x256xf32>
    %cst_5 = arith.constant 0.000000e+00 : f32
    %6 = vector.broadcast %cst_5 : f32 to vector<32x256xf32>
    %7 = arith.maximumf %5, %6 : vector<32x256xf32>
    %c0_6 = arith.constant 0 : index
    %c0_7 = arith.constant 0 : index
    %8 = vector.load %arg4[%c0_6, %c0_7] : memref<32x256xf32, #tpu.memory_space<vmem>>, vector<32x256xf32>
    tpu.vector_store %arg4[%c0_6, %c0_7], %7 {strides = array<i32>} : memref<32x256xf32, #tpu.memory_space<vmem>>, vector<32x256xf32>,
    return
  }
  func.func @transform_0(%arg0: i32) -> (i32, i32) {
    %c0_i32 = arith.constant 0 : i32
    %c0_i32_0 = arith.constant 0 : i32
    return %arg0, %c0_i32 : i32, i32
  }
  func.func @transform_1(%arg0: i32) -> (i32, i32) {
    %c0_i32 = arith.constant 0 : i32
    %c0_i32_0 = arith.constant 0 : i32
    %c0_i32_1 = arith.constant 0 : i32
    return %c0_i32, %c0_i32_0 : i32, i32
  }
  func.func @transform_2(%arg0: i32) -> (i32, i32) {
    %c0_i32 = arith.constant 0 : i32
    %c0_i32_0 = arith.constant 0 : i32
    %c0_i32_1 = arith.constant 0 : i32
    return %c0_i32, %c0_i32_0 : i32, i32
  }
  func.func @transform_3(%arg0: i32) -> (i32, i32) {
    %c0_i32 = arith.constant 0 : i32
    %c0_i32_0 = arith.constant 0 : i32
    return %arg0, %c0_i32 : i32, i32
  }
}

module attributes {stable_mosaic.version = 11 : i64} {
  func.func @_mm_bias_relu_kernel(%arg0: i32, %arg1: memref<8x768xf32, #tpu.memory_space<vmem>>, %arg2: memref<768x512xf32, #tpu.memory_space<vmem>>, %arg3: memref<1x512xf32, #tpu.memory_space<vmem>>, %arg4: memref<8x512xf32, #tpu.memory_space<vmem>>) attributes {dimension_semantics = [#tpu.dimension_semantics<parallel>], iteration_bounds = array<i64: 1>, scalar_prefetch = 0 : i64, scratch_operands = 0 : i64, tpu.core_type = #tpu.core_type<tc>, window_params = [{transform_indices = @transform_0, window_bounds = array<i64: 8, 768>}, {pipeline_mode = #tpu.pipeline_mode<synchronous>, transform_indices = @transform_1, window_bounds = array<i64: 768, 512>}, {pipeline_mode = #tpu.pipeline_mode<synchronous>, transform_indices = @transform_2, window_bounds = array<i64: 1, 512>}, {transform_indices = @transform_3, window_bounds = array<i64: 8, 512>}]} {
    %c0 = arith.constant 0 : index
    %c0_0 = arith.constant 0 : index
    %0 = vector.load %arg1[%c0, %c0_0] : memref<8x768xf32, #tpu.memory_space<vmem>>, vector<8x768xf32>
    %c0_1 = arith.constant 0 : index
    %c0_2 = arith.constant 0 : index
    %1 = vector.load %arg2[%c0_1, %c0_2] : memref<768x512xf32, #tpu.memory_space<vmem>>, vector<768x512xf32>
    %cst = arith.constant dense<0.000000e+00> : vector<8x512xf32>
    %2 = tpu.matmul %0, %1, %cst {dimension_numbers = #tpu.dot_dimension_numbers<[1], [0], [0], [1], [0, 0, 1, 1], [], []>} : vector<8x768xf32>, vector<768x512xf32>, vector<8x512xf32> -> vector<8x512xf32>
    %c0_3 = arith.constant 0 : index
    %c0_4 = arith.constant 0 : index
    %3 = vector.load %arg3[%c0_3, %c0_4] : memref<1x512xf32, #tpu.memory_space<vmem>>, vector<1x512xf32>
    %4 = vector.broadcast %3 : vector<1x512xf32> to vector<8x512xf32>
    %5 = arith.addf %2, %4 : vector<8x512xf32>
    %cst_5 = arith.constant 0.000000e+00 : f32
    %6 = vector.broadcast %cst_5 : f32 to vector<8x512xf32>
    %7 = arith.maximumf %5, %6 : vector<8x512xf32>
    %c0_6 = arith.constant 0 : index
    %c0_7 = arith.constant 0 : index
    %8 = vector.load %arg4[%c0_6, %c0_7] : memref<8x512xf32, #tpu.memory_space<vmem>>, vector<8x512xf32>
    tpu.vector_store %arg4[%c0_6, %c0_7], %7 {strides = array<i32>} : memref<8x512xf32, #tpu.memory_space<vmem>>, vector<8x512xf32>,
    return
  }
  func.func @transform_0(%arg0: i32) -> (i32, i32) {
    %c0_i32 = arith.constant 0 : i32
    %c0_i32_0 = arith.constant 0 : i32
    return %arg0, %c0_i32 : i32, i32
  }
  func.func @transform_1(%arg0: i32) -> (i32, i32) {
    %c0_i32 = arith.constant 0 : i32
    %c0_i32_0 = arith.constant 0 : i32
    %c0_i32_1 = arith.constant 0 : i32
    return %c0_i32, %c0_i32_0 : i32, i32
  }
  func.func @transform_2(%arg0: i32) -> (i32, i32) {
    %c0_i32 = arith.constant 0 : i32
    %c0_i32_0 = arith.constant 0 : i32
    %c0_i32_1 = arith.constant 0 : i32
    return %c0_i32, %c0_i32_0 : i32, i32
  }
  func.func @transform_3(%arg0: i32) -> (i32, i32) {
    %c0_i32 = arith.constant 0 : i32
    %c0_i32_0 = arith.constant 0 : i32
    return %arg0, %c0_i32 : i32, i32
  }
}

module attributes {stable_mosaic.version = 11 : i64} {
  func.func @_mm_bias_relu_kernel(%arg0: i32, %arg1: memref<8x1536xf32, #tpu.memory_space<vmem>>, %arg2: memref<1536x512xf32, #tpu.memory_space<vmem>>, %arg3: memref<1x512xf32, #tpu.memory_space<vmem>>, %arg4: memref<8x512xf32, #tpu.memory_space<vmem>>) attributes {dimension_semantics = [#tpu.dimension_semantics<parallel>], iteration_bounds = array<i64: 1>, scalar_prefetch = 0 : i64, scratch_operands = 0 : i64, tpu.core_type = #tpu.core_type<tc>, window_params = [{transform_indices = @transform_0, window_bounds = array<i64: 8, 1536>}, {pipeline_mode = #tpu.pipeline_mode<synchronous>, transform_indices = @transform_1, window_bounds = array<i64: 1536, 512>}, {pipeline_mode = #tpu.pipeline_mode<synchronous>, transform_indices = @transform_2, window_bounds = array<i64: 1, 512>}, {transform_indices = @transform_3, window_bounds = array<i64: 8, 512>}]} {
    %c0 = arith.constant 0 : index
    %c0_0 = arith.constant 0 : index
    %0 = vector.load %arg1[%c0, %c0_0] : memref<8x1536xf32, #tpu.memory_space<vmem>>, vector<8x1536xf32>
    %c0_1 = arith.constant 0 : index
    %c0_2 = arith.constant 0 : index
    %1 = vector.load %arg2[%c0_1, %c0_2] : memref<1536x512xf32, #tpu.memory_space<vmem>>, vector<1536x512xf32>
    %cst = arith.constant dense<0.000000e+00> : vector<8x512xf32>
    %2 = tpu.matmul %0, %1, %cst {dimension_numbers = #tpu.dot_dimension_numbers<[1], [0], [0], [1], [0, 0, 1, 1], [], []>} : vector<8x1536xf32>, vector<1536x512xf32>, vector<8x512xf32> -> vector<8x512xf32>
    %c0_3 = arith.constant 0 : index
    %c0_4 = arith.constant 0 : index
    %3 = vector.load %arg3[%c0_3, %c0_4] : memref<1x512xf32, #tpu.memory_space<vmem>>, vector<1x512xf32>
    %4 = vector.broadcast %3 : vector<1x512xf32> to vector<8x512xf32>
    %5 = arith.addf %2, %4 : vector<8x512xf32>
    %cst_5 = arith.constant 0.000000e+00 : f32
    %6 = vector.broadcast %cst_5 : f32 to vector<8x512xf32>
    %7 = arith.maximumf %5, %6 : vector<8x512xf32>
    %c0_6 = arith.constant 0 : index
    %c0_7 = arith.constant 0 : index
    %8 = vector.load %arg4[%c0_6, %c0_7] : memref<8x512xf32, #tpu.memory_space<vmem>>, vector<8x512xf32>
    tpu.vector_store %arg4[%c0_6, %c0_7], %7 {strides = array<i32>} : memref<8x512xf32, #tpu.memory_space<vmem>>, vector<8x512xf32>,
    return
  }
  func.func @transform_0(%arg0: i32) -> (i32, i32) {
    %c0_i32 = arith.constant 0 : i32
    %c0_i32_0 = arith.constant 0 : i32
    return %arg0, %c0_i32 : i32, i32
  }
  func.func @transform_1(%arg0: i32) -> (i32, i32) {
    %c0_i32 = arith.constant 0 : i32
    %c0_i32_0 = arith.constant 0 : i32
    %c0_i32_1 = arith.constant 0 : i32
    return %c0_i32, %c0_i32_0 : i32, i32
  }
  func.func @transform_2(%arg0: i32) -> (i32, i32) {
    %c0_i32 = arith.constant 0 : i32
    %c0_i32_0 = arith.constant 0 : i32
    %c0_i32_1 = arith.constant 0 : i32
    return %c0_i32, %c0_i32_0 : i32, i32
  }
  func.func @transform_3(%arg0: i32) -> (i32, i32) {
    %c0_i32 = arith.constant 0 : i32
    %c0_i32_0 = arith.constant 0 : i32
    return %arg0, %c0_i32 : i32, i32
  }
}

module attributes {stable_mosaic.version = 11 : i64} {
  func.func @_mm_bias_relu_kernel(%arg0: i32, %arg1: memref<8x512xf32, #tpu.memory_space<vmem>>, %arg2: memref<512x128xf32, #tpu.memory_space<vmem>>, %arg3: memref<1x128xf32, #tpu.memory_space<vmem>>, %arg4: memref<8x128xf32, #tpu.memory_space<vmem>>) attributes {dimension_semantics = [#tpu.dimension_semantics<parallel>], iteration_bounds = array<i64: 1>, scalar_prefetch = 0 : i64, scratch_operands = 0 : i64, tpu.core_type = #tpu.core_type<tc>, window_params = [{transform_indices = @transform_0, window_bounds = array<i64: 8, 512>}, {pipeline_mode = #tpu.pipeline_mode<synchronous>, transform_indices = @transform_1, window_bounds = array<i64: 512, 128>}, {pipeline_mode = #tpu.pipeline_mode<synchronous>, transform_indices = @transform_2, window_bounds = array<i64: 1, 128>}, {transform_indices = @transform_3, window_bounds = array<i64: 8, 128>}]} {
    %c0 = arith.constant 0 : index
    %c0_0 = arith.constant 0 : index
    %0 = vector.load %arg1[%c0, %c0_0] : memref<8x512xf32, #tpu.memory_space<vmem>>, vector<8x512xf32>
    %c0_1 = arith.constant 0 : index
    %c0_2 = arith.constant 0 : index
    %1 = vector.load %arg2[%c0_1, %c0_2] : memref<512x128xf32, #tpu.memory_space<vmem>>, vector<512x128xf32>
    %cst = arith.constant dense<0.000000e+00> : vector<8x128xf32>
    %2 = tpu.matmul %0, %1, %cst {dimension_numbers = #tpu.dot_dimension_numbers<[1], [0], [0], [1], [0, 0, 1, 1], [], []>} : vector<8x512xf32>, vector<512x128xf32>, vector<8x128xf32> -> vector<8x128xf32>
    %c0_3 = arith.constant 0 : index
    %c0_4 = arith.constant 0 : index
    %3 = vector.load %arg3[%c0_3, %c0_4] : memref<1x128xf32, #tpu.memory_space<vmem>>, vector<1x128xf32>
    %4 = vector.broadcast %3 : vector<1x128xf32> to vector<8x128xf32>
    %5 = arith.addf %2, %4 : vector<8x128xf32>
    %cst_5 = arith.constant 0.000000e+00 : f32
    %6 = vector.broadcast %cst_5 : f32 to vector<8x128xf32>
    %7 = arith.maximumf %5, %6 : vector<8x128xf32>
    %c0_6 = arith.constant 0 : index
    %c0_7 = arith.constant 0 : index
    %8 = vector.load %arg4[%c0_6, %c0_7] : memref<8x128xf32, #tpu.memory_space<vmem>>, vector<8x128xf32>
    tpu.vector_store %arg4[%c0_6, %c0_7], %7 {strides = array<i32>} : memref<8x128xf32, #tpu.memory_space<vmem>>, vector<8x128xf32>,
    return
  }
  func.func @transform_0(%arg0: i32) -> (i32, i32) {
    %c0_i32 = arith.constant 0 : i32
    %c0_i32_0 = arith.constant 0 : i32
    return %arg0, %c0_i32 : i32, i32
  }
  func.func @transform_1(%arg0: i32) -> (i32, i32) {
    %c0_i32 = arith.constant 0 : i32
    %c0_i32_0 = arith.constant 0 : i32
    %c0_i32_1 = arith.constant 0 : i32
    return %c0_i32, %c0_i32_0 : i32, i32
  }
  func.func @transform_2(%arg0: i32) -> (i32, i32) {
    %c0_i32 = arith.constant 0 : i32
    %c0_i32_0 = arith.constant 0 : i32
    %c0_i32_1 = arith.constant 0 : i32
    return %c0_i32, %c0_i32_0 : i32, i32
  }
  func.func @transform_3(%arg0: i32) -> (i32, i32) {
    %c0_i32 = arith.constant 0 : i32
    %c0_i32_0 = arith.constant 0 : i32
    return %arg0, %c0_i32 : i32, i32
  }
}

</mosaic_0001>

<bundles_post_ra>
// kernel: audio_cnn1d_extractor_forward.10
= control target key start
LH: loop header
LB: loop body
LE: loop exit
PB: predicated region body
PF: predicated region fallthrough
CT: control target
= control target key end

     0   :  { %s844_s12 = smov 0   ;;  %s1114_s0 = inlined_call_operand.vmem [shape: f32[2304,160], index: 0, kind: input, shape index: {}]   ;;  %s1115_s1 = inlined_call_operand.vmem [shape: f32[160,128], index: 1, kind: input, shape index: {}]   ;;  %s1116_s2 = inlined_call_operand.vmem [shape: f32[1,128], index: 2, kind: input, shape index: {}]   ;;  %s1117_s3 = inlined_call_operand.vmem [shape: f32[2304,128], index: 3, kind: output, shape index: {}]  }
   0x1 LB: > { %s710_s13 = sadd.s32 4294967295, %s821_s12   ;;  %p714_p0 = scmp.ge.s32.totalorder %s821_s12, 1  ;;  %s821_s12 = sphi %s844_s12, %s13_s12  }
   0x2   : > { %p139_p1 = scmp.lt.s32.totalorder %s821_s12, 10 }
   0x4   : > { %p140_p2 = pnand %p714_p0, %p139_p1 }
   0x5   : > { %v241_v0 = vld [vmem:[%s1115_s1] sm:$0xff] (!%p140_p2)  ;;  %v242_v1 = vld [vmem:[%s1115_s1 + $0x8] sm:$0xff] (!%p140_p2)  ;;  %v243_v2 = vld [vmem:[%s1115_s1 + $0x10] sm:$0xff] (!%p140_p2)  ;;  %s715_s20 = sshll.u32 (!%p140_p2), %s710_s13, 5  ;;  %v823_v3 = vmov (!%p140_p2), 0.0|0.0   ;;  %vm268_vm0 = vcmask (!%p140_p2), 261120  }
   0x6   : > { %143 = sbr.rel (%p140_p2) target bundleno = 324 (0x144), region = 32  ;;  %756 = vmatprep.subr.bf16.mxu0 (!%p140_p2), %v823_v3  ;;  %786 = vmatprep.subr.bf16.mxu1 (!%p140_p2), %v823_v3  ;;  %v757_v4 = vpack.c.bf16 (!%p140_p2), %v242_v1, %v241_v0  ;;  %v244_v5 = vld [vmem:[%s1115_s1 + $0x18] sm:$0xff] (!%p140_p2)  ;;  %p165_p3 = scmp.lt.s32.totalorder (!%p140_p2), %s715_s20, 287  ;;  %v245_v7 = vld [vmem:[%s1115_s1 + $0x20] sm:$0xff] (!%p140_p2)  ;;  %v246_v8 = vld [vmem:[%s1115_s1 + $0x28] sm:$0xff] (!%p140_p2) }
   0x7   : > { %v760_v6 = vpack.c.bf16 (!%p140_p2), %v244_v5, %v243_v2  ;;  %v763_v9 = vpack.c.bf16 (!%p140_p2), %v246_v8, %v245_v7  ;;  %v247_v12 = vld [vmem:[%s1115_s1 + $0x30] sm:$0xff] (!%p140_p2)  ;;  %v248_v13 = vld [vmem:[%s1115_s1 + $0x38] sm:$0xff] (!%p140_p2)  ;;  %v249_v15 = vld [vmem:[%s1115_s1 + $0x40] sm:$0xff] (!%p140_p2) }
   0x8   : > { %758 = vmatpush1.bf16.msra.mxu0 (!%p140_p2), %v757_v4  ;;  %796 = vmatpush1.bf16.msra.mxu1 (!%p140_p2), %v757_v4  ;;  %v766_v14 = vpack.c.bf16 (!%p140_p2), %v248_v13, %v247_v12  ;;  %v250_v16 = vld [vmem:[%s1115_s1 + $0x48] sm:$0xff] (!%p140_p2)  ;;  %v251_v18 = vld [vmem:[%s1115_s1 + $0x50] sm:$0xff] (!%p140_p2)  ;;  %v252_v19 = vld [vmem:[%s1115_s1 + $0x58] sm:$0xff] (!%p140_p2) }
   0x9   : > { %759 = vmatprep.subr.bf16.mxu0 (!%p140_p2), %v823_v3  ;;  %787 = vmatprep.subr.bf16.mxu1 (!%p140_p2), %v823_v3  ;;  %v769_v17 = vpack.c.bf16 (!%p140_p2), %v250_v16, %v249_v15  ;;  %v772_v20 = vpack.c.bf16 (!%p140_p2), %v252_v19, %v251_v18  ;;  %v253_v21 = vld [vmem:[%s1115_s1 + $0x60] sm:$0xff] (!%p140_p2)  ;;  %v254_v22 = vld [vmem:[%s1115_s1 + $0x68] sm:$0xff] (!%p140_p2)  ;;  %v255_v24 = vld [vmem:[%s1115_s1 + $0x70] sm:$0xff] (!%p140_p2) }
   0xa   : > { %v775_v23 = vpack.c.bf16 (!%p140_p2), %v254_v22, %v253_v21  ;;  %v256_v25 = vld [vmem:[%s1115_s1 + $0x78] sm:$0xff] (!%p140_p2)  ;;  %v257_v27 = vld [vmem:[%s1115_s1 + $0x80] sm:$0xff] (!%p140_p2)  ;;  %v258_v28 = vld [vmem:[%s1115_s1 + $0x88] sm:$0xff] (!%p140_p2) }
   0xb   : > { %v778_v26 = vpack.c.bf16 (!%p140_p2), %v256_v25, %v255_v24  ;;  %v781_v29 = vpack.c.bf16 (!%p140_p2), %v258_v28, %v257_v27  ;;  %v259_v30 = vld [vmem:[%s1115_s1 + $0x90] sm:$0xff] (!%p140_p2)  ;;  %v260_v31 = vld [vmem:[%s1115_s1 + $0x98] sm:$0xff] (!%p140_p2) }
   0xc   : > { %761 = vmatpush1.bf16.msra.mxu0 (!%p140_p2), %v760_v6  ;;  %797 = vmatpush1.bf16.msra.mxu1 (!%p140_p2), %v760_v6  ;;  %v784_v32 = vpack.c.bf16 (!%p140_p2), %v260_v31, %v259_v30  ;;  %v1039_v31 = vld [vmem:[%s1116_s2] ss:$0 sm:$0xff] (!%p140_p2) }
   0xd   : > { %s1119_s20 = smov (!%p165_p3, %s715_s20), 287  ;;  %762 = vmatprep.subr.bf16.mxu0 %v823_v3  ;;  %788 = vmatprep.subr.bf16.mxu1 %v823_v3 }
   0xe   : > { %s755_s27 = sshll.u32 %s1119_s20, 4  ;;  %s719_s10 = sshll.u32 %s1119_s20, 3 }
   0xf   : > { %s880_s30 = scalar_lea.vmem %s1114_s0, %s755_s27 }
  0x10   : > { %v178_v10 = vld [vmem:[%s880_s30 + $0x8] sm:$0xff]  ;;  %764 = vmatpush1.bf16.msra.mxu0 %v763_v9  ;;  %798 = vmatpush1.bf16.msra.mxu1 %v763_v9  ;;  %v177_v33 = vld [vmem:[%s880_s30] sm:$0xff]  ;;  %v180_v35 = vld [vmem:[%s880_s30 + $0x18] sm:$0xff] }
  0x11   : > { %v210_v11 = vld [vmem:[%s880_s30 + $0x108] sm:$0xff]  ;;  %721 = vmatprep.mubr.msk.f32.mxu0 %vm268_vm0, %v178_v10  ;;  %765 = vmatprep.subr.bf16.mxu0 %v823_v3  ;;  %v209_v34 = vld [vmem:[%s880_s30 + $0x100] sm:$0xff]  ;;  %v212_v36 = vld [vmem:[%s880_s30 + $0x118] sm:$0xff] }
  0x12   : > { %737 = vmatprep.mubr.msk.f32.mxu1 %vm268_vm0, %v210_v11  ;;  %789 = vmatprep.subr.bf16.mxu1 %v823_v3  ;;  %v179_v37 = vld [vmem:[%s880_s30 + $0x10] sm:$0xff]  ;;  %v182_v39 = vld [vmem:[%s880_s30 + $0x28] sm:$0xff]  ;;  %v181_v41 = vld [vmem:[%s880_s30 + $0x20] sm:$0xff] }
  0x13   : > { %v211_v38 = vld [vmem:[%s880_s30 + $0x110] sm:$0xff]  ;;  %v214_v40 = vld [vmem:[%s880_s30 + $0x128] sm:$0xff]  ;;  %v213_v42 = vld [vmem:[%s880_s30 + $0x120] sm:$0xff] }
  0x14   : > { %767 = vmatpush1.bf16.msra.mxu0 %v766_v14  ;;  %799 = vmatpush1.bf16.msra.mxu1 %v766_v14  ;;  %v184_v43 = vld [vmem:[%s880_s30 + $0x38] sm:$0xff]  ;;  %v183_v45 = vld [vmem:[%s880_s30 + $0x30] sm:$0xff]  ;;  %v186_v47 = vld [vmem:[%s880_s30 + $0x48] sm:$0xff] }
  0x15   : > { %768 = vmatprep.subr.bf16.mxu0 %v823_v3  ;;  %790 = vmatprep.subr.bf16.mxu1 %v823_v3  ;;  %v216_v44 = vld [vmem:[%s880_s30 + $0x138] sm:$0xff]  ;;  %v215_v46 = vld [vmem:[%s880_s30 + $0x130] sm:$0xff]  ;;  %v218_v48 = vld [vmem:[%s880_s30 + $0x148] sm:$0xff] }
  0x16   : > { %v185_v49 = vld [vmem:[%s880_s30 + $0x40] sm:$0xff]  ;;  %v188_v51 = vld [vmem:[%s880_s30 + $0x58] sm:$0xff]  ;;  %v187_v53 = vld [vmem:[%s880_s30 + $0x50] sm:$0xff] }
  0x17   : > { %v217_v50 = vld [vmem:[%s880_s30 + $0x140] sm:$0xff]  ;;  %v220_v52 = vld [vmem:[%s880_s30 + $0x158] sm:$0xff]  ;;  %v219_v54 = vld [vmem:[%s880_s30 + $0x150] sm:$0xff] }
  0x18   : > { %770 = vmatpush1.bf16.msra.mxu0 %v769_v17  ;;  %800 = vmatpush1.bf16.msra.mxu1 %v769_v17  ;;  %v190_v55 = vld [vmem:[%s880_s30 + $0x68] sm:$0xff]  ;;  %v189_v57 = vld [vmem:[%s880_s30 + $0x60] sm:$0xff]  ;;  %v192_v59 = vld [vmem:[%s880_s30 + $0x78] sm:$0xff] }
  0x19   : > { %771 = vmatprep.subr.bf16.mxu0 %v823_v3  ;;  %791 = vmatprep.subr.bf16.mxu1 %v823_v3  ;;  %v222_v56 = vld [vmem:[%s880_s30 + $0x168] sm:$0xff]  ;;  %v221_v58 = vld [vmem:[%s880_s30 + $0x160] sm:$0xff]  ;;  %v224_v60 = vld [vmem:[%s880_s30 + $0x178] sm:$0xff] }
  0x1a   : > { %v191_v61 = vld [vmem:[%s880_s30 + $0x70] sm:$0xff]  ;;  %v194_v63 = vld [vmem:[%s880_s30 + $0x88] sm:$0xff]  ;;  %v193_v1 = vld [vmem:[%s880_s30 + $0x80] sm:$0xff] }
  0x1b   : > { %v223_v62 = vld [vmem:[%s880_s30 + $0x170] sm:$0xff]  ;;  %v226_v0 = vld [vmem:[%s880_s30 + $0x188] sm:$0xff]  ;;  %v225_v2 = vld [vmem:[%s880_s30 + $0x180] sm:$0xff] }
  0x1c   : > { %773 = vmatpush1.bf16.msra.mxu0 %v772_v20  ;;  %801 = vmatpush1.bf16.msra.mxu1 %v772_v20  ;;  %v228_v4 = vld [vmem:[%s880_s30 + $0x198] sm:$0xff]  ;;  %v195_v5 = vld [vmem:[%s880_s30 + $0x90] sm:$0xff]  ;;  %v198_v7 = vld [vmem:[%s880_s30 + $0xa8] sm:$0xff] }
  0x1d   : > { %774 = vmatprep.subr.bf16.mxu0 %v823_v3  ;;  %792 = vmatprep.subr.bf16.mxu1 %v823_v3  ;;  %v227_v6 = vld [vmem:[%s880_s30 + $0x190] sm:$0xff]  ;;  %v230_v8 = vld [vmem:[%s880_s30 + $0x1a8] sm:$0xff]  ;;  %v197_v9 = vld [vmem:[%s880_s30 + $0xa0] sm:$0xff] }
  0x1e   : > { %v229_v10 = vld [vmem:[%s880_s30 + $0x1a0] sm:$0xff]  ;;  %v200_v11 = vld [vmem:[%s880_s30 + $0xb8] sm:$0xff]  ;;  %v199_v13 = vld [vmem:[%s880_s30 + $0xb0] sm:$0xff] }
  0x1f   : > { %v232_v12 = vld [vmem:[%s880_s30 + $0x1b8] sm:$0xff]  ;;  %v231_v14 = vld [vmem:[%s880_s30 + $0x1b0] sm:$0xff]  ;;  %v202_v15 = vld [vmem:[%s880_s30 + $0xc8] sm:$0xff] }
  0x20   : > { %776 = vmatpush1.bf16.msra.mxu0 %v775_v23  ;;  %802 = vmatpush1.bf16.msra.mxu1 %v775_v23  ;;  %v234_v16 = vld [vmem:[%s880_s30 + $0x1c8] sm:$0xff]  ;;  %v201_v17 = vld [vmem:[%s880_s30 + $0xc0] sm:$0xff]  ;;  %v204_v19 = vld [vmem:[%s880_s30 + $0xd8] sm:$0xff] }
  0x21   : > { %777 = vmatprep.subr.bf16.mxu0 %v823_v3  ;;  %793 = vmatprep.subr.bf16.mxu1 %v823_v3  ;;  %v233_v18 = vld [vmem:[%s880_s30 + $0x1c0] sm:$0xff]  ;;  %v236_v20 = vld [vmem:[%s880_s30 + $0x1d8] sm:$0xff]  ;;  %v203_v21 = vld [vmem:[%s880_s30 + $0xd0] sm:$0xff] }
  0x22   : > { %v235_v22 = vld [vmem:[%s880_s30 + $0x1d0] sm:$0xff]  ;;  %v206_v23 = vld [vmem:[%s880_s30 + $0xe8] sm:$0xff]  ;;  %v205_v25 = vld [vmem:[%s880_s30 + $0xe0] sm:$0xff] }
  0x23   : > { %v238_v24 = vld [vmem:[%s880_s30 + $0x1e8] sm:$0xff]  ;;  %v208_v27 = vld [vmem:[%s880_s30 + $0xf8] sm:$0xff]  ;;  %v239_v30 = vld [vmem:[%s880_s30 + $0x1f0] sm:$0xff] }
  0x24   : > { %779 = vmatpush1.bf16.msra.mxu0 %v778_v26  ;;  %803 = vmatpush1.bf16.msra.mxu1 %v778_v26  ;;  %v237_v26 = vld [vmem:[%s880_s30 + $0x1e0] sm:$0xff]  ;;  %v240_v28 = vld [vmem:[%s880_s30 + $0x1f8] sm:$0xff] }
  0x25   : > { %780 = vmatprep.subr.bf16.mxu0 %v823_v3  ;;  %794 = vmatprep.subr.bf16.mxu1 %v823_v3 }
  0x28   : > { %782 = vmatpush1.bf16.msra.mxu0 %v781_v29  ;;  %804 = vmatpush1.bf16.msra.mxu1 %v781_v29  ;;  %v207_v29 = vld [vmem:[%s880_s30 + $0xf0] sm:$0xff] }
  0x29   : > { %783 = vmatprep.subr.bf16.mxu0 %v823_v3  ;;  %795 = vmatprep.subr.bf16.mxu1 %v823_v3  ;;  %v196_v3 = vld [vmem:[%s880_s30 + $0x98] sm:$0xff]  ;;  %s1047_s30 = scalar_lea.vmem %s1117_s3, %s719_s10 }
  0x2c   : > { %785 = vmatpush1.bf16.msra.mxu0 %v784_v32  ;;  %805 = vmatpush1.bf16.msra.mxu1 %v784_v32 }
  0x2f   : > { %430 = vmatmul.mubr.f32.vlgmr.msra.gmra.mrb[0].mxu0 %v177_v33  ;;  %510 = vmatmul.mubr.f32.vlgmr.msra.gmra.mrb[0].mxu1 %v209_v34 }
  0x30   : > { %722 = vmatprep.mubr.msk.f32.mxu0 %vm268_vm0, %v180_v35  ;;  %738 = vmatprep.mubr.msk.f32.mxu1 %vm268_vm0, %v212_v36 }
  0x33   : > { %435 = vmatmul.mubr.f32.gmra.mrb[2].mxu0 %v179_v37  ;;  %515 = vmatmul.mubr.f32.gmra.mrb[2].mxu1 %v211_v38 }
  0x34   : > { %723 = vmatprep.mubr.msk.f32.mxu0 %vm268_vm0, %v182_v39  ;;  %739 = vmatprep.mubr.msk.f32.mxu1 %vm268_vm0, %v214_v40 }
  0x37   : > { %440 = vmatmul.mubr.f32.gmra.mrb[4].mxu0 %v181_v41  ;;  %520 = vmatmul.mubr.f32.gmra.mrb[4].mxu1 %v213_v42 }
  0x38   : > { %724 = vmatprep.mubr.msk.f32.mxu0 %vm268_vm0, %v184_v43  ;;  %740 = vmatprep.mubr.msk.f32.mxu1 %vm268_vm0, %v216_v44 }
  0x3b   : > { %445 = vmatmul.mubr.f32.gmra.mrb[6].mxu0 %v183_v45  ;;  %525 = vmatmul.mubr.f32.gmra.mrb[6].mxu1 %v215_v46 }
  0x3c   : > { %725 = vmatprep.mubr.msk.f32.mxu0 %vm268_vm0, %v186_v47  ;;  %741 = vmatprep.mubr.msk.f32.mxu1 %vm268_vm0, %v218_v48 }
  0x3f   : > { %450 = vmatmul.mubr.f32.gmra.mrb[8].mxu0 %v185_v49  ;;  %530 = vmatmul.mubr.f32.gmra.mrb[8].mxu1 %v217_v50 }
  0x40   : > { %726 = vmatprep.mubr.msk.f32.mxu0 %vm268_vm0, %v188_v51  ;;  %742 = vmatprep.mubr.msk.f32.mxu1 %vm268_vm0, %v220_v52 }
  0x43   : > { %455 = vmatmul.mubr.f32.gmra.mrb[10].mxu0 %v187_v53  ;;  %535 = vmatmul.mubr.f32.gmra.mrb[10].mxu1 %v219_v54 }
  0x44   : > { %727 = vmatprep.mubr.msk.f32.mxu0 %vm268_vm0, %v190_v55  ;;  %743 = vmatprep.mubr.msk.f32.mxu1 %vm268_vm0, %v222_v56 }
  0x47   : > { %460 = vmatmul.mubr.f32.gmra.mrb[12].mxu0 %v189_v57  ;;  %540 = vmatmul.mubr.f32.gmra.mrb[12].mxu1 %v221_v58 }
  0x48   : > { %728 = vmatprep.mubr.msk.f32.mxu0 %vm268_vm0, %v192_v59  ;;  %744 = vmatprep.mubr.msk.f32.mxu1 %vm268_vm0, %v224_v60 }
  0x4b   : > { %465 = vmatmul.mubr.f32.gmra.mrb[14].mxu0 %v191_v61  ;;  %545 = vmatmul.mubr.f32.gmra.mrb[14].mxu1 %v223_v62 }
  0x4c   : > { %729 = vmatprep.mubr.msk.f32.mxu0 %vm268_vm0, %v194_v63  ;;  %745 = vmatprep.mubr.msk.f32.mxu1 %vm268_vm0, %v226_v0 }
  0x4f   : > { %470 = vmatmul.mubr.f32.gmra.mrb[16].mxu0 %v193_v1  ;;  %550 = vmatmul.mubr.f32.gmra.mrb[16].mxu1 %v225_v2 }
  0x50   : > { %730 = vmatprep.mubr.msk.f32.mxu0 %vm268_vm0, %v196_v3  ;;  %746 = vmatprep.mubr.msk.f32.mxu1 %vm268_vm0, %v228_v4 }
  0x53   : > { %475 = vmatmul.mubr.f32.gmra.mrb[18].mxu0 %v195_v5  ;;  %555 = vmatmul.mubr.f32.gmra.mrb[18].mxu1 %v227_v6 }
  0x54   : > { %731 = vmatprep.mubr.msk.f32.mxu0 %vm268_vm0, %v198_v7  ;;  %747 = vmatprep.mubr.msk.f32.mxu1 %vm268_vm0, %v230_v8 }
  0x57   : > { %480 = vmatmul.mubr.f32.gmra.mrb[20].mxu0 %v197_v9  ;;  %560 = vmatmul.mubr.f32.gmra.mrb[20].mxu1 %v229_v10 }
  0x58   : > { %732 = vmatprep.mubr.msk.f32.mxu0 %vm268_vm0, %v200_v11  ;;  %748 = vmatprep.mubr.msk.f32.mxu1 %vm268_vm0, %v232_v12 }
  0x5b   : > { %485 = vmatmul.mubr.f32.gmra.mrb[22].mxu0 %v199_v13  ;;  %565 = vmatmul.mubr.f32.gmra.mrb[22].mxu1 %v231_v14 }
  0x5c   : > { %733 = vmatprep.mubr.msk.f32.mxu0 %vm268_vm0, %v202_v15  ;;  %749 = vmatprep.mubr.msk.f32.mxu1 %vm268_vm0, %v234_v16 }
  0x5f   : > { %490 = vmatmul.mubr.f32.gmra.mrb[24].mxu0 %v201_v17  ;;  %570 = vmatmul.mubr.f32.gmra.mrb[24].mxu1 %v233_v18 }
  0x60   : > { %734 = vmatprep.mubr.msk.f32.mxu0 %vm268_vm0, %v204_v19  ;;  %750 = vmatprep.mubr.msk.f32.mxu1 %vm268_vm0, %v236_v20 }
  0x63   : > { %495 = vmatmul.mubr.f32.gmra.mrb[26].mxu0 %v203_v21  ;;  %575 = vmatmul.mubr.f32.gmra.mrb[26].mxu1 %v235_v22 }
  0x64   : > { %735 = vmatprep.mubr.msk.f32.mxu0 %vm268_vm0, %v206_v23  ;;  %751 = vmatprep.mubr.msk.f32.mxu1 %vm268_vm0, %v238_v24 }
  0x67   : > { %500 = vmatmul.mubr.f32.gmra.mrb[28].mxu0 %v205_v25  ;;  %580 = vmatmul.mubr.f32.gmra.mrb[28].mxu1 %v237_v26 }
  0x68   : > { %736 = vmatprep.mubr.msk.f32.mxu0 %vm268_vm0, %v208_v27  ;;  %752 = vmatprep.mubr.msk.f32.mxu1 %vm268_vm0, %v240_v28 }
  0x6b   : > { %505 = vmatmul.mubr.f32.gmra.mrb[30].mxu0 %v207_v29  ;;  %585 = vmatmul.mubr.f32.gmra.mrb[30].mxu1 %v239_v30 }
 0x102   : > { %v431_v32 = vpop.f32.mrb[0].mxu0  ;;  %v511_v33 = vpop.f32.mrb[0].mxu1 }
 0x103   : > { %v432_v34 = vadd.f32 %v1039_v31, %v431_v32  ;;  %v512_v35 = vadd.f32 %v1039_v31, %v511_v33  ;;  %v433_v36 = vpop.f32.mrb[1].mxu0  ;;  %v513_v37 = vpop.f32.mrb[1].mxu1 }
 0x105   : > { %v590_v38 = vmax.f32 %v432_v34, 0.0  ;;  %v606_v39 = vmax.f32 %v512_v35, 0.0 }
 0x106   : > { %v436_v40 = vpop.f32.mrb[2].mxu0  ;;  %v516_v41 = vpop.f32.mrb[2].mxu1 }
 0x107   : > { %622 = vst [vmem:[%s1047_s30] sm:$0xff] %v590_v38  ;;  %638 = vst [vmem:[%s1047_s30 + $0x80] sm:$0xff] %v606_v39  ;;  %v437_v42 = vadd.f32 %v1039_v31, %v436_v40  ;;  %v517_v43 = vadd.f32 %v1039_v31, %v516_v41  ;;  %v438_v44 = vpop.f32.mrb[3].mxu0  ;;  %v518_v45 = vpop.f32.mrb[3].mxu1 }
 0x109   : > { %v591_v46 = vmax.f32 %v437_v42, 0.0  ;;  %v607_v47 = vmax.f32 %v517_v43, 0.0 }
 0x10a   : > { %v441_v48 = vpop.f32.mrb[4].mxu0  ;;  %v521_v49 = vpop.f32.mrb[4].mxu1 }
 0x10b   : > { %623 = vst [vmem:[%s1047_s30 + $0x8] sm:$0xff] %v591_v46  ;;  %639 = vst [vmem:[%s1047_s30 + $0x88] sm:$0xff] %v607_v47  ;;  %v442_v50 = vadd.f32 %v1039_v31, %v441_v48  ;;  %v522_v51 = vadd.f32 %v1039_v31, %v521_v49  ;;  %v443_v52 = vpop.f32.mrb[5].mxu0  ;;  %v523_v53 = vpop.f32.mrb[5].mxu1 }
 0x10d   : > { %v592_v54 = vmax.f32 %v442_v50, 0.0  ;;  %v608_v55 = vmax.f32 %v522_v51, 0.0 }
 0x10e   : > { %v446_v56 = vpop.f32.mrb[6].mxu0  ;;  %v526_v57 = vpop.f32.mrb[6].mxu1 }
 0x10f   : > { %624 = vst [vmem:[%s1047_s30 + $0x10] sm:$0xff] %v592_v54  ;;  %640 = vst [vmem:[%s1047_s30 + $0x90] sm:$0xff] %v608_v55  ;;  %v447_v58 = vadd.f32 %v1039_v31, %v446_v56  ;;  %v527_v59 = vadd.f32 %v1039_v31, %v526_v57  ;;  %v448_v60 = vpop.f32.mrb[7].mxu0  ;;  %v528_v61 = vpop.f32.mrb[7].mxu1 }
 0x111   : > { %v593_v62 = vmax.f32 %v447_v58, 0.0  ;;  %v609_v63 = vmax.f32 %v527_v59, 0.0 }
 0x112   : > { %v451_v0 = vpop.f32.mrb[8].mxu0  ;;  %v531_v1 = vpop.f32.mrb[8].mxu1 }
 0x113   : > { %625 = vst [vmem:[%s1047_s30 + $0x18] sm:$0xff] %v593_v62  ;;  %641 = vst [vmem:[%s1047_s30 + $0x98] sm:$0xff] %v609_v63  ;;  %v452_v2 = vadd.f32 %v1039_v31, %v451_v0  ;;  %v532_v3 = vadd.f32 %v1039_v31, %v531_v1  ;;  %v453_v4 = vpop.f32.mrb[9].mxu0  ;;  %v533_v5 = vpop.f32.mrb[9].mxu1 }
 0x115   : > { %v594_v6 = vmax.f32 %v452_v2, 0.0  ;;  %v610_v7 = vmax.f32 %v532_v3, 0.0 }
 0x116   : > { %v456_v8 = vpop.f32.mrb[10].mxu0  ;;  %v536_v9 = vpop.f32.mrb[10].mxu1 }
 0x117   : > { %626 = vst [vmem:[%s1047_s30 + $0x20] sm:$0xff] %v594_v6  ;;  %642 = vst [vmem:[%s1047_s30 + $0xa0] sm:$0xff] %v610_v7  ;;  %v457_v10 = vadd.f32 %v1039_v31, %v456_v8  ;;  %v537_v11 = vadd.f32 %v1039_v31, %v536_v9  ;;  %v458_v12 = vpop.f32.mrb[11].mxu0  ;;  %v538_v13 = vpop.f32.mrb[11].mxu1 }
 0x119   : > { %v595_v14 = vmax.f32 %v457_v10, 0.0  ;;  %v611_v15 = vmax.f32 %v537_v11, 0.0 }
 0x11a   : > { %v461_v16 = vpop.f32.mrb[12].mxu0  ;;  %v541_v17 = vpop.f32.mrb[12].mxu1 }
 0x11b   : > { %627 = vst [vmem:[%s1047_s30 + $0x28] sm:$0xff] %v595_v14  ;;  %643 = vst [vmem:[%s1047_s30 + $0xa8] sm:$0xff] %v611_v15  ;;  %v462_v18 = vadd.f32 %v1039_v31, %v461_v16  ;;  %v542_v19 = vadd.f32 %v1039_v31, %v541_v17  ;;  %v463_v20 = vpop.f32.mrb[13].mxu0  ;;  %v543_v21 = vpop.f32.mrb[13].mxu1 }
 0x11d   : > { %v596_v22 = vmax.f32 %v462_v18, 0.0  ;;  %v612_v23 = vmax.f32 %v542_v19, 0.0 }
 0x11e   : > { %v466_v24 = vpop.f32.mrb[14].mxu0  ;;  %v546_v25 = vpop.f32.mrb[14].mxu1 }
 0x11f   : > { %628 = vst [vmem:[%s1047_s30 + $0x30] sm:$0xff] %v596_v22  ;;  %644 = vst [vmem:[%s1047_s30 + $0xb0] sm:$0xff] %v612_v23  ;;  %v467_v26 = vadd.f32 %v1039_v31, %v466_v24  ;;  %v547_v27 = vadd.f32 %v1039_v31, %v546_v25  ;;  %v468_v28 = vpop.f32.mrb[15].mxu0  ;;  %v548_v29 = vpop.f32.mrb[15].mxu1 }
 0x121   : > { %v597_v30 = vmax.f32 %v467_v26, 0.0  ;;  %v613_v32 = vmax.f32 %v547_v27, 0.0 }
 0x122   : > { %v471_v33 = vpop.f32.mrb[16].mxu0  ;;  %v551_v34 = vpop.f32.mrb[16].mxu1 }
 0x123   : > { %629 = vst [vmem:[%s1047_s30 + $0x38] sm:$0xff] %v597_v30  ;;  %645 = vst [vmem:[%s1047_s30 + $0xb8] sm:$0xff] %v613_v32  ;;  %v472_v35 = vadd.f32 %v1039_v31, %v471_v33  ;;  %v552_v36 = vadd.f32 %v1039_v31, %v551_v34  ;;  %v473_v37 = vpop.f32.mrb[17].mxu0  ;;  %v553_v38 = vpop.f32.mrb[17].mxu1 }
 0x125   : > { %v598_v39 = vmax.f32 %v472_v35, 0.0  ;;  %v614_v40 = vmax.f32 %v552_v36, 0.0 }
 0x126   : > { %v476_v41 = vpop.f32.mrb[18].mxu0  ;;  %v556_v42 = vpop.f32.mrb[18].mxu1 }
 0x127   : > { %630 = vst [vmem:[%s1047_s30 + $0x40] sm:$0xff] %v598_v39  ;;  %646 = vst [vmem:[%s1047_s30 + $0xc0] sm:$0xff] %v614_v40  ;;  %v477_v43 = vadd.f32 %v1039_v31, %v476_v41  ;;  %v557_v44 = vadd.f32 %v1039_v31, %v556_v42  ;;  %v478_v45 = vpop.f32.mrb[19].mxu0  ;;  %v558_v46 = vpop.f32.mrb[19].mxu1 }
 0x129   : > { %v599_v47 = vmax.f32 %v477_v43, 0.0  ;;  %v615_v48 = vmax.f32 %v557_v44, 0.0 }
 0x12a   : > { %v481_v49 = vpop.f32.mrb[20].mxu0  ;;  %v561_v50 = vpop.f32.mrb[20].mxu1 }
 0x12b   : > { %631 = vst [vmem:[%s1047_s30 + $0x48] sm:$0xff] %v599_v47  ;;  %647 = vst [vmem:[%s1047_s30 + $0xc8] sm:$0xff] %v615_v48  ;;  %v482_v51 = vadd.f32 %v1039_v31, %v481_v49  ;;  %v562_v52 = vadd.f32 %v1039_v31, %v561_v50  ;;  %v483_v53 = vpop.f32.mrb[21].mxu0  ;;  %v563_v54 = vpop.f32.mrb[21].mxu1 }
 0x12d   : > { %v600_v55 = vmax.f32 %v482_v51, 0.0  ;;  %v616_v56 = vmax.f32 %v562_v52, 0.0 }
 0x12e   : > { %v486_v57 = vpop.f32.mrb[22].mxu0  ;;  %v566_v58 = vpop.f32.mrb[22].mxu1 }
 0x12f   : > { %632 = vst [vmem:[%s1047_s30 + $0x50] sm:$0xff] %v600_v55  ;;  %648 = vst [vmem:[%s1047_s30 + $0xd0] sm:$0xff] %v616_v56  ;;  %v487_v59 = vadd.f32 %v1039_v31, %v486_v57  ;;  %v567_v60 = vadd.f32 %v1039_v31, %v566_v58  ;;  %v488_v61 = vpop.f32.mrb[23].mxu0  ;;  %v568_v62 = vpop.f32.mrb[23].mxu1 }
 0x131   : > { %v601_v63 = vmax.f32 %v487_v59, 0.0  ;;  %v617_v0 = vmax.f32 %v567_v60, 0.0 }
 0x132   : > { %v491_v1 = vpop.f32.mrb[24].mxu0  ;;  %v571_v2 = vpop.f32.mrb[24].mxu1 }
 0x133   : > { %633 = vst [vmem:[%s1047_s30 + $0x58] sm:$0xff] %v601_v63  ;;  %649 = vst [vmem:[%s1047_s30 + $0xd8] sm:$0xff] %v617_v0  ;;  %v492_v3 = vadd.f32 %v1039_v31, %v491_v1  ;;  %v572_v4 = vadd.f32 %v1039_v31, %v571_v2  ;;  %v493_v5 = vpop.f32.mrb[25].mxu0  ;;  %v573_v6 = vpop.f32.mrb[25].mxu1 }
 0x135   : > { %v602_v7 = vmax.f32 %v492_v3, 0.0  ;;  %v618_v8 = vmax.f32 %v572_v4, 0.0 }
 0x136   : > { %v496_v9 = vpop.f32.mrb[26].mxu0  ;;  %v576_v10 = vpop.f32.mrb[26].mxu1 }
 0x137   : > { %634 = vst [vmem:[%s1047_s30 + $0x60] sm:$0xff] %v602_v7  ;;  %650 = vst [vmem:[%s1047_s30 + $0xe0] sm:$0xff] %v618_v8  ;;  %v497_v11 = vadd.f32 %v1039_v31, %v496_v9  ;;  %v577_v12 = vadd.f32 %v1039_v31, %v576_v10  ;;  %v498_v13 = vpop.f32.mrb[27].mxu0  ;;  %v578_v14 = vpop.f32.mrb[27].mxu1 }
 0x139   : > { %v603_v15 = vmax.f32 %v497_v11, 0.0  ;;  %v619_v16 = vmax.f32 %v577_v12, 0.0 }
 0x13a   : > { %v501_v17 = vpop.f32.mrb[28].mxu0  ;;  %v581_v18 = vpop.f32.mrb[28].mxu1 }
 0x13b   : > { %635 = vst [vmem:[%s1047_s30 + $0x68] sm:$0xff] %v603_v15  ;;  %651 = vst [vmem:[%s1047_s30 + $0xe8] sm:$0xff] %v619_v16  ;;  %v502_v19 = vadd.f32 %v1039_v31, %v501_v17  ;;  %v582_v20 = vadd.f32 %v1039_v31, %v581_v18  ;;  %v503_v21 = vpop.f32.mrb[29].mxu0  ;;  %v583_v22 = vpop.f32.mrb[29].mxu1 }
 0x13d   : > { %v604_v23 = vmax.f32 %v502_v19, 0.0  ;;  %v620_v24 = vmax.f32 %v582_v20, 0.0 }
 0x13e   : > { %v506_v25 = vpop.f32.mrb[30].mxu0  ;;  %v586_v26 = vpop.f32.mrb[30].mxu1 }
 0x13f   : > { %636 = vst [vmem:[%s1047_s30 + $0x70] sm:$0xff] %v604_v23  ;;  %652 = vst [vmem:[%s1047_s30 + $0xf0] sm:$0xff] %v620_v24  ;;  %v507_v27 = vadd.f32 %v1039_v31, %v506_v25  ;;  %v587_v28 = vadd.f32 %v1039_v31, %v586_v26  ;;  %v508_v29 = vpop.f32.mrb[31].mxu0  ;;  %v588_v30 = vpop.f32.mrb[31].mxu1 }
 0x141   : > { %v605_v32 = vmax.f32 %v507_v27, 0.0  ;;  %v621_v33 = vmax.f32 %v587_v28, 0.0 }
 0x143   : > { %637 = vst [vmem:[%s1047_s30 + $0x78] sm:$0xff] %v605_v32  ;;  %653 = vst [vmem:[%s1047_s30 + $0xf8] sm:$0xff] %v621_v33 }
 0x144 PF: > { %s13_s12 = sadd.s32 1, %s821_s12  }
 0x145   : > { %p10_p4 = scmp.ge.s32.totalorder %s13_s12, 11  }
 0x147   :  { %12 = sbr.rel (!%p10_p4) target bundleno = 1 (0x1), region = 62 }

// kernel: audio_cnn1d_extractor_forward.11
= control target key start
LH: loop header
LB: loop body
LE: loop exit
PB: predicated region body
PF: predicated region fallthrough
CT: control target
= control target key end

     0   :  { %s1189_s12 = smov 0   ;;  %s1582_s0 = inlined_call_operand.vmem [shape: f32[512,384], index: 0, kind: input, shape index: {}]   ;;  %s1583_s1 = inlined_call_operand.vmem [shape: f32[384,128], index: 1, kind: input, shape index: {}]   ;;  %s1584_s2 = inlined_call_operand.vmem [shape: f32[1,128], index: 2, kind: input, shape index: {}]   ;;  %s1585_s3 = inlined_call_operand.vmem [shape: f32[512,128], index: 3, kind: output, shape index: {}]  }
   0x1 LB: > { %s898_s13 = sadd.s32 4294967295, %s1166_s12   ;;  %p902_p0 = scmp.ge.s32.totalorder %s1166_s12, 1  ;;  %s1166_s12 = sphi %s1189_s12, %s13_s12  }
   0x2   : > { %p139_p1 = scmp.lt.s32.totalorder %s1166_s12, 3 }
   0x4   : > { %p140_p2 = pnand %p902_p0, %p139_p1 }
   0x5   : > { %v273_v0 = vld [vmem:[%s1583_s1] sm:$0xff] (!%p140_p2)  ;;  %v274_v1 = vld [vmem:[%s1583_s1 + $0x8] sm:$0xff] (!%p140_p2)  ;;  %v275_v2 = vld [vmem:[%s1583_s1 + $0x10] sm:$0xff] (!%p140_p2)  ;;  %s903_s20 = sshll.u32 (!%p140_p2), %s898_s13, 5  ;;  %v1168_v3 = vmov (!%p140_p2), 0.0|0.0  }
   0x6   : > { %143 = sbr.rel (%p140_p2) target bundleno = 382 (0x17e), region = 32  ;;  %1038 = vmatprep.subr.bf16.mxu0 (!%p140_p2), %v1168_v3  ;;  %1118 = vmatprep.subr.bf16.mxu1 (!%p140_p2), %v1168_v3  ;;  %v1039_v4 = vpack.c.bf16 (!%p140_p2), %v274_v1, %v273_v0  ;;  %v276_v5 = vld [vmem:[%s1583_s1 + $0x18] sm:$0xff] (!%p140_p2)  ;;  %p165_p3 = scmp.lt.s32.totalorder (!%p140_p2), %s903_s20, 63  ;;  %v277_v7 = vld [vmem:[%s1583_s1 + $0x20] sm:$0xff] (!%p140_p2)  ;;  %v278_v8 = vld [vmem:[%s1583_s1 + $0x28] sm:$0xff] (!%p140_p2) }
   0x7   : > { %v1042_v6 = vpack.c.bf16 (!%p140_p2), %v276_v5, %v275_v2  ;;  %v1045_v9 = vpack.c.bf16 (!%p140_p2), %v278_v8, %v277_v7  ;;  %v279_v10 = vld [vmem:[%s1583_s1 + $0x30] sm:$0xff] (!%p140_p2)  ;;  %v280_v11 = vld [vmem:[%s1583_s1 + $0x38] sm:$0xff] (!%p140_p2)  ;;  %v281_v15 = vld [vmem:[%s1583_s1 + $0x40] sm:$0xff] (!%p140_p2) }
   0x8   : > { %1040 = vmatpush1.bf16.msra.mxu0 (!%p140_p2), %v1039_v4  ;;  %1134 = vmatpush1.bf16.msra.mxu1 (!%p140_p2), %v1039_v4  ;;  %v1048_v13 = vpack.c.bf16 (!%p140_p2), %v280_v11, %v279_v10  ;;  %v282_v16 = vld [vmem:[%s1583_s1 + $0x48] sm:$0xff] (!%p140_p2)  ;;  %v283_v18 = vld [vmem:[%s1583_s1 + $0x50] sm:$0xff] (!%p140_p2)  ;;  %v284_v19 = vld [vmem:[%s1583_s1 + $0x58] sm:$0xff] (!%p140_p2) }
   0x9   : > { %1041 = vmatprep.subr.bf16.mxu0 (!%p140_p2), %v1168_v3  ;;  %1119 = vmatprep.subr.bf16.mxu1 (!%p140_p2), %v1168_v3  ;;  %v1051_v17 = vpack.c.bf16 (!%p140_p2), %v282_v16, %v281_v15  ;;  %v1054_v20 = vpack.c.bf16 (!%p140_p2), %v284_v19, %v283_v18  ;;  %v285_v21 = vld [vmem:[%s1583_s1 + $0x60] sm:$0xff] (!%p140_p2)  ;;  %v286_v22 = vld [vmem:[%s1583_s1 + $0x68] sm:$0xff] (!%p140_p2)  ;;  %v287_v24 = vld [vmem:[%s1583_s1 + $0x70] sm:$0xff] (!%p140_p2) }
   0xa   : > { %v1057_v23 = vpack.c.bf16 (!%p140_p2), %v286_v22, %v285_v21  ;;  %v288_v25 = vld [vmem:[%s1583_s1 + $0x78] sm:$0xff] (!%p140_p2)  ;;  %v289_v27 = vld [vmem:[%s1583_s1 + $0x80] sm:$0xff] (!%p140_p2)  ;;  %v290_v28 = vld [vmem:[%s1583_s1 + $0x88] sm:$0xff] (!%p140_p2) }
   0xb   : > { %v1060_v26 = vpack.c.bf16 (!%p140_p2), %v288_v25, %v287_v24  ;;  %v1063_v29 = vpack.c.bf16 (!%p140_p2), %v290_v28, %v289_v27  ;;  %v291_v30 = vld [vmem:[%s1583_s1 + $0x90] sm:$0xff] (!%p140_p2)  ;;  %v292_v31 = vld [vmem:[%s1583_s1 + $0x98] sm:$0xff] (!%p140_p2)  ;;  %v293_v33 = vld [vmem:[%s1583_s1 + $0xa0] sm:$0xff] (!%p140_p2) }
   0xc   : > { %1043 = vmatpush1.bf16.msra.mxu0 (!%p140_p2), %v1042_v6  ;;  %1135 = vmatpush1.bf16.msra.mxu1 (!%p140_p2), %v1042_v6  ;;  %v1066_v32 = vpack.c.bf16 (!%p140_p2), %v292_v31, %v291_v30  ;;  %v294_v34 = vld [vmem:[%s1583_s1 + $0xa8] sm:$0xff] (!%p140_p2)  ;;  %v295_v36 = vld [vmem:[%s1583_s1 + $0xb0] sm:$0xff] (!%p140_p2)  ;;  %v296_v37 = vld [vmem:[%s1583_s1 + $0xb8] sm:$0xff] (!%p140_p2) }
   0xd   : > { %s1587_s20 = smov (!%p165_p3, %s903_s20), 63  ;;  %1044 = vmatprep.subr.bf16.mxu0 %v1168_v3  ;;  %1120 = vmatprep.subr.bf16.mxu1 %v1168_v3  ;;  %v1069_v35 = vpack.c.bf16 %v294_v34, %v293_v33  ;;  %v1072_v38 = vpack.c.bf16 %v296_v37, %v295_v36  ;;  %v297_v39 = vld [vmem:[%s1583_s1 + $0xc0] sm:$0xff]  ;;  %v298_v40 = vld [vmem:[%s1583_s1 + $0xc8] sm:$0xff]  ;;  %v299_v42 = vld [vmem:[%s1583_s1 + $0xd0] sm:$0xff] }
   0xe   : > { %s1150_s27 = smul.u32 24, %s1587_s20  ;;  %v1075_v41 = vpack.c.bf16 %v298_v40, %v297_v39  ;;  %v300_v43 = vld [vmem:[%s1583_s1 + $0xd8] sm:$0xff]  ;;  %v301_v45 = vld [vmem:[%s1583_s1 + $0xe0] sm:$0xff]  ;;  %v302_v46 = vld [vmem:[%s1583_s1 + $0xe8] sm:$0xff]  ;;  %s906_s18 = sshll.u32 %s1587_s20, 3 }
   0xf   : > { %v1078_v44 = vpack.c.bf16 %v300_v43, %v299_v42  ;;  %v1081_v47 = vpack.c.bf16 %v302_v46, %v301_v45  ;;  %v303_v48 = vld [vmem:[%s1583_s1 + $0xf0] sm:$0xff]  ;;  %v304_v49 = vld [vmem:[%s1583_s1 + $0xf8] sm:$0xff]  ;;  %v305_v50 = vld [vmem:[%s1583_s1 + $0x100] sm:$0xff]  ;;  %s1504_s22 = scalar_lea.vmem %s1585_s3, %s906_s18 }
  0x10   : > { %s1225_s30 = scalar_lea.vmem %s1582_s0, %s1150_s27  ;;  %1046 = vmatpush1.bf16.msra.mxu0 %v1045_v9  ;;  %1136 = vmatpush1.bf16.msra.mxu1 %v1045_v9  ;;  %v306_v51 = vld [vmem:[%s1583_s1 + $0x108] sm:$0xff]  ;;  %v1084_v52 = vpack.c.bf16 %v304_v49, %v303_v48  ;;  %v307_v54 = vld [vmem:[%s1583_s1 + $0x110] sm:$0xff]  ;;  %v308_v55 = vld [vmem:[%s1583_s1 + $0x118] sm:$0xff] }
  0x11   : > { %v178_v12 = vld [vmem:[%s1225_s30 + $0x8] sm:$0xff]  ;;  %1047 = vmatprep.subr.bf16.mxu0 %v1168_v3  ;;  %1121 = vmatprep.subr.bf16.mxu1 %v1168_v3  ;;  %v1086_v53 = vpack.c.bf16 %v306_v51, %v305_v50  ;;  %v177_v56 = vld [vmem:[%s1225_s30] sm:$0xff]  ;;  %v1090_v59 = vpack.c.bf16 %v308_v55, %v307_v54  ;;  %v180_v63 = vld [vmem:[%s1225_s30 + $0x18] sm:$0xff] }
  0x12   : > { %v250_v14 = vld [vmem:[%s1225_s30 + $0x248] sm:$0xff]  ;;  %392 = vmatprep.mubr.f32.mxu0 %v178_v12  ;;  %v249_v57 = vld [vmem:[%s1225_s30 + $0x240] sm:$0xff]  ;;  %v252_v0 = vld [vmem:[%s1225_s30 + $0x258] sm:$0xff] }
  0x13   : > { %512 = vmatprep.mubr.f32.mxu1 %v250_v14  ;;  %v181_v58 = vld [vmem:[%s1225_s30 + $0x20] sm:$0xff]  ;;  %v310_v62 = vld [vmem:[%s1583_s1 + $0x128] sm:$0xff]  ;;  %v184_v1 = vld [vmem:[%s1225_s30 + $0x38] sm:$0xff] }
  0x14   : > { %1049 = vmatpush1.bf16.msra.mxu0 %v1048_v13  ;;  %1137 = vmatpush1.bf16.msra.mxu1 %v1048_v13  ;;  %v253_v60 = vld [vmem:[%s1225_s30 + $0x260] sm:$0xff]  ;;  %v311_v4 = vld [vmem:[%s1583_s1 + $0x130] sm:$0xff]  ;;  %v312_v5 = vld [vmem:[%s1583_s1 + $0x138] sm:$0xff] }
  0x15   : > { %1050 = vmatprep.subr.bf16.mxu0 %v1168_v3  ;;  %1122 = vmatprep.subr.bf16.mxu1 %v1168_v3  ;;  %v309_v61 = vld [vmem:[%s1583_s1 + $0x120] sm:$0xff]  ;;  %v183_v6 = vld [vmem:[%s1225_s30 + $0x30] sm:$0xff]  ;;  %v1098_v9 = vpack.c.bf16 %v312_v5, %v311_v4  ;;  %v314_v12 = vld [vmem:[%s1583_s1 + $0x148] sm:$0xff] }
  0x16   : > { %v1094_v2 = vpack.c.bf16 %v310_v62, %v309_v61  ;;  %v255_v7 = vld [vmem:[%s1225_s30 + $0x270] sm:$0xff]  ;;  %v313_v11 = vld [vmem:[%s1583_s1 + $0x140] sm:$0xff]  ;;  %v186_v13 = vld [vmem:[%s1225_s30 + $0x48] sm:$0xff] }
  0x17   : > { %v187_v8 = vld [vmem:[%s1225_s30 + $0x50] sm:$0xff]  ;;  %v258_v14 = vld [vmem:[%s1225_s30 + $0x288] sm:$0xff]  ;;  %v1102_v16 = vpack.c.bf16 %v314_v12, %v313_v11  ;;  %v316_v19 = vld [vmem:[%s1583_s1 + $0x158] sm:$0xff] }
  0x18   : > { %1052 = vmatpush1.bf16.msra.mxu0 %v1051_v17  ;;  %1138 = vmatpush1.bf16.msra.mxu1 %v1051_v17  ;;  %v259_v10 = vld [vmem:[%s1225_s30 + $0x290] sm:$0xff]  ;;  %v190_v15 = vld [vmem:[%s1225_s30 + $0x68] sm:$0xff]  ;;  %v261_v21 = vld [vmem:[%s1225_s30 + $0x2a0] sm:$0xff] }
  0x19   : > { %1053 = vmatprep.subr.bf16.mxu0 %v1168_v3  ;;  %1123 = vmatprep.subr.bf16.mxu1 %v1168_v3  ;;  %v262_v17 = vld [vmem:[%s1225_s30 + $0x2a8] sm:$0xff]  ;;  %v315_v18 = vld [vmem:[%s1583_s1 + $0x150] sm:$0xff]  ;;  %v193_v22 = vld [vmem:[%s1225_s30 + $0x80] sm:$0xff] }
  0x1a   : > { %v265_v24 = vld [vmem:[%s1225_s30 + $0x2c0] sm:$0xff]  ;;  %v192_v27 = vld [vmem:[%s1225_s30 + $0x78] sm:$0xff]  ;;  %v195_v34 = vld [vmem:[%s1225_s30 + $0x90] sm:$0xff] }
  0x1b   : > { %v317_v25 = vld [vmem:[%s1583_s1 + $0x160] sm:$0xff]  ;;  %v264_v28 = vld [vmem:[%s1225_s30 + $0x2b8] sm:$0xff]  ;;  %v199_v36 = vld [vmem:[%s1225_s30 + $0xb0] sm:$0xff] }
  0x1c   : > { %1055 = vmatpush1.bf16.msra.mxu0 %v1054_v20  ;;  %1139 = vmatpush1.bf16.msra.mxu1 %v1054_v20  ;;  %v189_v20 = vld [vmem:[%s1225_s30 + $0x60] sm:$0xff]  ;;  %v268_v31 = vld [vmem:[%s1225_s30 + $0x2d8] sm:$0xff]  ;;  %v198_v39 = vld [vmem:[%s1225_s30 + $0xa8] sm:$0xff] }
  0x1d   : > { %1056 = vmatprep.subr.bf16.mxu0 %v1168_v3  ;;  %1124 = vmatprep.subr.bf16.mxu1 %v1168_v3  ;;  %v320_v33 = vld [vmem:[%s1583_s1 + $0x178] sm:$0xff]  ;;  %v270_v40 = vld [vmem:[%s1225_s30 + $0x2e8] sm:$0xff]  ;;  %v179_v42 = vld [vmem:[%s1225_s30 + $0x10] sm:$0xff] }
  0x1e   : > { %v201_v43 = vld [vmem:[%s1225_s30 + $0xc0] sm:$0xff]  ;;  %v188_v48 = vld [vmem:[%s1225_s30 + $0x58] sm:$0xff]  ;;  %v191_v50 = vld [vmem:[%s1225_s30 + $0x70] sm:$0xff] }
  0x1f   : > { %v205_v45 = vld [vmem:[%s1225_s30 + $0xe0] sm:$0xff]  ;;  %v208_v49 = vld [vmem:[%s1225_s30 + $0xf8] sm:$0xff]  ;;  %v207_v51 = vld [vmem:[%s1225_s30 + $0xf0] sm:$0xff] }
  0x20   : > { %1058 = vmatpush1.bf16.msra.mxu0 %v1057_v23  ;;  %1140 = vmatpush1.bf16.msra.mxu1 %v1057_v23  ;;  %v1106_v23 = vpack.c.bf16 %v316_v19, %v315_v18  ;;  %v185_v46 = vld [vmem:[%s1225_s30 + $0x40] sm:$0xff]  ;;  %v210_v55 = vld [vmem:[%s1225_s30 + $0x108] sm:$0xff]  ;;  %v223_v5 = vld [vmem:[%s1225_s30 + $0x170] sm:$0xff] }
  0x21   : > { %1059 = vmatprep.subr.bf16.mxu0 %v1168_v3  ;;  %1125 = vmatprep.subr.bf16.mxu1 %v1168_v3  ;;  %v197_v54 = vld [vmem:[%s1225_s30 + $0xa0] sm:$0xff]  ;;  %v218_v4 = vld [vmem:[%s1225_s30 + $0x148] sm:$0xff]  ;;  %v239_v18 = vld [vmem:[%s1225_s30 + $0x1f0] sm:$0xff] }
  0x22   : > { %v217_v61 = vld [vmem:[%s1225_s30 + $0x140] sm:$0xff]  ;;  %v230_v12 = vld [vmem:[%s1225_s30 + $0x1a8] sm:$0xff]  ;;  %v231_v19 = vld [vmem:[%s1225_s30 + $0x1b0] sm:$0xff] }
  0x23   : > { %v209_v62 = vld [vmem:[%s1225_s30 + $0x100] sm:$0xff] }
  0x24   : > { %1061 = vmatpush1.bf16.msra.mxu0 %v1060_v26  ;;  %1141 = vmatpush1.bf16.msra.mxu1 %v1060_v26  ;;  %v318_v26 = vld [vmem:[%s1583_s1 + $0x168] sm:$0xff]  ;;  %v225_v11 = vld [vmem:[%s1225_s30 + $0x180] sm:$0xff] }
  0x25   : > { %1062 = vmatprep.subr.bf16.mxu0 %v1168_v3  ;;  %1126 = vmatprep.subr.bf16.mxu1 %v1168_v3  ;;  %v1110_v30 = vpack.c.bf16 %v318_v26, %v317_v25  ;;  %v238_v25 = vld [vmem:[%s1225_s30 + $0x1e8] sm:$0xff]  ;;  %v251_v26 = vld [vmem:[%s1225_s30 + $0x250] sm:$0xff] }
  0x28   : > { %1064 = vmatpush1.bf16.msra.mxu0 %v1063_v29  ;;  %1142 = vmatpush1.bf16.msra.mxu1 %v1063_v29  ;;  %v196_v29 = vld [vmem:[%s1225_s30 + $0x98] sm:$0xff] }
  0x29   : > { %1065 = vmatprep.subr.bf16.mxu0 %v1168_v3  ;;  %1127 = vmatprep.subr.bf16.mxu1 %v1168_v3 }
  0x2c   : > { %1067 = vmatpush1.bf16.msra.mxu0 %v1066_v32  ;;  %1143 = vmatpush1.bf16.msra.mxu1 %v1066_v32  ;;  %v319_v32 = vld [vmem:[%s1583_s1 + $0x170] sm:$0xff] }
  0x2d   : > { %1068 = vmatprep.subr.bf16.mxu0 %v1168_v3  ;;  %1128 = vmatprep.subr.bf16.mxu1 %v1168_v3  ;;  %v1114_v37 = vpack.c.bf16 %v320_v33, %v319_v32  ;;  %v260_v32 = vld [vmem:[%s1225_s30 + $0x298] sm:$0xff] }
  0x2e   : > { %v244_v33 = vld [vmem:[%s1225_s30 + $0x218] sm:$0xff] }
  0x30   : > { %1070 = vmatpush1.bf16.msra.mxu0 %v1069_v35  ;;  %1144 = vmatpush1.bf16.msra.mxu1 %v1069_v35  ;;  %v267_v35 = vld [vmem:[%s1225_s30 + $0x2d0] sm:$0xff] }
  0x31   : > { %1071 = vmatprep.subr.bf16.mxu0 %v1168_v3  ;;  %1129 = vmatprep.subr.bf16.mxu1 %v1168_v3 }
  0x34   : > { %1073 = vmatpush1.bf16.msra.mxu0 %v1072_v38  ;;  %1145 = vmatpush1.bf16.msra.mxu1 %v1072_v38  ;;  %v271_v38 = vld [vmem:[%s1225_s30 + $0x2f0] sm:$0xff] }
  0x35   : > { %1074 = vmatprep.subr.bf16.mxu0 %v1168_v3  ;;  %1130 = vmatprep.subr.bf16.mxu1 %v1168_v3 }
  0x38   : > { %1076 = vmatpush1.bf16.msra.mxu0 %v1075_v41  ;;  %1146 = vmatpush1.bf16.msra.mxu1 %v1075_v41  ;;  %v202_v41 = vld [vmem:[%s1225_s30 + $0xc8] sm:$0xff] }
  0x39   : > { %1077 = vmatprep.subr.bf16.mxu0 %v1168_v3  ;;  %1131 = vmatprep.subr.bf16.mxu1 %v1168_v3 }
  0x3c   : > { %1079 = vmatpush1.bf16.msra.mxu0 %v1078_v44  ;;  %1147 = vmatpush1.bf16.msra.mxu1 %v1078_v44  ;;  %v182_v44 = vld [vmem:[%s1225_s30 + $0x28] sm:$0xff] }
  0x3d   : > { %1080 = vmatprep.subr.bf16.mxu0 %v1168_v3  ;;  %1132 = vmatprep.subr.bf16.mxu1 %v1168_v3 }
  0x40   : > { %1082 = vmatpush1.bf16.msra.mxu0 %v1081_v47  ;;  %1148 = vmatpush1.bf16.msra.mxu1 %v1081_v47  ;;  %v204_v47 = vld [vmem:[%s1225_s30 + $0xd8] sm:$0xff] }
  0x41   : > { %1083 = vmatprep.subr.bf16.mxu0 %v1168_v3  ;;  %1133 = vmatprep.subr.bf16.mxu1 %v1168_v3  ;;  %v256_v3 = vld [vmem:[%s1225_s30 + $0x278] sm:$0xff] }
  0x44   : > { %1085 = vmatpush1.bf16.msra.mxu0 %v1084_v52  ;;  %1149 = vmatpush1.bf16.msra.mxu1 %v1084_v52  ;;  %v194_v52 = vld [vmem:[%s1225_s30 + $0x88] sm:$0xff] }
  0x45   : > { %1087 = vmatprep.subr.bf16.mxu1 %v1086_v53 }
  0x47   : > { %393 = vmatmul.mubr.f32.vlgmr.msra.gmra.mrb[0].mxu0 %v177_v56  ;;  %513 = vmatmul.mubr.f32.vlgmr.msra.gmra.mrb[0].mxu1 %v249_v57  ;;  %v200_v56 = vld [vmem:[%s1225_s30 + $0xb8] sm:$0xff]  ;;  %v214_v57 = vld [vmem:[%s1225_s30 + $0x128] sm:$0xff] }
  0x48   : > { %1089 = vmatpush3.bf16.msra.mxu1 %v1086_v53  ;;  %397 = vmatprep.mubr.f32.mxu0 %v181_v58  ;;  %v211_v53 = vld [vmem:[%s1225_s30 + $0x110] sm:$0xff] }
  0x49   : > { %517 = vmatprep.mubr.f32.mxu1 %v253_v60  ;;  %1091 = vmatprep.subr.bf16.mxu1 %v1090_v59  ;;  %v203_v58 = vld [vmem:[%s1225_s30 + $0xd0] sm:$0xff]  ;;  %v206_v60 = vld [vmem:[%s1225_s30 + $0xe8] sm:$0xff] }
  0x4b   : > { %398 = vmatmul.mubr.f32.gmra.mrb[2].mxu0 %v180_v63  ;;  %518 = vmatmul.mubr.f32.gmra.mrb[2].mxu1 %v252_v0  ;;  %v216_v63 = vld [vmem:[%s1225_s30 + $0x138] sm:$0xff] }
  0x4c   : > { %1093 = vmatpush3.bf16.msra.mxu1 %v1090_v59  ;;  %402 = vmatprep.mubr.f32.mxu0 %v184_v1  ;;  %v213_v59 = vld [vmem:[%s1225_s30 + $0x120] sm:$0xff]  ;;  %v212_v0 = vld [vmem:[%s1225_s30 + $0x118] sm:$0xff] }
  0x4d   : > { %522 = vmatprep.mubr.f32.mxu1 %v256_v3  ;;  %1095 = vmatprep.subr.bf16.mxu1 %v1094_v2  ;;  %v220_v1 = vld [vmem:[%s1225_s30 + $0x158] sm:$0xff]  ;;  %v219_v3 = vld [vmem:[%s1225_s30 + $0x150] sm:$0xff] }
  0x4f   : > { %403 = vmatmul.mubr.f32.gmra.mrb[4].mxu0 %v183_v6  ;;  %523 = vmatmul.mubr.f32.gmra.mrb[4].mxu1 %v255_v7  ;;  %v221_v6 = vld [vmem:[%s1225_s30 + $0x160] sm:$0xff]  ;;  %v222_v7 = vld [vmem:[%s1225_s30 + $0x168] sm:$0xff] }
  0x50   : > { %1097 = vmatpush3.bf16.msra.mxu1 %v1094_v2  ;;  %407 = vmatprep.mubr.f32.mxu0 %v187_v8  ;;  %v215_v2 = vld [vmem:[%s1225_s30 + $0x130] sm:$0xff]  ;;  %v224_v8 = vld [vmem:[%s1225_s30 + $0x178] sm:$0xff] }
  0x51   : > { %527 = vmatprep.mubr.f32.mxu1 %v259_v10  ;;  %1099 = vmatprep.subr.bf16.mxu1 %v1098_v9  ;;  %v227_v10 = vld [vmem:[%s1225_s30 + $0x190] sm:$0xff] }
  0x53   : > { %408 = vmatmul.mubr.f32.gmra.mrb[6].mxu0 %v186_v13  ;;  %528 = vmatmul.mubr.f32.gmra.mrb[6].mxu1 %v258_v14  ;;  %v229_v13 = vld [vmem:[%s1225_s30 + $0x1a0] sm:$0xff] }
  0x54   : > { %1101 = vmatpush3.bf16.msra.mxu1 %v1098_v9  ;;  %412 = vmatprep.mubr.f32.mxu0 %v190_v15  ;;  %v226_v9 = vld [vmem:[%s1225_s30 + $0x188] sm:$0xff]  ;;  %v233_v14 = vld [vmem:[%s1225_s30 + $0x1c0] sm:$0xff]  ;;  %v228_v15 = vld [vmem:[%s1225_s30 + $0x198] sm:$0xff] }
  0x55   : > { %532 = vmatprep.mubr.f32.mxu1 %v262_v17  ;;  %1103 = vmatprep.subr.bf16.mxu1 %v1102_v16  ;;  %v232_v17 = vld [vmem:[%s1225_s30 + $0x1b8] sm:$0xff] }
  0x57   : > { %413 = vmatmul.mubr.f32.gmra.mrb[8].mxu0 %v189_v20  ;;  %533 = vmatmul.mubr.f32.gmra.mrb[8].mxu1 %v261_v21  ;;  %v242_v20 = vld [vmem:[%s1225_s30 + $0x208] sm:$0xff]  ;;  %v235_v21 = vld [vmem:[%s1225_s30 + $0x1d0] sm:$0xff] }
  0x58   : > { %1105 = vmatpush3.bf16.msra.mxu1 %v1102_v16  ;;  %417 = vmatprep.mubr.f32.mxu0 %v193_v22  ;;  %v236_v16 = vld [vmem:[%s1225_s30 + $0x1d8] sm:$0xff]  ;;  %v245_v22 = vld [vmem:[%s1225_s30 + $0x220] sm:$0xff] }
  0x59   : > { %537 = vmatprep.mubr.f32.mxu1 %v265_v24  ;;  %1107 = vmatprep.subr.bf16.mxu1 %v1106_v23  ;;  %v248_v24 = vld [vmem:[%s1225_s30 + $0x238] sm:$0xff] }
  0x5b   : > { %418 = vmatmul.mubr.f32.gmra.mrb[10].mxu0 %v192_v27  ;;  %538 = vmatmul.mubr.f32.gmra.mrb[10].mxu1 %v264_v28  ;;  %v237_v27 = vld [vmem:[%s1225_s30 + $0x1e0] sm:$0xff]  ;;  %v254_v28 = vld [vmem:[%s1225_s30 + $0x268] sm:$0xff] }
  0x5c   : > { %1109 = vmatpush3.bf16.msra.mxu1 %v1106_v23  ;;  %422 = vmatprep.mubr.f32.mxu0 %v196_v29  ;;  %v234_v23 = vld [vmem:[%s1225_s30 + $0x1c8] sm:$0xff]  ;;  %v241_v29 = vld [vmem:[%s1225_s30 + $0x200] sm:$0xff] }
  0x5d   : > { %542 = vmatprep.mubr.f32.mxu1 %v268_v31  ;;  %1111 = vmatprep.subr.bf16.mxu1 %v1110_v30  ;;  %v240_v31 = vld [vmem:[%s1225_s30 + $0x1f8] sm:$0xff] }
  0x5f   : > { %423 = vmatmul.mubr.f32.gmra.mrb[12].mxu0 %v195_v34  ;;  %543 = vmatmul.mubr.f32.gmra.mrb[12].mxu1 %v267_v35  ;;  %v263_v34 = vld [vmem:[%s1225_s30 + $0x2b0] sm:$0xff] }
  0x60   : > { %1113 = vmatpush3.bf16.msra.mxu1 %v1110_v30  ;;  %427 = vmatprep.mubr.f32.mxu0 %v199_v36  ;;  %v257_v30 = vld [vmem:[%s1225_s30 + $0x280] sm:$0xff]  ;;  %v243_v35 = vld [vmem:[%s1225_s30 + $0x210] sm:$0xff]  ;;  %v266_v36 = vld [vmem:[%s1225_s30 + $0x2c8] sm:$0xff] }
  0x61   : > { %547 = vmatprep.mubr.f32.mxu1 %v271_v38  ;;  %1115 = vmatprep.subr.bf16.mxu1 %v1114_v37  ;;  %v269_v38 = vld [vmem:[%s1225_s30 + $0x2e0] sm:$0xff] }
  0x63   : > { %428 = vmatmul.mubr.f32.gmra.mrb[14].mxu0 %v198_v39  ;;  %548 = vmatmul.mubr.f32.gmra.mrb[14].mxu1 %v270_v40  ;;  %v246_v39 = vld [vmem:[%s1225_s30 + $0x228] sm:$0xff]  ;;  %v272_v40 = vld [vmem:[%s1225_s30 + $0x2f8] sm:$0xff] }
  0x64   : > { %1117 = vmatpush3.bf16.msra.mxu1 %v1114_v37  ;;  %432 = vmatprep.mubr.f32.mxu0 %v202_v41  ;;  %v247_v37 = vld [vmem:[%s1225_s30 + $0x230] sm:$0xff] }
  0x65   : > { %990 = vmatprep.mubr.f32.mxu1 %v179_v42 }
  0x67   : > { %433 = vmatmul.mubr.f32.gmra.mrb[16].mxu0 %v201_v43  ;;  %991 = vmatmul.mubr.f32.vlgmr.msra.gmra.mrb[16].mxu1 %v182_v44 }
  0x68   : > { %437 = vmatprep.mubr.f32.mxu0 %v205_v45  ;;  %993 = vmatprep.mubr.f32.mxu1 %v185_v46 }
  0x6b   : > { %438 = vmatmul.mubr.f32.gmra.mrb[18].mxu0 %v204_v47  ;;  %994 = vmatmul.mubr.f32.gmra.mrb[18].mxu1 %v188_v48 }
  0x6c   : > { %442 = vmatprep.mubr.f32.mxu0 %v208_v49  ;;  %996 = vmatprep.mubr.f32.mxu1 %v191_v50 }
  0x6f   : > { %443 = vmatmul.mubr.f32.gmra.mrb[20].mxu0 %v207_v51  ;;  %997 = vmatmul.mubr.f32.gmra.mrb[20].mxu1 %v194_v52 }
  0x70   : > { %447 = vmatprep.mubr.f32.mxu0 %v211_v53  ;;  %999 = vmatprep.mubr.f32.mxu1 %v197_v54 }
  0x73   : > { %448 = vmatmul.mubr.f32.gmra.mrb[22].mxu0 %v210_v55  ;;  %1000 = vmatmul.mubr.f32.gmra.mrb[22].mxu1 %v200_v56 }
  0x74   : > { %452 = vmatprep.mubr.f32.mxu0 %v214_v57  ;;  %1002 = vmatprep.mubr.f32.mxu1 %v203_v58 }
  0x77   : > { %453 = vmatmul.mubr.f32.gmra.mrb[24].mxu0 %v213_v59  ;;  %1003 = vmatmul.mubr.f32.gmra.mrb[24].mxu1 %v206_v60 }
  0x78   : > { %457 = vmatprep.mubr.f32.mxu0 %v217_v61  ;;  %1005 = vmatprep.mubr.f32.mxu1 %v209_v62 }
  0x7b   : > { %458 = vmatmul.mubr.f32.gmra.mrb[26].mxu0 %v216_v63  ;;  %1006 = vmatmul.mubr.f32.gmra.mrb[26].mxu1 %v212_v0 }
  0x7c   : > { %462 = vmatprep.mubr.f32.mxu0 %v220_v1  ;;  %1008 = vmatprep.mubr.f32.mxu1 %v215_v2 }
  0x7f   : > { %463 = vmatmul.mubr.f32.gmra.mrb[28].mxu0 %v219_v3  ;;  %1009 = vmatmul.mubr.f32.gmra.mrb[28].mxu1 %v218_v4 }
  0x80   : > { %467 = vmatprep.mubr.f32.mxu0 %v223_v5  ;;  %1011 = vmatprep.mubr.f32.mxu1 %v221_v6 }
  0x83   : > { %468 = vmatmul.mubr.f32.gmra.mrb[30].mxu0 %v222_v7  ;;  %1012 = vmatmul.mubr.f32.gmra.mrb[30].mxu1 %v224_v8  ;;  %v1496_v7 = vld [vmem:[%s1584_s2] ss:$0 sm:$0xff] }
  0x84   : > { %472 = vmatprep.mubr.f32.mxu0 %v226_v9  ;;  %1014 = vmatprep.mubr.f32.mxu1 %v227_v10 }
  0x87   : > { %473 = vmatmul.mubr.f32.gmra.mrb[32].mxu0 %v225_v11  ;;  %1015 = vmatmul.mubr.f32.gmra.mrb[32].mxu1 %v230_v12 }
  0x88   : > { %477 = vmatprep.mubr.f32.mxu0 %v229_v13  ;;  %1017 = vmatprep.mubr.f32.mxu1 %v233_v14 }
  0x8b   : > { %478 = vmatmul.mubr.f32.gmra.mrb[34].mxu0 %v228_v15  ;;  %1018 = vmatmul.mubr.f32.gmra.mrb[34].mxu1 %v236_v16 }
  0x8c   : > { %482 = vmatprep.mubr.f32.mxu0 %v232_v17  ;;  %1020 = vmatprep.mubr.f32.mxu1 %v239_v18 }
  0x8f   : > { %483 = vmatmul.mubr.f32.gmra.mrb[36].mxu0 %v231_v19  ;;  %1021 = vmatmul.mubr.f32.gmra.mrb[36].mxu1 %v242_v20 }
  0x90   : > { %487 = vmatprep.mubr.f32.mxu0 %v235_v21  ;;  %1023 = vmatprep.mubr.f32.mxu1 %v245_v22 }
  0x93   : > { %488 = vmatmul.mubr.f32.gmra.mrb[38].mxu0 %v234_v23  ;;  %1024 = vmatmul.mubr.f32.gmra.mrb[38].mxu1 %v248_v24 }
  0x94   : > { %492 = vmatprep.mubr.f32.mxu0 %v238_v25  ;;  %1026 = vmatprep.mubr.f32.mxu1 %v251_v26 }
  0x97   : > { %493 = vmatmul.mubr.f32.gmra.mrb[40].mxu0 %v237_v27  ;;  %1027 = vmatmul.mubr.f32.gmra.mrb[40].mxu1 %v254_v28 }
  0x98   : > { %497 = vmatprep.mubr.f32.mxu0 %v241_v29  ;;  %1029 = vmatprep.mubr.f32.mxu1 %v257_v30 }
  0x9b   : > { %498 = vmatmul.mubr.f32.gmra.mrb[42].mxu0 %v240_v31  ;;  %1030 = vmatmul.mubr.f32.gmra.mrb[42].mxu1 %v260_v32 }
  0x9c   : > { %502 = vmatprep.mubr.f32.mxu0 %v244_v33  ;;  %1032 = vmatprep.mubr.f32.mxu1 %v263_v34 }
  0x9f   : > { %503 = vmatmul.mubr.f32.gmra.mrb[44].mxu0 %v243_v35  ;;  %1033 = vmatmul.mubr.f32.gmra.mrb[44].mxu1 %v266_v36 }
  0xa0   : > { %507 = vmatprep.mubr.f32.mxu0 %v247_v37  ;;  %1035 = vmatprep.mubr.f32.mxu1 %v269_v38 }
  0xa3   : > { %508 = vmatmul.mubr.f32.gmra.mrb[46].mxu0 %v246_v39  ;;  %1036 = vmatmul.mubr.f32.gmra.mrb[46].mxu1 %v272_v40 }
 0x11a   : > { %v394_v41 = vpop.f32.mrb[0].mxu0  ;;  %v1477_v42 = vpop.f32.mrb[0].mxu1 }
 0x11b   : > { %v396_v43 = vpop.f32.mrb[1].mxu0  ;;  %v516_v44 = vpop.f32.mrb[1].mxu1  ;;  %v395_v11 = vadd.f32 %v1496_v7, %v394_v41 }
 0x11e   : > { %v399_v45 = vpop.f32.mrb[2].mxu0  ;;  %v1479_v46 = vpop.f32.mrb[2].mxu1 }
 0x11f   : > { %v401_v47 = vpop.f32.mrb[3].mxu0  ;;  %v521_v48 = vpop.f32.mrb[3].mxu1  ;;  %v400_v10 = vadd.f32 %v1496_v7, %v399_v45 }
 0x122   : > { %v404_v49 = vpop.f32.mrb[4].mxu0  ;;  %v1481_v50 = vpop.f32.mrb[4].mxu1 }
 0x123   : > { %v406_v51 = vpop.f32.mrb[5].mxu0  ;;  %v526_v52 = vpop.f32.mrb[5].mxu1  ;;  %v405_v20 = vadd.f32 %v1496_v7, %v404_v49 }
 0x126   : > { %v409_v53 = vpop.f32.mrb[6].mxu0  ;;  %v1483_v54 = vpop.f32.mrb[6].mxu1 }
 0x127   : > { %v411_v55 = vpop.f32.mrb[7].mxu0  ;;  %v531_v56 = vpop.f32.mrb[7].mxu1  ;;  %v410_v18 = vadd.f32 %v1496_v7, %v409_v53 }
 0x12a   : > { %v414_v57 = vpop.f32.mrb[8].mxu0  ;;  %v1485_v58 = vpop.f32.mrb[8].mxu1 }
 0x12b   : > { %v416_v59 = vpop.f32.mrb[9].mxu0  ;;  %v536_v60 = vpop.f32.mrb[9].mxu1  ;;  %v415_v30 = vadd.f32 %v1496_v7, %v414_v57 }
 0x12e   : > { %v419_v61 = vpop.f32.mrb[10].mxu0  ;;  %v1487_v62 = vpop.f32.mrb[10].mxu1 }
 0x12f   : > { %v421_v63 = vpop.f32.mrb[11].mxu0  ;;  %v541_v0 = vpop.f32.mrb[11].mxu1  ;;  %v420_v28 = vadd.f32 %v1496_v7, %v419_v61 }
 0x132   : > { %v424_v1 = vpop.f32.mrb[12].mxu0  ;;  %v1489_v2 = vpop.f32.mrb[12].mxu1 }
 0x133   : > { %v426_v3 = vpop.f32.mrb[13].mxu0  ;;  %v546_v4 = vpop.f32.mrb[13].mxu1  ;;  %v425_v40 = vadd.f32 %v1496_v7, %v424_v1 }
 0x136   : > { %v429_v5 = vpop.f32.mrb[14].mxu0  ;;  %v1491_v6 = vpop.f32.mrb[14].mxu1 }
 0x137   : > { %v431_v8 = vpop.f32.mrb[15].mxu0  ;;  %v551_v9 = vpop.f32.mrb[15].mxu1  ;;  %v430_v38 = vadd.f32 %v1496_v7, %v429_v5 }
 0x13a   : > { %v434_v12 = vpop.f32.mrb[16].mxu0  ;;  %v992_v13 = vpop.f32.mrb[16].mxu1 }
 0x13b   : > { %v625_v14 = vadd.f32 %v992_v13, %v400_v10  ;;  %v436_v15 = vpop.f32.mrb[17].mxu0  ;;  %v619_v16 = vpop.f32.mrb[17].mxu1  ;;  %v435_v53 = vadd.f32 %v1496_v7, %v434_v12 }
 0x13c   : > { %v620_v17 = vadd.f32 %v619_v16, %v395_v11 }
 0x13d   : > { %v779_v19 = vmax.f32 %v625_v14, 0.0 }
 0x13e   : > { %v778_v21 = vmax.f32 %v620_v17, 0.0  ;;  %v439_v22 = vpop.f32.mrb[18].mxu0  ;;  %v995_v23 = vpop.f32.mrb[18].mxu1 }
 0x13f   : > { %811 = vst [vmem:[%s1504_s22 + $0x8] sm:$0xff] %v779_v19  ;;  %v635_v24 = vadd.f32 %v995_v23, %v410_v18  ;;  %v441_v25 = vpop.f32.mrb[19].mxu0  ;;  %v629_v26 = vpop.f32.mrb[19].mxu1  ;;  %v440_v51 = vadd.f32 %v1496_v7, %v439_v22 }
 0x140   : > { %810 = vst [vmem:[%s1504_s22] sm:$0xff] %v778_v21  ;;  %v630_v27 = vadd.f32 %v629_v26, %v405_v20 }
 0x141   : > { %v781_v29 = vmax.f32 %v635_v24, 0.0 }
 0x142   : > { %v780_v31 = vmax.f32 %v630_v27, 0.0  ;;  %v444_v32 = vpop.f32.mrb[20].mxu0  ;;  %v998_v33 = vpop.f32.mrb[20].mxu1 }
 0x143   : > { %813 = vst [vmem:[%s1504_s22 + $0x18] sm:$0xff] %v781_v29  ;;  %v645_v34 = vadd.f32 %v998_v33, %v420_v28  ;;  %v446_v35 = vpop.f32.mrb[21].mxu0  ;;  %v639_v36 = vpop.f32.mrb[21].mxu1  ;;  %v445_v3 = vadd.f32 %v1496_v7, %v444_v32 }
 0x144   : > { %812 = vst [vmem:[%s1504_s22 + $0x10] sm:$0xff] %v780_v31  ;;  %v640_v37 = vadd.f32 %v639_v36, %v415_v30 }
 0x145   : > { %v783_v39 = vmax.f32 %v645_v34, 0.0 }
 0x146   : > { %v782_v41 = vmax.f32 %v640_v37, 0.0  ;;  %v449_v43 = vpop.f32.mrb[22].mxu0  ;;  %v1001_v44 = vpop.f32.mrb[22].mxu1 }
 0x147   : > { %815 = vst [vmem:[%s1504_s22 + $0x28] sm:$0xff] %v783_v39  ;;  %v655_v45 = vadd.f32 %v1001_v44, %v430_v38  ;;  %v451_v47 = vpop.f32.mrb[23].mxu0  ;;  %v649_v48 = vpop.f32.mrb[23].mxu1  ;;  %v450_v0 = vadd.f32 %v1496_v7, %v449_v43 }
 0x148   : > { %814 = vst [vmem:[%s1504_s22 + $0x20] sm:$0xff] %v782_v41  ;;  %v650_v49 = vadd.f32 %v649_v48, %v425_v40 }
 0x149   : > { %v785_v52 = vmax.f32 %v655_v45, 0.0 }
 0x14a   : > { %v784_v55 = vmax.f32 %v650_v49, 0.0  ;;  %v454_v56 = vpop.f32.mrb[24].mxu0  ;;  %v1004_v57 = vpop.f32.mrb[24].mxu1 }
 0x14b   : > { %817 = vst [vmem:[%s1504_s22 + $0x38] sm:$0xff] %v785_v52  ;;  %v665_v59 = vadd.f32 %v1004_v57, %v440_v51  ;;  %v456_v60 = vpop.f32.mrb[25].mxu0  ;;  %v659_v61 = vpop.f32.mrb[25].mxu1  ;;  %v455_v15 = vadd.f32 %v1496_v7, %v454_v56 }
 0x14c   : > { %816 = vst [vmem:[%s1504_s22 + $0x30] sm:$0xff] %v784_v55  ;;  %v660_v63 = vadd.f32 %v659_v61, %v435_v53 }
 0x14d   : > { %v787_v1 = vmax.f32 %v665_v59, 0.0 }
 0x14e   : > { %v786_v4 = vmax.f32 %v660_v63, 0.0  ;;  %v459_v5 = vpop.f32.mrb[26].mxu0  ;;  %v1007_v8 = vpop.f32.mrb[26].mxu1 }
 0x14f   : > { %819 = vst [vmem:[%s1504_s22 + $0x48] sm:$0xff] %v787_v1  ;;  %v675_v9 = vadd.f32 %v1007_v8, %v450_v0  ;;  %v461_v10 = vpop.f32.mrb[27].mxu0  ;;  %v669_v11 = vpop.f32.mrb[27].mxu1  ;;  %v460_v13 = vadd.f32 %v1496_v7, %v459_v5  ;;  %v515_v8 = vadd.f32 %v1496_v7, %v1477_v42  ;;  %v525_v42 = vadd.f32 %v1496_v7, %v1481_v50 }
 0x150   : > { %818 = vst [vmem:[%s1504_s22 + $0x40] sm:$0xff] %v786_v4  ;;  %v670_v12 = vadd.f32 %v669_v11, %v445_v3  ;;  %v520_v4 = vadd.f32 %v1496_v7, %v1479_v46 }
 0x151   : > { %v789_v14 = vmax.f32 %v675_v9, 0.0 }
 0x152   : > { %v788_v16 = vmax.f32 %v670_v12, 0.0  ;;  %v464_v17 = vpop.f32.mrb[28].mxu0  ;;  %v1010_v18 = vpop.f32.mrb[28].mxu1 }
 0x153   : > { %821 = vst [vmem:[%s1504_s22 + $0x58] sm:$0xff] %v789_v14  ;;  %v685_v19 = vadd.f32 %v1010_v18, %v460_v13  ;;  %v466_v20 = vpop.f32.mrb[29].mxu0  ;;  %v679_v21 = vpop.f32.mrb[29].mxu1  ;;  %v465_v24 = vadd.f32 %v1496_v7, %v464_v17  ;;  %v530_v17 = vadd.f32 %v1496_v7, %v1483_v54 }
 0x154   : > { %820 = vst [vmem:[%s1504_s22 + $0x50] sm:$0xff] %v788_v16  ;;  %v680_v22 = vadd.f32 %v679_v21, %v455_v15 }
 0x155   : > { %v791_v23 = vmax.f32 %v685_v19, 0.0 }
 0x156   : > { %v790_v25 = vmax.f32 %v680_v22, 0.0  ;;  %v469_v26 = vpop.f32.mrb[30].mxu0  ;;  %v1013_v27 = vpop.f32.mrb[30].mxu1 }
 0x157   : > { %823 = vst [vmem:[%s1504_s22 + $0x68] sm:$0xff] %v791_v23  ;;  %v470_v28 = vadd.f32 %v1496_v7, %v469_v26  ;;  %v471_v29 = vpop.f32.mrb[31].mxu0  ;;  %v689_v30 = vpop.f32.mrb[31].mxu1 }
 0x158   : > { %822 = vst [vmem:[%s1504_s22 + $0x60] sm:$0xff] %v790_v25  ;;  %v690_v31 = vadd.f32 %v689_v30, %v465_v24  ;;  %v535_v29 = vadd.f32 %v1496_v7, %v1485_v58 }
 0x159   : > { %v695_v32 = vadd.f32 %v1013_v27, %v470_v28  ;;  %v540_v27 = vadd.f32 %v1496_v7, %v1487_v62 }
 0x15a   : > { %v792_v33 = vmax.f32 %v690_v31, 0.0  ;;  %v474_v34 = vpop.f32.mrb[32].mxu0  ;;  %v1016_v35 = vpop.f32.mrb[32].mxu1 }
 0x15b   : > { %v793_v36 = vmax.f32 %v695_v32, 0.0  ;;  %v475_v37 = vadd.f32 %v1496_v7, %v474_v34  ;;  %v476_v38 = vpop.f32.mrb[33].mxu0  ;;  %v699_v39 = vpop.f32.mrb[33].mxu1 }
 0x15c   : > { %824 = vst [vmem:[%s1504_s22 + $0x70] sm:$0xff] %v792_v33  ;;  %v550_v38 = vadd.f32 %v1496_v7, %v1491_v6 }
 0x15d   : > { %825 = vst [vmem:[%s1504_s22 + $0x78] sm:$0xff] %v793_v36  ;;  %v700_v40 = vadd.f32 %v699_v39, %v475_v37 }
 0x15e   : > { %v479_v41 = vpop.f32.mrb[34].mxu0  ;;  %v1019_v43 = vpop.f32.mrb[34].mxu1 }
 0x15f   : > { %v794_v44 = vmax.f32 %v700_v40, 0.0  ;;  %v480_v45 = vadd.f32 %v1496_v7, %v479_v41  ;;  %v481_v47 = vpop.f32.mrb[35].mxu0  ;;  %v709_v48 = vpop.f32.mrb[35].mxu1  ;;  %v545_v40 = vadd.f32 %v1496_v7, %v1489_v2 }
 0x161   : > { %826 = vst [vmem:[%s1504_s22 + $0x80] sm:$0xff] %v794_v44  ;;  %v705_v49 = vadd.f32 %v1016_v35, %v480_v45 }
 0x162   : > { %v484_v51 = vpop.f32.mrb[36].mxu0  ;;  %v1022_v52 = vpop.f32.mrb[36].mxu1 }
 0x163   : > { %v795_v53 = vmax.f32 %v705_v49, 0.0  ;;  %v485_v55 = vadd.f32 %v1496_v7, %v484_v51  ;;  %v486_v56 = vpop.f32.mrb[37].mxu0  ;;  %v719_v57 = vpop.f32.mrb[37].mxu1 }
 0x165   : > { %827 = vst [vmem:[%s1504_s22 + $0x88] sm:$0xff] %v795_v53  ;;  %v710_v59 = vadd.f32 %v709_v48, %v485_v55 }
 0x166   : > { %v489_v60 = vpop.f32.mrb[38].mxu0  ;;  %v1541_v61 = vpop.f32.mrb[38].mxu1 }
 0x167   : > { %v796_v63 = vmax.f32 %v710_v59, 0.0  ;;  %v490_v0 = vadd.f32 %v1496_v7, %v489_v60  ;;  %v491_v1 = vpop.f32.mrb[39].mxu0  ;;  %v729_v3 = vpop.f32.mrb[39].mxu1 }
 0x169   : > { %828 = vst [vmem:[%s1504_s22 + $0x90] sm:$0xff] %v796_v63  ;;  %v715_v5 = vadd.f32 %v1019_v43, %v490_v0 }
 0x16a   : > { %v494_v9 = vpop.f32.mrb[40].mxu0  ;;  %v1028_v10 = vpop.f32.mrb[40].mxu1 }
 0x16b   : > { %v797_v11 = vmax.f32 %v715_v5, 0.0  ;;  %v495_v12 = vadd.f32 %v1496_v7, %v494_v9  ;;  %v745_v13 = vadd.f32 %v1028_v10, %v520_v4  ;;  %v496_v14 = vpop.f32.mrb[41].mxu0  ;;  %v739_v15 = vpop.f32.mrb[41].mxu1 }
 0x16c   : > { %v740_v16 = vadd.f32 %v739_v15, %v515_v8 }
 0x16d   : > { %829 = vst [vmem:[%s1504_s22 + $0x98] sm:$0xff] %v797_v11  ;;  %v720_v46 = vadd.f32 %v719_v57, %v495_v12  ;;  %v803_v18 = vmax.f32 %v745_v13, 0.0 }
 0x16e   : > { %v802_v19 = vmax.f32 %v740_v16, 0.0  ;;  %v499_v20 = vpop.f32.mrb[42].mxu0  ;;  %v1031_v21 = vpop.f32.mrb[42].mxu1 }
 0x16f   : > { %v798_v22 = vmax.f32 %v720_v46, 0.0  ;;  %835 = vst [vmem:[%s1504_s22 + $0xc8] sm:$0xff] %v803_v18  ;;  %v500_v23 = vadd.f32 %v1496_v7, %v499_v20  ;;  %v755_v24 = vadd.f32 %v1031_v21, %v530_v17  ;;  %v501_v25 = vpop.f32.mrb[43].mxu0  ;;  %v749_v26 = vpop.f32.mrb[43].mxu1 }
 0x170   : > { %834 = vst [vmem:[%s1504_s22 + $0xc0] sm:$0xff] %v802_v19  ;;  %v750_v54 = vadd.f32 %v749_v26, %v525_v42 }
 0x171   : > { %830 = vst [vmem:[%s1504_s22 + $0xa0] sm:$0xff] %v798_v22  ;;  %v725_v50 = vadd.f32 %v1022_v52, %v500_v23  ;;  %v805_v28 = vmax.f32 %v755_v24, 0.0 }
 0x172   : > { %v804_v30 = vmax.f32 %v750_v54, 0.0  ;;  %v504_v31 = vpop.f32.mrb[44].mxu0  ;;  %v1034_v32 = vpop.f32.mrb[44].mxu1 }
 0x173   : > { %v799_v33 = vmax.f32 %v725_v50, 0.0  ;;  %837 = vst [vmem:[%s1504_s22 + $0xd8] sm:$0xff] %v805_v28  ;;  %v505_v34 = vadd.f32 %v1496_v7, %v504_v31  ;;  %v765_v35 = vadd.f32 %v1034_v32, %v540_v27  ;;  %v506_v36 = vpop.f32.mrb[45].mxu0  ;;  %v759_v37 = vpop.f32.mrb[45].mxu1 }
 0x174   : > { %836 = vst [vmem:[%s1504_s22 + $0xd0] sm:$0xff] %v804_v30  ;;  %v760_v62 = vadd.f32 %v759_v37, %v535_v29 }
 0x175   : > { %831 = vst [vmem:[%s1504_s22 + $0xa8] sm:$0xff] %v799_v33  ;;  %v730_v58 = vadd.f32 %v729_v3, %v505_v34  ;;  %v807_v39 = vmax.f32 %v765_v35, 0.0 }
 0x176   : > { %v806_v41 = vmax.f32 %v760_v62, 0.0  ;;  %v509_v43 = vpop.f32.mrb[46].mxu0  ;;  %v1037_v44 = vpop.f32.mrb[46].mxu1 }
 0x177   : > { %v800_v45 = vmax.f32 %v730_v58, 0.0  ;;  %839 = vst [vmem:[%s1504_s22 + $0xe8] sm:$0xff] %v807_v39  ;;  %v510_v47 = vadd.f32 %v1496_v7, %v509_v43  ;;  %v775_v48 = vadd.f32 %v1037_v44, %v550_v38  ;;  %v511_v49 = vpop.f32.mrb[47].mxu0  ;;  %v769_v6 = vpop.f32.mrb[47].mxu1 }
 0x178   : > { %838 = vst [vmem:[%s1504_s22 + $0xe0] sm:$0xff] %v806_v41  ;;  %v770_v51 = vadd.f32 %v769_v6, %v545_v40 }
 0x179   : > { %832 = vst [vmem:[%s1504_s22 + $0xb0] sm:$0xff] %v800_v45  ;;  %v735_v52 = vadd.f32 %v1541_v61, %v510_v47  ;;  %v809_v53 = vmax.f32 %v775_v48, 0.0 }
 0x17a   : > { %v808_v2 = vmax.f32 %v770_v51, 0.0 }
 0x17b   : > { %v801_v55 = vmax.f32 %v735_v52, 0.0  ;;  %841 = vst [vmem:[%s1504_s22 + $0xf8] sm:$0xff] %v809_v53 }
 0x17c   : > { %840 = vst [vmem:[%s1504_s22 + $0xf0] sm:$0xff] %v808_v2 }
 0x17d   : > { %833 = vst [vmem:[%s1504_s22 + $0xb8] sm:$0xff] %v801_v55 }
 0x17e PF: > { %s13_s12 = sadd.s32 1, %s1166_s12  }
 0x17f   : > { %p10_p4 = scmp.ge.s32.totalorder %s13_s12, 4  }
 0x181   :  { %12 = sbr.rel (!%p10_p4) target bundleno = 1 (0x1), region = 62 }

// kernel: audio_cnn1d_extractor_forward.13
= control target key start
LH: loop header
LB: loop body
LE: loop exit
PB: predicated region body
PF: predicated region fallthrough
CT: control target
= control target key end

     0   :  { %s1053_s1 = inlined_call_operand.vmem [shape: f32[384,128], index: 1, kind: input, shape index: {}]   ;;  %s1054_s0 = inlined_call_operand.vmem [shape: f32[128,384], index: 0, kind: input, shape index: {}]   ;;  %s1055_s2 = inlined_call_operand.vmem [shape: f32[1,128], index: 2, kind: input, shape index: {}]   ;;  %s1056_s3 = inlined_call_operand.vmem [shape: f32[128,128], index: 3, kind: output, shape index: {}]  }
   0x1   :  { %v78_v0 = vld [vmem:[%s1053_s1 + $0x80] sm:$0xff]  ;;  %v79_v1 = vld [vmem:[%s1053_s1 + $0x88] sm:$0xff]  ;;  %v80_v5 = vld [vmem:[%s1053_s1 + $0x90] sm:$0xff] }
   0x2   :  { %v62_v2 = vld [vmem:[%s1053_s1] sm:$0xff]  ;;  %v612_v3 = vpack.c.bf16 %v79_v1, %v78_v0  ;;  %v63_v4 = vld [vmem:[%s1053_s1 + $0x8] sm:$0xff]  ;;  %v81_v6 = vld [vmem:[%s1053_s1 + $0x98] sm:$0xff] }
   0x3   :  { %v614_v7 = vpack.c.bf16 %v63_v4, %v62_v2  ;;  %v616_v8 = vpack.c.bf16 %v81_v6, %v80_v5  ;;  %v94_v9 = vld [vmem:[%s1053_s1 + $0x100] sm:$0xff]  ;;  %v95_v10 = vld [vmem:[%s1053_s1 + $0x108] sm:$0xff]  ;;  %v64_v11 = vld [vmem:[%s1053_s1 + $0x10] sm:$0xff] }
   0x4   :  { %613 = vmatprep.subr.bf16.mxu0 %v612_v3  ;;  %v644_v12 = vpack.c.bf16 %v95_v10, %v94_v9  ;;  %v65_v13 = vld [vmem:[%s1053_s1 + $0x18] sm:$0xff]  ;;  %v82_v14 = vld [vmem:[%s1053_s1 + $0xa0] sm:$0xff]  ;;  %v83_v15 = vld [vmem:[%s1053_s1 + $0xa8] sm:$0xff] }
   0x5   :  { %615 = vmatpush3.bf16.msra.mxu0 %v614_v7  ;;  %v618_v16 = vpack.c.bf16 %v65_v13, %v64_v11  ;;  %v96_v17 = vld [vmem:[%s1053_s1 + $0x110] sm:$0xff]  ;;  %v97_v18 = vld [vmem:[%s1053_s1 + $0x118] sm:$0xff]  ;;  %v620_v19 = vpack.c.bf16 %v83_v15, %v82_v14  ;;  %v66_v21 = vld [vmem:[%s1053_s1 + $0x20] sm:$0xff] }
   0x6   :  { %617 = vmatprep.subr.bf16.mxu0 %v616_v8  ;;  %645 = vmatprep.subr.bf16.mxu1 %v644_v12  ;;  %v648_v20 = vpack.c.bf16 %v97_v18, %v96_v17  ;;  %v67_v22 = vld [vmem:[%s1053_s1 + $0x28] sm:$0xff]  ;;  %v84_v23 = vld [vmem:[%s1053_s1 + $0xb0] sm:$0xff]  ;;  %v85_v24 = vld [vmem:[%s1053_s1 + $0xb8] sm:$0xff] }
   0x7   :  { %647 = vmatpush3.bf16.msra.mxu1 %v644_v12  ;;  %v98_v25 = vld [vmem:[%s1053_s1 + $0x120] sm:$0xff]  ;;  %v99_v26 = vld [vmem:[%s1053_s1 + $0x128] sm:$0xff]  ;;  %v622_v28 = vpack.c.bf16 %v67_v22, %v66_v21  ;;  %v100_v29 = vld [vmem:[%s1053_s1 + $0x130] sm:$0xff]  ;;  %v624_v31 = vpack.c.bf16 %v85_v24, %v84_v23 }
   0x8   :  { %649 = vmatprep.subr.bf16.mxu1 %v648_v20  ;;  %v652_v27 = vpack.c.bf16 %v99_v26, %v98_v25  ;;  %v101_v30 = vld [vmem:[%s1053_s1 + $0x138] sm:$0xff]  ;;  %v68_v32 = vld [vmem:[%s1053_s1 + $0x30] sm:$0xff]  ;;  %v86_v34 = vld [vmem:[%s1053_s1 + $0xc0] sm:$0xff] }
   0x9   :  { %619 = vmatpush3.bf16.msra.mxu0 %v618_v16  ;;  %v69_v33 = vld [vmem:[%s1053_s1 + $0x38] sm:$0xff]  ;;  %v87_v35 = vld [vmem:[%s1053_s1 + $0xc8] sm:$0xff]  ;;  %v656_v36 = vpack.c.bf16 %v101_v30, %v100_v29  ;;  %v102_v38 = vld [vmem:[%s1053_s1 + $0x140] sm:$0xff] }
   0xa   :  { %621 = vmatprep.subr.bf16.mxu0 %v620_v19  ;;  %v626_v37 = vpack.c.bf16 %v69_v33, %v68_v32  ;;  %v103_v39 = vld [vmem:[%s1053_s1 + $0x148] sm:$0xff]  ;;  %v628_v40 = vpack.c.bf16 %v87_v35, %v86_v34  ;;  %v70_v41 = vld [vmem:[%s1053_s1 + $0x40] sm:$0xff]  ;;  %v88_v43 = vld [vmem:[%s1053_s1 + $0xd0] sm:$0xff] }
   0xb   :  { %651 = vmatpush3.bf16.msra.mxu1 %v648_v20  ;;  %v71_v42 = vld [vmem:[%s1053_s1 + $0x48] sm:$0xff]  ;;  %v89_v44 = vld [vmem:[%s1053_s1 + $0xd8] sm:$0xff]  ;;  %v660_v45 = vpack.c.bf16 %v103_v39, %v102_v38  ;;  %v104_v48 = vld [vmem:[%s1053_s1 + $0x150] sm:$0xff] }
   0xc   :  { %653 = vmatprep.subr.bf16.mxu1 %v652_v27  ;;  %v15_v46 = vld [vmem:[%s1054_s0 + $0x8] sm:$0xff]  ;;  %v630_v47 = vpack.c.bf16 %v71_v42, %v70_v41  ;;  %v105_v49 = vld [vmem:[%s1053_s1 + $0x158] sm:$0xff]  ;;  %v632_v50 = vpack.c.bf16 %v89_v44, %v88_v43  ;;  %v72_v51 = vld [vmem:[%s1053_s1 + $0x50] sm:$0xff] }
   0xd   :  { %623 = vmatpush3.bf16.msra.mxu0 %v622_v28  ;;  %181 = vmatprep.mubr.f32.mxu0 %v15_v46  ;;  %v73_v52 = vld [vmem:[%s1053_s1 + $0x58] sm:$0xff]  ;;  %v16_v53 = vld [vmem:[%s1054_s0 + $0x10] sm:$0xff]  ;;  %v90_v54 = vld [vmem:[%s1053_s1 + $0xe0] sm:$0xff]  ;;  %v664_v56 = vpack.c.bf16 %v105_v49, %v104_v48 }
   0xe   :  { %625 = vmatprep.subr.bf16.mxu0 %v624_v31  ;;  %v91_v55 = vld [vmem:[%s1053_s1 + $0xe8] sm:$0xff]  ;;  %588 = vmatprep.mubr.f32.mxu1 %v16_v53  ;;  %v634_v57 = vpack.c.bf16 %v73_v52, %v72_v51  ;;  %v106_v58 = vld [vmem:[%s1053_s1 + $0x160] sm:$0xff]  ;;  %v92_v63 = vld [vmem:[%s1053_s1 + $0xf0] sm:$0xff] }
   0xf   :  { %655 = vmatpush3.bf16.msra.mxu1 %v652_v27  ;;  %v107_v59 = vld [vmem:[%s1053_s1 + $0x168] sm:$0xff]  ;;  %v636_v60 = vpack.c.bf16 %v91_v55, %v90_v54  ;;  %v74_v61 = vld [vmem:[%s1053_s1 + $0x60] sm:$0xff]  ;;  %v93_v0 = vld [vmem:[%s1053_s1 + $0xf8] sm:$0xff] }
  0x10   :  { %657 = vmatprep.subr.bf16.mxu1 %v656_v36  ;;  %v75_v62 = vld [vmem:[%s1053_s1 + $0x68] sm:$0xff]  ;;  %v668_v1 = vpack.c.bf16 %v107_v59, %v106_v58  ;;  %v108_v3 = vld [vmem:[%s1053_s1 + $0x170] sm:$0xff]  ;;  %v109_v4 = vld [vmem:[%s1053_s1 + $0x178] sm:$0xff]  ;;  %v640_v5 = vpack.c.bf16 %v93_v0, %v92_v63 }
  0x11   :  { %627 = vmatpush3.bf16.msra.mxu0 %v626_v37  ;;  %v638_v2 = vpack.c.bf16 %v75_v62, %v74_v61  ;;  %v76_v6 = vld [vmem:[%s1053_s1 + $0x70] sm:$0xff]  ;;  %v77_v7 = vld [vmem:[%s1053_s1 + $0x78] sm:$0xff]  ;;  %v672_v8 = vpack.c.bf16 %v109_v4, %v108_v3  ;;  %v14_v10 = vld [vmem:[%s1054_s0] sm:$0xff] }
  0x12   :  { %629 = vmatprep.subr.bf16.mxu0 %v628_v40  ;;  %v642_v9 = vpack.c.bf16 %v77_v7, %v76_v6  ;;  %v18_v11 = vld [vmem:[%s1054_s0 + $0x20] sm:$0xff]  ;;  %v19_v12 = vld [vmem:[%s1054_s0 + $0x28] sm:$0xff]  ;;  %v17_v14 = vld [vmem:[%s1054_s0 + $0x18] sm:$0xff] }
  0x13   :  { %659 = vmatpush3.bf16.msra.mxu1 %v656_v36  ;;  %v22_v13 = vld [vmem:[%s1054_s0 + $0x40] sm:$0xff]  ;;  %v21_v15 = vld [vmem:[%s1054_s0 + $0x38] sm:$0xff]  ;;  %v28_v17 = vld [vmem:[%s1054_s0 + $0x70] sm:$0xff] }
  0x14   :  { %661 = vmatprep.subr.bf16.mxu1 %v660_v45  ;;  %v25_v16 = vld [vmem:[%s1054_s0 + $0x58] sm:$0xff]  ;;  %v20_v18 = vld [vmem:[%s1054_s0 + $0x30] sm:$0xff]  ;;  %v31_v20 = vld [vmem:[%s1054_s0 + $0x88] sm:$0xff] }
  0x15   :  { %631 = vmatpush3.bf16.msra.mxu0 %v630_v47  ;;  %v24_v19 = vld [vmem:[%s1054_s0 + $0x50] sm:$0xff]  ;;  %v34_v21 = vld [vmem:[%s1054_s0 + $0xa0] sm:$0xff]  ;;  %v23_v22 = vld [vmem:[%s1054_s0 + $0x48] sm:$0xff] }
  0x16   :  { %633 = vmatprep.subr.bf16.mxu0 %v632_v50  ;;  %v27_v23 = vld [vmem:[%s1054_s0 + $0x68] sm:$0xff]  ;;  %v37_v24 = vld [vmem:[%s1054_s0 + $0xb8] sm:$0xff]  ;;  %v40_v25 = vld [vmem:[%s1054_s0 + $0xd0] sm:$0xff] }
  0x17   :  { %663 = vmatpush3.bf16.msra.mxu1 %v660_v45  ;;  %v26_v26 = vld [vmem:[%s1054_s0 + $0x60] sm:$0xff]  ;;  %v43_v28 = vld [vmem:[%s1054_s0 + $0xe8] sm:$0xff]  ;;  %v29_v30 = vld [vmem:[%s1054_s0 + $0x78] sm:$0xff] }
  0x18   :  { %665 = vmatprep.subr.bf16.mxu1 %v664_v56  ;;  %v30_v27 = vld [vmem:[%s1054_s0 + $0x80] sm:$0xff]  ;;  %v33_v31 = vld [vmem:[%s1054_s0 + $0x98] sm:$0xff]  ;;  %v52_v33 = vld [vmem:[%s1054_s0 + $0x130] sm:$0xff] }
  0x19   :  { %635 = vmatpush3.bf16.msra.mxu0 %v634_v57  ;;  %v46_v29 = vld [vmem:[%s1054_s0 + $0x100] sm:$0xff]  ;;  %v49_v32 = vld [vmem:[%s1054_s0 + $0x118] sm:$0xff]  ;;  %v32_v34 = vld [vmem:[%s1054_s0 + $0x90] sm:$0xff] }
  0x1a   :  { %637 = vmatprep.subr.bf16.mxu0 %v636_v60  ;;  %v36_v35 = vld [vmem:[%s1054_s0 + $0xb0] sm:$0xff]  ;;  %v55_v36 = vld [vmem:[%s1054_s0 + $0x148] sm:$0xff]  ;;  %v58_v37 = vld [vmem:[%s1054_s0 + $0x160] sm:$0xff] }
  0x1b   :  { %667 = vmatpush3.bf16.msra.mxu1 %v664_v56  ;;  %v35_v38 = vld [vmem:[%s1054_s0 + $0xa8] sm:$0xff]  ;;  %v61_v40 = vld [vmem:[%s1054_s0 + $0x178] sm:$0xff]  ;;  %v38_v41 = vld [vmem:[%s1054_s0 + $0xc0] sm:$0xff] }
  0x1c   :  { %669 = vmatprep.subr.bf16.mxu1 %v668_v1  ;;  %v39_v39 = vld [vmem:[%s1054_s0 + $0xc8] sm:$0xff]  ;;  %v42_v42 = vld [vmem:[%s1054_s0 + $0xe0] sm:$0xff]  ;;  %v41_v43 = vld [vmem:[%s1054_s0 + $0xd8] sm:$0xff] }
  0x1d   :  { %639 = vmatpush3.bf16.msra.mxu0 %v638_v2  ;;  %v45_v44 = vld [vmem:[%s1054_s0 + $0xf8] sm:$0xff]  ;;  %v44_v45 = vld [vmem:[%s1054_s0 + $0xf0] sm:$0xff]  ;;  %v47_v47 = vld [vmem:[%s1054_s0 + $0x108] sm:$0xff] }
  0x1e   :  { %641 = vmatprep.subr.bf16.mxu0 %v640_v5  ;;  %v48_v46 = vld [vmem:[%s1054_s0 + $0x110] sm:$0xff]  ;;  %v51_v48 = vld [vmem:[%s1054_s0 + $0x128] sm:$0xff]  ;;  %v50_v49 = vld [vmem:[%s1054_s0 + $0x120] sm:$0xff] }
  0x1f   :  { %671 = vmatpush3.bf16.msra.mxu1 %v668_v1  ;;  %v54_v50 = vld [vmem:[%s1054_s0 + $0x140] sm:$0xff]  ;;  %v53_v51 = vld [vmem:[%s1054_s0 + $0x138] sm:$0xff]  ;;  %v56_v53 = vld [vmem:[%s1054_s0 + $0x150] sm:$0xff] }
  0x20   :  { %673 = vmatprep.subr.bf16.mxu1 %v672_v8  ;;  %v57_v52 = vld [vmem:[%s1054_s0 + $0x158] sm:$0xff]  ;;  %v60_v54 = vld [vmem:[%s1054_s0 + $0x170] sm:$0xff]  ;;  %v59_v55 = vld [vmem:[%s1054_s0 + $0x168] sm:$0xff] }
  0x21   :  { %643 = vmatpush3.bf16.msra.mxu0 %v642_v9  ;;  %v987_v58 = vld [vmem:[%s1055_s2] ss:$0 sm:$0xff] }
  0x23   :  { %675 = vmatpush3.bf16.msra.mxu1 %v672_v8 }
  0x24   :  { %182 = vmatmul.mubr.f32.vlgmr.msra.gmra.mrb[0].mxu0 %v14_v10 }
  0x25   :  { %186 = vmatprep.mubr.f32.mxu0 %v18_v11 }
  0x26   :  { %589 = vmatmul.mubr.f32.vlgmr.msra.gmra.mrb[0].mxu1 %v19_v12 }
  0x27   :  { %591 = vmatprep.mubr.f32.mxu1 %v22_v13 }
  0x28   :  { %187 = vmatmul.mubr.f32.gmra.mrb[2].mxu0 %v17_v14 }
  0x29   :  { %191 = vmatprep.mubr.f32.mxu0 %v21_v15 }
  0x2a   :  { %592 = vmatmul.mubr.f32.gmra.mrb[2].mxu1 %v25_v16 }
  0x2b   :  { %594 = vmatprep.mubr.f32.mxu1 %v28_v17 }
  0x2c   :  { %192 = vmatmul.mubr.f32.gmra.mrb[4].mxu0 %v20_v18 }
  0x2d   :  { %196 = vmatprep.mubr.f32.mxu0 %v24_v19 }
  0x2e   :  { %595 = vmatmul.mubr.f32.gmra.mrb[4].mxu1 %v31_v20 }
  0x2f   :  { %597 = vmatprep.mubr.f32.mxu1 %v34_v21 }
  0x30   :  { %197 = vmatmul.mubr.f32.gmra.mrb[6].mxu0 %v23_v22 }
  0x31   :  { %201 = vmatprep.mubr.f32.mxu0 %v27_v23 }
  0x32   :  { %598 = vmatmul.mubr.f32.gmra.mrb[6].mxu1 %v37_v24 }
  0x33   :  { %600 = vmatprep.mubr.f32.mxu1 %v40_v25 }
  0x34   :  { %202 = vmatmul.mubr.f32.gmra.mrb[8].mxu0 %v26_v26 }
  0x35   :  { %206 = vmatprep.mubr.f32.mxu0 %v30_v27 }
  0x36   :  { %601 = vmatmul.mubr.f32.gmra.mrb[8].mxu1 %v43_v28 }
  0x37   :  { %603 = vmatprep.mubr.f32.mxu1 %v46_v29 }
  0x38   :  { %207 = vmatmul.mubr.f32.gmra.mrb[10].mxu0 %v29_v30 }
  0x39   :  { %211 = vmatprep.mubr.f32.mxu0 %v33_v31 }
  0x3a   :  { %604 = vmatmul.mubr.f32.gmra.mrb[10].mxu1 %v49_v32 }
  0x3b   :  { %606 = vmatprep.mubr.f32.mxu1 %v52_v33 }
  0x3c   :  { %212 = vmatmul.mubr.f32.gmra.mrb[12].mxu0 %v32_v34 }
  0x3d   :  { %216 = vmatprep.mubr.f32.mxu0 %v36_v35 }
  0x3e   :  { %607 = vmatmul.mubr.f32.gmra.mrb[12].mxu1 %v55_v36 }
  0x3f   :  { %609 = vmatprep.mubr.f32.mxu1 %v58_v37 }
  0x40   :  { %217 = vmatmul.mubr.f32.gmra.mrb[14].mxu0 %v35_v38 }
  0x41   :  { %221 = vmatprep.mubr.f32.mxu0 %v39_v39 }
  0x42   :  { %610 = vmatmul.mubr.f32.gmra.mrb[14].mxu1 %v61_v40 }
  0x44   :  { %222 = vmatmul.mubr.f32.gmra.mrb[16].mxu0 %v38_v41 }
  0x45   :  { %226 = vmatprep.mubr.f32.mxu0 %v42_v42 }
  0x48   :  { %227 = vmatmul.mubr.f32.gmra.mrb[18].mxu0 %v41_v43 }
  0x49   :  { %231 = vmatprep.mubr.f32.mxu0 %v45_v44 }
  0x4c   :  { %232 = vmatmul.mubr.f32.gmra.mrb[20].mxu0 %v44_v45 }
  0x4d   :  { %236 = vmatprep.mubr.f32.mxu0 %v48_v46 }
  0x50   :  { %237 = vmatmul.mubr.f32.gmra.mrb[22].mxu0 %v47_v47 }
  0x51   :  { %241 = vmatprep.mubr.f32.mxu0 %v51_v48 }
  0x54   :  { %242 = vmatmul.mubr.f32.gmra.mrb[24].mxu0 %v50_v49 }
  0x55   :  { %246 = vmatprep.mubr.f32.mxu0 %v54_v50 }
  0x58   :  { %247 = vmatmul.mubr.f32.gmra.mrb[26].mxu0 %v53_v51 }
  0x59   :  { %251 = vmatprep.mubr.f32.mxu0 %v57_v52 }
  0x5c   :  { %252 = vmatmul.mubr.f32.gmra.mrb[28].mxu0 %v56_v53 }
  0x5d   :  { %256 = vmatprep.mubr.f32.mxu0 %v60_v54 }
  0x60   :  { %257 = vmatmul.mubr.f32.gmra.mrb[30].mxu0 %v59_v55 }
  0xf7   :  { %v476_v56 = vpop.f32.mrb[0].mxu0 }
  0xf8   :  { %v477_v57 = vpop.f32.mrb[1].mxu0 }
  0xf9   :  { %v478_v59 = vadd.f32 %v477_v57, %v476_v56  ;;  %v590_v60 = vpop.f32.mrb[0].mxu1 }
  0xfa   :  { %v328_v61 = vpop.f32.mrb[1].mxu1 }
  0xfb   :  { %v479_v62 = vpop.f32.mrb[2].mxu0  ;;  %v184_v63 = vadd.f32 %v478_v59, %v987_v58 }
  0xfc   :  { %v480_v0 = vpop.f32.mrb[3].mxu0 }
  0xfd   :  { %v481_v1 = vadd.f32 %v480_v0, %v479_v62  ;;  %v329_v2 = vadd.f32 %v328_v61, %v184_v63  ;;  %v593_v3 = vpop.f32.mrb[2].mxu1 }
  0xfe   :  { %v338_v4 = vpop.f32.mrb[3].mxu1 }
  0xff   :  { %v189_v5 = vadd.f32 %v481_v1, %v987_v58  ;;  %v407_v6 = vmax.f32 %v329_v2, 0.0  ;;  %v482_v7 = vpop.f32.mrb[4].mxu0 }
 0x100   :  { %v483_v8 = vpop.f32.mrb[5].mxu0 }
 0x101   :  { %v334_v9 = vadd.f32 %v590_v60, %v189_v5  ;;  %423 = vst [vmem:[%s1056_s3] sm:$0xff] %v407_v6  ;;  %v484_v10 = vadd.f32 %v483_v8, %v482_v7  ;;  %v596_v11 = vpop.f32.mrb[4].mxu1 }
 0x102   :  { %v348_v12 = vpop.f32.mrb[5].mxu1 }
 0x103   :  { %v408_v13 = vmax.f32 %v334_v9, 0.0  ;;  %v485_v14 = vpop.f32.mrb[6].mxu0  ;;  %v194_v15 = vadd.f32 %v484_v10, %v987_v58 }
 0x104   :  { %v486_v16 = vpop.f32.mrb[7].mxu0 }
 0x105   :  { %424 = vst [vmem:[%s1056_s3 + $0x8] sm:$0xff] %v408_v13  ;;  %v487_v17 = vadd.f32 %v486_v16, %v485_v14  ;;  %v339_v18 = vadd.f32 %v338_v4, %v194_v15  ;;  %v599_v19 = vpop.f32.mrb[6].mxu1 }
 0x106   :  { %v358_v20 = vpop.f32.mrb[7].mxu1 }
 0x107   :  { %v199_v21 = vadd.f32 %v487_v17, %v987_v58  ;;  %v409_v22 = vmax.f32 %v339_v18, 0.0  ;;  %v488_v23 = vpop.f32.mrb[8].mxu0 }
 0x108   :  { %v489_v24 = vpop.f32.mrb[9].mxu0 }
 0x109   :  { %v344_v25 = vadd.f32 %v593_v3, %v199_v21  ;;  %425 = vst [vmem:[%s1056_s3 + $0x10] sm:$0xff] %v409_v22  ;;  %v490_v26 = vadd.f32 %v489_v24, %v488_v23  ;;  %v602_v27 = vpop.f32.mrb[8].mxu1 }
 0x10a   :  { %v368_v28 = vpop.f32.mrb[9].mxu1 }
 0x10b   :  { %v410_v29 = vmax.f32 %v344_v25, 0.0  ;;  %v491_v30 = vpop.f32.mrb[10].mxu0  ;;  %v204_v31 = vadd.f32 %v490_v26, %v987_v58 }
 0x10c   :  { %v492_v32 = vpop.f32.mrb[11].mxu0 }
 0x10d   :  { %426 = vst [vmem:[%s1056_s3 + $0x18] sm:$0xff] %v410_v29  ;;  %v493_v33 = vadd.f32 %v492_v32, %v491_v30  ;;  %v349_v34 = vadd.f32 %v348_v12, %v204_v31  ;;  %v605_v35 = vpop.f32.mrb[10].mxu1 }
 0x10e   :  { %v378_v36 = vpop.f32.mrb[11].mxu1 }
 0x10f   :  { %v209_v37 = vadd.f32 %v493_v33, %v987_v58  ;;  %v411_v38 = vmax.f32 %v349_v34, 0.0  ;;  %v494_v39 = vpop.f32.mrb[12].mxu0 }
 0x110   :  { %v495_v40 = vpop.f32.mrb[13].mxu0 }
 0x111   :  { %v354_v41 = vadd.f32 %v596_v11, %v209_v37  ;;  %427 = vst [vmem:[%s1056_s3 + $0x20] sm:$0xff] %v411_v38  ;;  %v496_v42 = vadd.f32 %v495_v40, %v494_v39  ;;  %v608_v43 = vpop.f32.mrb[12].mxu1 }
 0x112   :  { %v388_v44 = vpop.f32.mrb[13].mxu1 }
 0x113   :  { %v412_v45 = vmax.f32 %v354_v41, 0.0  ;;  %v497_v46 = vpop.f32.mrb[14].mxu0  ;;  %v214_v47 = vadd.f32 %v496_v42, %v987_v58 }
 0x114   :  { %v498_v48 = vpop.f32.mrb[15].mxu0 }
 0x115   :  { %428 = vst [vmem:[%s1056_s3 + $0x28] sm:$0xff] %v412_v45  ;;  %v499_v49 = vadd.f32 %v498_v48, %v497_v46  ;;  %v359_v50 = vadd.f32 %v358_v20, %v214_v47  ;;  %v611_v51 = vpop.f32.mrb[14].mxu1 }
 0x116   :  { %v398_v52 = vpop.f32.mrb[15].mxu1 }
 0x117   :  { %v219_v53 = vadd.f32 %v499_v49, %v987_v58  ;;  %v413_v54 = vmax.f32 %v359_v50, 0.0  ;;  %v500_v55 = vpop.f32.mrb[16].mxu0 }
 0x118   :  { %v501_v56 = vpop.f32.mrb[17].mxu0 }
 0x119   :  { %v364_v57 = vadd.f32 %v599_v19, %v219_v53  ;;  %429 = vst [vmem:[%s1056_s3 + $0x30] sm:$0xff] %v413_v54  ;;  %v502_v59 = vadd.f32 %v501_v56, %v500_v55 }
 0x11b   :  { %v414_v60 = vmax.f32 %v364_v57, 0.0  ;;  %v503_v61 = vpop.f32.mrb[18].mxu0  ;;  %v224_v62 = vadd.f32 %v502_v59, %v987_v58 }
 0x11c   :  { %v504_v63 = vpop.f32.mrb[19].mxu0 }
 0x11d   :  { %430 = vst [vmem:[%s1056_s3 + $0x38] sm:$0xff] %v414_v60  ;;  %v505_v0 = vadd.f32 %v504_v63, %v503_v61  ;;  %v369_v1 = vadd.f32 %v368_v28, %v224_v62 }
 0x11f   :  { %v229_v2 = vadd.f32 %v505_v0, %v987_v58  ;;  %v415_v3 = vmax.f32 %v369_v1, 0.0  ;;  %v506_v4 = vpop.f32.mrb[20].mxu0 }
 0x120   :  { %v507_v5 = vpop.f32.mrb[21].mxu0 }
 0x121   :  { %v374_v6 = vadd.f32 %v602_v27, %v229_v2  ;;  %431 = vst [vmem:[%s1056_s3 + $0x40] sm:$0xff] %v415_v3  ;;  %v508_v7 = vadd.f32 %v507_v5, %v506_v4 }
 0x123   :  { %v416_v8 = vmax.f32 %v374_v6, 0.0  ;;  %v509_v9 = vpop.f32.mrb[22].mxu0  ;;  %v234_v10 = vadd.f32 %v508_v7, %v987_v58 }
 0x124   :  { %v510_v11 = vpop.f32.mrb[23].mxu0 }
 0x125   :  { %432 = vst [vmem:[%s1056_s3 + $0x48] sm:$0xff] %v416_v8  ;;  %v511_v12 = vadd.f32 %v510_v11, %v509_v9  ;;  %v379_v13 = vadd.f32 %v378_v36, %v234_v10 }
 0x127   :  { %v239_v14 = vadd.f32 %v511_v12, %v987_v58  ;;  %v417_v15 = vmax.f32 %v379_v13, 0.0  ;;  %v512_v16 = vpop.f32.mrb[24].mxu0 }
 0x128   :  { %v513_v17 = vpop.f32.mrb[25].mxu0 }
 0x129   :  { %v384_v18 = vadd.f32 %v605_v35, %v239_v14  ;;  %433 = vst [vmem:[%s1056_s3 + $0x50] sm:$0xff] %v417_v15  ;;  %v514_v19 = vadd.f32 %v513_v17, %v512_v16 }
 0x12b   :  { %v418_v20 = vmax.f32 %v384_v18, 0.0  ;;  %v515_v21 = vpop.f32.mrb[26].mxu0  ;;  %v244_v22 = vadd.f32 %v514_v19, %v987_v58 }
 0x12c   :  { %v516_v23 = vpop.f32.mrb[27].mxu0 }
 0x12d   :  { %434 = vst [vmem:[%s1056_s3 + $0x58] sm:$0xff] %v418_v20  ;;  %v517_v24 = vadd.f32 %v516_v23, %v515_v21  ;;  %v389_v25 = vadd.f32 %v388_v44, %v244_v22 }
 0x12f   :  { %v249_v26 = vadd.f32 %v517_v24, %v987_v58  ;;  %v419_v27 = vmax.f32 %v389_v25, 0.0  ;;  %v518_v28 = vpop.f32.mrb[28].mxu0 }
 0x130   :  { %v519_v29 = vpop.f32.mrb[29].mxu0 }
 0x131   :  { %v394_v30 = vadd.f32 %v608_v43, %v249_v26  ;;  %435 = vst [vmem:[%s1056_s3 + $0x60] sm:$0xff] %v419_v27  ;;  %v520_v31 = vadd.f32 %v519_v29, %v518_v28 }
 0x133   :  { %v420_v32 = vmax.f32 %v394_v30, 0.0  ;;  %v521_v33 = vpop.f32.mrb[30].mxu0  ;;  %v254_v34 = vadd.f32 %v520_v31, %v987_v58 }
 0x134   :  { %v522_v35 = vpop.f32.mrb[31].mxu0 }
 0x135   :  { %436 = vst [vmem:[%s1056_s3 + $0x68] sm:$0xff] %v420_v32  ;;  %v523_v36 = vadd.f32 %v522_v35, %v521_v33  ;;  %v399_v37 = vadd.f32 %v398_v52, %v254_v34 }
 0x137   :  { %v259_v38 = vadd.f32 %v523_v36, %v987_v58  ;;  %v421_v39 = vmax.f32 %v399_v37, 0.0 }
 0x139   :  { %v404_v40 = vadd.f32 %v611_v51, %v259_v38  ;;  %437 = vst [vmem:[%s1056_s3 + $0x70] sm:$0xff] %v421_v39 }
 0x13b   :  { %v422_v41 = vmax.f32 %v404_v40, 0.0 }
 0x13d   :  { %438 = vst [vmem:[%s1056_s3 + $0x78] sm:$0xff] %v422_v41 }

// kernel: audio_cnn1d_extractor_forward.15
= control target key start
LH: loop header
LB: loop body
LE: loop exit
PB: predicated region body
PF: predicated region fallthrough
CT: control target
= control target key end

     0   :  { %v445_v3 = vmov 0.0   ;;  %s821_s1 = inlined_call_operand.vmem [shape: f32[384,256], index: 1, kind: input, shape index: {}]   ;;  %s822_s0 = inlined_call_operand.vmem [shape: f32[32,384], index: 0, kind: input, shape index: {}]   ;;  %s823_s2 = inlined_call_operand.vmem [shape: f32[1,256], index: 2, kind: input, shape index: {}]   ;;  %s824_s3 = inlined_call_operand.vmem [shape: f32[32,256], index: 3, kind: output, shape index: {}]  }
   0x1   :  { %v27_v0 = vld [vmem:[%s821_s1 + $0x8] sm:$0xff]  ;;  %v29_v1 = vld [vmem:[%s821_s1 + $0x18] sm:$0xff]  ;;  %v26_v2 = vld [vmem:[%s821_s1] sm:$0xff]  ;;  %287 = vmatprep.mubr.f32.mxu0 %v445_v3 }
   0x2   :  { %v332_v4 = vpack.c.bf16 %v29_v1, %v27_v0  ;;  %v28_v5 = vld [vmem:[%s821_s1 + $0x10] sm:$0xff]  ;;  %v31_v6 = vld [vmem:[%s821_s1 + $0x28] sm:$0xff]  ;;  %v33_v7 = vld [vmem:[%s821_s1 + $0x38] sm:$0xff] }
   0x3   :  { %v334_v8 = vpack.c.bf16 %v28_v5, %v26_v2  ;;  %v336_v9 = vpack.c.bf16 %v33_v7, %v31_v6  ;;  %v30_v10 = vld [vmem:[%s821_s1 + $0x20] sm:$0xff]  ;;  %v32_v11 = vld [vmem:[%s821_s1 + $0x30] sm:$0xff]  ;;  %v35_v12 = vld [vmem:[%s821_s1 + $0x48] sm:$0xff] }
   0x4   :  { %333 = vmatprep.subr.bf16.mxu1 %v332_v4  ;;  %v37_v13 = vld [vmem:[%s821_s1 + $0x58] sm:$0xff]  ;;  %v338_v14 = vpack.c.bf16 %v32_v11, %v30_v10  ;;  %v34_v16 = vld [vmem:[%s821_s1 + $0x40] sm:$0xff]  ;;  %v36_v17 = vld [vmem:[%s821_s1 + $0x50] sm:$0xff] }
   0x5   :  { %335 = vmatpush1.bf16.msra.mxu1 %v334_v8  ;;  %v340_v15 = vpack.c.bf16 %v37_v13, %v35_v12  ;;  %v39_v18 = vld [vmem:[%s821_s1 + $0x68] sm:$0xff]  ;;  %v41_v19 = vld [vmem:[%s821_s1 + $0x78] sm:$0xff]  ;;  %v342_v20 = vpack.c.bf16 %v36_v17, %v34_v16  ;;  %v38_v22 = vld [vmem:[%s821_s1 + $0x60] sm:$0xff] }
   0x6   :  { %337 = vmatprep.subr.bf16.mxu1 %v336_v9  ;;  %v344_v21 = vpack.c.bf16 %v41_v19, %v39_v18  ;;  %v40_v23 = vld [vmem:[%s821_s1 + $0x70] sm:$0xff]  ;;  %v43_v24 = vld [vmem:[%s821_s1 + $0x88] sm:$0xff]  ;;  %v45_v25 = vld [vmem:[%s821_s1 + $0x98] sm:$0xff] }
   0x7   :  { %v346_v26 = vpack.c.bf16 %v40_v23, %v38_v22  ;;  %v91_v27 = vld [vmem:[%s821_s1 + $0x208] sm:$0xff]  ;;  %v93_v28 = vld [vmem:[%s821_s1 + $0x218] sm:$0xff]  ;;  %v90_v29 = vld [vmem:[%s821_s1 + $0x200] sm:$0xff]  ;;  %v348_v30 = vpack.c.bf16 %v45_v25, %v43_v24 }
   0x8   :  { %v42_v31 = vld [vmem:[%s821_s1 + $0x80] sm:$0xff]  ;;  %v44_v32 = vld [vmem:[%s821_s1 + $0x90] sm:$0xff]  ;;  %v396_v33 = vpack.c.bf16 %v93_v28, %v91_v27  ;;  %v47_v35 = vld [vmem:[%s821_s1 + $0xa8] sm:$0xff] }
   0x9   :  { %339 = vmatpush1.bf16.msra.mxu1 %v338_v14  ;;  %v92_v34 = vld [vmem:[%s821_s1 + $0x210] sm:$0xff]  ;;  %v49_v36 = vld [vmem:[%s821_s1 + $0xb8] sm:$0xff]  ;;  %v95_v38 = vld [vmem:[%s821_s1 + $0x228] sm:$0xff]  ;;  %v350_v42 = vpack.c.bf16 %v44_v32, %v42_v31 }
   0xa   :  { %341 = vmatprep.subr.bf16.mxu1 %v340_v15  ;;  %v398_v37 = vpack.c.bf16 %v92_v34, %v90_v29  ;;  %397 = vmatprep.subr.bf16.mxu0 %v396_v33  ;;  %v97_v39 = vld [vmem:[%s821_s1 + $0x238] sm:$0xff]  ;;  %v94_v40 = vld [vmem:[%s821_s1 + $0x220] sm:$0xff]  ;;  %v96_v41 = vld [vmem:[%s821_s1 + $0x230] sm:$0xff]  ;;  %v352_v47 = vpack.c.bf16 %v49_v36, %v47_v35 }
   0xb   :  { %v46_v43 = vld [vmem:[%s821_s1 + $0xa0] sm:$0xff]  ;;  %v48_v44 = vld [vmem:[%s821_s1 + $0xb0] sm:$0xff]  ;;  %v400_v45 = vpack.c.bf16 %v97_v39, %v95_v38  ;;  %v402_v46 = vpack.c.bf16 %v96_v41, %v94_v40  ;;  %v51_v48 = vld [vmem:[%s821_s1 + $0xc8] sm:$0xff] }
   0xc   :  { %399 = vmatpush1.bf16.msra.mxu0 %v398_v37  ;;  %v99_v49 = vld [vmem:[%s821_s1 + $0x248] sm:$0xff]  ;;  %v101_v50 = vld [vmem:[%s821_s1 + $0x258] sm:$0xff]  ;;  %v98_v53 = vld [vmem:[%s821_s1 + $0x240] sm:$0xff]  ;;  %v354_v55 = vpack.c.bf16 %v48_v44, %v46_v43 }
   0xd   :  { %343 = vmatpush1.bf16.msra.mxu1 %v342_v20  ;;  %v53_v51 = vld [vmem:[%s821_s1 + $0xd8] sm:$0xff]  ;;  %401 = vmatprep.subr.bf16.mxu0 %v400_v45  ;;  %v404_v52 = vpack.c.bf16 %v101_v50, %v99_v49  ;;  %v100_v54 = vld [vmem:[%s821_s1 + $0x250] sm:$0xff]  ;;  %v50_v56 = vld [vmem:[%s821_s1 + $0xc0] sm:$0xff] }
   0xe   :  { %345 = vmatprep.subr.bf16.mxu1 %v344_v21  ;;  %v406_v57 = vpack.c.bf16 %v100_v54, %v98_v53  ;;  %v103_v58 = vld [vmem:[%s821_s1 + $0x268] sm:$0xff]  ;;  %v105_v59 = vld [vmem:[%s821_s1 + $0x278] sm:$0xff]  ;;  %v356_v60 = vpack.c.bf16 %v53_v51, %v51_v48  ;;  %v52_v61 = vld [vmem:[%s821_s1 + $0xd0] sm:$0xff] }
   0xf   :  { %v408_v62 = vpack.c.bf16 %v105_v59, %v103_v58  ;;  %v102_v63 = vld [vmem:[%s821_s1 + $0x260] sm:$0xff]  ;;  %v104_v0 = vld [vmem:[%s821_s1 + $0x270] sm:$0xff]  ;;  %v55_v1 = vld [vmem:[%s821_s1 + $0xe8] sm:$0xff]  ;;  %v358_v6 = vpack.c.bf16 %v52_v61, %v50_v56 }
  0x10   :  { %403 = vmatpush1.bf16.msra.mxu0 %v402_v46  ;;  %v57_v2 = vld [vmem:[%s821_s1 + $0xf8] sm:$0xff]  ;;  %v107_v4 = vld [vmem:[%s821_s1 + $0x288] sm:$0xff]  ;;  %v54_v7 = vld [vmem:[%s821_s1 + $0xe0] sm:$0xff]  ;;  %v410_v9 = vpack.c.bf16 %v104_v0, %v102_v63 }
  0x11   :  { %347 = vmatpush1.bf16.msra.mxu1 %v346_v26  ;;  %405 = vmatprep.subr.bf16.mxu0 %v404_v52  ;;  %v109_v5 = vld [vmem:[%s821_s1 + $0x298] sm:$0xff]  ;;  %v56_v8 = vld [vmem:[%s821_s1 + $0xf0] sm:$0xff]  ;;  %v360_v10 = vpack.c.bf16 %v57_v2, %v55_v1  ;;  %v59_v11 = vld [vmem:[%s821_s1 + $0x108] sm:$0xff] }
  0x12   :  { %349 = vmatprep.subr.bf16.mxu1 %v348_v30  ;;  %v412_v12 = vpack.c.bf16 %v109_v5, %v107_v4  ;;  %v106_v13 = vld [vmem:[%s821_s1 + $0x280] sm:$0xff]  ;;  %v108_v14 = vld [vmem:[%s821_s1 + $0x290] sm:$0xff]  ;;  %v61_v15 = vld [vmem:[%s821_s1 + $0x118] sm:$0xff]  ;;  %v362_v18 = vpack.c.bf16 %v56_v8, %v54_v7 }
  0x13   :  { %v111_v16 = vld [vmem:[%s821_s1 + $0x2a8] sm:$0xff]  ;;  %v113_v17 = vld [vmem:[%s821_s1 + $0x2b8] sm:$0xff]  ;;  %v58_v19 = vld [vmem:[%s821_s1 + $0x100] sm:$0xff]  ;;  %v414_v21 = vpack.c.bf16 %v108_v14, %v106_v13  ;;  %v364_v22 = vpack.c.bf16 %v61_v15, %v59_v11 }
  0x14   :  { %407 = vmatpush1.bf16.msra.mxu0 %v406_v57  ;;  %v60_v20 = vld [vmem:[%s821_s1 + $0x110] sm:$0xff]  ;;  %v63_v23 = vld [vmem:[%s821_s1 + $0x128] sm:$0xff]  ;;  %v416_v24 = vpack.c.bf16 %v113_v17, %v111_v16  ;;  %v110_v25 = vld [vmem:[%s821_s1 + $0x2a0] sm:$0xff] }
  0x15   :  { %351 = vmatpush1.bf16.msra.mxu1 %v350_v42  ;;  %409 = vmatprep.subr.bf16.mxu0 %v408_v62  ;;  %v112_v26 = vld [vmem:[%s821_s1 + $0x2b0] sm:$0xff]  ;;  %v65_v27 = vld [vmem:[%s821_s1 + $0x138] sm:$0xff]  ;;  %v115_v28 = vld [vmem:[%s821_s1 + $0x2c8] sm:$0xff]  ;;  %v366_v30 = vpack.c.bf16 %v60_v20, %v58_v19 }
  0x16   :  { %353 = vmatprep.subr.bf16.mxu1 %v352_v47  ;;  %v117_v29 = vld [vmem:[%s821_s1 + $0x2d8] sm:$0xff]  ;;  %v62_v31 = vld [vmem:[%s821_s1 + $0x120] sm:$0xff]  ;;  %v64_v32 = vld [vmem:[%s821_s1 + $0x130] sm:$0xff]  ;;  %v418_v33 = vpack.c.bf16 %v112_v26, %v110_v25  ;;  %v368_v35 = vpack.c.bf16 %v65_v27, %v63_v23 }
  0x17   :  { %v15_v34 = vld [vmem:[%s822_s0 + $0x8] sm:$0xff]  ;;  %v420_v37 = vpack.c.bf16 %v117_v29, %v115_v28  ;;  %v114_v38 = vld [vmem:[%s821_s1 + $0x2c0] sm:$0xff]  ;;  %v116_v39 = vld [vmem:[%s821_s1 + $0x2d0] sm:$0xff]  ;;  %v370_v43 = vpack.c.bf16 %v64_v32, %v62_v31 }
  0x18   :  { %411 = vmatpush1.bf16.msra.mxu0 %v410_v9  ;;  %v67_v36 = vld [vmem:[%s821_s1 + $0x148] sm:$0xff]  ;;  %v69_v40 = vld [vmem:[%s821_s1 + $0x158] sm:$0xff]  ;;  %198 = vmatprep.mubr.f32.mxu1 %v15_v34  ;;  %v66_v44 = vld [vmem:[%s821_s1 + $0x140] sm:$0xff]  ;;  %v422_v45 = vpack.c.bf16 %v116_v39, %v114_v38 }
  0x19   :  { %355 = vmatpush1.bf16.msra.mxu1 %v354_v55  ;;  %413 = vmatprep.subr.bf16.mxu0 %v412_v12  ;;  %v119_v41 = vld [vmem:[%s821_s1 + $0x2e8] sm:$0xff]  ;;  %v121_v42 = vld [vmem:[%s821_s1 + $0x2f8] sm:$0xff]  ;;  %v372_v46 = vpack.c.bf16 %v69_v40, %v67_v36  ;;  %v68_v47 = vld [vmem:[%s821_s1 + $0x150] sm:$0xff] }
  0x1a   :  { %357 = vmatprep.subr.bf16.mxu1 %v356_v60  ;;  %v424_v48 = vpack.c.bf16 %v121_v42, %v119_v41  ;;  %v118_v49 = vld [vmem:[%s821_s1 + $0x2e0] sm:$0xff]  ;;  %v120_v50 = vld [vmem:[%s821_s1 + $0x2f0] sm:$0xff]  ;;  %v71_v51 = vld [vmem:[%s821_s1 + $0x168] sm:$0xff]  ;;  %v374_v53 = vpack.c.bf16 %v68_v47, %v66_v44 }
  0x1b   :  { %v73_v52 = vld [vmem:[%s821_s1 + $0x178] sm:$0xff]  ;;  %v426_v54 = vpack.c.bf16 %v120_v50, %v118_v49  ;;  %v70_v56 = vld [vmem:[%s821_s1 + $0x160] sm:$0xff]  ;;  %v72_v57 = vld [vmem:[%s821_s1 + $0x170] sm:$0xff] }
  0x1c   :  { %415 = vmatpush1.bf16.msra.mxu0 %v414_v21  ;;  %v376_v55 = vpack.c.bf16 %v73_v52, %v71_v51  ;;  %v75_v58 = vld [vmem:[%s821_s1 + $0x188] sm:$0xff]  ;;  %v77_v59 = vld [vmem:[%s821_s1 + $0x198] sm:$0xff]  ;;  %v378_v60 = vpack.c.bf16 %v72_v57, %v70_v56  ;;  %v16_v61 = vld [vmem:[%s822_s0 + $0x10] sm:$0xff] }
  0x1d   :  { %359 = vmatpush1.bf16.msra.mxu1 %v358_v6  ;;  %417 = vmatprep.subr.bf16.mxu0 %v416_v24  ;;  %v380_v62 = vpack.c.bf16 %v77_v59, %v75_v58  ;;  %v74_v63 = vld [vmem:[%s821_s1 + $0x180] sm:$0xff]  ;;  %v76_v0 = vld [vmem:[%s821_s1 + $0x190] sm:$0xff]  ;;  %v79_v1 = vld [vmem:[%s821_s1 + $0x1a8] sm:$0xff] }
  0x1e   :  { %361 = vmatprep.subr.bf16.mxu1 %v360_v10  ;;  %v81_v2 = vld [vmem:[%s821_s1 + $0x1b8] sm:$0xff]  ;;  %v382_v4 = vpack.c.bf16 %v76_v0, %v74_v63  ;;  %v19_v5 = vld [vmem:[%s822_s0 + $0x28] sm:$0xff]  ;;  %v78_v7 = vld [vmem:[%s821_s1 + $0x1a0] sm:$0xff] }
  0x1f   :  { %v384_v6 = vpack.c.bf16 %v81_v2, %v79_v1  ;;  %v80_v8 = vld [vmem:[%s821_s1 + $0x1b0] sm:$0xff]  ;;  %v83_v9 = vld [vmem:[%s821_s1 + $0x1c8] sm:$0xff]  ;;  %v85_v10 = vld [vmem:[%s821_s1 + $0x1d8] sm:$0xff] }
  0x20   :  { %419 = vmatpush1.bf16.msra.mxu0 %v418_v33  ;;  %v386_v11 = vpack.c.bf16 %v80_v8, %v78_v7  ;;  %v22_v12 = vld [vmem:[%s822_s0 + $0x40] sm:$0xff]  ;;  %v388_v13 = vpack.c.bf16 %v85_v10, %v83_v9  ;;  %v84_v15 = vld [vmem:[%s821_s1 + $0x1d0] sm:$0xff]  ;;  %v87_v16 = vld [vmem:[%s821_s1 + $0x1e8] sm:$0xff]  ;;  %v124_v33 = vlaneseq }
  0x21   :  { %363 = vmatpush1.bf16.msra.mxu1 %v362_v18  ;;  %421 = vmatprep.subr.bf16.mxu0 %v420_v37  ;;  %v82_v14 = vld [vmem:[%s821_s1 + $0x1c0] sm:$0xff]  ;;  %v89_v17 = vld [vmem:[%s821_s1 + $0x1f8] sm:$0xff]  ;;  %v20_v27 = vld [vmem:[%s822_s0 + $0x30] sm:$0xff] }
  0x22   :  { %365 = vmatprep.subr.bf16.mxu1 %v364_v22  ;;  %v390_v18 = vpack.c.bf16 %v84_v15, %v82_v14  ;;  %v25_v19 = vld [vmem:[%s822_s0 + $0x58] sm:$0xff]  ;;  %v392_v20 = vpack.c.bf16 %v89_v17, %v87_v16  ;;  %v86_v21 = vld [vmem:[%s821_s1 + $0x1e0] sm:$0xff]  ;;  %v88_v22 = vld [vmem:[%s821_s1 + $0x1f0] sm:$0xff]  ;;  %v125_v36 = vshrl.u32 %v124_v33, 7 }
  0x23   :  { %v394_v23 = vpack.c.bf16 %v88_v22, %v86_v21  ;;  %v18_v24 = vld [vmem:[%s822_s0 + $0x20] sm:$0xff]  ;;  %v17_v25 = vld [vmem:[%s822_s0 + $0x18] sm:$0xff]  ;;  %v24_v28 = vld [vmem:[%s822_s0 + $0x50] sm:$0xff] }
  0x24   :  { %423 = vmatpush1.bf16.msra.mxu0 %v422_v45  ;;  %v21_v26 = vld [vmem:[%s822_s0 + $0x38] sm:$0xff]  ;;  %v23_v29 = vld [vmem:[%s822_s0 + $0x48] sm:$0xff]  ;;  %v126_v39 = vsub.s32 0, %v125_v36  ;;  %v122_v41 = vld [vmem:[%s823_s2] sm:$0x3]  ;;  %v130_v42 = vsub.s32 1, %v125_v36 }
  0x25   :  { %367 = vmatpush1.bf16.msra.mxu1 %v366_v30  ;;  %425 = vmatprep.subr.bf16.mxu0 %v424_v48 }
  0x26   :  { %369 = vmatprep.subr.bf16.mxu1 %v368_v35  ;;  %v131_v44 = vrot.slane %v122_v41, %v130_v42 }
  0x28   :  { %427 = vmatpush1.bf16.msra.mxu0 %v426_v54 }
  0x29   :  { %371 = vmatpush1.bf16.msra.mxu1 %v370_v43  ;;  %v127_v43 = vrot.slane %v122_v41, %v126_v39 }
  0x2a   :  { %373 = vmatprep.subr.bf16.mxu1 %v372_v46 }
  0x2b   :  { %288 = vmatmul.mubr.f32.vlgmr.msra.gmra.mrb[0].mxu0 %v16_v61 }
  0x2c   :  { %293 = vmatprep.mubr.f32.mxu0 %v445_v3 }
  0x2d   :  { %375 = vmatpush1.bf16.msra.mxu1 %v374_v53 }
  0x2e   :  { %377 = vmatprep.subr.bf16.mxu1 %v376_v55 }
  0x2f   :  { %294 = vmatmul.mubr.f32.gmra.mrb[2].mxu0 %v19_v5 }
  0x30   :  { %299 = vmatprep.mubr.f32.mxu0 %v445_v3 }
  0x31   :  { %379 = vmatpush1.bf16.msra.mxu1 %v378_v60 }
  0x32   :  { %381 = vmatprep.subr.bf16.mxu1 %v380_v62 }
  0x33   :  { %300 = vmatmul.mubr.f32.gmra.mrb[4].mxu0 %v22_v12 }
  0x34   :  { %305 = vmatprep.mubr.f32.mxu0 %v445_v3  ;;  %v14_v3 = vld [vmem:[%s822_s0] sm:$0xff] }
  0x35   :  { %383 = vmatpush1.bf16.msra.mxu1 %v382_v4 }
  0x36   :  { %385 = vmatprep.subr.bf16.mxu1 %v384_v6 }
  0x37   :  { %306 = vmatmul.mubr.f32.gmra.mrb[6].mxu0 %v25_v19 }
  0x39   :  { %387 = vmatpush1.bf16.msra.mxu1 %v386_v11 }
  0x3a   :  { %389 = vmatprep.subr.bf16.mxu1 %v388_v13 }
  0x3d   :  { %391 = vmatpush1.bf16.msra.mxu1 %v390_v18 }
  0x3e   :  { %393 = vmatprep.subr.bf16.mxu1 %v392_v20 }
  0x41   :  { %395 = vmatpush1.bf16.msra.mxu1 %v394_v23 }
  0x44   :  { %199 = vmatmul.mubr.f32.vlgmr.msra.gmra.mrb[0].mxu1 %v14_v3 }
  0x45   :  { %204 = vmatprep.mubr.f32.mxu1 %v18_v24 }
  0x48   :  { %205 = vmatmul.mubr.f32.gmra.mrb[2].mxu1 %v17_v25 }
  0x49   :  { %210 = vmatprep.mubr.f32.mxu1 %v21_v26 }
  0x4c   :  { %211 = vmatmul.mubr.f32.gmra.mrb[4].mxu1 %v20_v27 }
  0x4d   :  { %216 = vmatprep.mubr.f32.mxu1 %v24_v28 }
  0x50   :  { %217 = vmatmul.mubr.f32.gmra.mrb[6].mxu1 %v23_v29 }
  0xfe   :  { %v289_v30 = vpop.f32.mrb[0].mxu0 }
  0xff   :  { %v291_v31 = vpop.f32.mrb[1].mxu0 }
 0x102   :  { %v295_v32 = vpop.f32.mrb[2].mxu0 }
 0x103   :  { %v297_v34 = vpop.f32.mrb[3].mxu0 }
 0x106   :  { %v301_v35 = vpop.f32.mrb[4].mxu0 }
 0x107   :  { %v303_v37 = vpop.f32.mrb[5].mxu0 }
 0x10a   :  { %v307_v38 = vpop.f32.mrb[6].mxu0 }
 0x10b   :  { %v309_v40 = vpop.f32.mrb[7].mxu0 }
 0x117   :  { %v200_v45 = vpop.f32.mrb[0].mxu1 }
 0x118   :  { %v201_v46 = vadd.f32 %v200_v45, %v127_v43  ;;  %v202_v47 = vpop.f32.mrb[1].mxu1 }
 0x119   :  { %v203_v48 = vadd.f32 %v202_v47, %v131_v44 }
 0x11a   :  { %v290_v49 = vadd.f32 %v289_v30, %v201_v46 }
 0x11b   :  { %v292_v50 = vadd.f32 %v291_v31, %v203_v48  ;;  %v206_v51 = vpop.f32.mrb[2].mxu1 }
 0x11c   :  { %v312_v52 = vmax.f32 %v290_v49, 0.0  ;;  %v207_v53 = vadd.f32 %v206_v51, %v127_v43  ;;  %v208_v54 = vpop.f32.mrb[3].mxu1 }
 0x11d   :  { %v313_v55 = vmax.f32 %v292_v50, 0.0  ;;  %v209_v56 = vadd.f32 %v208_v54, %v131_v44 }
 0x11e   :  { %320 = vst [vmem:[%s824_s3] sm:$0xff] %v312_v52  ;;  %v296_v57 = vadd.f32 %v295_v32, %v207_v53 }
 0x11f   :  { %321 = vst [vmem:[%s824_s3 + $0x8] sm:$0xff] %v313_v55  ;;  %v298_v58 = vadd.f32 %v297_v34, %v209_v56  ;;  %v212_v59 = vpop.f32.mrb[4].mxu1 }
 0x120   :  { %v314_v60 = vmax.f32 %v296_v57, 0.0  ;;  %v213_v61 = vadd.f32 %v212_v59, %v127_v43  ;;  %v214_v62 = vpop.f32.mrb[5].mxu1 }
 0x121   :  { %v315_v63 = vmax.f32 %v298_v58, 0.0  ;;  %v215_v0 = vadd.f32 %v214_v62, %v131_v44 }
 0x122   :  { %322 = vst [vmem:[%s824_s3 + $0x10] sm:$0xff] %v314_v60  ;;  %v302_v1 = vadd.f32 %v301_v35, %v213_v61 }
 0x123   :  { %323 = vst [vmem:[%s824_s3 + $0x18] sm:$0xff] %v315_v63  ;;  %v304_v2 = vadd.f32 %v303_v37, %v215_v0  ;;  %v218_v4 = vpop.f32.mrb[6].mxu1 }
 0x124   :  { %v316_v5 = vmax.f32 %v302_v1, 0.0  ;;  %v219_v6 = vadd.f32 %v218_v4, %v127_v43  ;;  %v220_v7 = vpop.f32.mrb[7].mxu1 }
 0x125   :  { %v317_v8 = vmax.f32 %v304_v2, 0.0  ;;  %v221_v9 = vadd.f32 %v220_v7, %v131_v44 }
 0x126   :  { %324 = vst [vmem:[%s824_s3 + $0x20] sm:$0xff] %v316_v5  ;;  %v308_v10 = vadd.f32 %v307_v38, %v219_v6 }
 0x127   :  { %325 = vst [vmem:[%s824_s3 + $0x28] sm:$0xff] %v317_v8  ;;  %v310_v11 = vadd.f32 %v309_v40, %v221_v9 }
 0x128   :  { %v318_v12 = vmax.f32 %v308_v10, 0.0 }
 0x129   :  { %v319_v13 = vmax.f32 %v310_v11, 0.0 }
 0x12a   :  { %326 = vst [vmem:[%s824_s3 + $0x30] sm:$0xff] %v318_v12 }
 0x12b   :  { %327 = vst [vmem:[%s824_s3 + $0x38] sm:$0xff] %v319_v13 }

// kernel: audio_cnn1d_extractor_forward.16
= control target key start
LH: loop header
LB: loop body
LE: loop exit
PB: predicated region body
PF: predicated region fallthrough
CT: control target
= control target key end

     0   :  { %s1472_s1 = inlined_call_operand.vmem [shape: f32[768,256], index: 1, kind: input, shape index: {}]   ;;  %s1473_s0 = inlined_call_operand.vmem [shape: f32[32,768], index: 0, kind: input, shape index: {}]   ;;  %s1474_s2 = inlined_call_operand.vmem [shape: f32[1,256], index: 2, kind: input, shape index: {}]   ;;  %s1475_s3 = inlined_call_operand.vmem [shape: f32[32,256], index: 3, kind: output, shape index: {}]  }
   0x1   :  { %v39_v0 = vld [vmem:[%s1472_s1 + $0x8] sm:$0xff]  ;;  %v41_v1 = vld [vmem:[%s1472_s1 + $0x18] sm:$0xff]  ;;  %v38_v5 = vld [vmem:[%s1472_s1] sm:$0xff] }
   0x2   :  { %v103_v2 = vld [vmem:[%s1472_s1 + $0x208] sm:$0xff]  ;;  %v529_v3 = vpack.c.bf16 %v41_v1, %v39_v0  ;;  %v105_v4 = vld [vmem:[%s1472_s1 + $0x218] sm:$0xff]  ;;  %v40_v6 = vld [vmem:[%s1472_s1 + $0x10] sm:$0xff] }
   0x3   :  { %v593_v7 = vpack.c.bf16 %v105_v4, %v103_v2  ;;  %v531_v8 = vpack.c.bf16 %v40_v6, %v38_v5  ;;  %v102_v9 = vld [vmem:[%s1472_s1 + $0x200] sm:$0xff]  ;;  %v104_v10 = vld [vmem:[%s1472_s1 + $0x210] sm:$0xff]  ;;  %v43_v11 = vld [vmem:[%s1472_s1 + $0x28] sm:$0xff] }
   0x4   :  { %530 = vmatprep.subr.bf16.mxu1 %v529_v3  ;;  %v595_v12 = vpack.c.bf16 %v104_v10, %v102_v9  ;;  %v45_v13 = vld [vmem:[%s1472_s1 + $0x38] sm:$0xff]  ;;  %v107_v14 = vld [vmem:[%s1472_s1 + $0x228] sm:$0xff]  ;;  %v42_v18 = vld [vmem:[%s1472_s1 + $0x20] sm:$0xff] }
   0x5   :  { %v109_v15 = vld [vmem:[%s1472_s1 + $0x238] sm:$0xff]  ;;  %594 = vmatprep.subr.bf16.mxu0 %v593_v7  ;;  %532 = vmatpush1.bf16.msra.mxu1 %v531_v8  ;;  %v533_v16 = vpack.c.bf16 %v45_v13, %v43_v11  ;;  %v44_v19 = vld [vmem:[%s1472_s1 + $0x30] sm:$0xff]  ;;  %v106_v20 = vld [vmem:[%s1472_s1 + $0x220] sm:$0xff] }
   0x6   :  { %v597_v17 = vpack.c.bf16 %v109_v15, %v107_v14  ;;  %596 = vmatpush1.bf16.msra.mxu0 %v595_v12  ;;  %v535_v21 = vpack.c.bf16 %v44_v19, %v42_v18  ;;  %v108_v22 = vld [vmem:[%s1472_s1 + $0x230] sm:$0xff]  ;;  %v47_v23 = vld [vmem:[%s1472_s1 + $0x48] sm:$0xff]  ;;  %v49_v24 = vld [vmem:[%s1472_s1 + $0x58] sm:$0xff] }
   0x7   :  { %534 = vmatprep.subr.bf16.mxu1 %v533_v16  ;;  %v599_v25 = vpack.c.bf16 %v108_v22, %v106_v20  ;;  %v537_v26 = vpack.c.bf16 %v49_v24, %v47_v23  ;;  %v111_v27 = vld [vmem:[%s1472_s1 + $0x248] sm:$0xff]  ;;  %v113_v28 = vld [vmem:[%s1472_s1 + $0x258] sm:$0xff]  ;;  %v46_v29 = vld [vmem:[%s1472_s1 + $0x40] sm:$0xff] }
   0x8   :  { %598 = vmatprep.subr.bf16.mxu0 %v597_v17  ;;  %v601_v30 = vpack.c.bf16 %v113_v28, %v111_v27  ;;  %v48_v31 = vld [vmem:[%s1472_s1 + $0x50] sm:$0xff]  ;;  %v110_v32 = vld [vmem:[%s1472_s1 + $0x240] sm:$0xff]  ;;  %v51_v35 = vld [vmem:[%s1472_s1 + $0x68] sm:$0xff] }
   0x9   :  { %v112_v33 = vld [vmem:[%s1472_s1 + $0x250] sm:$0xff]  ;;  %536 = vmatpush1.bf16.msra.mxu1 %v535_v21  ;;  %v539_v34 = vpack.c.bf16 %v48_v31, %v46_v29  ;;  %v53_v36 = vld [vmem:[%s1472_s1 + $0x78] sm:$0xff]  ;;  %v115_v37 = vld [vmem:[%s1472_s1 + $0x268] sm:$0xff] }
   0xa   :  { %600 = vmatpush1.bf16.msra.mxu0 %v599_v25  ;;  %538 = vmatprep.subr.bf16.mxu1 %v537_v26  ;;  %v603_v38 = vpack.c.bf16 %v112_v33, %v110_v32  ;;  %v541_v39 = vpack.c.bf16 %v53_v36, %v51_v35  ;;  %v117_v40 = vld [vmem:[%s1472_s1 + $0x278] sm:$0xff]  ;;  %v50_v41 = vld [vmem:[%s1472_s1 + $0x60] sm:$0xff]  ;;  %v52_v42 = vld [vmem:[%s1472_s1 + $0x70] sm:$0xff] }
   0xb   :  { %602 = vmatprep.subr.bf16.mxu0 %v601_v30  ;;  %v605_v43 = vpack.c.bf16 %v117_v40, %v115_v37  ;;  %v114_v44 = vld [vmem:[%s1472_s1 + $0x260] sm:$0xff]  ;;  %v116_v45 = vld [vmem:[%s1472_s1 + $0x270] sm:$0xff]  ;;  %v55_v46 = vld [vmem:[%s1472_s1 + $0x88] sm:$0xff]  ;;  %v543_v50 = vpack.c.bf16 %v52_v42, %v50_v41 }
   0xc   :  { %v57_v47 = vld [vmem:[%s1472_s1 + $0x98] sm:$0xff]  ;;  %v119_v48 = vld [vmem:[%s1472_s1 + $0x288] sm:$0xff]  ;;  %v607_v51 = vpack.c.bf16 %v116_v45, %v114_v44  ;;  %v54_v53 = vld [vmem:[%s1472_s1 + $0x80] sm:$0xff] }
   0xd   :  { %v121_v49 = vld [vmem:[%s1472_s1 + $0x298] sm:$0xff]  ;;  %540 = vmatpush1.bf16.msra.mxu1 %v539_v34  ;;  %v545_v52 = vpack.c.bf16 %v57_v47, %v55_v46  ;;  %v56_v54 = vld [vmem:[%s1472_s1 + $0x90] sm:$0xff]  ;;  %v118_v55 = vld [vmem:[%s1472_s1 + $0x280] sm:$0xff] }
   0xe   :  { %604 = vmatpush1.bf16.msra.mxu0 %v603_v38  ;;  %542 = vmatprep.subr.bf16.mxu1 %v541_v39  ;;  %v609_v56 = vpack.c.bf16 %v121_v49, %v119_v48  ;;  %v120_v57 = vld [vmem:[%s1472_s1 + $0x290] sm:$0xff]  ;;  %v59_v58 = vld [vmem:[%s1472_s1 + $0xa8] sm:$0xff]  ;;  %v61_v59 = vld [vmem:[%s1472_s1 + $0xb8] sm:$0xff]  ;;  %v547_v62 = vpack.c.bf16 %v56_v54, %v54_v53 }
   0xf   :  { %606 = vmatprep.subr.bf16.mxu0 %v605_v43  ;;  %v123_v60 = vld [vmem:[%s1472_s1 + $0x2a8] sm:$0xff]  ;;  %v125_v61 = vld [vmem:[%s1472_s1 + $0x2b8] sm:$0xff]  ;;  %v611_v63 = vpack.c.bf16 %v120_v57, %v118_v55  ;;  %v549_v0 = vpack.c.bf16 %v61_v59, %v59_v58  ;;  %v58_v1 = vld [vmem:[%s1472_s1 + $0xa0] sm:$0xff] }
  0x10   :  { %v60_v2 = vld [vmem:[%s1472_s1 + $0xb0] sm:$0xff]  ;;  %v122_v3 = vld [vmem:[%s1472_s1 + $0x2a0] sm:$0xff]  ;;  %v613_v4 = vpack.c.bf16 %v125_v61, %v123_v60  ;;  %v63_v6 = vld [vmem:[%s1472_s1 + $0xc8] sm:$0xff] }
  0x11   :  { %544 = vmatpush1.bf16.msra.mxu1 %v543_v50  ;;  %v124_v5 = vld [vmem:[%s1472_s1 + $0x2b0] sm:$0xff]  ;;  %v65_v7 = vld [vmem:[%s1472_s1 + $0xd8] sm:$0xff]  ;;  %v127_v8 = vld [vmem:[%s1472_s1 + $0x2c8] sm:$0xff]  ;;  %v551_v10 = vpack.c.bf16 %v60_v2, %v58_v1 }
  0x12   :  { %608 = vmatpush1.bf16.msra.mxu0 %v607_v51  ;;  %546 = vmatprep.subr.bf16.mxu1 %v545_v52  ;;  %v129_v9 = vld [vmem:[%s1472_s1 + $0x2d8] sm:$0xff]  ;;  %v615_v11 = vpack.c.bf16 %v124_v5, %v122_v3  ;;  %v553_v12 = vpack.c.bf16 %v65_v7, %v63_v6  ;;  %v62_v13 = vld [vmem:[%s1472_s1 + $0xc0] sm:$0xff]  ;;  %v64_v14 = vld [vmem:[%s1472_s1 + $0xd0] sm:$0xff] }
  0x13   :  { %610 = vmatprep.subr.bf16.mxu0 %v609_v56  ;;  %v126_v15 = vld [vmem:[%s1472_s1 + $0x2c0] sm:$0xff]  ;;  %v617_v16 = vpack.c.bf16 %v129_v9, %v127_v8  ;;  %v128_v17 = vld [vmem:[%s1472_s1 + $0x2d0] sm:$0xff]  ;;  %v67_v18 = vld [vmem:[%s1472_s1 + $0xe8] sm:$0xff]  ;;  %v555_v22 = vpack.c.bf16 %v64_v14, %v62_v13 }
  0x14   :  { %v69_v19 = vld [vmem:[%s1472_s1 + $0xf8] sm:$0xff]  ;;  %v131_v20 = vld [vmem:[%s1472_s1 + $0x2e8] sm:$0xff]  ;;  %v619_v23 = vpack.c.bf16 %v128_v17, %v126_v15  ;;  %v66_v25 = vld [vmem:[%s1472_s1 + $0xe0] sm:$0xff] }
  0x15   :  { %548 = vmatpush1.bf16.msra.mxu1 %v547_v62  ;;  %v133_v21 = vld [vmem:[%s1472_s1 + $0x2f8] sm:$0xff]  ;;  %v557_v24 = vpack.c.bf16 %v69_v19, %v67_v18  ;;  %v68_v26 = vld [vmem:[%s1472_s1 + $0xf0] sm:$0xff]  ;;  %v130_v27 = vld [vmem:[%s1472_s1 + $0x2e0] sm:$0xff] }
  0x16   :  { %612 = vmatpush1.bf16.msra.mxu0 %v611_v63  ;;  %550 = vmatprep.subr.bf16.mxu1 %v549_v0  ;;  %v621_v28 = vpack.c.bf16 %v133_v21, %v131_v20  ;;  %v132_v29 = vld [vmem:[%s1472_s1 + $0x2f0] sm:$0xff]  ;;  %v71_v30 = vld [vmem:[%s1472_s1 + $0x108] sm:$0xff]  ;;  %v73_v31 = vld [vmem:[%s1472_s1 + $0x118] sm:$0xff]  ;;  %v559_v34 = vpack.c.bf16 %v68_v26, %v66_v25 }
  0x17   :  { %614 = vmatprep.subr.bf16.mxu0 %v613_v4  ;;  %v135_v32 = vld [vmem:[%s1472_s1 + $0x308] sm:$0xff]  ;;  %v137_v33 = vld [vmem:[%s1472_s1 + $0x318] sm:$0xff]  ;;  %v623_v35 = vpack.c.bf16 %v132_v29, %v130_v27  ;;  %v561_v36 = vpack.c.bf16 %v73_v31, %v71_v30  ;;  %v70_v37 = vld [vmem:[%s1472_s1 + $0x100] sm:$0xff] }
  0x18   :  { %v72_v38 = vld [vmem:[%s1472_s1 + $0x110] sm:$0xff]  ;;  %v134_v39 = vld [vmem:[%s1472_s1 + $0x300] sm:$0xff]  ;;  %v625_v40 = vpack.c.bf16 %v137_v33, %v135_v32  ;;  %v75_v42 = vld [vmem:[%s1472_s1 + $0x128] sm:$0xff] }
  0x19   :  { %552 = vmatpush1.bf16.msra.mxu1 %v551_v10  ;;  %v136_v41 = vld [vmem:[%s1472_s1 + $0x310] sm:$0xff]  ;;  %v77_v43 = vld [vmem:[%s1472_s1 + $0x138] sm:$0xff]  ;;  %v139_v44 = vld [vmem:[%s1472_s1 + $0x328] sm:$0xff]  ;;  %v563_v46 = vpack.c.bf16 %v72_v38, %v70_v37 }
  0x1a   :  { %616 = vmatpush1.bf16.msra.mxu0 %v615_v11  ;;  %554 = vmatprep.subr.bf16.mxu1 %v553_v12  ;;  %v141_v45 = vld [vmem:[%s1472_s1 + $0x338] sm:$0xff]  ;;  %v627_v47 = vpack.c.bf16 %v136_v41, %v134_v39  ;;  %v565_v48 = vpack.c.bf16 %v77_v43, %v75_v42  ;;  %v74_v49 = vld [vmem:[%s1472_s1 + $0x120] sm:$0xff]  ;;  %v76_v50 = vld [vmem:[%s1472_s1 + $0x130] sm:$0xff] }
  0x1b   :  { %618 = vmatprep.subr.bf16.mxu0 %v617_v16  ;;  %v138_v51 = vld [vmem:[%s1472_s1 + $0x320] sm:$0xff]  ;;  %v629_v52 = vpack.c.bf16 %v141_v45, %v139_v44  ;;  %v140_v53 = vld [vmem:[%s1472_s1 + $0x330] sm:$0xff]  ;;  %v79_v54 = vld [vmem:[%s1472_s1 + $0x148] sm:$0xff]  ;;  %v567_v58 = vpack.c.bf16 %v76_v50, %v74_v49 }
  0x1c   :  { %v81_v55 = vld [vmem:[%s1472_s1 + $0x158] sm:$0xff]  ;;  %v143_v56 = vld [vmem:[%s1472_s1 + $0x348] sm:$0xff]  ;;  %v631_v59 = vpack.c.bf16 %v140_v53, %v138_v51  ;;  %v78_v61 = vld [vmem:[%s1472_s1 + $0x140] sm:$0xff] }
  0x1d   :  { %556 = vmatpush1.bf16.msra.mxu1 %v555_v22  ;;  %v145_v57 = vld [vmem:[%s1472_s1 + $0x358] sm:$0xff]  ;;  %v569_v60 = vpack.c.bf16 %v81_v55, %v79_v54  ;;  %v80_v62 = vld [vmem:[%s1472_s1 + $0x150] sm:$0xff]  ;;  %v142_v63 = vld [vmem:[%s1472_s1 + $0x340] sm:$0xff] }
  0x1e   :  { %620 = vmatpush1.bf16.msra.mxu0 %v619_v23  ;;  %558 = vmatprep.subr.bf16.mxu1 %v557_v24  ;;  %v633_v0 = vpack.c.bf16 %v145_v57, %v143_v56  ;;  %v144_v1 = vld [vmem:[%s1472_s1 + $0x350] sm:$0xff]  ;;  %v83_v2 = vld [vmem:[%s1472_s1 + $0x168] sm:$0xff]  ;;  %v85_v3 = vld [vmem:[%s1472_s1 + $0x178] sm:$0xff]  ;;  %v571_v6 = vpack.c.bf16 %v80_v62, %v78_v61 }
  0x1f   :  { %622 = vmatprep.subr.bf16.mxu0 %v621_v28  ;;  %v147_v4 = vld [vmem:[%s1472_s1 + $0x368] sm:$0xff]  ;;  %v149_v5 = vld [vmem:[%s1472_s1 + $0x378] sm:$0xff]  ;;  %v82_v7 = vld [vmem:[%s1472_s1 + $0x160] sm:$0xff]  ;;  %v635_v8 = vpack.c.bf16 %v144_v1, %v142_v63  ;;  %v573_v9 = vpack.c.bf16 %v85_v3, %v83_v2 }
  0x20   :  { %v84_v10 = vld [vmem:[%s1472_s1 + $0x170] sm:$0xff]  ;;  %v146_v11 = vld [vmem:[%s1472_s1 + $0x360] sm:$0xff]  ;;  %v637_v13 = vpack.c.bf16 %v149_v5, %v147_v4  ;;  %v87_v14 = vld [vmem:[%s1472_s1 + $0x188] sm:$0xff] }
  0x21   :  { %560 = vmatpush1.bf16.msra.mxu1 %v559_v34  ;;  %v148_v12 = vld [vmem:[%s1472_s1 + $0x370] sm:$0xff]  ;;  %v89_v15 = vld [vmem:[%s1472_s1 + $0x198] sm:$0xff]  ;;  %v15_v16 = vld [vmem:[%s1473_s0 + $0x8] sm:$0xff]  ;;  %v575_v20 = vpack.c.bf16 %v84_v10, %v82_v7 }
  0x22   :  { %624 = vmatpush1.bf16.msra.mxu0 %v623_v35  ;;  %562 = vmatprep.subr.bf16.mxu1 %v561_v36  ;;  %v151_v17 = vld [vmem:[%s1472_s1 + $0x388] sm:$0xff]  ;;  %v153_v18 = vld [vmem:[%s1472_s1 + $0x398] sm:$0xff]  ;;  %v639_v21 = vpack.c.bf16 %v148_v12, %v146_v11  ;;  %v577_v22 = vpack.c.bf16 %v89_v15, %v87_v14  ;;  %v86_v23 = vld [vmem:[%s1472_s1 + $0x180] sm:$0xff] }
  0x23   :  { %626 = vmatprep.subr.bf16.mxu0 %v625_v40  ;;  %306 = vmatprep.mubr.f32.mxu1 %v15_v16  ;;  %v17_v19 = vld [vmem:[%s1473_s0 + $0x18] sm:$0xff]  ;;  %v88_v24 = vld [vmem:[%s1472_s1 + $0x190] sm:$0xff]  ;;  %v150_v25 = vld [vmem:[%s1472_s1 + $0x380] sm:$0xff]  ;;  %v641_v26 = vpack.c.bf16 %v153_v18, %v151_v17 }
  0x24   :  { %395 = vmatprep.mubr.f32.mxu0 %v17_v19  ;;  %v152_v27 = vld [vmem:[%s1472_s1 + $0x390] sm:$0xff]  ;;  %v91_v28 = vld [vmem:[%s1472_s1 + $0x1a8] sm:$0xff]  ;;  %v93_v29 = vld [vmem:[%s1472_s1 + $0x1b8] sm:$0xff]  ;;  %v579_v32 = vpack.c.bf16 %v88_v24, %v86_v23 }
  0x25   :  { %564 = vmatpush1.bf16.msra.mxu1 %v563_v46  ;;  %v155_v30 = vld [vmem:[%s1472_s1 + $0x3a8] sm:$0xff]  ;;  %v157_v31 = vld [vmem:[%s1472_s1 + $0x3b8] sm:$0xff]  ;;  %v643_v33 = vpack.c.bf16 %v152_v27, %v150_v25  ;;  %v581_v34 = vpack.c.bf16 %v93_v29, %v91_v28  ;;  %v90_v35 = vld [vmem:[%s1472_s1 + $0x1a0] sm:$0xff] }
  0x26   :  { %628 = vmatpush1.bf16.msra.mxu0 %v627_v47  ;;  %566 = vmatprep.subr.bf16.mxu1 %v565_v48  ;;  %v92_v36 = vld [vmem:[%s1472_s1 + $0x1b0] sm:$0xff]  ;;  %v154_v37 = vld [vmem:[%s1472_s1 + $0x3a0] sm:$0xff]  ;;  %v645_v38 = vpack.c.bf16 %v157_v31, %v155_v30  ;;  %v95_v40 = vld [vmem:[%s1472_s1 + $0x1c8] sm:$0xff] }
  0x27   :  { %630 = vmatprep.subr.bf16.mxu0 %v629_v52  ;;  %v156_v39 = vld [vmem:[%s1472_s1 + $0x3b0] sm:$0xff]  ;;  %v97_v41 = vld [vmem:[%s1472_s1 + $0x1d8] sm:$0xff]  ;;  %v159_v42 = vld [vmem:[%s1472_s1 + $0x3c8] sm:$0xff]  ;;  %v583_v44 = vpack.c.bf16 %v92_v36, %v90_v35 }
  0x28   :  { %v161_v43 = vld [vmem:[%s1472_s1 + $0x3d8] sm:$0xff]  ;;  %v647_v45 = vpack.c.bf16 %v156_v39, %v154_v37  ;;  %v585_v46 = vpack.c.bf16 %v97_v41, %v95_v40  ;;  %v94_v47 = vld [vmem:[%s1472_s1 + $0x1c0] sm:$0xff]  ;;  %v96_v48 = vld [vmem:[%s1472_s1 + $0x1d0] sm:$0xff] }
  0x29   :  { %568 = vmatpush1.bf16.msra.mxu1 %v567_v58  ;;  %v158_v49 = vld [vmem:[%s1472_s1 + $0x3c0] sm:$0xff]  ;;  %v649_v50 = vpack.c.bf16 %v161_v43, %v159_v42  ;;  %v160_v51 = vld [vmem:[%s1472_s1 + $0x3d0] sm:$0xff]  ;;  %v99_v52 = vld [vmem:[%s1472_s1 + $0x1e8] sm:$0xff]  ;;  %v587_v56 = vpack.c.bf16 %v96_v48, %v94_v47 }
  0x2a   :  { %632 = vmatpush1.bf16.msra.mxu0 %v631_v59  ;;  %570 = vmatprep.subr.bf16.mxu1 %v569_v60  ;;  %v101_v53 = vld [vmem:[%s1472_s1 + $0x1f8] sm:$0xff]  ;;  %v163_v54 = vld [vmem:[%s1472_s1 + $0x3e8] sm:$0xff]  ;;  %v651_v57 = vpack.c.bf16 %v160_v51, %v158_v49  ;;  %v98_v59 = vld [vmem:[%s1472_s1 + $0x1e0] sm:$0xff] }
  0x2b   :  { %634 = vmatprep.subr.bf16.mxu0 %v633_v0  ;;  %v165_v55 = vld [vmem:[%s1472_s1 + $0x3f8] sm:$0xff]  ;;  %v589_v58 = vpack.c.bf16 %v101_v53, %v99_v52  ;;  %v100_v60 = vld [vmem:[%s1472_s1 + $0x1f0] sm:$0xff]  ;;  %v162_v61 = vld [vmem:[%s1472_s1 + $0x3e0] sm:$0xff] }
  0x2c   :  { %v653_v62 = vpack.c.bf16 %v165_v55, %v163_v54  ;;  %v164_v63 = vld [vmem:[%s1472_s1 + $0x3f0] sm:$0xff]  ;;  %v167_v0 = vld [vmem:[%s1472_s1 + $0x408] sm:$0xff]  ;;  %v169_v1 = vld [vmem:[%s1472_s1 + $0x418] sm:$0xff]  ;;  %v591_v2 = vpack.c.bf16 %v100_v60, %v98_v59 }
  0x2d   :  { %572 = vmatpush1.bf16.msra.mxu1 %v571_v6  ;;  %v655_v3 = vpack.c.bf16 %v164_v63, %v162_v61  ;;  %v657_v4 = vpack.c.bf16 %v169_v1, %v167_v0  ;;  %v166_v5 = vld [vmem:[%s1472_s1 + $0x400] sm:$0xff]  ;;  %v168_v6 = vld [vmem:[%s1472_s1 + $0x410] sm:$0xff]  ;;  %v171_v7 = vld [vmem:[%s1472_s1 + $0x428] sm:$0xff] }
  0x2e   :  { %636 = vmatpush1.bf16.msra.mxu0 %v635_v8  ;;  %574 = vmatprep.subr.bf16.mxu1 %v573_v9  ;;  %v173_v8 = vld [vmem:[%s1472_s1 + $0x438] sm:$0xff]  ;;  %v14_v9 = vld [vmem:[%s1473_s0] sm:$0xff]  ;;  %v659_v10 = vpack.c.bf16 %v168_v6, %v166_v5  ;;  %v16_v11 = vld [vmem:[%s1473_s0 + $0x10] sm:$0xff] }
  0x2f   :  { %638 = vmatprep.subr.bf16.mxu0 %v637_v13  ;;  %v661_v12 = vpack.c.bf16 %v173_v8, %v171_v7  ;;  %v170_v13 = vld [vmem:[%s1472_s1 + $0x420] sm:$0xff]  ;;  %v172_v14 = vld [vmem:[%s1472_s1 + $0x430] sm:$0xff]  ;;  %v175_v15 = vld [vmem:[%s1472_s1 + $0x448] sm:$0xff] }
  0x30   :  { %v177_v16 = vld [vmem:[%s1472_s1 + $0x458] sm:$0xff]  ;;  %v663_v18 = vpack.c.bf16 %v172_v14, %v170_v13  ;;  %v20_v19 = vld [vmem:[%s1473_s0 + $0x30] sm:$0xff]  ;;  %v22_v24 = vld [vmem:[%s1473_s0 + $0x40] sm:$0xff] }
  0x31   :  { %576 = vmatpush1.bf16.msra.mxu1 %v575_v20  ;;  %v21_v17 = vld [vmem:[%s1473_s0 + $0x38] sm:$0xff]  ;;  %v23_v20 = vld [vmem:[%s1473_s0 + $0x48] sm:$0xff]  ;;  %v176_v23 = vld [vmem:[%s1472_s1 + $0x450] sm:$0xff] }
  0x32   :  { %640 = vmatpush1.bf16.msra.mxu0 %v639_v21  ;;  %578 = vmatprep.subr.bf16.mxu1 %v577_v22  ;;  %v665_v21 = vpack.c.bf16 %v177_v16, %v175_v15  ;;  %v174_v22 = vld [vmem:[%s1472_s1 + $0x440] sm:$0xff]  ;;  %v179_v25 = vld [vmem:[%s1472_s1 + $0x468] sm:$0xff]  ;;  %v29_v30 = vld [vmem:[%s1473_s0 + $0x78] sm:$0xff] }
  0x33   :  { %642 = vmatprep.subr.bf16.mxu0 %v641_v26  ;;  %v181_v26 = vld [vmem:[%s1472_s1 + $0x478] sm:$0xff]  ;;  %v27_v27 = vld [vmem:[%s1473_s0 + $0x68] sm:$0xff]  ;;  %v667_v28 = vpack.c.bf16 %v176_v23, %v174_v22  ;;  %v26_v29 = vld [vmem:[%s1473_s0 + $0x60] sm:$0xff] }
  0x34   :  { %v669_v31 = vpack.c.bf16 %v181_v26, %v179_v25  ;;  %v183_v35 = vld [vmem:[%s1472_s1 + $0x488] sm:$0xff]  ;;  %v185_v36 = vld [vmem:[%s1472_s1 + $0x498] sm:$0xff]  ;;  %v32_v39 = vld [vmem:[%s1473_s0 + $0x90] sm:$0xff] }
  0x35   :  { %580 = vmatpush1.bf16.msra.mxu1 %v579_v32  ;;  %v178_v32 = vld [vmem:[%s1472_s1 + $0x460] sm:$0xff]  ;;  %v33_v37 = vld [vmem:[%s1473_s0 + $0x98] sm:$0xff]  ;;  %v35_v40 = vld [vmem:[%s1473_s0 + $0xa8] sm:$0xff]  ;;  %v673_v41 = vpack.c.bf16 %v185_v36, %v183_v35 }
  0x36   :  { %644 = vmatpush1.bf16.msra.mxu0 %v643_v33  ;;  %582 = vmatprep.subr.bf16.mxu1 %v581_v34  ;;  %v180_v33 = vld [vmem:[%s1472_s1 + $0x470] sm:$0xff]  ;;  %v182_v42 = vld [vmem:[%s1472_s1 + $0x480] sm:$0xff]  ;;  %v19_v47 = vld [vmem:[%s1473_s0 + $0x28] sm:$0xff] }
  0x37   :  { %646 = vmatprep.subr.bf16.mxu0 %v645_v38  ;;  %v28_v34 = vld [vmem:[%s1473_s0 + $0x70] sm:$0xff]  ;;  %v671_v38 = vpack.c.bf16 %v180_v33, %v178_v32  ;;  %v31_v49 = vld [vmem:[%s1473_s0 + $0x88] sm:$0xff]  ;;  %v186_v51 = vld [vmem:[%s1472_s1 + $0x4a0] sm:$0xff] }
  0x38   :  { %v184_v43 = vld [vmem:[%s1472_s1 + $0x490] sm:$0xff]  ;;  %v191_v53 = vld [vmem:[%s1472_s1 + $0x4c8] sm:$0xff]  ;;  %v193_v54 = vld [vmem:[%s1472_s1 + $0x4d8] sm:$0xff] }
  0x39   :  { %584 = vmatpush1.bf16.msra.mxu1 %v583_v44  ;;  %v34_v44 = vld [vmem:[%s1473_s0 + $0xa0] sm:$0xff]  ;;  %v675_v48 = vpack.c.bf16 %v184_v43, %v182_v42  ;;  %v188_v52 = vld [vmem:[%s1472_s1 + $0x4b0] sm:$0xff]  ;;  %v195_v59 = vld [vmem:[%s1472_s1 + $0x4e8] sm:$0xff] }
  0x3a   :  { %648 = vmatpush1.bf16.msra.mxu0 %v647_v45  ;;  %586 = vmatprep.subr.bf16.mxu1 %v585_v46  ;;  %v187_v45 = vld [vmem:[%s1472_s1 + $0x4a8] sm:$0xff]  ;;  %v189_v46 = vld [vmem:[%s1472_s1 + $0x4b8] sm:$0xff]  ;;  %v679_v55 = vpack.c.bf16 %v188_v52, %v186_v51  ;;  %v194_v63 = vld [vmem:[%s1472_s1 + $0x4e0] sm:$0xff] }
  0x3b   :  { %650 = vmatprep.subr.bf16.mxu0 %v649_v50  ;;  %v677_v50 = vpack.c.bf16 %v189_v46, %v187_v45  ;;  %v197_v60 = vld [vmem:[%s1472_s1 + $0x4f8] sm:$0xff]  ;;  %v196_v0 = vld [vmem:[%s1472_s1 + $0x4f0] sm:$0xff]  ;;  %v199_v1 = vld [vmem:[%s1472_s1 + $0x508] sm:$0xff] }
  0x3c   :  { %v198_v5 = vld [vmem:[%s1472_s1 + $0x500] sm:$0xff]  ;;  %v200_v6 = vld [vmem:[%s1472_s1 + $0x510] sm:$0xff]  ;;  %v203_v7 = vld [vmem:[%s1472_s1 + $0x528] sm:$0xff] }
  0x3d   :  { %588 = vmatpush1.bf16.msra.mxu1 %v587_v56  ;;  %v681_v56 = vpack.c.bf16 %v193_v54, %v191_v53  ;;  %v205_v8 = vld [vmem:[%s1472_s1 + $0x538] sm:$0xff]  ;;  %v207_v13 = vld [vmem:[%s1472_s1 + $0x548] sm:$0xff]  ;;  %v210_v23 = vld [vmem:[%s1472_s1 + $0x560] sm:$0xff] }
  0x3e   :  { %652 = vmatpush1.bf16.msra.mxu0 %v651_v57  ;;  %590 = vmatprep.subr.bf16.mxu1 %v589_v58  ;;  %v190_v57 = vld [vmem:[%s1472_s1 + $0x4c0] sm:$0xff]  ;;  %v192_v58 = vld [vmem:[%s1472_s1 + $0x4d0] sm:$0xff]  ;;  %v209_v14 = vld [vmem:[%s1472_s1 + $0x558] sm:$0xff] }
  0x3f   :  { %654 = vmatprep.subr.bf16.mxu0 %v653_v62  ;;  %v683_v61 = vpack.c.bf16 %v192_v58, %v190_v57  ;;  %v685_v62 = vpack.c.bf16 %v197_v60, %v195_v59  ;;  %v697_v16 = vpack.c.bf16 %v209_v14, %v207_v13  ;;  %v215_v25 = vld [vmem:[%s1472_s1 + $0x588] sm:$0xff]  ;;  %v217_v26 = vld [vmem:[%s1472_s1 + $0x598] sm:$0xff]  ;;  %v218_v35 = vld [vmem:[%s1472_s1 + $0x5a0] sm:$0xff] }
  0x40   :  { %v221_v32 = vld [vmem:[%s1472_s1 + $0x5b8] sm:$0xff]  ;;  %v220_v36 = vld [vmem:[%s1472_s1 + $0x5b0] sm:$0xff]  ;;  %v227_v43 = vld [vmem:[%s1472_s1 + $0x5e8] sm:$0xff] }
  0x41   :  { %592 = vmatpush1.bf16.msra.mxu1 %v591_v2  ;;  %v201_v2 = vld [vmem:[%s1472_s1 + $0x518] sm:$0xff]  ;;  %v224_v42 = vld [vmem:[%s1472_s1 + $0x5d0] sm:$0xff]  ;;  %v18_v51 = vld [vmem:[%s1473_s0 + $0x20] sm:$0xff] }
  0x42   :  { %656 = vmatpush1.bf16.msra.mxu0 %v655_v3  ;;  %721 = vmatprep.subr.bf16.mxu1 %v657_v4  ;;  %v687_v3 = vpack.c.bf16 %v196_v0, %v194_v63  ;;  %v37_v52 = vld [vmem:[%s1473_s0 + $0xb8] sm:$0xff]  ;;  %v36_v54 = vld [vmem:[%s1473_s0 + $0xb0] sm:$0xff] }
  0x43   :  { %658 = vmatprep.subr.bf16.mxu0 %v657_v4  ;;  %v689_v4 = vpack.c.bf16 %v201_v2, %v199_v1  ;;  %v25_v53 = vld [vmem:[%s1473_s0 + $0x58] sm:$0xff] }
  0x44   :  { %307 = vmatmul.mubr.f32.vlgmr.msra.gmra.mrb[0].mxu1 %v14_v9  ;;  %v691_v9 = vpack.c.bf16 %v200_v6, %v198_v5 }
  0x45   :  { %396 = vmatmul.mubr.f32.vlgmr.msra.gmra.mrb[0].mxu0 %v16_v11  ;;  %737 = vmatpush1.bf16.msra.mxu1 %v659_v10  ;;  %v202_v11 = vld [vmem:[%s1472_s1 + $0x520] sm:$0xff] }
  0x46   :  { %660 = vmatpush1.bf16.msra.mxu0 %v659_v10  ;;  %722 = vmatprep.subr.bf16.mxu1 %v661_v12  ;;  %v693_v10 = vpack.c.bf16 %v205_v8, %v203_v7 }
  0x47   :  { %662 = vmatprep.subr.bf16.mxu0 %v661_v12  ;;  %312 = vmatprep.mubr.f32.mxu1 %v21_v17  ;;  %v204_v12 = vld [vmem:[%s1472_s1 + $0x530] sm:$0xff]  ;;  %v206_v17 = vld [vmem:[%s1472_s1 + $0x540] sm:$0xff] }
  0x48   :  { %313 = vmatmul.mubr.f32.gmra.mrb[2].mxu1 %v20_v19  ;;  %401 = vmatprep.mubr.f32.mxu0 %v23_v20  ;;  %v695_v15 = vpack.c.bf16 %v204_v12, %v202_v11  ;;  %v211_v19 = vld [vmem:[%s1472_s1 + $0x568] sm:$0xff]  ;;  %v213_v20 = vld [vmem:[%s1472_s1 + $0x578] sm:$0xff] }
  0x49   :  { %738 = vmatpush1.bf16.msra.mxu1 %v663_v18  ;;  %402 = vmatmul.mubr.f32.gmra.mrb[2].mxu0 %v22_v24  ;;  %v701_v22 = vpack.c.bf16 %v213_v20, %v211_v19  ;;  %v212_v24 = vld [vmem:[%s1472_s1 + $0x570] sm:$0xff] }
  0x4a   :  { %664 = vmatpush1.bf16.msra.mxu0 %v663_v18  ;;  %723 = vmatprep.subr.bf16.mxu1 %v665_v21  ;;  %v208_v18 = vld [vmem:[%s1472_s1 + $0x550] sm:$0xff] }
  0x4b   :  { %666 = vmatprep.subr.bf16.mxu0 %v665_v21  ;;  %318 = vmatprep.mubr.f32.mxu1 %v27_v27  ;;  %v699_v21 = vpack.c.bf16 %v208_v18, %v206_v17  ;;  %v703_v27 = vpack.c.bf16 %v212_v24, %v210_v23 }
  0x4c   :  { %319 = vmatmul.mubr.f32.gmra.mrb[4].mxu1 %v26_v29  ;;  %407 = vmatprep.mubr.f32.mxu0 %v29_v30  ;;  %v214_v29 = vld [vmem:[%s1472_s1 + $0x580] sm:$0xff]  ;;  %v216_v30 = vld [vmem:[%s1472_s1 + $0x590] sm:$0xff] }
  0x4d   :  { %739 = vmatpush1.bf16.msra.mxu1 %v667_v28  ;;  %408 = vmatmul.mubr.f32.gmra.mrb[4].mxu0 %v28_v34  ;;  %v707_v33 = vpack.c.bf16 %v216_v30, %v214_v29 }
  0x4e   :  { %668 = vmatpush1.bf16.msra.mxu0 %v667_v28  ;;  %724 = vmatprep.subr.bf16.mxu1 %v669_v31  ;;  %v705_v28 = vpack.c.bf16 %v217_v26, %v215_v25 }
  0x4f   :  { %670 = vmatprep.subr.bf16.mxu0 %v669_v31  ;;  %324 = vmatprep.mubr.f32.mxu1 %v33_v37  ;;  %v219_v31 = vld [vmem:[%s1472_s1 + $0x5a8] sm:$0xff] }
  0x50   :  { %325 = vmatmul.mubr.f32.gmra.mrb[6].mxu1 %v32_v39  ;;  %413 = vmatprep.mubr.f32.mxu0 %v35_v40  ;;  %v709_v34 = vpack.c.bf16 %v221_v32, %v219_v31  ;;  %v223_v37 = vld [vmem:[%s1472_s1 + $0x5c8] sm:$0xff]  ;;  %v711_v39 = vpack.c.bf16 %v220_v36, %v218_v35 }
  0x51   :  { %740 = vmatpush1.bf16.msra.mxu1 %v671_v38  ;;  %414 = vmatmul.mubr.f32.gmra.mrb[6].mxu0 %v34_v44  ;;  %v229_v44 = vld [vmem:[%s1472_s1 + $0x5f8] sm:$0xff] }
  0x52   :  { %672 = vmatpush1.bf16.msra.mxu0 %v671_v38  ;;  %725 = vmatprep.subr.bf16.mxu1 %v673_v41  ;;  %v225_v38 = vld [vmem:[%s1472_s1 + $0x5d8] sm:$0xff]  ;;  %v717_v46 = vpack.c.bf16 %v229_v44, %v227_v43 }
  0x53   :  { %674 = vmatprep.subr.bf16.mxu0 %v673_v41  ;;  %484 = vmatprep.mubr.f32.mxu0 %v19_v47  ;;  %v713_v40 = vpack.c.bf16 %v225_v38, %v223_v37  ;;  %v222_v41 = vld [vmem:[%s1472_s1 + $0x5c0] sm:$0xff] }
  0x54   :  { %496 = vmatprep.mubr.f32.mxu1 %v31_v49  ;;  %v715_v45 = vpack.c.bf16 %v224_v42, %v222_v41  ;;  %v226_v47 = vld [vmem:[%s1472_s1 + $0x5e0] sm:$0xff] }
  0x55   :  { %741 = vmatpush1.bf16.msra.mxu1 %v675_v48 }
  0x56   :  { %676 = vmatpush1.bf16.msra.mxu0 %v675_v48  ;;  %726 = vmatprep.subr.bf16.mxu1 %v677_v50  ;;  %v228_v48 = vld [vmem:[%s1472_s1 + $0x5f0] sm:$0xff] }
  0x57   :  { %678 = vmatprep.subr.bf16.mxu0 %v677_v50  ;;  %v719_v49 = vpack.c.bf16 %v228_v48, %v226_v47  ;;  %v30_v50 = vld [vmem:[%s1473_s0 + $0x80] sm:$0xff] }
  0x59   :  { %742 = vmatpush1.bf16.msra.mxu1 %v679_v55 }
  0x5a   :  { %680 = vmatpush1.bf16.msra.mxu0 %v679_v55  ;;  %727 = vmatprep.subr.bf16.mxu1 %v681_v56  ;;  %v24_v55 = vld [vmem:[%s1473_s0 + $0x50] sm:$0xff] }
  0x5b   :  { %682 = vmatprep.subr.bf16.mxu0 %v681_v56  ;;  %v232_v56 = vlaneseq }
  0x5d   :  { %743 = vmatpush1.bf16.msra.mxu1 %v683_v61  ;;  %v233_v57 = vshrl.u32 %v232_v56, 7 }
  0x5e   :  { %684 = vmatpush1.bf16.msra.mxu0 %v683_v61  ;;  %728 = vmatprep.subr.bf16.mxu1 %v685_v62  ;;  %v230_v61 = vld [vmem:[%s1474_s2] sm:$0x3] }
  0x5f   :  { %686 = vmatprep.subr.bf16.mxu0 %v685_v62  ;;  %v234_v60 = vsub.s32 0, %v233_v57  ;;  %v238_v62 = vsub.s32 1, %v233_v57 }
  0x61   :  { %744 = vmatpush1.bf16.msra.mxu1 %v687_v3  ;;  %v235_v1 = vrot.slane %v230_v61, %v234_v60  ;;  %v239_v2 = vrot.slane %v230_v61, %v238_v62 }
  0x62   :  { %688 = vmatpush1.bf16.msra.mxu0 %v687_v3  ;;  %729 = vmatprep.subr.bf16.mxu1 %v689_v4 }
  0x63   :  { %690 = vmatprep.subr.bf16.mxu0 %v689_v4 }
  0x65   :  { %745 = vmatpush1.bf16.msra.mxu1 %v691_v9 }
  0x66   :  { %692 = vmatpush1.bf16.msra.mxu0 %v691_v9  ;;  %730 = vmatprep.subr.bf16.mxu1 %v693_v10 }
  0x67   :  { %694 = vmatprep.subr.bf16.mxu0 %v693_v10 }
  0x69   :  { %746 = vmatpush1.bf16.msra.mxu1 %v695_v15 }
  0x6a   :  { %696 = vmatpush1.bf16.msra.mxu0 %v695_v15  ;;  %731 = vmatprep.subr.bf16.mxu1 %v697_v16 }
  0x6b   :  { %698 = vmatprep.subr.bf16.mxu0 %v697_v16 }
  0x6d   :  { %747 = vmatpush1.bf16.msra.mxu1 %v699_v21 }
  0x6e   :  { %700 = vmatpush1.bf16.msra.mxu0 %v699_v21  ;;  %732 = vmatprep.subr.bf16.mxu1 %v701_v22 }
  0x6f   :  { %702 = vmatprep.subr.bf16.mxu0 %v701_v22 }
  0x71   :  { %748 = vmatpush1.bf16.msra.mxu1 %v703_v27 }
  0x72   :  { %704 = vmatpush1.bf16.msra.mxu0 %v703_v27  ;;  %733 = vmatprep.subr.bf16.mxu1 %v705_v28 }
  0x73   :  { %706 = vmatprep.subr.bf16.mxu0 %v705_v28 }
  0x75   :  { %749 = vmatpush1.bf16.msra.mxu1 %v707_v33 }
  0x76   :  { %708 = vmatpush1.bf16.msra.mxu0 %v707_v33  ;;  %734 = vmatprep.subr.bf16.mxu1 %v709_v34 }
  0x77   :  { %710 = vmatprep.subr.bf16.mxu0 %v709_v34 }
  0x79   :  { %750 = vmatpush1.bf16.msra.mxu1 %v711_v39 }
  0x7a   :  { %712 = vmatpush1.bf16.msra.mxu0 %v711_v39  ;;  %735 = vmatprep.subr.bf16.mxu1 %v713_v40 }
  0x7b   :  { %714 = vmatprep.subr.bf16.mxu0 %v713_v40 }
  0x7d   :  { %751 = vmatpush1.bf16.msra.mxu1 %v715_v45 }
  0x7e   :  { %716 = vmatpush1.bf16.msra.mxu0 %v715_v45  ;;  %736 = vmatprep.subr.bf16.mxu1 %v717_v46 }
  0x7f   :  { %718 = vmatprep.subr.bf16.mxu0 %v717_v46 }
  0x81   :  { %752 = vmatpush1.bf16.msra.mxu1 %v719_v49 }
  0x82   :  { %720 = vmatpush1.bf16.msra.mxu0 %v719_v49 }
  0x84   :  { %497 = vmatmul.mubr.f32.vlgmr.msra.gmra.mrb[8].mxu1 %v30_v50 }
  0x85   :  { %485 = vmatmul.mubr.f32.vlgmr.msra.gmra.mrb[0].mxu0 %v18_v51  ;;  %502 = vmatprep.mubr.f32.mxu1 %v37_v52 }
  0x86   :  { %490 = vmatprep.mubr.f32.mxu0 %v25_v53 }
  0x88   :  { %503 = vmatmul.mubr.f32.gmra.mrb[10].mxu1 %v36_v54 }
  0x89   :  { %491 = vmatmul.mubr.f32.gmra.mrb[2].mxu0 %v24_v55 }
 0x117   :  { %v308_v58 = vpop.f32.mrb[0].mxu1 }
 0x118   :  { %v310_v59 = vpop.f32.mrb[1].mxu1  ;;  %v309_v19 = vadd.f32 %v308_v58, %v235_v1 }
 0x119   :  { %v311_v21 = vadd.f32 %v310_v59, %v239_v2 }
 0x11b   :  { %v314_v63 = vpop.f32.mrb[2].mxu1 }
 0x11c   :  { %v316_v0 = vpop.f32.mrb[3].mxu1  ;;  %v315_v30 = vadd.f32 %v314_v63, %v235_v1 }
 0x11d   :  { %v317_v34 = vadd.f32 %v316_v0, %v239_v2 }
 0x11f   :  { %v320_v3 = vpop.f32.mrb[4].mxu1 }
 0x120   :  { %v321_v4 = vadd.f32 %v320_v3, %v235_v1  ;;  %v322_v5 = vpop.f32.mrb[5].mxu1  ;;  %v409_v6 = vpop.f32.mrb[4].mxu0 }
 0x121   :  { %v323_v7 = vadd.f32 %v322_v5, %v239_v2  ;;  %v411_v8 = vpop.f32.mrb[5].mxu0 }
 0x122   :  { %v410_v9 = vadd.f32 %v409_v6, %v321_v4 }
 0x123   :  { %v412_v10 = vadd.f32 %v411_v8, %v323_v7  ;;  %v326_v11 = vpop.f32.mrb[6].mxu1 }
 0x124   :  { %v327_v12 = vadd.f32 %v326_v11, %v235_v1  ;;  %v328_v13 = vpop.f32.mrb[7].mxu1  ;;  %v415_v14 = vpop.f32.mrb[6].mxu0 }
 0x125   :  { %v329_v15 = vadd.f32 %v328_v13, %v239_v2  ;;  %v417_v16 = vpop.f32.mrb[7].mxu0 }
 0x126   :  { %v416_v17 = vadd.f32 %v415_v14, %v327_v12 }
 0x127   :  { %v418_v18 = vadd.f32 %v417_v16, %v329_v15 }
 0x157   :  { %v498_v20 = vpop.f32.mrb[8].mxu1 }
 0x158   :  { %v486_v22 = vpop.f32.mrb[0].mxu0  ;;  %v499_v23 = vadd.f32 %v498_v20, %v410_v9  ;;  %v500_v24 = vpop.f32.mrb[9].mxu1 }
 0x159   :  { %v754_v25 = vadd.f32 %v486_v22, %v309_v19  ;;  %v488_v26 = vpop.f32.mrb[1].mxu0  ;;  %v501_v27 = vadd.f32 %v500_v24, %v412_v10 }
 0x15a   :  { %v513_v28 = vmax.f32 %v499_v23, 0.0  ;;  %v756_v29 = vadd.f32 %v488_v26, %v311_v21 }
 0x15b   :  { %v509_v31 = vmax.f32 %v754_v25, 0.0  ;;  %v514_v32 = vmax.f32 %v501_v27, 0.0  ;;  %v504_v33 = vpop.f32.mrb[10].mxu1 }
 0x15c   :  { %521 = vst [vmem:[%s1475_s3 + $0x20] sm:$0xff] %v513_v28  ;;  %v510_v35 = vmax.f32 %v756_v29, 0.0  ;;  %v492_v36 = vpop.f32.mrb[2].mxu0  ;;  %v505_v37 = vadd.f32 %v504_v33, %v416_v17  ;;  %v506_v38 = vpop.f32.mrb[11].mxu1 }
 0x15d   :  { %517 = vst [vmem:[%s1475_s3] sm:$0xff] %v509_v31  ;;  %522 = vst [vmem:[%s1475_s3 + $0x28] sm:$0xff] %v514_v32  ;;  %v758_v39 = vadd.f32 %v492_v36, %v315_v30  ;;  %v494_v40 = vpop.f32.mrb[3].mxu0  ;;  %v507_v41 = vadd.f32 %v506_v38, %v418_v18 }
 0x15e   :  { %518 = vst [vmem:[%s1475_s3 + $0x8] sm:$0xff] %v510_v35  ;;  %v515_v42 = vmax.f32 %v505_v37, 0.0  ;;  %v760_v43 = vadd.f32 %v494_v40, %v317_v34 }
 0x15f   :  { %v511_v44 = vmax.f32 %v758_v39, 0.0  ;;  %v516_v45 = vmax.f32 %v507_v41, 0.0 }
 0x160   :  { %523 = vst [vmem:[%s1475_s3 + $0x30] sm:$0xff] %v515_v42  ;;  %v512_v46 = vmax.f32 %v760_v43, 0.0 }
 0x161   :  { %519 = vst [vmem:[%s1475_s3 + $0x10] sm:$0xff] %v511_v44  ;;  %524 = vst [vmem:[%s1475_s3 + $0x38] sm:$0xff] %v516_v45 }
 0x162   :  { %520 = vst [vmem:[%s1475_s3 + $0x18] sm:$0xff] %v512_v46 }

// kernel: audio_cnn1d_extractor_forward.17
= control target key start
LH: loop header
LB: loop body
LE: loop exit
PB: predicated region body
PF: predicated region fallthrough
CT: control target
= control target key end

     0   :  { %s2465_s1 = inlined_call_operand.vmem [shape: f32[768,512], index: 1, kind: input, shape index: {}]   ;;  %s2466_s0 = inlined_call_operand.vmem [shape: f32[8,768], index: 0, kind: input, shape index: {}]   ;;  %s2467_s2 = inlined_call_operand.vmem [shape: f32[1,512], index: 2, kind: input, shape index: {}]   ;;  %s2468_s3 = inlined_call_operand.vmem [shape: f32[8,512], index: 3, kind: output, shape index: {}]  }
   0x1   :  { %v21_v0 = vld [vmem:[%s2465_s1 + $0x8] sm:$0xff]  ;;  %v23_v2 = vld [vmem:[%s2465_s1 + $0x18] sm:$0xff]  ;;  %v20_v5 = vld [vmem:[%s2465_s1] sm:$0xff] }
   0x2   :  { %v25_v1 = vld [vmem:[%s2465_s1 + $0x28] sm:$0xff]  ;;  %v27_v4 = vld [vmem:[%s2465_s1 + $0x38] sm:$0xff]  ;;  %v24_v6 = vld [vmem:[%s2465_s1 + $0x20] sm:$0xff] }
   0x3   :  { %v864_v3 = vpack.c.bf16 %v25_v1, %v21_v0  ;;  %v1056_v7 = vpack.c.bf16 %v27_v4, %v23_v2  ;;  %v866_v8 = vpack.c.bf16 %v24_v6, %v20_v5  ;;  %v22_v9 = vld [vmem:[%s2465_s1 + $0x10] sm:$0xff]  ;;  %v29_v11 = vld [vmem:[%s2465_s1 + $0x48] sm:$0xff]  ;;  %v31_v14 = vld [vmem:[%s2465_s1 + $0x58] sm:$0xff] }
   0x4   :  { %v26_v10 = vld [vmem:[%s2465_s1 + $0x30] sm:$0xff]  ;;  %v33_v13 = vld [vmem:[%s2465_s1 + $0x68] sm:$0xff]  ;;  %v35_v15 = vld [vmem:[%s2465_s1 + $0x78] sm:$0xff] }
   0x5   :  { %865 = vmatprep.subr.bf16.mxu0 %v864_v3  ;;  %v1058_v12 = vpack.c.bf16 %v26_v10, %v22_v9  ;;  %1057 = vmatprep.subr.bf16.mxu1 %v1056_v7  ;;  %v868_v16 = vpack.c.bf16 %v33_v13, %v29_v11  ;;  %v1060_v17 = vpack.c.bf16 %v35_v15, %v31_v14  ;;  %v28_v18 = vld [vmem:[%s2465_s1 + $0x40] sm:$0xff]  ;;  %v30_v20 = vld [vmem:[%s2465_s1 + $0x50] sm:$0xff]  ;;  %v37_v23 = vld [vmem:[%s2465_s1 + $0x88] sm:$0xff] }
   0x6   :  { %867 = vmatpush1.bf16.msra.mxu0 %v866_v8  ;;  %v32_v19 = vld [vmem:[%s2465_s1 + $0x60] sm:$0xff]  ;;  %v34_v22 = vld [vmem:[%s2465_s1 + $0x70] sm:$0xff]  ;;  %v41_v24 = vld [vmem:[%s2465_s1 + $0xa8] sm:$0xff] }
   0x7   :  { %1059 = vmatpush1.bf16.msra.mxu1 %v1058_v12  ;;  %v870_v21 = vpack.c.bf16 %v32_v19, %v28_v18  ;;  %869 = vmatprep.subr.bf16.mxu0 %v868_v16  ;;  %v1062_v25 = vpack.c.bf16 %v34_v22, %v30_v20  ;;  %v872_v26 = vpack.c.bf16 %v41_v24, %v37_v23  ;;  %v39_v27 = vld [vmem:[%s2465_s1 + $0x98] sm:$0xff]  ;;  %v36_v29 = vld [vmem:[%s2465_s1 + $0x80] sm:$0xff]  ;;  %v38_v32 = vld [vmem:[%s2465_s1 + $0x90] sm:$0xff] }
   0x8   :  { %1061 = vmatprep.subr.bf16.mxu1 %v1060_v17  ;;  %v43_v28 = vld [vmem:[%s2465_s1 + $0xb8] sm:$0xff]  ;;  %v40_v31 = vld [vmem:[%s2465_s1 + $0xa0] sm:$0xff]  ;;  %v42_v33 = vld [vmem:[%s2465_s1 + $0xb0] sm:$0xff] }
   0x9   :  { %v1064_v30 = vpack.c.bf16 %v43_v28, %v39_v27  ;;  %v874_v34 = vpack.c.bf16 %v40_v31, %v36_v29  ;;  %v45_v35 = vld [vmem:[%s2465_s1 + $0xc8] sm:$0xff]  ;;  %v47_v37 = vld [vmem:[%s2465_s1 + $0xd8] sm:$0xff]  ;;  %v1066_v38 = vpack.c.bf16 %v42_v33, %v38_v32  ;;  %v44_v41 = vld [vmem:[%s2465_s1 + $0xc0] sm:$0xff] }
   0xa   :  { %871 = vmatpush1.bf16.msra.mxu0 %v870_v21  ;;  %v49_v36 = vld [vmem:[%s2465_s1 + $0xe8] sm:$0xff]  ;;  %v51_v40 = vld [vmem:[%s2465_s1 + $0xf8] sm:$0xff]  ;;  %v48_v42 = vld [vmem:[%s2465_s1 + $0xe0] sm:$0xff] }
   0xb   :  { %1063 = vmatpush1.bf16.msra.mxu1 %v1062_v25  ;;  %873 = vmatprep.subr.bf16.mxu0 %v872_v26  ;;  %v876_v39 = vpack.c.bf16 %v49_v36, %v45_v35  ;;  %v1068_v43 = vpack.c.bf16 %v51_v40, %v47_v37  ;;  %v46_v44 = vld [vmem:[%s2465_s1 + $0xd0] sm:$0xff]  ;;  %v53_v46 = vld [vmem:[%s2465_s1 + $0x108] sm:$0xff]  ;;  %v55_v48 = vld [vmem:[%s2465_s1 + $0x118] sm:$0xff]  ;;  %v878_v50 = vpack.c.bf16 %v48_v42, %v44_v41 }
   0xc   :  { %1065 = vmatprep.subr.bf16.mxu1 %v1064_v30  ;;  %v50_v45 = vld [vmem:[%s2465_s1 + $0xf0] sm:$0xff]  ;;  %v57_v47 = vld [vmem:[%s2465_s1 + $0x128] sm:$0xff]  ;;  %v59_v49 = vld [vmem:[%s2465_s1 + $0x138] sm:$0xff] }
   0xd   :  { %v1070_v51 = vpack.c.bf16 %v50_v45, %v46_v44  ;;  %v880_v52 = vpack.c.bf16 %v57_v47, %v53_v46  ;;  %v52_v53 = vld [vmem:[%s2465_s1 + $0x100] sm:$0xff]  ;;  %v54_v55 = vld [vmem:[%s2465_s1 + $0x110] sm:$0xff]  ;;  %v1072_v56 = vpack.c.bf16 %v59_v49, %v55_v48  ;;  %v61_v58 = vld [vmem:[%s2465_s1 + $0x148] sm:$0xff] }
   0xe   :  { %875 = vmatpush1.bf16.msra.mxu0 %v874_v34  ;;  %v56_v54 = vld [vmem:[%s2465_s1 + $0x120] sm:$0xff]  ;;  %v58_v57 = vld [vmem:[%s2465_s1 + $0x130] sm:$0xff]  ;;  %v65_v59 = vld [vmem:[%s2465_s1 + $0x168] sm:$0xff] }
   0xf   :  { %1067 = vmatpush1.bf16.msra.mxu1 %v1066_v38  ;;  %877 = vmatprep.subr.bf16.mxu0 %v876_v39  ;;  %v63_v60 = vld [vmem:[%s2465_s1 + $0x158] sm:$0xff]  ;;  %v882_v62 = vpack.c.bf16 %v56_v54, %v52_v53  ;;  %v1074_v63 = vpack.c.bf16 %v58_v57, %v54_v55  ;;  %v884_v0 = vpack.c.bf16 %v65_v59, %v61_v58  ;;  %v60_v1 = vld [vmem:[%s2465_s1 + $0x140] sm:$0xff]  ;;  %v62_v3 = vld [vmem:[%s2465_s1 + $0x150] sm:$0xff] }
  0x10   :  { %1069 = vmatprep.subr.bf16.mxu1 %v1068_v43  ;;  %v67_v61 = vld [vmem:[%s2465_s1 + $0x178] sm:$0xff]  ;;  %v64_v2 = vld [vmem:[%s2465_s1 + $0x160] sm:$0xff]  ;;  %v66_v5 = vld [vmem:[%s2465_s1 + $0x170] sm:$0xff] }
  0x11   :  { %v1076_v4 = vpack.c.bf16 %v67_v61, %v63_v60  ;;  %v69_v6 = vld [vmem:[%s2465_s1 + $0x188] sm:$0xff]  ;;  %v71_v8 = vld [vmem:[%s2465_s1 + $0x198] sm:$0xff]  ;;  %v886_v10 = vpack.c.bf16 %v64_v2, %v60_v1  ;;  %v1078_v11 = vpack.c.bf16 %v66_v5, %v62_v3  ;;  %v68_v13 = vld [vmem:[%s2465_s1 + $0x180] sm:$0xff] }
  0x12   :  { %879 = vmatpush1.bf16.msra.mxu0 %v878_v50  ;;  %v73_v7 = vld [vmem:[%s2465_s1 + $0x1a8] sm:$0xff]  ;;  %v75_v9 = vld [vmem:[%s2465_s1 + $0x1b8] sm:$0xff]  ;;  %v72_v14 = vld [vmem:[%s2465_s1 + $0x1a0] sm:$0xff] }
  0x13   :  { %1071 = vmatpush1.bf16.msra.mxu1 %v1070_v51  ;;  %881 = vmatprep.subr.bf16.mxu0 %v880_v52  ;;  %v888_v12 = vpack.c.bf16 %v73_v7, %v69_v6  ;;  %v70_v15 = vld [vmem:[%s2465_s1 + $0x190] sm:$0xff]  ;;  %v1080_v16 = vpack.c.bf16 %v75_v9, %v71_v8  ;;  %v77_v18 = vld [vmem:[%s2465_s1 + $0x1c8] sm:$0xff]  ;;  %v79_v20 = vld [vmem:[%s2465_s1 + $0x1d8] sm:$0xff]  ;;  %v890_v22 = vpack.c.bf16 %v72_v14, %v68_v13 }
  0x14   :  { %1073 = vmatprep.subr.bf16.mxu1 %v1072_v56  ;;  %v74_v17 = vld [vmem:[%s2465_s1 + $0x1b0] sm:$0xff]  ;;  %v81_v19 = vld [vmem:[%s2465_s1 + $0x1e8] sm:$0xff]  ;;  %v83_v21 = vld [vmem:[%s2465_s1 + $0x1f8] sm:$0xff] }
  0x15   :  { %v1082_v23 = vpack.c.bf16 %v74_v17, %v70_v15  ;;  %v892_v24 = vpack.c.bf16 %v81_v19, %v77_v18  ;;  %v76_v25 = vld [vmem:[%s2465_s1 + $0x1c0] sm:$0xff]  ;;  %v78_v27 = vld [vmem:[%s2465_s1 + $0x1d0] sm:$0xff]  ;;  %v1084_v28 = vpack.c.bf16 %v83_v21, %v79_v20  ;;  %v85_v30 = vld [vmem:[%s2465_s1 + $0x208] sm:$0xff] }
  0x16   :  { %883 = vmatpush1.bf16.msra.mxu0 %v882_v62  ;;  %v80_v26 = vld [vmem:[%s2465_s1 + $0x1e0] sm:$0xff]  ;;  %v82_v29 = vld [vmem:[%s2465_s1 + $0x1f0] sm:$0xff]  ;;  %v89_v31 = vld [vmem:[%s2465_s1 + $0x228] sm:$0xff] }
  0x17   :  { %1075 = vmatpush1.bf16.msra.mxu1 %v1074_v63  ;;  %885 = vmatprep.subr.bf16.mxu0 %v884_v0  ;;  %v87_v32 = vld [vmem:[%s2465_s1 + $0x218] sm:$0xff]  ;;  %v894_v34 = vpack.c.bf16 %v80_v26, %v76_v25  ;;  %v1086_v35 = vpack.c.bf16 %v82_v29, %v78_v27  ;;  %v896_v36 = vpack.c.bf16 %v89_v31, %v85_v30  ;;  %v84_v37 = vld [vmem:[%s2465_s1 + $0x200] sm:$0xff]  ;;  %v86_v39 = vld [vmem:[%s2465_s1 + $0x210] sm:$0xff] }
  0x18   :  { %1077 = vmatprep.subr.bf16.mxu1 %v1076_v4  ;;  %v91_v33 = vld [vmem:[%s2465_s1 + $0x238] sm:$0xff]  ;;  %v88_v38 = vld [vmem:[%s2465_s1 + $0x220] sm:$0xff]  ;;  %v90_v41 = vld [vmem:[%s2465_s1 + $0x230] sm:$0xff] }
  0x19   :  { %v1088_v40 = vpack.c.bf16 %v91_v33, %v87_v32  ;;  %v93_v42 = vld [vmem:[%s2465_s1 + $0x248] sm:$0xff]  ;;  %v95_v44 = vld [vmem:[%s2465_s1 + $0x258] sm:$0xff]  ;;  %v898_v46 = vpack.c.bf16 %v88_v38, %v84_v37  ;;  %v1090_v47 = vpack.c.bf16 %v90_v41, %v86_v39  ;;  %v92_v49 = vld [vmem:[%s2465_s1 + $0x240] sm:$0xff] }
  0x1a   :  { %887 = vmatpush1.bf16.msra.mxu0 %v886_v10  ;;  %v97_v43 = vld [vmem:[%s2465_s1 + $0x268] sm:$0xff]  ;;  %v99_v45 = vld [vmem:[%s2465_s1 + $0x278] sm:$0xff]  ;;  %v96_v50 = vld [vmem:[%s2465_s1 + $0x260] sm:$0xff] }
  0x1b   :  { %1079 = vmatpush1.bf16.msra.mxu1 %v1078_v11  ;;  %889 = vmatprep.subr.bf16.mxu0 %v888_v12  ;;  %v900_v48 = vpack.c.bf16 %v97_v43, %v93_v42  ;;  %v94_v51 = vld [vmem:[%s2465_s1 + $0x250] sm:$0xff]  ;;  %v1092_v52 = vpack.c.bf16 %v99_v45, %v95_v44  ;;  %v101_v54 = vld [vmem:[%s2465_s1 + $0x288] sm:$0xff]  ;;  %v103_v56 = vld [vmem:[%s2465_s1 + $0x298] sm:$0xff]  ;;  %v902_v58 = vpack.c.bf16 %v96_v50, %v92_v49 }
  0x1c   :  { %1081 = vmatprep.subr.bf16.mxu1 %v1080_v16  ;;  %v98_v53 = vld [vmem:[%s2465_s1 + $0x270] sm:$0xff]  ;;  %v105_v55 = vld [vmem:[%s2465_s1 + $0x2a8] sm:$0xff]  ;;  %v107_v57 = vld [vmem:[%s2465_s1 + $0x2b8] sm:$0xff] }
  0x1d   :  { %v1094_v59 = vpack.c.bf16 %v98_v53, %v94_v51  ;;  %v904_v60 = vpack.c.bf16 %v105_v55, %v101_v54  ;;  %v100_v61 = vld [vmem:[%s2465_s1 + $0x280] sm:$0xff]  ;;  %v102_v63 = vld [vmem:[%s2465_s1 + $0x290] sm:$0xff]  ;;  %v1096_v0 = vpack.c.bf16 %v107_v57, %v103_v56  ;;  %v109_v2 = vld [vmem:[%s2465_s1 + $0x2c8] sm:$0xff] }
  0x1e   :  { %891 = vmatpush1.bf16.msra.mxu0 %v890_v22  ;;  %v104_v62 = vld [vmem:[%s2465_s1 + $0x2a0] sm:$0xff]  ;;  %v106_v1 = vld [vmem:[%s2465_s1 + $0x2b0] sm:$0xff]  ;;  %v113_v3 = vld [vmem:[%s2465_s1 + $0x2e8] sm:$0xff] }
  0x1f   :  { %1083 = vmatpush1.bf16.msra.mxu1 %v1082_v23  ;;  %893 = vmatprep.subr.bf16.mxu0 %v892_v24  ;;  %v111_v4 = vld [vmem:[%s2465_s1 + $0x2d8] sm:$0xff]  ;;  %v906_v6 = vpack.c.bf16 %v104_v62, %v100_v61  ;;  %v108_v7 = vld [vmem:[%s2465_s1 + $0x2c0] sm:$0xff]  ;;  %v1098_v8 = vpack.c.bf16 %v106_v1, %v102_v63  ;;  %v908_v9 = vpack.c.bf16 %v113_v3, %v109_v2  ;;  %v110_v11 = vld [vmem:[%s2465_s1 + $0x2d0] sm:$0xff] }
  0x20   :  { %1085 = vmatprep.subr.bf16.mxu1 %v1084_v28  ;;  %v115_v5 = vld [vmem:[%s2465_s1 + $0x2f8] sm:$0xff]  ;;  %v112_v10 = vld [vmem:[%s2465_s1 + $0x2e0] sm:$0xff]  ;;  %v114_v12 = vld [vmem:[%s2465_s1 + $0x2f0] sm:$0xff] }
  0x21   :  { %v1100_v13 = vpack.c.bf16 %v115_v5, %v111_v4  ;;  %v117_v14 = vld [vmem:[%s2465_s1 + $0x308] sm:$0xff]  ;;  %v119_v17 = vld [vmem:[%s2465_s1 + $0x318] sm:$0xff]  ;;  %v910_v19 = vpack.c.bf16 %v112_v10, %v108_v7  ;;  %v1102_v20 = vpack.c.bf16 %v114_v12, %v110_v11  ;;  %v116_v22 = vld [vmem:[%s2465_s1 + $0x300] sm:$0xff] }
  0x22   :  { %895 = vmatpush1.bf16.msra.mxu0 %v894_v34  ;;  %v121_v15 = vld [vmem:[%s2465_s1 + $0x328] sm:$0xff]  ;;  %v123_v18 = vld [vmem:[%s2465_s1 + $0x338] sm:$0xff]  ;;  %v120_v23 = vld [vmem:[%s2465_s1 + $0x320] sm:$0xff] }
  0x23   :  { %1087 = vmatpush1.bf16.msra.mxu1 %v1086_v35  ;;  %897 = vmatprep.subr.bf16.mxu0 %v896_v36  ;;  %v15_v16 = vld [vmem:[%s2466_s0 + $0x8] sm:$0xff]  ;;  %v912_v21 = vpack.c.bf16 %v121_v15, %v117_v14  ;;  %v118_v24 = vld [vmem:[%s2465_s1 + $0x310] sm:$0xff]  ;;  %v1104_v25 = vpack.c.bf16 %v123_v18, %v119_v17  ;;  %v127_v29 = vld [vmem:[%s2465_s1 + $0x358] sm:$0xff]  ;;  %v914_v31 = vpack.c.bf16 %v120_v23, %v116_v22 }
  0x24   :  { %1089 = vmatprep.subr.bf16.mxu1 %v1088_v40  ;;  %490 = vmatprep.mubr.f32.mxu0 %v15_v16  ;;  %v122_v26 = vld [vmem:[%s2465_s1 + $0x330] sm:$0xff]  ;;  %v125_v27 = vld [vmem:[%s2465_s1 + $0x348] sm:$0xff]  ;;  %v131_v30 = vld [vmem:[%s2465_s1 + $0x378] sm:$0xff] }
  0x25   :  { %703 = vmatprep.mubr.f32.mxu1 %v15_v16  ;;  %v129_v28 = vld [vmem:[%s2465_s1 + $0x368] sm:$0xff]  ;;  %v1106_v32 = vpack.c.bf16 %v122_v26, %v118_v24  ;;  %v124_v34 = vld [vmem:[%s2465_s1 + $0x340] sm:$0xff]  ;;  %v126_v36 = vld [vmem:[%s2465_s1 + $0x350] sm:$0xff]  ;;  %v1108_v37 = vpack.c.bf16 %v131_v30, %v127_v29 }
  0x26   :  { %899 = vmatpush1.bf16.msra.mxu0 %v898_v46  ;;  %v916_v33 = vpack.c.bf16 %v129_v28, %v125_v27  ;;  %v128_v35 = vld [vmem:[%s2465_s1 + $0x360] sm:$0xff]  ;;  %v130_v38 = vld [vmem:[%s2465_s1 + $0x370] sm:$0xff]  ;;  %v133_v39 = vld [vmem:[%s2465_s1 + $0x388] sm:$0xff] }
  0x27   :  { %1091 = vmatpush1.bf16.msra.mxu1 %v1090_v47  ;;  %901 = vmatprep.subr.bf16.mxu0 %v900_v48  ;;  %v137_v40 = vld [vmem:[%s2465_s1 + $0x3a8] sm:$0xff]  ;;  %v135_v41 = vld [vmem:[%s2465_s1 + $0x398] sm:$0xff]  ;;  %v918_v43 = vpack.c.bf16 %v128_v35, %v124_v34  ;;  %v1110_v44 = vpack.c.bf16 %v130_v38, %v126_v36  ;;  %v132_v46 = vld [vmem:[%s2465_s1 + $0x380] sm:$0xff] }
  0x28   :  { %1093 = vmatprep.subr.bf16.mxu1 %v1092_v52  ;;  %v139_v42 = vld [vmem:[%s2465_s1 + $0x3b8] sm:$0xff]  ;;  %v920_v45 = vpack.c.bf16 %v137_v40, %v133_v39  ;;  %v136_v47 = vld [vmem:[%s2465_s1 + $0x3a0] sm:$0xff]  ;;  %v134_v48 = vld [vmem:[%s2465_s1 + $0x390] sm:$0xff] }
  0x29   :  { %v1112_v49 = vpack.c.bf16 %v139_v42, %v135_v41  ;;  %v138_v50 = vld [vmem:[%s2465_s1 + $0x3b0] sm:$0xff]  ;;  %v141_v51 = vld [vmem:[%s2465_s1 + $0x3c8] sm:$0xff]  ;;  %v143_v53 = vld [vmem:[%s2465_s1 + $0x3d8] sm:$0xff]  ;;  %v922_v55 = vpack.c.bf16 %v136_v47, %v132_v46 }
  0x2a   :  { %903 = vmatpush1.bf16.msra.mxu0 %v902_v58  ;;  %v145_v52 = vld [vmem:[%s2465_s1 + $0x3e8] sm:$0xff]  ;;  %v147_v54 = vld [vmem:[%s2465_s1 + $0x3f8] sm:$0xff]  ;;  %v1114_v56 = vpack.c.bf16 %v138_v50, %v134_v48  ;;  %v140_v58 = vld [vmem:[%s2465_s1 + $0x3c0] sm:$0xff] }
  0x2b   :  { %1095 = vmatpush1.bf16.msra.mxu1 %v1094_v59  ;;  %905 = vmatprep.subr.bf16.mxu0 %v904_v60  ;;  %v924_v57 = vpack.c.bf16 %v145_v52, %v141_v51  ;;  %v144_v59 = vld [vmem:[%s2465_s1 + $0x3e0] sm:$0xff]  ;;  %v142_v60 = vld [vmem:[%s2465_s1 + $0x3d0] sm:$0xff]  ;;  %v1116_v61 = vpack.c.bf16 %v147_v54, %v143_v53  ;;  %v149_v63 = vld [vmem:[%s2465_s1 + $0x408] sm:$0xff] }
  0x2c   :  { %1097 = vmatprep.subr.bf16.mxu1 %v1096_v0  ;;  %v146_v62 = vld [vmem:[%s2465_s1 + $0x3f0] sm:$0xff]  ;;  %v153_v0 = vld [vmem:[%s2465_s1 + $0x428] sm:$0xff]  ;;  %v151_v1 = vld [vmem:[%s2465_s1 + $0x418] sm:$0xff]  ;;  %v926_v3 = vpack.c.bf16 %v144_v59, %v140_v58 }
  0x2d   :  { %v155_v2 = vld [vmem:[%s2465_s1 + $0x438] sm:$0xff]  ;;  %v1118_v4 = vpack.c.bf16 %v146_v62, %v142_v60  ;;  %v928_v5 = vpack.c.bf16 %v153_v0, %v149_v63  ;;  %v152_v7 = vld [vmem:[%s2465_s1 + $0x420] sm:$0xff]  ;;  %v154_v10 = vld [vmem:[%s2465_s1 + $0x430] sm:$0xff] }
  0x2e   :  { %907 = vmatpush1.bf16.msra.mxu0 %v906_v6  ;;  %v148_v6 = vld [vmem:[%s2465_s1 + $0x400] sm:$0xff]  ;;  %v157_v11 = vld [vmem:[%s2465_s1 + $0x448] sm:$0xff]  ;;  %v163_v14 = vld [vmem:[%s2465_s1 + $0x478] sm:$0xff] }
  0x2f   :  { %1099 = vmatpush1.bf16.msra.mxu1 %v1098_v8  ;;  %909 = vmatprep.subr.bf16.mxu0 %v908_v9  ;;  %v150_v8 = vld [vmem:[%s2465_s1 + $0x410] sm:$0xff]  ;;  %v1120_v9 = vpack.c.bf16 %v155_v2, %v151_v1  ;;  %v161_v12 = vld [vmem:[%s2465_s1 + $0x468] sm:$0xff]  ;;  %v14_v15 = vld [vmem:[%s2466_s0] sm:$0xff]  ;;  %v930_v16 = vpack.c.bf16 %v152_v7, %v148_v6 }
  0x30   :  { %1101 = vmatprep.subr.bf16.mxu1 %v1100_v13  ;;  %v159_v13 = vld [vmem:[%s2465_s1 + $0x458] sm:$0xff]  ;;  %v1122_v17 = vpack.c.bf16 %v154_v10, %v150_v8  ;;  %v932_v18 = vpack.c.bf16 %v161_v12, %v157_v11  ;;  %v162_v23 = vld [vmem:[%s2465_s1 + $0x470] sm:$0xff]  ;;  %v165_v24 = vld [vmem:[%s2465_s1 + $0x488] sm:$0xff] }
  0x31   :  { %v1124_v22 = vpack.c.bf16 %v163_v14, %v159_v13  ;;  %v167_v26 = vld [vmem:[%s2465_s1 + $0x498] sm:$0xff]  ;;  %v170_v35 = vld [vmem:[%s2465_s1 + $0x4b0] sm:$0xff]  ;;  %v173_v36 = vld [vmem:[%s2465_s1 + $0x4c8] sm:$0xff] }
  0x32   :  { %911 = vmatpush1.bf16.msra.mxu0 %v910_v19  ;;  %v156_v19 = vld [vmem:[%s2465_s1 + $0x440] sm:$0xff]  ;;  %v171_v27 = vld [vmem:[%s2465_s1 + $0x4b8] sm:$0xff]  ;;  %v178_v47 = vld [vmem:[%s2465_s1 + $0x4f0] sm:$0xff] }
  0x33   :  { %1103 = vmatpush1.bf16.msra.mxu1 %v1102_v20  ;;  %913 = vmatprep.subr.bf16.mxu0 %v912_v21  ;;  %v160_v20 = vld [vmem:[%s2465_s1 + $0x460] sm:$0xff]  ;;  %v158_v21 = vld [vmem:[%s2465_s1 + $0x450] sm:$0xff]  ;;  %v1128_v34 = vpack.c.bf16 %v171_v27, %v167_v26  ;;  %v175_v38 = vld [vmem:[%s2465_s1 + $0x4d8] sm:$0xff] }
  0x34   :  { %1105 = vmatprep.subr.bf16.mxu1 %v1104_v25  ;;  %v169_v25 = vld [vmem:[%s2465_s1 + $0x4a8] sm:$0xff]  ;;  %v934_v28 = vpack.c.bf16 %v160_v20, %v156_v19  ;;  %v1126_v29 = vpack.c.bf16 %v162_v23, %v158_v21  ;;  %v179_v39 = vld [vmem:[%s2465_s1 + $0x4f8] sm:$0xff]  ;;  %v186_v59 = vld [vmem:[%s2465_s1 + $0x530] sm:$0xff] }
  0x35   :  { %v936_v30 = vpack.c.bf16 %v169_v25, %v165_v24  ;;  %v1132_v46 = vpack.c.bf16 %v179_v39, %v175_v38  ;;  %v181_v48 = vld [vmem:[%s2465_s1 + $0x508] sm:$0xff]  ;;  %v183_v50 = vld [vmem:[%s2465_s1 + $0x518] sm:$0xff]  ;;  %v194_v7 = vld [vmem:[%s2465_s1 + $0x570] sm:$0xff] }
  0x36   :  { %915 = vmatpush1.bf16.msra.mxu0 %v914_v31  ;;  %v164_v31 = vld [vmem:[%s2465_s1 + $0x480] sm:$0xff]  ;;  %v187_v51 = vld [vmem:[%s2465_s1 + $0x538] sm:$0xff]  ;;  %v189_v60 = vld [vmem:[%s2465_s1 + $0x548] sm:$0xff] }
  0x37   :  { %1107 = vmatpush1.bf16.msra.mxu1 %v1106_v32  ;;  %917 = vmatprep.subr.bf16.mxu0 %v916_v33  ;;  %v168_v32 = vld [vmem:[%s2465_s1 + $0x4a0] sm:$0xff]  ;;  %v166_v33 = vld [vmem:[%s2465_s1 + $0x490] sm:$0xff]  ;;  %v1136_v58 = vpack.c.bf16 %v187_v51, %v183_v50  ;;  %v191_v62 = vld [vmem:[%s2465_s1 + $0x558] sm:$0xff] }
  0x38   :  { %1109 = vmatprep.subr.bf16.mxu1 %v1108_v37  ;;  %v177_v37 = vld [vmem:[%s2465_s1 + $0x4e8] sm:$0xff]  ;;  %v938_v40 = vpack.c.bf16 %v168_v32, %v164_v31  ;;  %v1130_v41 = vpack.c.bf16 %v170_v35, %v166_v33  ;;  %v195_v63 = vld [vmem:[%s2465_s1 + $0x578] sm:$0xff]  ;;  %v196_v13 = vld [vmem:[%s2465_s1 + $0x580] sm:$0xff] }
  0x39   :  { %v940_v42 = vpack.c.bf16 %v177_v37, %v173_v36  ;;  %v1140_v6 = vpack.c.bf16 %v195_v63, %v191_v62  ;;  %v197_v8 = vld [vmem:[%s2465_s1 + $0x588] sm:$0xff]  ;;  %v199_v10 = vld [vmem:[%s2465_s1 + $0x598] sm:$0xff]  ;;  %v210_v32 = vld [vmem:[%s2465_s1 + $0x5f0] sm:$0xff] }
  0x3a   :  { %919 = vmatpush1.bf16.msra.mxu0 %v918_v43  ;;  %v172_v43 = vld [vmem:[%s2465_s1 + $0x4c0] sm:$0xff]  ;;  %v203_v11 = vld [vmem:[%s2465_s1 + $0x5b8] sm:$0xff]  ;;  %v205_v20 = vld [vmem:[%s2465_s1 + $0x5c8] sm:$0xff] }
  0x3b   :  { %1111 = vmatpush1.bf16.msra.mxu1 %v1110_v44  ;;  %921 = vmatprep.subr.bf16.mxu0 %v920_v45  ;;  %v176_v44 = vld [vmem:[%s2465_s1 + $0x4e0] sm:$0xff]  ;;  %v174_v45 = vld [vmem:[%s2465_s1 + $0x4d0] sm:$0xff]  ;;  %v1144_v19 = vpack.c.bf16 %v203_v11, %v199_v10  ;;  %v209_v21 = vld [vmem:[%s2465_s1 + $0x5e8] sm:$0xff] }
  0x3c   :  { %1113 = vmatprep.subr.bf16.mxu1 %v1112_v49  ;;  %v185_v49 = vld [vmem:[%s2465_s1 + $0x528] sm:$0xff]  ;;  %v942_v52 = vpack.c.bf16 %v176_v44, %v172_v43  ;;  %v1134_v53 = vpack.c.bf16 %v178_v47, %v174_v45  ;;  %v207_v23 = vld [vmem:[%s2465_s1 + $0x5d8] sm:$0xff]  ;;  %v956_v27 = vpack.c.bf16 %v209_v21, %v205_v20  ;;  %v218_v44 = vld [vmem:[%s2465_s1 + $0x630] sm:$0xff] }
  0x3d   :  { %v944_v54 = vpack.c.bf16 %v185_v49, %v181_v48  ;;  %v211_v24 = vld [vmem:[%s2465_s1 + $0x5f8] sm:$0xff]  ;;  %v213_v33 = vld [vmem:[%s2465_s1 + $0x608] sm:$0xff] }
  0x3e   :  { %923 = vmatpush1.bf16.msra.mxu0 %v922_v55  ;;  %v180_v55 = vld [vmem:[%s2465_s1 + $0x500] sm:$0xff]  ;;  %v1148_v31 = vpack.c.bf16 %v211_v24, %v207_v23  ;;  %v215_v35 = vld [vmem:[%s2465_s1 + $0x618] sm:$0xff]  ;;  %v221_v45 = vld [vmem:[%s2465_s1 + $0x648] sm:$0xff] }
  0x3f   :  { %1115 = vmatpush1.bf16.msra.mxu1 %v1114_v56  ;;  %925 = vmatprep.subr.bf16.mxu0 %v924_v57  ;;  %v184_v56 = vld [vmem:[%s2465_s1 + $0x520] sm:$0xff]  ;;  %v182_v57 = vld [vmem:[%s2465_s1 + $0x510] sm:$0xff]  ;;  %v219_v36 = vld [vmem:[%s2465_s1 + $0x638] sm:$0xff] }
  0x40   :  { %1117 = vmatprep.subr.bf16.mxu1 %v1116_v61  ;;  %v193_v61 = vld [vmem:[%s2465_s1 + $0x568] sm:$0xff]  ;;  %v946_v0 = vpack.c.bf16 %v184_v56, %v180_v55  ;;  %v1138_v1 = vpack.c.bf16 %v186_v59, %v182_v57  ;;  %v1152_v43 = vpack.c.bf16 %v219_v36, %v215_v35  ;;  %v223_v47 = vld [vmem:[%s2465_s1 + $0x658] sm:$0xff]  ;;  %v226_v56 = vld [vmem:[%s2465_s1 + $0x670] sm:$0xff] }
  0x41   :  { %v948_v2 = vpack.c.bf16 %v193_v61, %v189_v60  ;;  %v227_v48 = vld [vmem:[%s2465_s1 + $0x678] sm:$0xff]  ;;  %v229_v57 = vld [vmem:[%s2465_s1 + $0x688] sm:$0xff]  ;;  %v244_v24 = vld [vmem:[%s2465_s1 + $0x700] sm:$0xff] }
  0x42   :  { %927 = vmatpush1.bf16.msra.mxu0 %v926_v3  ;;  %v188_v3 = vld [vmem:[%s2465_s1 + $0x540] sm:$0xff]  ;;  %v1156_v55 = vpack.c.bf16 %v227_v48, %v223_v47  ;;  %v231_v59 = vld [vmem:[%s2465_s1 + $0x698] sm:$0xff] }
  0x43   :  { %1119 = vmatpush1.bf16.msra.mxu1 %v1118_v4  ;;  %929 = vmatprep.subr.bf16.mxu0 %v928_v5  ;;  %v192_v4 = vld [vmem:[%s2465_s1 + $0x560] sm:$0xff]  ;;  %v190_v5 = vld [vmem:[%s2465_s1 + $0x550] sm:$0xff]  ;;  %v235_v60 = vld [vmem:[%s2465_s1 + $0x6b8] sm:$0xff] }
  0x44   :  { %1121 = vmatprep.subr.bf16.mxu1 %v1120_v9  ;;  %v201_v9 = vld [vmem:[%s2465_s1 + $0x5a8] sm:$0xff]  ;;  %v950_v12 = vpack.c.bf16 %v192_v4, %v188_v3  ;;  %v1142_v14 = vpack.c.bf16 %v194_v7, %v190_v5  ;;  %v1160_v3 = vpack.c.bf16 %v235_v60, %v231_v59  ;;  %v234_v4 = vld [vmem:[%s2465_s1 + $0x6b0] sm:$0xff]  ;;  %v239_v7 = vld [vmem:[%s2465_s1 + $0x6d8] sm:$0xff] }
  0x45   :  { %491 = vmatmul.mubr.f32.vlgmr.msra.gmra.mrb[0].mxu0 %v14_v15  ;;  %v237_v5 = vld [vmem:[%s2465_s1 + $0x6c8] sm:$0xff]  ;;  %v251_v20 = vld [vmem:[%s2465_s1 + $0x738] sm:$0xff]  ;;  %v252_v36 = vld [vmem:[%s2465_s1 + $0x740] sm:$0xff] }
  0x46   :  { %931 = vmatpush1.bf16.msra.mxu0 %v930_v16  ;;  %704 = vmatmul.mubr.f32.vlgmr.msra.gmra.mrb[0].mxu1 %v14_v15  ;;  %v952_v15 = vpack.c.bf16 %v201_v9, %v197_v8  ;;  %v200_v16 = vld [vmem:[%s2465_s1 + $0x5a0] sm:$0xff]  ;;  %v243_v8 = vld [vmem:[%s2465_s1 + $0x6f8] sm:$0xff] }
  0x47   :  { %1123 = vmatpush1.bf16.msra.mxu1 %v1122_v17  ;;  %933 = vmatprep.subr.bf16.mxu0 %v932_v18  ;;  %v198_v17 = vld [vmem:[%s2465_s1 + $0x590] sm:$0xff]  ;;  %v954_v25 = vpack.c.bf16 %v200_v16, %v196_v13  ;;  %v240_v13 = vld [vmem:[%s2465_s1 + $0x6e0] sm:$0xff] }
  0x48   :  { %1125 = vmatprep.subr.bf16.mxu1 %v1124_v22  ;;  %v202_v18 = vld [vmem:[%s2465_s1 + $0x5b0] sm:$0xff]  ;;  %v17_v22 = vld [vmem:[%s2466_s0 + $0x18] sm:$0xff]  ;;  %v260_v48 = vld [vmem:[%s2465_s1 + $0x780] sm:$0xff] }
  0x49   :  { %561 = vmatprep.mubr.f32.mxu0 %v17_v22  ;;  %774 = vmatprep.mubr.f32.mxu1 %v17_v22  ;;  %v1146_v26 = vpack.c.bf16 %v202_v18, %v198_v17  ;;  %v242_v16 = vld [vmem:[%s2465_s1 + $0x6f0] sm:$0xff]  ;;  %v245_v17 = vld [vmem:[%s2465_s1 + $0x708] sm:$0xff]  ;;  %v268_v60 = vld [vmem:[%s2465_s1 + $0x7c0] sm:$0xff] }
  0x4a   :  { %935 = vmatpush1.bf16.msra.mxu0 %v934_v28  ;;  %v204_v28 = vld [vmem:[%s2465_s1 + $0x5c0] sm:$0xff]  ;;  %v249_v18 = vld [vmem:[%s2465_s1 + $0x728] sm:$0xff] }
  0x4b   :  { %1127 = vmatpush1.bf16.msra.mxu1 %v1126_v29  ;;  %937 = vmatprep.subr.bf16.mxu0 %v936_v30  ;;  %v208_v29 = vld [vmem:[%s2465_s1 + $0x5e0] sm:$0xff]  ;;  %v206_v30 = vld [vmem:[%s2465_s1 + $0x5d0] sm:$0xff]  ;;  %v976_v23 = vpack.c.bf16 %v249_v18, %v245_v17 }
  0x4c   :  { %1129 = vmatprep.subr.bf16.mxu1 %v1128_v34  ;;  %v217_v34 = vld [vmem:[%s2465_s1 + $0x628] sm:$0xff]  ;;  %v958_v37 = vpack.c.bf16 %v208_v29, %v204_v28  ;;  %v1150_v38 = vpack.c.bf16 %v210_v32, %v206_v30  ;;  %v250_v28 = vld [vmem:[%s2465_s1 + $0x730] sm:$0xff]  ;;  %v259_v32 = vld [vmem:[%s2465_s1 + $0x778] sm:$0xff] }
  0x4d   :  { %v960_v39 = vpack.c.bf16 %v217_v34, %v213_v33  ;;  %v253_v29 = vld [vmem:[%s2465_s1 + $0x748] sm:$0xff]  ;;  %v16_v17 = vld [vmem:[%s2466_s0 + $0x10] sm:$0xff] }
  0x4e   :  { %939 = vmatpush1.bf16.msra.mxu0 %v938_v40  ;;  %v212_v40 = vld [vmem:[%s2465_s1 + $0x600] sm:$0xff]  ;;  %v257_v30 = vld [vmem:[%s2465_s1 + $0x768] sm:$0xff] }
  0x4f   :  { %1131 = vmatpush1.bf16.msra.mxu1 %v1130_v41  ;;  %941 = vmatprep.subr.bf16.mxu0 %v940_v42  ;;  %v216_v41 = vld [vmem:[%s2465_s1 + $0x620] sm:$0xff]  ;;  %v214_v42 = vld [vmem:[%s2465_s1 + $0x610] sm:$0xff]  ;;  %v980_v35 = vpack.c.bf16 %v257_v30, %v253_v29  ;;  %v299_v29 = vld [vmem:[%s2465_s1 + $0x8b8] sm:$0xff] }
  0x50   :  { %1133 = vmatprep.subr.bf16.mxu1 %v1132_v46  ;;  %v225_v46 = vld [vmem:[%s2465_s1 + $0x668] sm:$0xff]  ;;  %v962_v49 = vpack.c.bf16 %v216_v41, %v212_v40  ;;  %v1154_v50 = vpack.c.bf16 %v218_v44, %v214_v42  ;;  %v258_v40 = vld [vmem:[%s2465_s1 + $0x770] sm:$0xff]  ;;  %v267_v44 = vld [vmem:[%s2465_s1 + $0x7b8] sm:$0xff] }
  0x51   :  { %v964_v51 = vpack.c.bf16 %v225_v46, %v221_v45  ;;  %v261_v41 = vld [vmem:[%s2465_s1 + $0x788] sm:$0xff] }
  0x52   :  { %943 = vmatpush1.bf16.msra.mxu0 %v942_v52  ;;  %v220_v52 = vld [vmem:[%s2465_s1 + $0x640] sm:$0xff]  ;;  %v265_v42 = vld [vmem:[%s2465_s1 + $0x7a8] sm:$0xff] }
  0x53   :  { %1135 = vmatpush1.bf16.msra.mxu1 %v1134_v53  ;;  %945 = vmatprep.subr.bf16.mxu0 %v944_v54  ;;  %v224_v53 = vld [vmem:[%s2465_s1 + $0x660] sm:$0xff]  ;;  %v222_v54 = vld [vmem:[%s2465_s1 + $0x650] sm:$0xff]  ;;  %v984_v47 = vpack.c.bf16 %v265_v42, %v261_v41  ;;  %v19_v30 = vld [vmem:[%s2466_s0 + $0x28] sm:$0xff] }
  0x54   :  { %1137 = vmatprep.subr.bf16.mxu1 %v1136_v58  ;;  %v233_v58 = vld [vmem:[%s2465_s1 + $0x6a8] sm:$0xff]  ;;  %v966_v61 = vpack.c.bf16 %v224_v53, %v220_v52  ;;  %v1158_v62 = vpack.c.bf16 %v226_v56, %v222_v54  ;;  %v266_v52 = vld [vmem:[%s2465_s1 + $0x7b0] sm:$0xff]  ;;  %v275_v56 = vld [vmem:[%s2465_s1 + $0x7f8] sm:$0xff] }
  0x55   :  { %v968_v63 = vpack.c.bf16 %v233_v58, %v229_v57  ;;  %v269_v53 = vld [vmem:[%s2465_s1 + $0x7c8] sm:$0xff]  ;;  %v303_v41 = vld [vmem:[%s2465_s1 + $0x8d8] sm:$0xff] }
  0x56   :  { %947 = vmatpush1.bf16.msra.mxu0 %v946_v0  ;;  %v228_v0 = vld [vmem:[%s2465_s1 + $0x680] sm:$0xff]  ;;  %v273_v54 = vld [vmem:[%s2465_s1 + $0x7e8] sm:$0xff]  ;;  %v307_v42 = vld [vmem:[%s2465_s1 + $0x8f8] sm:$0xff] }
  0x57   :  { %1139 = vmatpush1.bf16.msra.mxu1 %v1138_v1  ;;  %949 = vmatprep.subr.bf16.mxu0 %v948_v2  ;;  %v232_v1 = vld [vmem:[%s2465_s1 + $0x6a0] sm:$0xff]  ;;  %v230_v2 = vld [vmem:[%s2465_s1 + $0x690] sm:$0xff]  ;;  %v988_v59 = vpack.c.bf16 %v273_v54, %v269_v53  ;;  %v311_v53 = vld [vmem:[%s2465_s1 + $0x918] sm:$0xff] }
  0x58   :  { %1141 = vmatprep.subr.bf16.mxu1 %v1140_v6  ;;  %v241_v6 = vld [vmem:[%s2465_s1 + $0x6e8] sm:$0xff]  ;;  %v970_v9 = vpack.c.bf16 %v232_v1, %v228_v0  ;;  %v1162_v10 = vpack.c.bf16 %v234_v4, %v230_v2  ;;  %v274_v0 = vld [vmem:[%s2465_s1 + $0x7f0] sm:$0xff]  ;;  %v283_v4 = vld [vmem:[%s2465_s1 + $0x838] sm:$0xff] }
  0x59   :  { %v972_v11 = vpack.c.bf16 %v241_v6, %v237_v5  ;;  %v277_v1 = vld [vmem:[%s2465_s1 + $0x808] sm:$0xff]  ;;  %v315_v54 = vld [vmem:[%s2465_s1 + $0x938] sm:$0xff] }
  0x5a   :  { %951 = vmatpush1.bf16.msra.mxu0 %v950_v12  ;;  %v236_v12 = vld [vmem:[%s2465_s1 + $0x6c0] sm:$0xff]  ;;  %v281_v2 = vld [vmem:[%s2465_s1 + $0x828] sm:$0xff] }
  0x5b   :  { %1143 = vmatpush1.bf16.msra.mxu1 %v1142_v14  ;;  %953 = vmatprep.subr.bf16.mxu0 %v952_v15  ;;  %v238_v14 = vld [vmem:[%s2465_s1 + $0x6d0] sm:$0xff]  ;;  %v1164_v15 = vpack.c.bf16 %v243_v8, %v239_v7  ;;  %v974_v21 = vpack.c.bf16 %v240_v13, %v236_v12  ;;  %v992_v7 = vpack.c.bf16 %v281_v2, %v277_v1  ;;  %v276_v8 = vld [vmem:[%s2465_s1 + $0x800] sm:$0xff]  ;;  %v285_v13 = vld [vmem:[%s2465_s1 + $0x848] sm:$0xff] }
  0x5c   :  { %1145 = vmatprep.subr.bf16.mxu1 %v1144_v19  ;;  %v247_v19 = vld [vmem:[%s2465_s1 + $0x718] sm:$0xff]  ;;  %v1166_v22 = vpack.c.bf16 %v242_v16, %v238_v14  ;;  %v282_v12 = vld [vmem:[%s2465_s1 + $0x830] sm:$0xff]  ;;  %v289_v14 = vld [vmem:[%s2465_s1 + $0x868] sm:$0xff] }
  0x5d   :  { %v291_v16 = vld [vmem:[%s2465_s1 + $0x878] sm:$0xff] }
  0x5e   :  { %955 = vmatpush1.bf16.msra.mxu0 %v954_v25  ;;  %v248_v25 = vld [vmem:[%s2465_s1 + $0x720] sm:$0xff]  ;;  %v319_v1 = vld [vmem:[%s2465_s1 + $0x958] sm:$0xff] }
  0x5f   :  { %1147 = vmatpush1.bf16.msra.mxu1 %v1146_v26  ;;  %957 = vmatprep.subr.bf16.mxu0 %v956_v27  ;;  %v246_v26 = vld [vmem:[%s2465_s1 + $0x710] sm:$0xff]  ;;  %v1168_v27 = vpack.c.bf16 %v251_v20, %v247_v19  ;;  %v978_v33 = vpack.c.bf16 %v248_v25, %v244_v24  ;;  %v996_v20 = vpack.c.bf16 %v289_v14, %v285_v13  ;;  %v323_v2 = vld [vmem:[%s2465_s1 + $0x978] sm:$0xff] }
  0x60   :  { %1149 = vmatprep.subr.bf16.mxu1 %v1148_v31  ;;  %v255_v31 = vld [vmem:[%s2465_s1 + $0x758] sm:$0xff]  ;;  %v1170_v34 = vpack.c.bf16 %v250_v28, %v246_v26  ;;  %v290_v25 = vld [vmem:[%s2465_s1 + $0x870] sm:$0xff]  ;;  %v293_v26 = vld [vmem:[%s2465_s1 + $0x888] sm:$0xff] }
  0x61   :  { %v295_v28 = vld [vmem:[%s2465_s1 + $0x898] sm:$0xff] }
  0x62   :  { %959 = vmatpush1.bf16.msra.mxu0 %v958_v37  ;;  %v256_v37 = vld [vmem:[%s2465_s1 + $0x760] sm:$0xff]  ;;  %v327_v13 = vld [vmem:[%s2465_s1 + $0x998] sm:$0xff] }
  0x63   :  { %1151 = vmatpush1.bf16.msra.mxu1 %v1150_v38  ;;  %961 = vmatprep.subr.bf16.mxu0 %v960_v39  ;;  %v254_v38 = vld [vmem:[%s2465_s1 + $0x750] sm:$0xff]  ;;  %v1172_v39 = vpack.c.bf16 %v259_v32, %v255_v31  ;;  %v982_v45 = vpack.c.bf16 %v256_v37, %v252_v36  ;;  %v1192_v37 = vpack.c.bf16 %v299_v29, %v295_v28  ;;  %v331_v14 = vld [vmem:[%s2465_s1 + $0x9b8] sm:$0xff] }
  0x64   :  { %1153 = vmatprep.subr.bf16.mxu1 %v1152_v43  ;;  %v263_v43 = vld [vmem:[%s2465_s1 + $0x798] sm:$0xff]  ;;  %v1174_v46 = vpack.c.bf16 %v258_v40, %v254_v38  ;;  %v294_v36 = vld [vmem:[%s2465_s1 + $0x890] sm:$0xff]  ;;  %v305_v40 = vld [vmem:[%s2465_s1 + $0x8e8] sm:$0xff] }
  0x65   :  { %v298_v38 = vld [vmem:[%s2465_s1 + $0x8b0] sm:$0xff] }
  0x66   :  { %963 = vmatpush1.bf16.msra.mxu0 %v962_v49  ;;  %v264_v49 = vld [vmem:[%s2465_s1 + $0x7a0] sm:$0xff] }
  0x67   :  { %1155 = vmatpush1.bf16.msra.mxu1 %v1154_v50  ;;  %965 = vmatprep.subr.bf16.mxu0 %v964_v51  ;;  %v262_v50 = vld [vmem:[%s2465_s1 + $0x790] sm:$0xff]  ;;  %v1176_v51 = vpack.c.bf16 %v267_v44, %v263_v43  ;;  %v986_v57 = vpack.c.bf16 %v264_v49, %v260_v48  ;;  %v1194_v44 = vpack.c.bf16 %v298_v38, %v294_v36  ;;  %v345_v36 = vld [vmem:[%s2465_s1 + $0xa28] sm:$0xff]  ;;  %v347_v38 = vld [vmem:[%s2465_s1 + $0xa38] sm:$0xff] }
  0x68   :  { %1157 = vmatprep.subr.bf16.mxu1 %v1156_v55  ;;  %v271_v55 = vld [vmem:[%s2465_s1 + $0x7d8] sm:$0xff]  ;;  %v1178_v58 = vpack.c.bf16 %v266_v52, %v262_v50  ;;  %v302_v48 = vld [vmem:[%s2465_s1 + $0x8d0] sm:$0xff]  ;;  %v1196_v49 = vpack.c.bf16 %v307_v42, %v303_v41  ;;  %v313_v52 = vld [vmem:[%s2465_s1 + $0x928] sm:$0xff] }
  0x69   :  { %v306_v50 = vld [vmem:[%s2465_s1 + $0x8f0] sm:$0xff]  ;;  %v340_v42 = vld [vmem:[%s2465_s1 + $0xa00] sm:$0xff] }
  0x6a   :  { %967 = vmatpush1.bf16.msra.mxu0 %v966_v61  ;;  %v272_v61 = vld [vmem:[%s2465_s1 + $0x7e0] sm:$0xff] }
  0x6b   :  { %1159 = vmatpush1.bf16.msra.mxu1 %v1158_v62  ;;  %969 = vmatprep.subr.bf16.mxu0 %v968_v63  ;;  %v270_v62 = vld [vmem:[%s2465_s1 + $0x7d0] sm:$0xff]  ;;  %v1180_v63 = vpack.c.bf16 %v275_v56, %v271_v55  ;;  %v990_v5 = vpack.c.bf16 %v272_v61, %v268_v60  ;;  %v1198_v56 = vpack.c.bf16 %v306_v50, %v302_v48  ;;  %v353_v48 = vld [vmem:[%s2465_s1 + $0xa68] sm:$0xff]  ;;  %v355_v50 = vld [vmem:[%s2465_s1 + $0xa78] sm:$0xff] }
  0x6c   :  { %1161 = vmatprep.subr.bf16.mxu1 %v1160_v3  ;;  %v279_v3 = vld [vmem:[%s2465_s1 + $0x818] sm:$0xff]  ;;  %v1182_v6 = vpack.c.bf16 %v274_v0, %v270_v62  ;;  %v310_v60 = vld [vmem:[%s2465_s1 + $0x910] sm:$0xff]  ;;  %v1200_v61 = vpack.c.bf16 %v315_v54, %v311_v53  ;;  %v321_v0 = vld [vmem:[%s2465_s1 + $0x968] sm:$0xff] }
  0x6d   :  { %v314_v62 = vld [vmem:[%s2465_s1 + $0x930] sm:$0xff]  ;;  %v348_v54 = vld [vmem:[%s2465_s1 + $0xa40] sm:$0xff] }
  0x6e   :  { %971 = vmatpush1.bf16.msra.mxu0 %v970_v9  ;;  %v280_v9 = vld [vmem:[%s2465_s1 + $0x820] sm:$0xff] }
  0x6f   :  { %1163 = vmatpush1.bf16.msra.mxu1 %v1162_v10  ;;  %973 = vmatprep.subr.bf16.mxu0 %v972_v11  ;;  %v278_v10 = vld [vmem:[%s2465_s1 + $0x810] sm:$0xff]  ;;  %v1184_v11 = vpack.c.bf16 %v283_v4, %v279_v3  ;;  %v994_v18 = vpack.c.bf16 %v280_v9, %v276_v8  ;;  %v1202_v4 = vpack.c.bf16 %v314_v62, %v310_v60  ;;  %v361_v60 = vld [vmem:[%s2465_s1 + $0xaa8] sm:$0xff]  ;;  %v363_v62 = vld [vmem:[%s2465_s1 + $0xab8] sm:$0xff] }
  0x70   :  { %1165 = vmatprep.subr.bf16.mxu1 %v1164_v15  ;;  %v287_v15 = vld [vmem:[%s2465_s1 + $0x858] sm:$0xff]  ;;  %v1186_v19 = vpack.c.bf16 %v282_v12, %v278_v10  ;;  %v318_v8 = vld [vmem:[%s2465_s1 + $0x950] sm:$0xff]  ;;  %v1204_v9 = vpack.c.bf16 %v323_v2, %v319_v1  ;;  %v329_v12 = vld [vmem:[%s2465_s1 + $0x9a8] sm:$0xff] }
  0x71   :  { %v1188_v24 = vpack.c.bf16 %v291_v16, %v287_v15  ;;  %v322_v10 = vld [vmem:[%s2465_s1 + $0x970] sm:$0xff]  ;;  %v356_v2 = vld [vmem:[%s2465_s1 + $0xa80] sm:$0xff] }
  0x72   :  { %975 = vmatpush1.bf16.msra.mxu0 %v974_v21  ;;  %v284_v21 = vld [vmem:[%s2465_s1 + $0x840] sm:$0xff]  ;;  %v1206_v16 = vpack.c.bf16 %v322_v10, %v318_v8  ;;  %v369_v8 = vld [vmem:[%s2465_s1 + $0xae8] sm:$0xff]  ;;  %v371_v10 = vld [vmem:[%s2465_s1 + $0xaf8] sm:$0xff] }
  0x73   :  { %1167 = vmatpush1.bf16.msra.mxu1 %v1166_v22  ;;  %977 = vmatprep.subr.bf16.mxu0 %v976_v23  ;;  %v288_v22 = vld [vmem:[%s2465_s1 + $0x860] sm:$0xff]  ;;  %v286_v23 = vld [vmem:[%s2465_s1 + $0x850] sm:$0xff] }
  0x74   :  { %1169 = vmatprep.subr.bf16.mxu1 %v1168_v27  ;;  %v297_v27 = vld [vmem:[%s2465_s1 + $0x8a8] sm:$0xff]  ;;  %v998_v31 = vpack.c.bf16 %v288_v22, %v284_v21  ;;  %v1190_v32 = vpack.c.bf16 %v290_v25, %v286_v23  ;;  %v1208_v21 = vpack.c.bf16 %v331_v14, %v327_v13  ;;  %v330_v22 = vld [vmem:[%s2465_s1 + $0x9b0] sm:$0xff]  ;;  %v335_v25 = vld [vmem:[%s2465_s1 + $0x9d8] sm:$0xff] }
  0x75   :  { %v333_v23 = vld [vmem:[%s2465_s1 + $0x9c8] sm:$0xff]  ;;  %v364_v14 = vld [vmem:[%s2465_s1 + $0xac0] sm:$0xff] }
  0x76   :  { %979 = vmatpush1.bf16.msra.mxu0 %v978_v33  ;;  %v1000_v33 = vpack.c.bf16 %v297_v27, %v293_v26  ;;  %v339_v26 = vld [vmem:[%s2465_s1 + $0x9f8] sm:$0xff] }
  0x77   :  { %1171 = vmatpush1.bf16.msra.mxu1 %v1170_v34  ;;  %981 = vmatprep.subr.bf16.mxu0 %v980_v35  ;;  %v292_v34 = vld [vmem:[%s2465_s1 + $0x880] sm:$0xff] }
  0x78   :  { %1173 = vmatprep.subr.bf16.mxu1 %v1172_v39  ;;  %v296_v35 = vld [vmem:[%s2465_s1 + $0x8a0] sm:$0xff]  ;;  %v301_v39 = vld [vmem:[%s2465_s1 + $0x8c8] sm:$0xff] }
  0x79   :  { %v1002_v43 = vpack.c.bf16 %v296_v35, %v292_v34  ;;  %v338_v34 = vld [vmem:[%s2465_s1 + $0x9f0] sm:$0xff]  ;;  %v341_v35 = vld [vmem:[%s2465_s1 + $0xa08] sm:$0xff] }
  0x7a   :  { %983 = vmatpush1.bf16.msra.mxu0 %v982_v45  ;;  %v1004_v45 = vpack.c.bf16 %v305_v40, %v301_v39  ;;  %v1024_v41 = vpack.c.bf16 %v345_v36, %v341_v35 }
  0x7b   :  { %1175 = vmatpush1.bf16.msra.mxu1 %v1174_v46  ;;  %985 = vmatprep.subr.bf16.mxu0 %v984_v47  ;;  %v300_v46 = vld [vmem:[%s2465_s1 + $0x8c0] sm:$0xff] }
  0x7c   :  { %1177 = vmatprep.subr.bf16.mxu1 %v1176_v51  ;;  %v304_v47 = vld [vmem:[%s2465_s1 + $0x8e0] sm:$0xff]  ;;  %v309_v51 = vld [vmem:[%s2465_s1 + $0x908] sm:$0xff] }
  0x7d   :  { %v1006_v55 = vpack.c.bf16 %v304_v47, %v300_v46  ;;  %v346_v46 = vld [vmem:[%s2465_s1 + $0xa30] sm:$0xff]  ;;  %v349_v47 = vld [vmem:[%s2465_s1 + $0xa48] sm:$0xff] }
  0x7e   :  { %987 = vmatpush1.bf16.msra.mxu0 %v986_v57  ;;  %v1008_v57 = vpack.c.bf16 %v313_v52, %v309_v51  ;;  %v1028_v53 = vpack.c.bf16 %v353_v48, %v349_v47 }
  0x7f   :  { %1179 = vmatpush1.bf16.msra.mxu1 %v1178_v58  ;;  %989 = vmatprep.subr.bf16.mxu0 %v988_v59  ;;  %v308_v58 = vld [vmem:[%s2465_s1 + $0x900] sm:$0xff] }
  0x80   :  { %1181 = vmatprep.subr.bf16.mxu1 %v1180_v63  ;;  %v312_v59 = vld [vmem:[%s2465_s1 + $0x920] sm:$0xff]  ;;  %v317_v63 = vld [vmem:[%s2465_s1 + $0x948] sm:$0xff] }
  0x81   :  { %v1010_v3 = vpack.c.bf16 %v312_v59, %v308_v58  ;;  %v354_v58 = vld [vmem:[%s2465_s1 + $0xa70] sm:$0xff]  ;;  %v357_v59 = vld [vmem:[%s2465_s1 + $0xa88] sm:$0xff] }
  0x82   :  { %991 = vmatpush1.bf16.msra.mxu0 %v990_v5  ;;  %v1012_v5 = vpack.c.bf16 %v321_v0, %v317_v63  ;;  %v1032_v1 = vpack.c.bf16 %v361_v60, %v357_v59 }
  0x83   :  { %1183 = vmatpush1.bf16.msra.mxu1 %v1182_v6  ;;  %993 = vmatprep.subr.bf16.mxu0 %v992_v7  ;;  %v316_v6 = vld [vmem:[%s2465_s1 + $0x940] sm:$0xff] }
  0x84   :  { %1185 = vmatprep.subr.bf16.mxu1 %v1184_v11  ;;  %v320_v7 = vld [vmem:[%s2465_s1 + $0x960] sm:$0xff]  ;;  %v325_v11 = vld [vmem:[%s2465_s1 + $0x988] sm:$0xff] }
  0x85   :  { %562 = vmatmul.mubr.f32.vlgmr.msra.gmra.mrb[0].mxu0 %v16_v17  ;;  %v1014_v15 = vpack.c.bf16 %v320_v7, %v316_v6  ;;  %v362_v6 = vld [vmem:[%s2465_s1 + $0xab0] sm:$0xff]  ;;  %v365_v7 = vld [vmem:[%s2465_s1 + $0xac8] sm:$0xff] }
  0x86   :  { %995 = vmatpush1.bf16.msra.mxu0 %v994_v18  ;;  %775 = vmatmul.mubr.f32.vlgmr.msra.gmra.mrb[0].mxu1 %v16_v17  ;;  %v1016_v17 = vpack.c.bf16 %v329_v12, %v325_v11  ;;  %v324_v18 = vld [vmem:[%s2465_s1 + $0x980] sm:$0xff]  ;;  %v1036_v13 = vpack.c.bf16 %v369_v8, %v365_v7 }
  0x87   :  { %1187 = vmatpush1.bf16.msra.mxu1 %v1186_v19  ;;  %997 = vmatprep.subr.bf16.mxu0 %v996_v20  ;;  %v328_v19 = vld [vmem:[%s2465_s1 + $0x9a0] sm:$0xff]  ;;  %v326_v20 = vld [vmem:[%s2465_s1 + $0x990] sm:$0xff] }
  0x88   :  { %1189 = vmatprep.subr.bf16.mxu1 %v1188_v24  ;;  %632 = vmatprep.mubr.f32.mxu0 %v19_v30  ;;  %v337_v24 = vld [vmem:[%s2465_s1 + $0x9e8] sm:$0xff]  ;;  %v1018_v27 = vpack.c.bf16 %v328_v19, %v324_v18  ;;  %v1210_v28 = vpack.c.bf16 %v330_v22, %v326_v20  ;;  %v370_v18 = vld [vmem:[%s2465_s1 + $0xaf0] sm:$0xff]  ;;  %v379_v22 = vld [vmem:[%s2465_s1 + $0xb38] sm:$0xff] }
  0x89   :  { %845 = vmatprep.mubr.f32.mxu1 %v19_v30  ;;  %v1020_v29 = vpack.c.bf16 %v337_v24, %v333_v23  ;;  %v332_v30 = vld [vmem:[%s2465_s1 + $0x9c0] sm:$0xff]  ;;  %v373_v19 = vld [vmem:[%s2465_s1 + $0xb08] sm:$0xff] }
  0x8a   :  { %999 = vmatpush1.bf16.msra.mxu0 %v998_v31  ;;  %v336_v31 = vld [vmem:[%s2465_s1 + $0x9e0] sm:$0xff]  ;;  %v377_v20 = vld [vmem:[%s2465_s1 + $0xb28] sm:$0xff] }
  0x8b   :  { %1191 = vmatpush1.bf16.msra.mxu1 %v1190_v32  ;;  %1001 = vmatprep.subr.bf16.mxu0 %v1000_v33  ;;  %v334_v32 = vld [vmem:[%s2465_s1 + $0x9d0] sm:$0xff]  ;;  %v1212_v33 = vpack.c.bf16 %v339_v26, %v335_v25  ;;  %v1022_v39 = vpack.c.bf16 %v336_v31, %v332_v30  ;;  %v1040_v25 = vpack.c.bf16 %v377_v20, %v373_v19  ;;  %v372_v26 = vld [vmem:[%s2465_s1 + $0xb00] sm:$0xff]  ;;  %v381_v31 = vld [vmem:[%s2465_s1 + $0xb48] sm:$0xff] }
  0x8c   :  { %1193 = vmatprep.subr.bf16.mxu1 %v1192_v37  ;;  %v343_v37 = vld [vmem:[%s2465_s1 + $0xa18] sm:$0xff]  ;;  %v1214_v40 = vpack.c.bf16 %v338_v34, %v334_v32  ;;  %v378_v30 = vld [vmem:[%s2465_s1 + $0xb30] sm:$0xff]  ;;  %v385_v32 = vld [vmem:[%s2465_s1 + $0xb68] sm:$0xff] }
  0x8d   :  { %v387_v34 = vld [vmem:[%s2465_s1 + $0xb78] sm:$0xff] }
  0x8e   :  { %1003 = vmatpush1.bf16.msra.mxu0 %v1002_v43  ;;  %v344_v43 = vld [vmem:[%s2465_s1 + $0xa20] sm:$0xff] }
  0x8f   :  { %1195 = vmatpush1.bf16.msra.mxu1 %v1194_v44  ;;  %1005 = vmatprep.subr.bf16.mxu0 %v1004_v45  ;;  %v342_v44 = vld [vmem:[%s2465_s1 + $0xa10] sm:$0xff]  ;;  %v1216_v45 = vpack.c.bf16 %v347_v38, %v343_v37  ;;  %v1026_v51 = vpack.c.bf16 %v344_v43, %v340_v42  ;;  %v1044_v37 = vpack.c.bf16 %v385_v32, %v381_v31  ;;  %v380_v38 = vld [vmem:[%s2465_s1 + $0xb40] sm:$0xff]  ;;  %v389_v43 = vld [vmem:[%s2465_s1 + $0xb88] sm:$0xff] }
  0x90   :  { %1197 = vmatprep.subr.bf16.mxu1 %v1196_v49  ;;  %v351_v49 = vld [vmem:[%s2465_s1 + $0xa58] sm:$0xff]  ;;  %v1218_v52 = vpack.c.bf16 %v346_v46, %v342_v44  ;;  %v386_v42 = vld [vmem:[%s2465_s1 + $0xb70] sm:$0xff]  ;;  %v393_v44 = vld [vmem:[%s2465_s1 + $0xba8] sm:$0xff] }
  0x91   :  { %v395_v46 = vld [vmem:[%s2465_s1 + $0xbb8] sm:$0xff] }
  0x92   :  { %1007 = vmatpush1.bf16.msra.mxu0 %v1006_v55  ;;  %v352_v55 = vld [vmem:[%s2465_s1 + $0xa60] sm:$0xff] }
  0x93   :  { %1199 = vmatpush1.bf16.msra.mxu1 %v1198_v56  ;;  %1009 = vmatprep.subr.bf16.mxu0 %v1008_v57  ;;  %v350_v56 = vld [vmem:[%s2465_s1 + $0xa50] sm:$0xff]  ;;  %v1220_v57 = vpack.c.bf16 %v355_v50, %v351_v49  ;;  %v1030_v63 = vpack.c.bf16 %v352_v55, %v348_v54  ;;  %v1048_v49 = vpack.c.bf16 %v393_v44, %v389_v43  ;;  %v388_v50 = vld [vmem:[%s2465_s1 + $0xb80] sm:$0xff]  ;;  %v397_v55 = vld [vmem:[%s2465_s1 + $0xbc8] sm:$0xff] }
  0x94   :  { %1201 = vmatprep.subr.bf16.mxu1 %v1200_v61  ;;  %v359_v61 = vld [vmem:[%s2465_s1 + $0xa98] sm:$0xff]  ;;  %v1222_v0 = vpack.c.bf16 %v354_v58, %v350_v56  ;;  %v394_v54 = vld [vmem:[%s2465_s1 + $0xbb0] sm:$0xff]  ;;  %v401_v56 = vld [vmem:[%s2465_s1 + $0xbe8] sm:$0xff] }
  0x95   :  { %v403_v58 = vld [vmem:[%s2465_s1 + $0xbf8] sm:$0xff] }
  0x96   :  { %1011 = vmatpush1.bf16.msra.mxu0 %v1010_v3  ;;  %v360_v3 = vld [vmem:[%s2465_s1 + $0xaa0] sm:$0xff] }
  0x97   :  { %1203 = vmatpush1.bf16.msra.mxu1 %v1202_v4  ;;  %1013 = vmatprep.subr.bf16.mxu0 %v1012_v5  ;;  %v358_v4 = vld [vmem:[%s2465_s1 + $0xa90] sm:$0xff]  ;;  %v1224_v5 = vpack.c.bf16 %v363_v62, %v359_v61  ;;  %v1034_v11 = vpack.c.bf16 %v360_v3, %v356_v2  ;;  %v1052_v61 = vpack.c.bf16 %v401_v56, %v397_v55  ;;  %v396_v62 = vld [vmem:[%s2465_s1 + $0xbc0] sm:$0xff] }
  0x98   :  { %1205 = vmatprep.subr.bf16.mxu1 %v1204_v9  ;;  %v367_v9 = vld [vmem:[%s2465_s1 + $0xad8] sm:$0xff]  ;;  %v1226_v12 = vpack.c.bf16 %v362_v6, %v358_v4  ;;  %v402_v2 = vld [vmem:[%s2465_s1 + $0xbf0] sm:$0xff]  ;;  %v406_v6 = vlaneseq }
  0x9a   :  { %1015 = vmatpush1.bf16.msra.mxu0 %v1014_v15  ;;  %v368_v15 = vld [vmem:[%s2465_s1 + $0xae0] sm:$0xff]  ;;  %v407_v7 = vshrl.u32 %v406_v6, 7 }
  0x9b   :  { %1207 = vmatpush1.bf16.msra.mxu1 %v1206_v16  ;;  %1017 = vmatprep.subr.bf16.mxu0 %v1016_v17  ;;  %v366_v16 = vld [vmem:[%s2465_s1 + $0xad0] sm:$0xff]  ;;  %v1228_v17 = vpack.c.bf16 %v371_v10, %v367_v9  ;;  %v1038_v23 = vpack.c.bf16 %v368_v15, %v364_v14  ;;  %v404_v9 = vld [vmem:[%s2467_s2] sm:$0xf] }
  0x9c   :  { %1209 = vmatprep.subr.bf16.mxu1 %v1208_v21  ;;  %v375_v21 = vld [vmem:[%s2465_s1 + $0xb18] sm:$0xff]  ;;  %v1230_v24 = vpack.c.bf16 %v370_v18, %v366_v16  ;;  %v408_v8 = vsub.s32 0, %v407_v7  ;;  %v416_v10 = vsub.s32 2, %v407_v7 }
  0x9e   :  { %1019 = vmatpush1.bf16.msra.mxu0 %v1018_v27  ;;  %v376_v27 = vld [vmem:[%s2465_s1 + $0xb20] sm:$0xff]  ;;  %v417_v14 = vrot.slane %v404_v9, %v416_v10 }
  0x9f   :  { %1211 = vmatpush1.bf16.msra.mxu1 %v1210_v28  ;;  %1021 = vmatprep.subr.bf16.mxu0 %v1020_v29  ;;  %v374_v28 = vld [vmem:[%s2465_s1 + $0xb10] sm:$0xff]  ;;  %v1232_v29 = vpack.c.bf16 %v379_v22, %v375_v21  ;;  %v1042_v35 = vpack.c.bf16 %v376_v27, %v372_v26 }
  0xa0   :  { %1213 = vmatprep.subr.bf16.mxu1 %v1212_v33  ;;  %v383_v33 = vld [vmem:[%s2465_s1 + $0xb58] sm:$0xff]  ;;  %v1234_v36 = vpack.c.bf16 %v378_v30, %v374_v28 }
  0xa2   :  { %1023 = vmatpush1.bf16.msra.mxu0 %v1022_v39  ;;  %v384_v39 = vld [vmem:[%s2465_s1 + $0xb60] sm:$0xff] }
  0xa3   :  { %1215 = vmatpush1.bf16.msra.mxu1 %v1214_v40  ;;  %1025 = vmatprep.subr.bf16.mxu0 %v1024_v41  ;;  %v382_v40 = vld [vmem:[%s2465_s1 + $0xb50] sm:$0xff]  ;;  %v1236_v41 = vpack.c.bf16 %v387_v34, %v383_v33  ;;  %v1046_v47 = vpack.c.bf16 %v384_v39, %v380_v38 }
  0xa4   :  { %1217 = vmatprep.subr.bf16.mxu1 %v1216_v45  ;;  %v391_v45 = vld [vmem:[%s2465_s1 + $0xb98] sm:$0xff]  ;;  %v1238_v48 = vpack.c.bf16 %v386_v42, %v382_v40 }
  0xa6   :  { %1027 = vmatpush1.bf16.msra.mxu0 %v1026_v51  ;;  %v392_v51 = vld [vmem:[%s2465_s1 + $0xba0] sm:$0xff] }
  0xa7   :  { %1219 = vmatpush1.bf16.msra.mxu1 %v1218_v52  ;;  %1029 = vmatprep.subr.bf16.mxu0 %v1028_v53  ;;  %v390_v52 = vld [vmem:[%s2465_s1 + $0xb90] sm:$0xff]  ;;  %v1240_v53 = vpack.c.bf16 %v395_v46, %v391_v45  ;;  %v1050_v59 = vpack.c.bf16 %v392_v51, %v388_v50 }
  0xa8   :  { %1221 = vmatprep.subr.bf16.mxu1 %v1220_v57  ;;  %v399_v57 = vld [vmem:[%s2465_s1 + $0xbd8] sm:$0xff]  ;;  %v1242_v60 = vpack.c.bf16 %v394_v54, %v390_v52 }
  0xaa   :  { %1031 = vmatpush1.bf16.msra.mxu0 %v1030_v63  ;;  %v400_v63 = vld [vmem:[%s2465_s1 + $0xbe0] sm:$0xff] }
  0xab   :  { %1223 = vmatpush1.bf16.msra.mxu1 %v1222_v0  ;;  %1033 = vmatprep.subr.bf16.mxu0 %v1032_v1  ;;  %v1244_v0 = vpack.c.bf16 %v403_v58, %v399_v57  ;;  %v398_v1 = vld [vmem:[%s2465_s1 + $0xbd0] sm:$0xff]  ;;  %v1054_v3 = vpack.c.bf16 %v400_v63, %v396_v62 }
  0xac   :  { %1225 = vmatprep.subr.bf16.mxu1 %v1224_v5  ;;  %v1246_v4 = vpack.c.bf16 %v402_v2, %v398_v1  ;;  %v18_v5 = vld [vmem:[%s2466_s0 + $0x20] sm:$0xff] }
  0xae   :  { %1035 = vmatpush1.bf16.msra.mxu0 %v1034_v11  ;;  %v412_v11 = vsub.s32 1, %v407_v7 }
  0xaf   :  { %1227 = vmatpush1.bf16.msra.mxu1 %v1226_v12  ;;  %1037 = vmatprep.subr.bf16.mxu0 %v1036_v13  ;;  %v420_v12 = vsub.s32 3, %v407_v7  ;;  %v409_v13 = vrot.slane %v404_v9, %v408_v8 }
  0xb0   :  { %1229 = vmatprep.subr.bf16.mxu1 %v1228_v17  ;;  %v413_v15 = vrot.slane %v404_v9, %v412_v11 }
  0xb1   :  { %v421_v16 = vrot.slane %v404_v9, %v420_v12 }
  0xb2   :  { %1039 = vmatpush1.bf16.msra.mxu0 %v1038_v23 }
  0xb3   :  { %1231 = vmatpush1.bf16.msra.mxu1 %v1230_v24  ;;  %1041 = vmatprep.subr.bf16.mxu0 %v1040_v25 }
  0xb4   :  { %1233 = vmatprep.subr.bf16.mxu1 %v1232_v29 }
  0xb6   :  { %1043 = vmatpush1.bf16.msra.mxu0 %v1042_v35 }
  0xb7   :  { %1235 = vmatpush1.bf16.msra.mxu1 %v1234_v36  ;;  %1045 = vmatprep.subr.bf16.mxu0 %v1044_v37 }
  0xb8   :  { %1237 = vmatprep.subr.bf16.mxu1 %v1236_v41 }
  0xba   :  { %1047 = vmatpush1.bf16.msra.mxu0 %v1046_v47 }
  0xbb   :  { %1239 = vmatpush1.bf16.msra.mxu1 %v1238_v48  ;;  %1049 = vmatprep.subr.bf16.mxu0 %v1048_v49 }
  0xbc   :  { %1241 = vmatprep.subr.bf16.mxu1 %v1240_v53 }
  0xbe   :  { %1051 = vmatpush1.bf16.msra.mxu0 %v1050_v59 }
  0xbf   :  { %1243 = vmatpush1.bf16.msra.mxu1 %v1242_v60  ;;  %1053 = vmatprep.subr.bf16.mxu0 %v1052_v61 }
  0xc0   :  { %1245 = vmatprep.subr.bf16.mxu1 %v1244_v0 }
  0xc2   :  { %1055 = vmatpush1.bf16.msra.mxu0 %v1054_v3 }
  0xc3   :  { %1247 = vmatpush1.bf16.msra.mxu1 %v1246_v4 }
  0xc5   :  { %633 = vmatmul.mubr.f32.vlgmr.msra.gmra.mrb[0].mxu0 %v18_v5 }
  0xc6   :  { %846 = vmatmul.mubr.f32.vlgmr.msra.gmra.mrb[0].mxu1 %v18_v5 }
 0x198   :  { %v634_v17 = vpop.f32.mrb[0].mxu0 }
 0x199   :  { %v1248_v18 = vadd.f32 %v634_v17, %v409_v13  ;;  %v847_v19 = vpop.f32.mrb[0].mxu1  ;;  %v636_v20 = vpop.f32.mrb[1].mxu0 }
 0x19a   :  { %v1250_v21 = vadd.f32 %v847_v19, %v417_v14  ;;  %v1249_v22 = vadd.f32 %v636_v20, %v413_v15  ;;  %v849_v23 = vpop.f32.mrb[1].mxu1 }
 0x19b   :  { %v852_v24 = vmax.f32 %v1248_v18, 0.0  ;;  %v1251_v25 = vadd.f32 %v849_v23, %v421_v16 }
 0x19c   :  { %v854_v26 = vmax.f32 %v1250_v21, 0.0  ;;  %v853_v27 = vmax.f32 %v1249_v22, 0.0 }
 0x19d   :  { %856 = vst [vmem:[%s2468_s3] sm:$0xff] %v852_v24  ;;  %v855_v28 = vmax.f32 %v1251_v25, 0.0 }
 0x19e   :  { %858 = vst [vmem:[%s2468_s3 + $0x10] sm:$0xff] %v854_v26  ;;  %857 = vst [vmem:[%s2468_s3 + $0x8] sm:$0xff] %v853_v27 }
 0x19f   :  { %859 = vst [vmem:[%s2468_s3 + $0x18] sm:$0xff] %v855_v28 }

// kernel: audio_cnn1d_extractor_forward.19
= control target key start
LH: loop header
LB: loop body
LE: loop exit
PB: predicated region body
PF: predicated region fallthrough
CT: control target
= control target key end

     0   :  { %s646_s0 = inlined_call_operand.vmem [shape: f32[8,512], index: 0, kind: input, shape index: {}]   ;;  %s647_s1 = inlined_call_operand.vmem [shape: f32[512,128], index: 1, kind: input, shape index: {}]   ;;  %s648_s2 = inlined_call_operand.vmem [shape: f32[1,128], index: 2, kind: input, shape index: {}]   ;;  %s649_s3 = inlined_call_operand.hbm [shape: f32[8,128], index: 3, kind: output, shape index: {}]  }
   0x1   :  { %v35_v0 = vld [vmem:[%s647_s1 + $0x80] sm:$0xff]  ;;  %v36_v1 = vld [vmem:[%s647_s1 + $0x88] sm:$0xff]  ;;  %v37_v11 = vld [vmem:[%s647_s1 + $0x90] sm:$0xff] }
   0x2   :  { %v19_v2 = vld [vmem:[%s647_s1] sm:$0xff]  ;;  %v317_v3 = vpack.c.bf16 %v36_v1, %v35_v0  ;;  %v20_v4 = vld [vmem:[%s647_s1 + $0x8] sm:$0xff]  ;;  %v38_v13 = vld [vmem:[%s647_s1 + $0x98] sm:$0xff] }
   0x3   :  { %v67_v5 = vld [vmem:[%s647_s1 + $0x180] sm:$0xff]  ;;  %v68_v6 = vld [vmem:[%s647_s1 + $0x188] sm:$0xff]  ;;  %v319_v7 = vpack.c.bf16 %v20_v4, %v19_v2  ;;  %v21_v14 = vld [vmem:[%s647_s1 + $0x10] sm:$0xff]  ;;  %v321_v16 = vpack.c.bf16 %v38_v13, %v37_v11 }
   0x4   :  { %v349_v8 = vpack.c.bf16 %v68_v6, %v67_v5  ;;  %v51_v9 = vld [vmem:[%s647_s1 + $0x100] sm:$0xff]  ;;  %v52_v10 = vld [vmem:[%s647_s1 + $0x108] sm:$0xff]  ;;  %318 = vmatprep.subr.bf16.mxu0 %v317_v3  ;;  %v22_v15 = vld [vmem:[%s647_s1 + $0x18] sm:$0xff] }
   0x5   :  { %v351_v12 = vpack.c.bf16 %v52_v10, %v51_v9  ;;  %320 = vmatpush3.bf16.msra.mxu0 %v319_v7  ;;  %v323_v17 = vpack.c.bf16 %v22_v15, %v21_v14  ;;  %v69_v18 = vld [vmem:[%s647_s1 + $0x190] sm:$0xff]  ;;  %v70_v19 = vld [vmem:[%s647_s1 + $0x198] sm:$0xff]  ;;  %v39_v23 = vld [vmem:[%s647_s1 + $0xa0] sm:$0xff] }
   0x6   :  { %350 = vmatprep.subr.bf16.mxu1 %v349_v8  ;;  %v53_v20 = vld [vmem:[%s647_s1 + $0x110] sm:$0xff]  ;;  %v353_v21 = vpack.c.bf16 %v70_v19, %v69_v18  ;;  %v54_v22 = vld [vmem:[%s647_s1 + $0x118] sm:$0xff]  ;;  %v40_v24 = vld [vmem:[%s647_s1 + $0xa8] sm:$0xff]  ;;  %322 = vmatprep.subr.bf16.mxu0 %v321_v16 }
   0x7   :  { %352 = vmatpush3.bf16.msra.mxu1 %v351_v12  ;;  %v355_v25 = vpack.c.bf16 %v54_v22, %v53_v20  ;;  %v325_v26 = vpack.c.bf16 %v40_v24, %v39_v23  ;;  %v23_v27 = vld [vmem:[%s647_s1 + $0x20] sm:$0xff]  ;;  %v24_v28 = vld [vmem:[%s647_s1 + $0x28] sm:$0xff]  ;;  %v41_v35 = vld [vmem:[%s647_s1 + $0xb0] sm:$0xff] }
   0x8   :  { %v71_v29 = vld [vmem:[%s647_s1 + $0x1a0] sm:$0xff]  ;;  %354 = vmatprep.subr.bf16.mxu1 %v353_v21  ;;  %v72_v30 = vld [vmem:[%s647_s1 + $0x1a8] sm:$0xff]  ;;  %v327_v33 = vpack.c.bf16 %v24_v28, %v23_v27  ;;  %v42_v36 = vld [vmem:[%s647_s1 + $0xb8] sm:$0xff] }
   0x9   :  { %v55_v31 = vld [vmem:[%s647_s1 + $0x120] sm:$0xff]  ;;  %v56_v32 = vld [vmem:[%s647_s1 + $0x128] sm:$0xff]  ;;  %324 = vmatpush3.bf16.msra.mxu0 %v323_v17  ;;  %v357_v34 = vpack.c.bf16 %v72_v30, %v71_v29  ;;  %v25_v37 = vld [vmem:[%s647_s1 + $0x30] sm:$0xff]  ;;  %v329_v39 = vpack.c.bf16 %v42_v36, %v41_v35 }
   0xa   :  { %326 = vmatprep.subr.bf16.mxu0 %v325_v26  ;;  %v359_v38 = vpack.c.bf16 %v56_v32, %v55_v31  ;;  %v26_v40 = vld [vmem:[%s647_s1 + $0x38] sm:$0xff]  ;;  %v73_v41 = vld [vmem:[%s647_s1 + $0x1b0] sm:$0xff]  ;;  %v43_v46 = vld [vmem:[%s647_s1 + $0xc0] sm:$0xff] }
   0xb   :  { %356 = vmatpush3.bf16.msra.mxu1 %v355_v25  ;;  %v74_v42 = vld [vmem:[%s647_s1 + $0x1b8] sm:$0xff]  ;;  %v57_v44 = vld [vmem:[%s647_s1 + $0x130] sm:$0xff]  ;;  %v44_v47 = vld [vmem:[%s647_s1 + $0xc8] sm:$0xff]  ;;  %v331_v48 = vpack.c.bf16 %v26_v40, %v25_v37 }
   0xc   :  { %358 = vmatprep.subr.bf16.mxu1 %v357_v34  ;;  %v361_v43 = vpack.c.bf16 %v74_v42, %v73_v41  ;;  %v58_v45 = vld [vmem:[%s647_s1 + $0x138] sm:$0xff]  ;;  %v75_v49 = vld [vmem:[%s647_s1 + $0x1c0] sm:$0xff]  ;;  %v76_v50 = vld [vmem:[%s647_s1 + $0x1c8] sm:$0xff]  ;;  %v333_v52 = vpack.c.bf16 %v44_v47, %v43_v46 }
   0xd   :  { %328 = vmatpush3.bf16.msra.mxu0 %v327_v33  ;;  %v363_v51 = vpack.c.bf16 %v58_v45, %v57_v44  ;;  %v27_v53 = vld [vmem:[%s647_s1 + $0x40] sm:$0xff]  ;;  %v28_v54 = vld [vmem:[%s647_s1 + $0x48] sm:$0xff]  ;;  %v365_v56 = vpack.c.bf16 %v76_v50, %v75_v49  ;;  %v45_v58 = vld [vmem:[%s647_s1 + $0xd0] sm:$0xff] }
   0xe   :  { %330 = vmatprep.subr.bf16.mxu0 %v329_v39  ;;  %v59_v55 = vld [vmem:[%s647_s1 + $0x140] sm:$0xff]  ;;  %v60_v57 = vld [vmem:[%s647_s1 + $0x148] sm:$0xff]  ;;  %v46_v59 = vld [vmem:[%s647_s1 + $0xd8] sm:$0xff]  ;;  %v335_v62 = vpack.c.bf16 %v28_v54, %v27_v53 }
   0xf   :  { %360 = vmatpush3.bf16.msra.mxu1 %v359_v38  ;;  %v77_v60 = vld [vmem:[%s647_s1 + $0x1d0] sm:$0xff]  ;;  %v78_v61 = vld [vmem:[%s647_s1 + $0x1d8] sm:$0xff]  ;;  %v367_v63 = vpack.c.bf16 %v60_v57, %v59_v55  ;;  %v337_v0 = vpack.c.bf16 %v46_v59, %v45_v58  ;;  %v47_v6 = vld [vmem:[%s647_s1 + $0xe0] sm:$0xff] }
  0x10   :  { %362 = vmatprep.subr.bf16.mxu1 %v361_v43  ;;  %v29_v1 = vld [vmem:[%s647_s1 + $0x50] sm:$0xff]  ;;  %v30_v2 = vld [vmem:[%s647_s1 + $0x58] sm:$0xff]  ;;  %v369_v4 = vpack.c.bf16 %v78_v61, %v77_v60  ;;  %v48_v7 = vld [vmem:[%s647_s1 + $0xe8] sm:$0xff] }
  0x11   :  { %332 = vmatpush3.bf16.msra.mxu0 %v331_v48  ;;  %v61_v3 = vld [vmem:[%s647_s1 + $0x150] sm:$0xff]  ;;  %v62_v5 = vld [vmem:[%s647_s1 + $0x158] sm:$0xff]  ;;  %v79_v8 = vld [vmem:[%s647_s1 + $0x1e0] sm:$0xff]  ;;  %v339_v10 = vpack.c.bf16 %v30_v2, %v29_v1  ;;  %v341_v15 = vpack.c.bf16 %v48_v7, %v47_v6 }
  0x12   :  { %334 = vmatprep.subr.bf16.mxu0 %v333_v52  ;;  %v80_v9 = vld [vmem:[%s647_s1 + $0x1e8] sm:$0xff]  ;;  %v31_v11 = vld [vmem:[%s647_s1 + $0x60] sm:$0xff]  ;;  %v371_v14 = vpack.c.bf16 %v62_v5, %v61_v3  ;;  %v49_v17 = vld [vmem:[%s647_s1 + $0xf0] sm:$0xff] }
  0x13   :  { %364 = vmatpush3.bf16.msra.mxu1 %v363_v51  ;;  %v32_v12 = vld [vmem:[%s647_s1 + $0x68] sm:$0xff]  ;;  %v63_v13 = vld [vmem:[%s647_s1 + $0x160] sm:$0xff]  ;;  %v373_v19 = vpack.c.bf16 %v80_v9, %v79_v8  ;;  %v50_v20 = vld [vmem:[%s647_s1 + $0xf8] sm:$0xff] }
  0x14   :  { %366 = vmatprep.subr.bf16.mxu1 %v365_v56  ;;  %v64_v16 = vld [vmem:[%s647_s1 + $0x168] sm:$0xff]  ;;  %v18_v21 = vld [vmem:[%s646_s0 + $0x18] sm:$0xff] }
  0x15   :  { %336 = vmatpush3.bf16.msra.mxu0 %v335_v62  ;;  %v16_v18 = vld [vmem:[%s646_s0 + $0x8] sm:$0xff] }
  0x16   :  { %338 = vmatprep.subr.bf16.mxu0 %v337_v0  ;;  %154 = vmatprep.mubr.f32.mxu0 %v16_v18 }
  0x17   :  { %368 = vmatpush3.bf16.msra.mxu1 %v367_v63 }
  0x18   :  { %370 = vmatprep.subr.bf16.mxu1 %v369_v4 }
  0x19   :  { %8 = vsyncpa [#allocation3], 0  ;;  %v81_v22 = vld [vmem:[%s647_s1 + $0x1f0] sm:$0xff]  ;;  %v82_v23 = vld [vmem:[%s647_s1 + $0x1f8] sm:$0xff]  ;;  %224 = vmatprep.mubr.f32.mxu1 %v18_v21  ;;  %340 = vmatpush3.bf16.msra.mxu0 %v339_v10  ;;  %v343_v24 = vpack.c.bf16 %v32_v12, %v31_v11  ;;  %v375_v25 = vpack.c.bf16 %v64_v16, %v63_v13  ;;  %v345_v26 = vpack.c.bf16 %v50_v20, %v49_v17  ;;  %s406_s14 = smov [#allocation2]  }
  0x1a   :  { %342 = vmatprep.subr.bf16.mxu0 %v341_v15  ;;  %v33_v27 = vld [vmem:[%s647_s1 + $0x70] sm:$0xff]  ;;  %v34_v28 = vld [vmem:[%s647_s1 + $0x78] sm:$0xff]  ;;  %v377_v29 = vpack.c.bf16 %v82_v23, %v81_v22  ;;  %v15_v34 = vld [vmem:[%s646_s0] sm:$0xff]  ;;  %s238_s15 = sshll.u32 %s406_s14, 4  ;;  %s239_s15 = int_to_ptr.vmem [resolvable:$true] %s238_s15 }
  0x1b   :  { %372 = vmatpush3.bf16.msra.mxu1 %v371_v14  ;;  %v65_v30 = vld [vmem:[%s647_s1 + $0x170] sm:$0xff]  ;;  %v66_v31 = vld [vmem:[%s647_s1 + $0x178] sm:$0xff]  ;;  %v347_v32 = vpack.c.bf16 %v34_v28, %v33_v27  ;;  %v246_v37 = vld [vmem:[%s648_s2] ss:$0 sm:$0xff]  ;;  %p387_p1 = scmp.lt.s32.totalorder %s239_s15, %s239_s15 }
  0x1c   :  { %374 = vmatprep.subr.bf16.mxu1 %v373_v19  ;;  %v379_v33 = vpack.c.bf16 %v66_v31, %v65_v30  ;;  %v17_v35 = vld [vmem:[%s646_s0 + $0x10] sm:$0xff]  ;;  %s382_s0 = scalar_lea.vmem %s239_s15, 128 }
  0x1d   :  { %344 = vmatpush3.bf16.msra.mxu0 %v343_v24  ;;  %p383_p0 = scmp.ne.s32.totalorder %s239_s15, %s382_s0  ;;  %p388_p2 = scmp.lt.s32.totalorder %s382_s0, %s382_s0 }
  0x1e   :  { %346 = vmatprep.subr.bf16.mxu0 %v345_v26 }
  0x1f   :  { %376 = vmatpush3.bf16.msra.mxu1 %v375_v25  ;;  %p389_p3 = por %p388_p2, %p387_p1 }
  0x20   :  { %378 = vmatprep.subr.bf16.mxu1 %v377_v29 }
  0x21   :  { %348 = vmatpush3.bf16.msra.mxu0 %v347_v32  ;;  %p390_p4 = pnand %p389_p3, %p383_p0 }
  0x23   :  { %380 = vmatpush3.bf16.msra.mxu1 %v379_v33 }
  0x24   :  { %155 = vmatmul.mubr.f32.vlgmr.msra.gmra.mrb[0].mxu0 %v15_v34 }
  0x26   :  { %225 = vmatmul.mubr.f32.vlgmr.msra.gmra.mrb[0].mxu1 %v17_v35 }
  0xf7   :  { %v279_v36 = vpop.f32.mrb[0].mxu0 }
  0xf8   :  { %v280_v38 = vpop.f32.mrb[1].mxu0 }
  0xf9   :  { %v314_v39 = vpop.f32.mrb[0].mxu1  ;;  %v281_v40 = vadd.f32 %v280_v38, %v279_v36 }
  0xfa   :  { %v315_v41 = vpop.f32.mrb[1].mxu1 }
  0xfb   :  { %v316_v42 = vadd.f32 %v315_v41, %v314_v39  ;;  %v157_v43 = vadd.f32 %v281_v40, %v246_v37 }
  0xfd   :  { %v227_v44 = vadd.f32 %v316_v42, %v157_v43 }
  0xff   :  { %v230_v45 = vmax.f32 %v227_v44, 0.0 }
 0x101   :  { %231 = vst [vmem:[#allocation2] sm:$0xff] %v230_v45 }
 0x102   :  { %393 = shalt.err (!%p390_p4)
}
 0x103   :  { %s394_s17 = scalar_lea.hbm %s649_s3, 128 }
 0x104   :  { %p395_p5 = scmp.ne.s32.totalorder %s649_s3, %s394_s17  ;;  %p398_p6 = scmp.lt.u32.totalorder %s394_s17, %s649_s3 }
 0x106   :  { %p400_p7 = pnand %p398_p6, %p395_p5 }
 0x108   :  { %403 = shalt.err (!%p400_p7)
}
 0x109   :  { %241 = dma.vmem_to_hbm [thread:$0]  %s239_s15, 128, %s649_s3, [#allocation3]  }
 0x10a   :  { %404 = dma.done.wait [#allocation3], 128  }
 0x10b   :  { %405 = vsyncadd [#allocation3], 4294967168 }
 0x10c   :  { %245 = vsyncpa [#allocation3], 1 }

// kernel: audio_cnn1d_extractor_forward.18
= control target key start
LH: loop header
LB: loop body
LE: loop exit
PB: predicated region body
PF: predicated region fallthrough
CT: control target
= control target key end

     0   :  { %s4847_s1 = inlined_call_operand.vmem [shape: f32[1536,512], index: 1, kind: input, shape index: {}]   ;;  %s4848_s0 = inlined_call_operand.vmem [shape: f32[8,1536], index: 0, kind: input, shape index: {}]   ;;  %s4849_s2 = inlined_call_operand.vmem [shape: f32[1,512], index: 2, kind: input, shape index: {}]   ;;  %s4850_s3 = inlined_call_operand.vmem [shape: f32[8,512], index: 3, kind: output, shape index: {}]  }
   0x1   :  { %v27_v0 = vld [vmem:[%s4847_s1 + $0x8] sm:$0xff]  ;;  %v29_v2 = vld [vmem:[%s4847_s1 + $0x18] sm:$0xff]  ;;  %v26_v5 = vld [vmem:[%s4847_s1] sm:$0xff] }
   0x2   :  { %v31_v1 = vld [vmem:[%s4847_s1 + $0x28] sm:$0xff]  ;;  %v33_v4 = vld [vmem:[%s4847_s1 + $0x38] sm:$0xff]  ;;  %v30_v6 = vld [vmem:[%s4847_s1 + $0x20] sm:$0xff] }
   0x3   :  { %v1680_v3 = vpack.c.bf16 %v31_v1, %v27_v0  ;;  %v2064_v7 = vpack.c.bf16 %v33_v4, %v29_v2  ;;  %v1682_v8 = vpack.c.bf16 %v30_v6, %v26_v5  ;;  %v28_v9 = vld [vmem:[%s4847_s1 + $0x10] sm:$0xff]  ;;  %v35_v11 = vld [vmem:[%s4847_s1 + $0x48] sm:$0xff]  ;;  %v37_v14 = vld [vmem:[%s4847_s1 + $0x58] sm:$0xff] }
   0x4   :  { %v32_v10 = vld [vmem:[%s4847_s1 + $0x30] sm:$0xff]  ;;  %v39_v13 = vld [vmem:[%s4847_s1 + $0x68] sm:$0xff]  ;;  %v41_v15 = vld [vmem:[%s4847_s1 + $0x78] sm:$0xff] }
   0x5   :  { %1681 = vmatprep.subr.bf16.mxu0 %v1680_v3  ;;  %v2066_v12 = vpack.c.bf16 %v32_v10, %v28_v9  ;;  %2065 = vmatprep.subr.bf16.mxu1 %v2064_v7  ;;  %v1684_v16 = vpack.c.bf16 %v39_v13, %v35_v11  ;;  %v2068_v17 = vpack.c.bf16 %v41_v15, %v37_v14  ;;  %v34_v18 = vld [vmem:[%s4847_s1 + $0x40] sm:$0xff]  ;;  %v36_v20 = vld [vmem:[%s4847_s1 + $0x50] sm:$0xff]  ;;  %v43_v23 = vld [vmem:[%s4847_s1 + $0x88] sm:$0xff] }
   0x6   :  { %1683 = vmatpush1.bf16.msra.mxu0 %v1682_v8  ;;  %v38_v19 = vld [vmem:[%s4847_s1 + $0x60] sm:$0xff]  ;;  %v40_v22 = vld [vmem:[%s4847_s1 + $0x70] sm:$0xff]  ;;  %v47_v24 = vld [vmem:[%s4847_s1 + $0xa8] sm:$0xff] }
   0x7   :  { %2067 = vmatpush1.bf16.msra.mxu1 %v2066_v12  ;;  %v1686_v21 = vpack.c.bf16 %v38_v19, %v34_v18  ;;  %1685 = vmatprep.subr.bf16.mxu0 %v1684_v16  ;;  %v2070_v25 = vpack.c.bf16 %v40_v22, %v36_v20  ;;  %v1688_v26 = vpack.c.bf16 %v47_v24, %v43_v23  ;;  %v45_v27 = vld [vmem:[%s4847_s1 + $0x98] sm:$0xff]  ;;  %v42_v29 = vld [vmem:[%s4847_s1 + $0x80] sm:$0xff]  ;;  %v44_v32 = vld [vmem:[%s4847_s1 + $0x90] sm:$0xff] }
   0x8   :  { %2069 = vmatprep.subr.bf16.mxu1 %v2068_v17  ;;  %v49_v28 = vld [vmem:[%s4847_s1 + $0xb8] sm:$0xff]  ;;  %v46_v31 = vld [vmem:[%s4847_s1 + $0xa0] sm:$0xff]  ;;  %v48_v33 = vld [vmem:[%s4847_s1 + $0xb0] sm:$0xff] }
   0x9   :  { %v2072_v30 = vpack.c.bf16 %v49_v28, %v45_v27  ;;  %v1690_v34 = vpack.c.bf16 %v46_v31, %v42_v29  ;;  %v51_v35 = vld [vmem:[%s4847_s1 + $0xc8] sm:$0xff]  ;;  %v53_v37 = vld [vmem:[%s4847_s1 + $0xd8] sm:$0xff]  ;;  %v2074_v38 = vpack.c.bf16 %v48_v33, %v44_v32  ;;  %v50_v41 = vld [vmem:[%s4847_s1 + $0xc0] sm:$0xff] }
   0xa   :  { %1687 = vmatpush1.bf16.msra.mxu0 %v1686_v21  ;;  %v55_v36 = vld [vmem:[%s4847_s1 + $0xe8] sm:$0xff]  ;;  %v57_v40 = vld [vmem:[%s4847_s1 + $0xf8] sm:$0xff]  ;;  %v54_v42 = vld [vmem:[%s4847_s1 + $0xe0] sm:$0xff] }
   0xb   :  { %2071 = vmatpush1.bf16.msra.mxu1 %v2070_v25  ;;  %1689 = vmatprep.subr.bf16.mxu0 %v1688_v26  ;;  %v1692_v39 = vpack.c.bf16 %v55_v36, %v51_v35  ;;  %v2076_v43 = vpack.c.bf16 %v57_v40, %v53_v37  ;;  %v52_v44 = vld [vmem:[%s4847_s1 + $0xd0] sm:$0xff]  ;;  %v59_v46 = vld [vmem:[%s4847_s1 + $0x108] sm:$0xff]  ;;  %v61_v48 = vld [vmem:[%s4847_s1 + $0x118] sm:$0xff]  ;;  %v1694_v50 = vpack.c.bf16 %v54_v42, %v50_v41 }
   0xc   :  { %2073 = vmatprep.subr.bf16.mxu1 %v2072_v30  ;;  %v56_v45 = vld [vmem:[%s4847_s1 + $0xf0] sm:$0xff]  ;;  %v63_v47 = vld [vmem:[%s4847_s1 + $0x128] sm:$0xff]  ;;  %v65_v49 = vld [vmem:[%s4847_s1 + $0x138] sm:$0xff] }
   0xd   :  { %v2078_v51 = vpack.c.bf16 %v56_v45, %v52_v44  ;;  %v1696_v52 = vpack.c.bf16 %v63_v47, %v59_v46  ;;  %v58_v53 = vld [vmem:[%s4847_s1 + $0x100] sm:$0xff]  ;;  %v60_v55 = vld [vmem:[%s4847_s1 + $0x110] sm:$0xff]  ;;  %v2080_v56 = vpack.c.bf16 %v65_v49, %v61_v48  ;;  %v67_v58 = vld [vmem:[%s4847_s1 + $0x148] sm:$0xff] }
   0xe   :  { %1691 = vmatpush1.bf16.msra.mxu0 %v1690_v34  ;;  %v62_v54 = vld [vmem:[%s4847_s1 + $0x120] sm:$0xff]  ;;  %v64_v57 = vld [vmem:[%s4847_s1 + $0x130] sm:$0xff]  ;;  %v71_v59 = vld [vmem:[%s4847_s1 + $0x168] sm:$0xff] }
   0xf   :  { %2075 = vmatpush1.bf16.msra.mxu1 %v2074_v38  ;;  %1693 = vmatprep.subr.bf16.mxu0 %v1692_v39  ;;  %v69_v60 = vld [vmem:[%s4847_s1 + $0x158] sm:$0xff]  ;;  %v1698_v62 = vpack.c.bf16 %v62_v54, %v58_v53  ;;  %v2082_v63 = vpack.c.bf16 %v64_v57, %v60_v55  ;;  %v1700_v0 = vpack.c.bf16 %v71_v59, %v67_v58  ;;  %v66_v1 = vld [vmem:[%s4847_s1 + $0x140] sm:$0xff]  ;;  %v68_v3 = vld [vmem:[%s4847_s1 + $0x150] sm:$0xff] }
  0x10   :  { %2077 = vmatprep.subr.bf16.mxu1 %v2076_v43  ;;  %v73_v61 = vld [vmem:[%s4847_s1 + $0x178] sm:$0xff]  ;;  %v70_v2 = vld [vmem:[%s4847_s1 + $0x160] sm:$0xff]  ;;  %v72_v5 = vld [vmem:[%s4847_s1 + $0x170] sm:$0xff] }
  0x11   :  { %v2084_v4 = vpack.c.bf16 %v73_v61, %v69_v60  ;;  %v75_v6 = vld [vmem:[%s4847_s1 + $0x188] sm:$0xff]  ;;  %v77_v8 = vld [vmem:[%s4847_s1 + $0x198] sm:$0xff]  ;;  %v1702_v10 = vpack.c.bf16 %v70_v2, %v66_v1  ;;  %v2086_v11 = vpack.c.bf16 %v72_v5, %v68_v3  ;;  %v74_v13 = vld [vmem:[%s4847_s1 + $0x180] sm:$0xff] }
  0x12   :  { %1695 = vmatpush1.bf16.msra.mxu0 %v1694_v50  ;;  %v79_v7 = vld [vmem:[%s4847_s1 + $0x1a8] sm:$0xff]  ;;  %v81_v9 = vld [vmem:[%s4847_s1 + $0x1b8] sm:$0xff]  ;;  %v78_v14 = vld [vmem:[%s4847_s1 + $0x1a0] sm:$0xff] }
  0x13   :  { %2079 = vmatpush1.bf16.msra.mxu1 %v2078_v51  ;;  %1697 = vmatprep.subr.bf16.mxu0 %v1696_v52  ;;  %v1704_v12 = vpack.c.bf16 %v79_v7, %v75_v6  ;;  %v76_v15 = vld [vmem:[%s4847_s1 + $0x190] sm:$0xff]  ;;  %v2088_v16 = vpack.c.bf16 %v81_v9, %v77_v8  ;;  %v83_v18 = vld [vmem:[%s4847_s1 + $0x1c8] sm:$0xff]  ;;  %v85_v20 = vld [vmem:[%s4847_s1 + $0x1d8] sm:$0xff]  ;;  %v1706_v22 = vpack.c.bf16 %v78_v14, %v74_v13 }
  0x14   :  { %2081 = vmatprep.subr.bf16.mxu1 %v2080_v56  ;;  %v80_v17 = vld [vmem:[%s4847_s1 + $0x1b0] sm:$0xff]  ;;  %v87_v19 = vld [vmem:[%s4847_s1 + $0x1e8] sm:$0xff]  ;;  %v89_v21 = vld [vmem:[%s4847_s1 + $0x1f8] sm:$0xff] }
  0x15   :  { %v2090_v23 = vpack.c.bf16 %v80_v17, %v76_v15  ;;  %v1708_v24 = vpack.c.bf16 %v87_v19, %v83_v18  ;;  %v82_v25 = vld [vmem:[%s4847_s1 + $0x1c0] sm:$0xff]  ;;  %v84_v27 = vld [vmem:[%s4847_s1 + $0x1d0] sm:$0xff]  ;;  %v2092_v28 = vpack.c.bf16 %v89_v21, %v85_v20  ;;  %v91_v30 = vld [vmem:[%s4847_s1 + $0x208] sm:$0xff] }
  0x16   :  { %1699 = vmatpush1.bf16.msra.mxu0 %v1698_v62  ;;  %v86_v26 = vld [vmem:[%s4847_s1 + $0x1e0] sm:$0xff]  ;;  %v88_v29 = vld [vmem:[%s4847_s1 + $0x1f0] sm:$0xff]  ;;  %v95_v31 = vld [vmem:[%s4847_s1 + $0x228] sm:$0xff] }
  0x17   :  { %2083 = vmatpush1.bf16.msra.mxu1 %v2082_v63  ;;  %1701 = vmatprep.subr.bf16.mxu0 %v1700_v0  ;;  %v93_v32 = vld [vmem:[%s4847_s1 + $0x218] sm:$0xff]  ;;  %v1710_v34 = vpack.c.bf16 %v86_v26, %v82_v25  ;;  %v2094_v35 = vpack.c.bf16 %v88_v29, %v84_v27  ;;  %v1712_v36 = vpack.c.bf16 %v95_v31, %v91_v30  ;;  %v90_v37 = vld [vmem:[%s4847_s1 + $0x200] sm:$0xff]  ;;  %v92_v39 = vld [vmem:[%s4847_s1 + $0x210] sm:$0xff] }
  0x18   :  { %2085 = vmatprep.subr.bf16.mxu1 %v2084_v4  ;;  %v97_v33 = vld [vmem:[%s4847_s1 + $0x238] sm:$0xff]  ;;  %v94_v38 = vld [vmem:[%s4847_s1 + $0x220] sm:$0xff]  ;;  %v96_v41 = vld [vmem:[%s4847_s1 + $0x230] sm:$0xff] }
  0x19   :  { %v2096_v40 = vpack.c.bf16 %v97_v33, %v93_v32  ;;  %v99_v42 = vld [vmem:[%s4847_s1 + $0x248] sm:$0xff]  ;;  %v101_v44 = vld [vmem:[%s4847_s1 + $0x258] sm:$0xff]  ;;  %v1714_v46 = vpack.c.bf16 %v94_v38, %v90_v37  ;;  %v2098_v47 = vpack.c.bf16 %v96_v41, %v92_v39  ;;  %v98_v49 = vld [vmem:[%s4847_s1 + $0x240] sm:$0xff] }
  0x1a   :  { %1703 = vmatpush1.bf16.msra.mxu0 %v1702_v10  ;;  %v103_v43 = vld [vmem:[%s4847_s1 + $0x268] sm:$0xff]  ;;  %v105_v45 = vld [vmem:[%s4847_s1 + $0x278] sm:$0xff]  ;;  %v102_v50 = vld [vmem:[%s4847_s1 + $0x260] sm:$0xff] }
  0x1b   :  { %2087 = vmatpush1.bf16.msra.mxu1 %v2086_v11  ;;  %1705 = vmatprep.subr.bf16.mxu0 %v1704_v12  ;;  %v1716_v48 = vpack.c.bf16 %v103_v43, %v99_v42  ;;  %v100_v51 = vld [vmem:[%s4847_s1 + $0x250] sm:$0xff]  ;;  %v2100_v52 = vpack.c.bf16 %v105_v45, %v101_v44  ;;  %v107_v54 = vld [vmem:[%s4847_s1 + $0x288] sm:$0xff]  ;;  %v109_v56 = vld [vmem:[%s4847_s1 + $0x298] sm:$0xff]  ;;  %v1718_v58 = vpack.c.bf16 %v102_v50, %v98_v49 }
  0x1c   :  { %2089 = vmatprep.subr.bf16.mxu1 %v2088_v16  ;;  %v104_v53 = vld [vmem:[%s4847_s1 + $0x270] sm:$0xff]  ;;  %v111_v55 = vld [vmem:[%s4847_s1 + $0x2a8] sm:$0xff]  ;;  %v113_v57 = vld [vmem:[%s4847_s1 + $0x2b8] sm:$0xff] }
  0x1d   :  { %v2102_v59 = vpack.c.bf16 %v104_v53, %v100_v51  ;;  %v1720_v60 = vpack.c.bf16 %v111_v55, %v107_v54  ;;  %v106_v61 = vld [vmem:[%s4847_s1 + $0x280] sm:$0xff]  ;;  %v108_v63 = vld [vmem:[%s4847_s1 + $0x290] sm:$0xff]  ;;  %v2104_v0 = vpack.c.bf16 %v113_v57, %v109_v56  ;;  %v115_v2 = vld [vmem:[%s4847_s1 + $0x2c8] sm:$0xff] }
  0x1e   :  { %1707 = vmatpush1.bf16.msra.mxu0 %v1706_v22  ;;  %v110_v62 = vld [vmem:[%s4847_s1 + $0x2a0] sm:$0xff]  ;;  %v112_v1 = vld [vmem:[%s4847_s1 + $0x2b0] sm:$0xff]  ;;  %v119_v3 = vld [vmem:[%s4847_s1 + $0x2e8] sm:$0xff] }
  0x1f   :  { %2091 = vmatpush1.bf16.msra.mxu1 %v2090_v23  ;;  %1709 = vmatprep.subr.bf16.mxu0 %v1708_v24  ;;  %v117_v4 = vld [vmem:[%s4847_s1 + $0x2d8] sm:$0xff]  ;;  %v1722_v6 = vpack.c.bf16 %v110_v62, %v106_v61  ;;  %v114_v7 = vld [vmem:[%s4847_s1 + $0x2c0] sm:$0xff]  ;;  %v2106_v8 = vpack.c.bf16 %v112_v1, %v108_v63  ;;  %v1724_v9 = vpack.c.bf16 %v119_v3, %v115_v2  ;;  %v116_v11 = vld [vmem:[%s4847_s1 + $0x2d0] sm:$0xff] }
  0x20   :  { %2093 = vmatprep.subr.bf16.mxu1 %v2092_v28  ;;  %v121_v5 = vld [vmem:[%s4847_s1 + $0x2f8] sm:$0xff]  ;;  %v118_v10 = vld [vmem:[%s4847_s1 + $0x2e0] sm:$0xff]  ;;  %v120_v12 = vld [vmem:[%s4847_s1 + $0x2f0] sm:$0xff] }
  0x21   :  { %v2108_v13 = vpack.c.bf16 %v121_v5, %v117_v4  ;;  %v123_v14 = vld [vmem:[%s4847_s1 + $0x308] sm:$0xff]  ;;  %v125_v17 = vld [vmem:[%s4847_s1 + $0x318] sm:$0xff]  ;;  %v1726_v19 = vpack.c.bf16 %v118_v10, %v114_v7  ;;  %v2110_v20 = vpack.c.bf16 %v120_v12, %v116_v11  ;;  %v122_v22 = vld [vmem:[%s4847_s1 + $0x300] sm:$0xff] }
  0x22   :  { %1711 = vmatpush1.bf16.msra.mxu0 %v1710_v34  ;;  %v127_v15 = vld [vmem:[%s4847_s1 + $0x328] sm:$0xff]  ;;  %v129_v18 = vld [vmem:[%s4847_s1 + $0x338] sm:$0xff]  ;;  %v126_v23 = vld [vmem:[%s4847_s1 + $0x320] sm:$0xff] }
  0x23   :  { %2095 = vmatpush1.bf16.msra.mxu1 %v2094_v35  ;;  %1713 = vmatprep.subr.bf16.mxu0 %v1712_v36  ;;  %v15_v16 = vld [vmem:[%s4848_s0 + $0x8] sm:$0xff]  ;;  %v1728_v21 = vpack.c.bf16 %v127_v15, %v123_v14  ;;  %v124_v24 = vld [vmem:[%s4847_s1 + $0x310] sm:$0xff]  ;;  %v2112_v25 = vpack.c.bf16 %v129_v18, %v125_v17  ;;  %v133_v29 = vld [vmem:[%s4847_s1 + $0x358] sm:$0xff]  ;;  %v1730_v31 = vpack.c.bf16 %v126_v23, %v122_v22 }
  0x24   :  { %2097 = vmatprep.subr.bf16.mxu1 %v2096_v40  ;;  %880 = vmatprep.mubr.f32.mxu0 %v15_v16  ;;  %v128_v26 = vld [vmem:[%s4847_s1 + $0x330] sm:$0xff]  ;;  %v131_v27 = vld [vmem:[%s4847_s1 + $0x348] sm:$0xff]  ;;  %v137_v30 = vld [vmem:[%s4847_s1 + $0x378] sm:$0xff] }
  0x25   :  { %1306 = vmatprep.mubr.f32.mxu1 %v15_v16  ;;  %v135_v28 = vld [vmem:[%s4847_s1 + $0x368] sm:$0xff]  ;;  %v2114_v32 = vpack.c.bf16 %v128_v26, %v124_v24  ;;  %v130_v34 = vld [vmem:[%s4847_s1 + $0x340] sm:$0xff]  ;;  %v132_v36 = vld [vmem:[%s4847_s1 + $0x350] sm:$0xff]  ;;  %v2116_v37 = vpack.c.bf16 %v137_v30, %v133_v29 }
  0x26   :  { %1715 = vmatpush1.bf16.msra.mxu0 %v1714_v46  ;;  %v1732_v33 = vpack.c.bf16 %v135_v28, %v131_v27  ;;  %v134_v35 = vld [vmem:[%s4847_s1 + $0x360] sm:$0xff]  ;;  %v136_v38 = vld [vmem:[%s4847_s1 + $0x370] sm:$0xff]  ;;  %v139_v39 = vld [vmem:[%s4847_s1 + $0x388] sm:$0xff] }
  0x27   :  { %2099 = vmatpush1.bf16.msra.mxu1 %v2098_v47  ;;  %1717 = vmatprep.subr.bf16.mxu0 %v1716_v48  ;;  %v143_v40 = vld [vmem:[%s4847_s1 + $0x3a8] sm:$0xff]  ;;  %v141_v41 = vld [vmem:[%s4847_s1 + $0x398] sm:$0xff]  ;;  %v1734_v43 = vpack.c.bf16 %v134_v35, %v130_v34  ;;  %v2118_v44 = vpack.c.bf16 %v136_v38, %v132_v36  ;;  %v138_v46 = vld [vmem:[%s4847_s1 + $0x380] sm:$0xff] }
  0x28   :  { %2101 = vmatprep.subr.bf16.mxu1 %v2100_v52  ;;  %v145_v42 = vld [vmem:[%s4847_s1 + $0x3b8] sm:$0xff]  ;;  %v1736_v45 = vpack.c.bf16 %v143_v40, %v139_v39  ;;  %v142_v47 = vld [vmem:[%s4847_s1 + $0x3a0] sm:$0xff]  ;;  %v140_v48 = vld [vmem:[%s4847_s1 + $0x390] sm:$0xff] }
  0x29   :  { %v2120_v49 = vpack.c.bf16 %v145_v42, %v141_v41  ;;  %v144_v50 = vld [vmem:[%s4847_s1 + $0x3b0] sm:$0xff]  ;;  %v147_v51 = vld [vmem:[%s4847_s1 + $0x3c8] sm:$0xff]  ;;  %v149_v53 = vld [vmem:[%s4847_s1 + $0x3d8] sm:$0xff]  ;;  %v1738_v55 = vpack.c.bf16 %v142_v47, %v138_v46 }
  0x2a   :  { %1719 = vmatpush1.bf16.msra.mxu0 %v1718_v58  ;;  %v151_v52 = vld [vmem:[%s4847_s1 + $0x3e8] sm:$0xff]  ;;  %v153_v54 = vld [vmem:[%s4847_s1 + $0x3f8] sm:$0xff]  ;;  %v2122_v56 = vpack.c.bf16 %v144_v50, %v140_v48  ;;  %v146_v58 = vld [vmem:[%s4847_s1 + $0x3c0] sm:$0xff] }
  0x2b   :  { %2103 = vmatpush1.bf16.msra.mxu1 %v2102_v59  ;;  %1721 = vmatprep.subr.bf16.mxu0 %v1720_v60  ;;  %v1740_v57 = vpack.c.bf16 %v151_v52, %v147_v51  ;;  %v150_v59 = vld [vmem:[%s4847_s1 + $0x3e0] sm:$0xff]  ;;  %v148_v60 = vld [vmem:[%s4847_s1 + $0x3d0] sm:$0xff]  ;;  %v2124_v61 = vpack.c.bf16 %v153_v54, %v149_v53  ;;  %v155_v63 = vld [vmem:[%s4847_s1 + $0x408] sm:$0xff] }
  0x2c   :  { %2105 = vmatprep.subr.bf16.mxu1 %v2104_v0  ;;  %v152_v62 = vld [vmem:[%s4847_s1 + $0x3f0] sm:$0xff]  ;;  %v159_v0 = vld [vmem:[%s4847_s1 + $0x428] sm:$0xff]  ;;  %v157_v1 = vld [vmem:[%s4847_s1 + $0x418] sm:$0xff]  ;;  %v1742_v3 = vpack.c.bf16 %v150_v59, %v146_v58 }
  0x2d   :  { %v161_v2 = vld [vmem:[%s4847_s1 + $0x438] sm:$0xff]  ;;  %v2126_v4 = vpack.c.bf16 %v152_v62, %v148_v60  ;;  %v1744_v5 = vpack.c.bf16 %v159_v0, %v155_v63  ;;  %v158_v7 = vld [vmem:[%s4847_s1 + $0x420] sm:$0xff]  ;;  %v160_v10 = vld [vmem:[%s4847_s1 + $0x430] sm:$0xff] }
  0x2e   :  { %1723 = vmatpush1.bf16.msra.mxu0 %v1722_v6  ;;  %v154_v6 = vld [vmem:[%s4847_s1 + $0x400] sm:$0xff]  ;;  %v163_v11 = vld [vmem:[%s4847_s1 + $0x448] sm:$0xff]  ;;  %v169_v14 = vld [vmem:[%s4847_s1 + $0x478] sm:$0xff] }
  0x2f   :  { %2107 = vmatpush1.bf16.msra.mxu1 %v2106_v8  ;;  %1725 = vmatprep.subr.bf16.mxu0 %v1724_v9  ;;  %v156_v8 = vld [vmem:[%s4847_s1 + $0x410] sm:$0xff]  ;;  %v2128_v9 = vpack.c.bf16 %v161_v2, %v157_v1  ;;  %v167_v12 = vld [vmem:[%s4847_s1 + $0x468] sm:$0xff]  ;;  %v14_v15 = vld [vmem:[%s4848_s0] sm:$0xff]  ;;  %v1746_v16 = vpack.c.bf16 %v158_v7, %v154_v6 }
  0x30   :  { %2109 = vmatprep.subr.bf16.mxu1 %v2108_v13  ;;  %v165_v13 = vld [vmem:[%s4847_s1 + $0x458] sm:$0xff]  ;;  %v2130_v17 = vpack.c.bf16 %v160_v10, %v156_v8  ;;  %v1748_v18 = vpack.c.bf16 %v167_v12, %v163_v11  ;;  %v168_v23 = vld [vmem:[%s4847_s1 + $0x470] sm:$0xff]  ;;  %v171_v24 = vld [vmem:[%s4847_s1 + $0x488] sm:$0xff] }
  0x31   :  { %v2132_v22 = vpack.c.bf16 %v169_v14, %v165_v13  ;;  %v173_v26 = vld [vmem:[%s4847_s1 + $0x498] sm:$0xff]  ;;  %v176_v35 = vld [vmem:[%s4847_s1 + $0x4b0] sm:$0xff]  ;;  %v179_v36 = vld [vmem:[%s4847_s1 + $0x4c8] sm:$0xff] }
  0x32   :  { %1727 = vmatpush1.bf16.msra.mxu0 %v1726_v19  ;;  %v162_v19 = vld [vmem:[%s4847_s1 + $0x440] sm:$0xff]  ;;  %v177_v27 = vld [vmem:[%s4847_s1 + $0x4b8] sm:$0xff]  ;;  %v184_v47 = vld [vmem:[%s4847_s1 + $0x4f0] sm:$0xff] }
  0x33   :  { %2111 = vmatpush1.bf16.msra.mxu1 %v2110_v20  ;;  %1729 = vmatprep.subr.bf16.mxu0 %v1728_v21  ;;  %v166_v20 = vld [vmem:[%s4847_s1 + $0x460] sm:$0xff]  ;;  %v164_v21 = vld [vmem:[%s4847_s1 + $0x450] sm:$0xff]  ;;  %v2136_v34 = vpack.c.bf16 %v177_v27, %v173_v26  ;;  %v181_v38 = vld [vmem:[%s4847_s1 + $0x4d8] sm:$0xff] }
  0x34   :  { %2113 = vmatprep.subr.bf16.mxu1 %v2112_v25  ;;  %v175_v25 = vld [vmem:[%s4847_s1 + $0x4a8] sm:$0xff]  ;;  %v1750_v28 = vpack.c.bf16 %v166_v20, %v162_v19  ;;  %v2134_v29 = vpack.c.bf16 %v168_v23, %v164_v21  ;;  %v185_v39 = vld [vmem:[%s4847_s1 + $0x4f8] sm:$0xff]  ;;  %v192_v59 = vld [vmem:[%s4847_s1 + $0x530] sm:$0xff] }
  0x35   :  { %v1752_v30 = vpack.c.bf16 %v175_v25, %v171_v24  ;;  %v2140_v46 = vpack.c.bf16 %v185_v39, %v181_v38  ;;  %v187_v48 = vld [vmem:[%s4847_s1 + $0x508] sm:$0xff]  ;;  %v189_v50 = vld [vmem:[%s4847_s1 + $0x518] sm:$0xff]  ;;  %v200_v7 = vld [vmem:[%s4847_s1 + $0x570] sm:$0xff] }
  0x36   :  { %1731 = vmatpush1.bf16.msra.mxu0 %v1730_v31  ;;  %v170_v31 = vld [vmem:[%s4847_s1 + $0x480] sm:$0xff]  ;;  %v193_v51 = vld [vmem:[%s4847_s1 + $0x538] sm:$0xff]  ;;  %v195_v60 = vld [vmem:[%s4847_s1 + $0x548] sm:$0xff] }
  0x37   :  { %2115 = vmatpush1.bf16.msra.mxu1 %v2114_v32  ;;  %1733 = vmatprep.subr.bf16.mxu0 %v1732_v33  ;;  %v174_v32 = vld [vmem:[%s4847_s1 + $0x4a0] sm:$0xff]  ;;  %v172_v33 = vld [vmem:[%s4847_s1 + $0x490] sm:$0xff]  ;;  %v2144_v58 = vpack.c.bf16 %v193_v51, %v189_v50  ;;  %v197_v62 = vld [vmem:[%s4847_s1 + $0x558] sm:$0xff] }
  0x38   :  { %2117 = vmatprep.subr.bf16.mxu1 %v2116_v37  ;;  %v183_v37 = vld [vmem:[%s4847_s1 + $0x4e8] sm:$0xff]  ;;  %v1754_v40 = vpack.c.bf16 %v174_v32, %v170_v31  ;;  %v2138_v41 = vpack.c.bf16 %v176_v35, %v172_v33  ;;  %v201_v63 = vld [vmem:[%s4847_s1 + $0x578] sm:$0xff]  ;;  %v202_v13 = vld [vmem:[%s4847_s1 + $0x580] sm:$0xff] }
  0x39   :  { %v1756_v42 = vpack.c.bf16 %v183_v37, %v179_v36  ;;  %v2148_v6 = vpack.c.bf16 %v201_v63, %v197_v62  ;;  %v203_v8 = vld [vmem:[%s4847_s1 + $0x588] sm:$0xff]  ;;  %v205_v10 = vld [vmem:[%s4847_s1 + $0x598] sm:$0xff]  ;;  %v216_v32 = vld [vmem:[%s4847_s1 + $0x5f0] sm:$0xff] }
  0x3a   :  { %1735 = vmatpush1.bf16.msra.mxu0 %v1734_v43  ;;  %v178_v43 = vld [vmem:[%s4847_s1 + $0x4c0] sm:$0xff]  ;;  %v209_v11 = vld [vmem:[%s4847_s1 + $0x5b8] sm:$0xff]  ;;  %v211_v20 = vld [vmem:[%s4847_s1 + $0x5c8] sm:$0xff] }
  0x3b   :  { %2119 = vmatpush1.bf16.msra.mxu1 %v2118_v44  ;;  %1737 = vmatprep.subr.bf16.mxu0 %v1736_v45  ;;  %v182_v44 = vld [vmem:[%s4847_s1 + $0x4e0] sm:$0xff]  ;;  %v180_v45 = vld [vmem:[%s4847_s1 + $0x4d0] sm:$0xff]  ;;  %v2152_v19 = vpack.c.bf16 %v209_v11, %v205_v10  ;;  %v215_v21 = vld [vmem:[%s4847_s1 + $0x5e8] sm:$0xff] }
  0x3c   :  { %2121 = vmatprep.subr.bf16.mxu1 %v2120_v49  ;;  %v191_v49 = vld [vmem:[%s4847_s1 + $0x528] sm:$0xff]  ;;  %v1758_v52 = vpack.c.bf16 %v182_v44, %v178_v43  ;;  %v2142_v53 = vpack.c.bf16 %v184_v47, %v180_v45  ;;  %v213_v23 = vld [vmem:[%s4847_s1 + $0x5d8] sm:$0xff]  ;;  %v1772_v27 = vpack.c.bf16 %v215_v21, %v211_v20  ;;  %v224_v44 = vld [vmem:[%s4847_s1 + $0x630] sm:$0xff] }
  0x3d   :  { %v1760_v54 = vpack.c.bf16 %v191_v49, %v187_v48  ;;  %v217_v24 = vld [vmem:[%s4847_s1 + $0x5f8] sm:$0xff]  ;;  %v219_v33 = vld [vmem:[%s4847_s1 + $0x608] sm:$0xff] }
  0x3e   :  { %1739 = vmatpush1.bf16.msra.mxu0 %v1738_v55  ;;  %v186_v55 = vld [vmem:[%s4847_s1 + $0x500] sm:$0xff]  ;;  %v2156_v31 = vpack.c.bf16 %v217_v24, %v213_v23  ;;  %v221_v35 = vld [vmem:[%s4847_s1 + $0x618] sm:$0xff]  ;;  %v227_v45 = vld [vmem:[%s4847_s1 + $0x648] sm:$0xff] }
  0x3f   :  { %2123 = vmatpush1.bf16.msra.mxu1 %v2122_v56  ;;  %1741 = vmatprep.subr.bf16.mxu0 %v1740_v57  ;;  %v190_v56 = vld [vmem:[%s4847_s1 + $0x520] sm:$0xff]  ;;  %v188_v57 = vld [vmem:[%s4847_s1 + $0x510] sm:$0xff]  ;;  %v225_v36 = vld [vmem:[%s4847_s1 + $0x638] sm:$0xff] }
  0x40   :  { %2125 = vmatprep.subr.bf16.mxu1 %v2124_v61  ;;  %v199_v61 = vld [vmem:[%s4847_s1 + $0x568] sm:$0xff]  ;;  %v1762_v0 = vpack.c.bf16 %v190_v56, %v186_v55  ;;  %v2146_v1 = vpack.c.bf16 %v192_v59, %v188_v57  ;;  %v2160_v43 = vpack.c.bf16 %v225_v36, %v221_v35  ;;  %v229_v47 = vld [vmem:[%s4847_s1 + $0x658] sm:$0xff]  ;;  %v232_v56 = vld [vmem:[%s4847_s1 + $0x670] sm:$0xff] }
  0x41   :  { %v1764_v2 = vpack.c.bf16 %v199_v61, %v195_v60  ;;  %v233_v48 = vld [vmem:[%s4847_s1 + $0x678] sm:$0xff]  ;;  %v235_v57 = vld [vmem:[%s4847_s1 + $0x688] sm:$0xff]  ;;  %v250_v24 = vld [vmem:[%s4847_s1 + $0x700] sm:$0xff] }
  0x42   :  { %1743 = vmatpush1.bf16.msra.mxu0 %v1742_v3  ;;  %v194_v3 = vld [vmem:[%s4847_s1 + $0x540] sm:$0xff]  ;;  %v2164_v55 = vpack.c.bf16 %v233_v48, %v229_v47  ;;  %v237_v59 = vld [vmem:[%s4847_s1 + $0x698] sm:$0xff] }
  0x43   :  { %2127 = vmatpush1.bf16.msra.mxu1 %v2126_v4  ;;  %1745 = vmatprep.subr.bf16.mxu0 %v1744_v5  ;;  %v198_v4 = vld [vmem:[%s4847_s1 + $0x560] sm:$0xff]  ;;  %v196_v5 = vld [vmem:[%s4847_s1 + $0x550] sm:$0xff]  ;;  %v241_v60 = vld [vmem:[%s4847_s1 + $0x6b8] sm:$0xff] }
  0x44   :  { %2129 = vmatprep.subr.bf16.mxu1 %v2128_v9  ;;  %v207_v9 = vld [vmem:[%s4847_s1 + $0x5a8] sm:$0xff]  ;;  %v1766_v12 = vpack.c.bf16 %v198_v4, %v194_v3  ;;  %v2150_v14 = vpack.c.bf16 %v200_v7, %v196_v5  ;;  %v2168_v3 = vpack.c.bf16 %v241_v60, %v237_v59  ;;  %v240_v4 = vld [vmem:[%s4847_s1 + $0x6b0] sm:$0xff]  ;;  %v245_v7 = vld [vmem:[%s4847_s1 + $0x6d8] sm:$0xff] }
  0x45   :  { %881 = vmatmul.mubr.f32.vlgmr.msra.gmra.mrb[0].mxu0 %v14_v15  ;;  %v243_v5 = vld [vmem:[%s4847_s1 + $0x6c8] sm:$0xff]  ;;  %v257_v20 = vld [vmem:[%s4847_s1 + $0x738] sm:$0xff]  ;;  %v258_v36 = vld [vmem:[%s4847_s1 + $0x740] sm:$0xff] }
  0x46   :  { %1747 = vmatpush1.bf16.msra.mxu0 %v1746_v16  ;;  %1307 = vmatmul.mubr.f32.vlgmr.msra.gmra.mrb[0].mxu1 %v14_v15  ;;  %v1768_v15 = vpack.c.bf16 %v207_v9, %v203_v8  ;;  %v206_v16 = vld [vmem:[%s4847_s1 + $0x5a0] sm:$0xff]  ;;  %v249_v8 = vld [vmem:[%s4847_s1 + $0x6f8] sm:$0xff] }
  0x47   :  { %2131 = vmatpush1.bf16.msra.mxu1 %v2130_v17  ;;  %1749 = vmatprep.subr.bf16.mxu0 %v1748_v18  ;;  %v204_v17 = vld [vmem:[%s4847_s1 + $0x590] sm:$0xff]  ;;  %v1770_v25 = vpack.c.bf16 %v206_v16, %v202_v13  ;;  %v246_v13 = vld [vmem:[%s4847_s1 + $0x6e0] sm:$0xff] }
  0x48   :  { %2133 = vmatprep.subr.bf16.mxu1 %v2132_v22  ;;  %v208_v18 = vld [vmem:[%s4847_s1 + $0x5b0] sm:$0xff]  ;;  %v17_v22 = vld [vmem:[%s4848_s0 + $0x18] sm:$0xff]  ;;  %v266_v48 = vld [vmem:[%s4847_s1 + $0x780] sm:$0xff] }
  0x49   :  { %951 = vmatprep.mubr.f32.mxu0 %v17_v22  ;;  %1377 = vmatprep.mubr.f32.mxu1 %v17_v22  ;;  %v2154_v26 = vpack.c.bf16 %v208_v18, %v204_v17  ;;  %v248_v16 = vld [vmem:[%s4847_s1 + $0x6f0] sm:$0xff]  ;;  %v251_v17 = vld [vmem:[%s4847_s1 + $0x708] sm:$0xff]  ;;  %v274_v60 = vld [vmem:[%s4847_s1 + $0x7c0] sm:$0xff] }
  0x4a   :  { %1751 = vmatpush1.bf16.msra.mxu0 %v1750_v28  ;;  %v210_v28 = vld [vmem:[%s4847_s1 + $0x5c0] sm:$0xff]  ;;  %v255_v18 = vld [vmem:[%s4847_s1 + $0x728] sm:$0xff] }
  0x4b   :  { %2135 = vmatpush1.bf16.msra.mxu1 %v2134_v29  ;;  %1753 = vmatprep.subr.bf16.mxu0 %v1752_v30  ;;  %v214_v29 = vld [vmem:[%s4847_s1 + $0x5e0] sm:$0xff]  ;;  %v212_v30 = vld [vmem:[%s4847_s1 + $0x5d0] sm:$0xff]  ;;  %v1792_v23 = vpack.c.bf16 %v255_v18, %v251_v17 }
  0x4c   :  { %2137 = vmatprep.subr.bf16.mxu1 %v2136_v34  ;;  %v223_v34 = vld [vmem:[%s4847_s1 + $0x628] sm:$0xff]  ;;  %v1774_v37 = vpack.c.bf16 %v214_v29, %v210_v28  ;;  %v2158_v38 = vpack.c.bf16 %v216_v32, %v212_v30  ;;  %v256_v28 = vld [vmem:[%s4847_s1 + $0x730] sm:$0xff]  ;;  %v265_v32 = vld [vmem:[%s4847_s1 + $0x778] sm:$0xff] }
  0x4d   :  { %v1776_v39 = vpack.c.bf16 %v223_v34, %v219_v33  ;;  %v259_v29 = vld [vmem:[%s4847_s1 + $0x748] sm:$0xff]  ;;  %v16_v17 = vld [vmem:[%s4848_s0 + $0x10] sm:$0xff] }
  0x4e   :  { %1755 = vmatpush1.bf16.msra.mxu0 %v1754_v40  ;;  %v218_v40 = vld [vmem:[%s4847_s1 + $0x600] sm:$0xff]  ;;  %v263_v30 = vld [vmem:[%s4847_s1 + $0x768] sm:$0xff] }
  0x4f   :  { %2139 = vmatpush1.bf16.msra.mxu1 %v2138_v41  ;;  %1757 = vmatprep.subr.bf16.mxu0 %v1756_v42  ;;  %v222_v41 = vld [vmem:[%s4847_s1 + $0x620] sm:$0xff]  ;;  %v220_v42 = vld [vmem:[%s4847_s1 + $0x610] sm:$0xff]  ;;  %v1796_v35 = vpack.c.bf16 %v263_v30, %v259_v29  ;;  %v305_v29 = vld [vmem:[%s4847_s1 + $0x8b8] sm:$0xff] }
  0x50   :  { %2141 = vmatprep.subr.bf16.mxu1 %v2140_v46  ;;  %v231_v46 = vld [vmem:[%s4847_s1 + $0x668] sm:$0xff]  ;;  %v1778_v49 = vpack.c.bf16 %v222_v41, %v218_v40  ;;  %v2162_v50 = vpack.c.bf16 %v224_v44, %v220_v42  ;;  %v264_v40 = vld [vmem:[%s4847_s1 + $0x770] sm:$0xff]  ;;  %v273_v44 = vld [vmem:[%s4847_s1 + $0x7b8] sm:$0xff] }
  0x51   :  { %v1780_v51 = vpack.c.bf16 %v231_v46, %v227_v45  ;;  %v267_v41 = vld [vmem:[%s4847_s1 + $0x788] sm:$0xff] }
  0x52   :  { %1759 = vmatpush1.bf16.msra.mxu0 %v1758_v52  ;;  %v226_v52 = vld [vmem:[%s4847_s1 + $0x640] sm:$0xff]  ;;  %v271_v42 = vld [vmem:[%s4847_s1 + $0x7a8] sm:$0xff] }
  0x53   :  { %2143 = vmatpush1.bf16.msra.mxu1 %v2142_v53  ;;  %1761 = vmatprep.subr.bf16.mxu0 %v1760_v54  ;;  %v230_v53 = vld [vmem:[%s4847_s1 + $0x660] sm:$0xff]  ;;  %v228_v54 = vld [vmem:[%s4847_s1 + $0x650] sm:$0xff]  ;;  %v1800_v47 = vpack.c.bf16 %v271_v42, %v267_v41  ;;  %v19_v30 = vld [vmem:[%s4848_s0 + $0x28] sm:$0xff] }
  0x54   :  { %2145 = vmatprep.subr.bf16.mxu1 %v2144_v58  ;;  %v239_v58 = vld [vmem:[%s4847_s1 + $0x6a8] sm:$0xff]  ;;  %v1782_v61 = vpack.c.bf16 %v230_v53, %v226_v52  ;;  %v2166_v62 = vpack.c.bf16 %v232_v56, %v228_v54  ;;  %v272_v52 = vld [vmem:[%s4847_s1 + $0x7b0] sm:$0xff]  ;;  %v281_v56 = vld [vmem:[%s4847_s1 + $0x7f8] sm:$0xff] }
  0x55   :  { %v1784_v63 = vpack.c.bf16 %v239_v58, %v235_v57  ;;  %v275_v53 = vld [vmem:[%s4847_s1 + $0x7c8] sm:$0xff]  ;;  %v309_v41 = vld [vmem:[%s4847_s1 + $0x8d8] sm:$0xff] }
  0x56   :  { %1763 = vmatpush1.bf16.msra.mxu0 %v1762_v0  ;;  %v234_v0 = vld [vmem:[%s4847_s1 + $0x680] sm:$0xff]  ;;  %v279_v54 = vld [vmem:[%s4847_s1 + $0x7e8] sm:$0xff]  ;;  %v313_v42 = vld [vmem:[%s4847_s1 + $0x8f8] sm:$0xff] }
  0x57   :  { %2147 = vmatpush1.bf16.msra.mxu1 %v2146_v1  ;;  %1765 = vmatprep.subr.bf16.mxu0 %v1764_v2  ;;  %v238_v1 = vld [vmem:[%s4847_s1 + $0x6a0] sm:$0xff]  ;;  %v236_v2 = vld [vmem:[%s4847_s1 + $0x690] sm:$0xff]  ;;  %v1804_v59 = vpack.c.bf16 %v279_v54, %v275_v53  ;;  %v317_v53 = vld [vmem:[%s4847_s1 + $0x918] sm:$0xff] }
  0x58   :  { %2149 = vmatprep.subr.bf16.mxu1 %v2148_v6  ;;  %v247_v6 = vld [vmem:[%s4847_s1 + $0x6e8] sm:$0xff]  ;;  %v1786_v9 = vpack.c.bf16 %v238_v1, %v234_v0  ;;  %v2170_v10 = vpack.c.bf16 %v240_v4, %v236_v2  ;;  %v280_v0 = vld [vmem:[%s4847_s1 + $0x7f0] sm:$0xff]  ;;  %v289_v4 = vld [vmem:[%s4847_s1 + $0x838] sm:$0xff] }
  0x59   :  { %v1788_v11 = vpack.c.bf16 %v247_v6, %v243_v5  ;;  %v283_v1 = vld [vmem:[%s4847_s1 + $0x808] sm:$0xff]  ;;  %v321_v54 = vld [vmem:[%s4847_s1 + $0x938] sm:$0xff] }
  0x5a   :  { %1767 = vmatpush1.bf16.msra.mxu0 %v1766_v12  ;;  %v242_v12 = vld [vmem:[%s4847_s1 + $0x6c0] sm:$0xff]  ;;  %v287_v2 = vld [vmem:[%s4847_s1 + $0x828] sm:$0xff] }
  0x5b   :  { %2151 = vmatpush1.bf16.msra.mxu1 %v2150_v14  ;;  %1769 = vmatprep.subr.bf16.mxu0 %v1768_v15  ;;  %v244_v14 = vld [vmem:[%s4847_s1 + $0x6d0] sm:$0xff]  ;;  %v2172_v15 = vpack.c.bf16 %v249_v8, %v245_v7  ;;  %v1790_v21 = vpack.c.bf16 %v246_v13, %v242_v12  ;;  %v1808_v7 = vpack.c.bf16 %v287_v2, %v283_v1  ;;  %v282_v8 = vld [vmem:[%s4847_s1 + $0x800] sm:$0xff]  ;;  %v291_v13 = vld [vmem:[%s4847_s1 + $0x848] sm:$0xff] }
  0x5c   :  { %2153 = vmatprep.subr.bf16.mxu1 %v2152_v19  ;;  %v253_v19 = vld [vmem:[%s4847_s1 + $0x718] sm:$0xff]  ;;  %v2174_v22 = vpack.c.bf16 %v248_v16, %v244_v14  ;;  %v288_v12 = vld [vmem:[%s4847_s1 + $0x830] sm:$0xff]  ;;  %v295_v14 = vld [vmem:[%s4847_s1 + $0x868] sm:$0xff] }
  0x5d   :  { %v297_v16 = vld [vmem:[%s4847_s1 + $0x878] sm:$0xff] }
  0x5e   :  { %1771 = vmatpush1.bf16.msra.mxu0 %v1770_v25  ;;  %v254_v25 = vld [vmem:[%s4847_s1 + $0x720] sm:$0xff]  ;;  %v325_v1 = vld [vmem:[%s4847_s1 + $0x958] sm:$0xff] }
  0x5f   :  { %2155 = vmatpush1.bf16.msra.mxu1 %v2154_v26  ;;  %1773 = vmatprep.subr.bf16.mxu0 %v1772_v27  ;;  %v252_v26 = vld [vmem:[%s4847_s1 + $0x710] sm:$0xff]  ;;  %v2176_v27 = vpack.c.bf16 %v257_v20, %v253_v19  ;;  %v1794_v33 = vpack.c.bf16 %v254_v25, %v250_v24  ;;  %v1812_v20 = vpack.c.bf16 %v295_v14, %v291_v13  ;;  %v329_v2 = vld [vmem:[%s4847_s1 + $0x978] sm:$0xff] }
  0x60   :  { %2157 = vmatprep.subr.bf16.mxu1 %v2156_v31  ;;  %v261_v31 = vld [vmem:[%s4847_s1 + $0x758] sm:$0xff]  ;;  %v2178_v34 = vpack.c.bf16 %v256_v28, %v252_v26  ;;  %v296_v25 = vld [vmem:[%s4847_s1 + $0x870] sm:$0xff]  ;;  %v299_v26 = vld [vmem:[%s4847_s1 + $0x888] sm:$0xff] }
  0x61   :  { %v301_v28 = vld [vmem:[%s4847_s1 + $0x898] sm:$0xff] }
  0x62   :  { %1775 = vmatpush1.bf16.msra.mxu0 %v1774_v37  ;;  %v262_v37 = vld [vmem:[%s4847_s1 + $0x760] sm:$0xff]  ;;  %v333_v13 = vld [vmem:[%s4847_s1 + $0x998] sm:$0xff] }
  0x63   :  { %2159 = vmatpush1.bf16.msra.mxu1 %v2158_v38  ;;  %1777 = vmatprep.subr.bf16.mxu0 %v1776_v39  ;;  %v260_v38 = vld [vmem:[%s4847_s1 + $0x750] sm:$0xff]  ;;  %v2180_v39 = vpack.c.bf16 %v265_v32, %v261_v31  ;;  %v1798_v45 = vpack.c.bf16 %v262_v37, %v258_v36  ;;  %v2200_v37 = vpack.c.bf16 %v305_v29, %v301_v28  ;;  %v337_v14 = vld [vmem:[%s4847_s1 + $0x9b8] sm:$0xff] }
  0x64   :  { %2161 = vmatprep.subr.bf16.mxu1 %v2160_v43  ;;  %v269_v43 = vld [vmem:[%s4847_s1 + $0x798] sm:$0xff]  ;;  %v2182_v46 = vpack.c.bf16 %v264_v40, %v260_v38  ;;  %v300_v36 = vld [vmem:[%s4847_s1 + $0x890] sm:$0xff]  ;;  %v311_v40 = vld [vmem:[%s4847_s1 + $0x8e8] sm:$0xff] }
  0x65   :  { %v304_v38 = vld [vmem:[%s4847_s1 + $0x8b0] sm:$0xff] }
  0x66   :  { %1779 = vmatpush1.bf16.msra.mxu0 %v1778_v49  ;;  %v270_v49 = vld [vmem:[%s4847_s1 + $0x7a0] sm:$0xff] }
  0x67   :  { %2163 = vmatpush1.bf16.msra.mxu1 %v2162_v50  ;;  %1781 = vmatprep.subr.bf16.mxu0 %v1780_v51  ;;  %v268_v50 = vld [vmem:[%s4847_s1 + $0x790] sm:$0xff]  ;;  %v2184_v51 = vpack.c.bf16 %v273_v44, %v269_v43  ;;  %v1802_v57 = vpack.c.bf16 %v270_v49, %v266_v48  ;;  %v2202_v44 = vpack.c.bf16 %v304_v38, %v300_v36  ;;  %v351_v36 = vld [vmem:[%s4847_s1 + $0xa28] sm:$0xff]  ;;  %v353_v38 = vld [vmem:[%s4847_s1 + $0xa38] sm:$0xff] }
  0x68   :  { %2165 = vmatprep.subr.bf16.mxu1 %v2164_v55  ;;  %v277_v55 = vld [vmem:[%s4847_s1 + $0x7d8] sm:$0xff]  ;;  %v2186_v58 = vpack.c.bf16 %v272_v52, %v268_v50  ;;  %v308_v48 = vld [vmem:[%s4847_s1 + $0x8d0] sm:$0xff]  ;;  %v2204_v49 = vpack.c.bf16 %v313_v42, %v309_v41  ;;  %v319_v52 = vld [vmem:[%s4847_s1 + $0x928] sm:$0xff] }
  0x69   :  { %v312_v50 = vld [vmem:[%s4847_s1 + $0x8f0] sm:$0xff]  ;;  %v346_v42 = vld [vmem:[%s4847_s1 + $0xa00] sm:$0xff] }
  0x6a   :  { %1783 = vmatpush1.bf16.msra.mxu0 %v1782_v61  ;;  %v278_v61 = vld [vmem:[%s4847_s1 + $0x7e0] sm:$0xff] }
  0x6b   :  { %2167 = vmatpush1.bf16.msra.mxu1 %v2166_v62  ;;  %1785 = vmatprep.subr.bf16.mxu0 %v1784_v63  ;;  %v276_v62 = vld [vmem:[%s4847_s1 + $0x7d0] sm:$0xff]  ;;  %v2188_v63 = vpack.c.bf16 %v281_v56, %v277_v55  ;;  %v1806_v5 = vpack.c.bf16 %v278_v61, %v274_v60  ;;  %v2206_v56 = vpack.c.bf16 %v312_v50, %v308_v48  ;;  %v359_v48 = vld [vmem:[%s4847_s1 + $0xa68] sm:$0xff]  ;;  %v361_v50 = vld [vmem:[%s4847_s1 + $0xa78] sm:$0xff] }
  0x6c   :  { %2169 = vmatprep.subr.bf16.mxu1 %v2168_v3  ;;  %v285_v3 = vld [vmem:[%s4847_s1 + $0x818] sm:$0xff]  ;;  %v2190_v6 = vpack.c.bf16 %v280_v0, %v276_v62  ;;  %v316_v60 = vld [vmem:[%s4847_s1 + $0x910] sm:$0xff]  ;;  %v2208_v61 = vpack.c.bf16 %v321_v54, %v317_v53  ;;  %v327_v0 = vld [vmem:[%s4847_s1 + $0x968] sm:$0xff] }
  0x6d   :  { %v320_v62 = vld [vmem:[%s4847_s1 + $0x930] sm:$0xff]  ;;  %v354_v54 = vld [vmem:[%s4847_s1 + $0xa40] sm:$0xff] }
  0x6e   :  { %1787 = vmatpush1.bf16.msra.mxu0 %v1786_v9  ;;  %v286_v9 = vld [vmem:[%s4847_s1 + $0x820] sm:$0xff] }
  0x6f   :  { %2171 = vmatpush1.bf16.msra.mxu1 %v2170_v10  ;;  %1789 = vmatprep.subr.bf16.mxu0 %v1788_v11  ;;  %v284_v10 = vld [vmem:[%s4847_s1 + $0x810] sm:$0xff]  ;;  %v2192_v11 = vpack.c.bf16 %v289_v4, %v285_v3  ;;  %v1810_v18 = vpack.c.bf16 %v286_v9, %v282_v8  ;;  %v2210_v4 = vpack.c.bf16 %v320_v62, %v316_v60  ;;  %v367_v60 = vld [vmem:[%s4847_s1 + $0xaa8] sm:$0xff]  ;;  %v369_v62 = vld [vmem:[%s4847_s1 + $0xab8] sm:$0xff] }
  0x70   :  { %2173 = vmatprep.subr.bf16.mxu1 %v2172_v15  ;;  %v293_v15 = vld [vmem:[%s4847_s1 + $0x858] sm:$0xff]  ;;  %v2194_v19 = vpack.c.bf16 %v288_v12, %v284_v10  ;;  %v324_v8 = vld [vmem:[%s4847_s1 + $0x950] sm:$0xff]  ;;  %v2212_v9 = vpack.c.bf16 %v329_v2, %v325_v1  ;;  %v335_v12 = vld [vmem:[%s4847_s1 + $0x9a8] sm:$0xff] }
  0x71   :  { %v2196_v24 = vpack.c.bf16 %v297_v16, %v293_v15  ;;  %v328_v10 = vld [vmem:[%s4847_s1 + $0x970] sm:$0xff]  ;;  %v362_v2 = vld [vmem:[%s4847_s1 + $0xa80] sm:$0xff] }
  0x72   :  { %1791 = vmatpush1.bf16.msra.mxu0 %v1790_v21  ;;  %v290_v21 = vld [vmem:[%s4847_s1 + $0x840] sm:$0xff]  ;;  %v2214_v16 = vpack.c.bf16 %v328_v10, %v324_v8  ;;  %v375_v8 = vld [vmem:[%s4847_s1 + $0xae8] sm:$0xff]  ;;  %v377_v10 = vld [vmem:[%s4847_s1 + $0xaf8] sm:$0xff] }
  0x73   :  { %2175 = vmatpush1.bf16.msra.mxu1 %v2174_v22  ;;  %1793 = vmatprep.subr.bf16.mxu0 %v1792_v23  ;;  %v294_v22 = vld [vmem:[%s4847_s1 + $0x860] sm:$0xff]  ;;  %v292_v23 = vld [vmem:[%s4847_s1 + $0x850] sm:$0xff] }
  0x74   :  { %2177 = vmatprep.subr.bf16.mxu1 %v2176_v27  ;;  %v303_v27 = vld [vmem:[%s4847_s1 + $0x8a8] sm:$0xff]  ;;  %v1814_v31 = vpack.c.bf16 %v294_v22, %v290_v21  ;;  %v2198_v32 = vpack.c.bf16 %v296_v25, %v292_v23  ;;  %v2216_v21 = vpack.c.bf16 %v337_v14, %v333_v13  ;;  %v336_v22 = vld [vmem:[%s4847_s1 + $0x9b0] sm:$0xff]  ;;  %v341_v25 = vld [vmem:[%s4847_s1 + $0x9d8] sm:$0xff] }
  0x75   :  { %v339_v23 = vld [vmem:[%s4847_s1 + $0x9c8] sm:$0xff]  ;;  %v370_v14 = vld [vmem:[%s4847_s1 + $0xac0] sm:$0xff] }
  0x76   :  { %1795 = vmatpush1.bf16.msra.mxu0 %v1794_v33  ;;  %v1816_v33 = vpack.c.bf16 %v303_v27, %v299_v26  ;;  %v345_v26 = vld [vmem:[%s4847_s1 + $0x9f8] sm:$0xff] }
  0x77   :  { %2179 = vmatpush1.bf16.msra.mxu1 %v2178_v34  ;;  %1797 = vmatprep.subr.bf16.mxu0 %v1796_v35  ;;  %v298_v34 = vld [vmem:[%s4847_s1 + $0x880] sm:$0xff] }
  0x78   :  { %2181 = vmatprep.subr.bf16.mxu1 %v2180_v39  ;;  %v302_v35 = vld [vmem:[%s4847_s1 + $0x8a0] sm:$0xff]  ;;  %v307_v39 = vld [vmem:[%s4847_s1 + $0x8c8] sm:$0xff] }
  0x79   :  { %v1818_v43 = vpack.c.bf16 %v302_v35, %v298_v34  ;;  %v344_v34 = vld [vmem:[%s4847_s1 + $0x9f0] sm:$0xff]  ;;  %v347_v35 = vld [vmem:[%s4847_s1 + $0xa08] sm:$0xff] }
  0x7a   :  { %1799 = vmatpush1.bf16.msra.mxu0 %v1798_v45  ;;  %v1820_v45 = vpack.c.bf16 %v311_v40, %v307_v39  ;;  %v1840_v41 = vpack.c.bf16 %v351_v36, %v347_v35 }
  0x7b   :  { %2183 = vmatpush1.bf16.msra.mxu1 %v2182_v46  ;;  %1801 = vmatprep.subr.bf16.mxu0 %v1800_v47  ;;  %v306_v46 = vld [vmem:[%s4847_s1 + $0x8c0] sm:$0xff] }
  0x7c   :  { %2185 = vmatprep.subr.bf16.mxu1 %v2184_v51  ;;  %v310_v47 = vld [vmem:[%s4847_s1 + $0x8e0] sm:$0xff]  ;;  %v315_v51 = vld [vmem:[%s4847_s1 + $0x908] sm:$0xff] }
  0x7d   :  { %v1822_v55 = vpack.c.bf16 %v310_v47, %v306_v46  ;;  %v352_v46 = vld [vmem:[%s4847_s1 + $0xa30] sm:$0xff]  ;;  %v355_v47 = vld [vmem:[%s4847_s1 + $0xa48] sm:$0xff] }
  0x7e   :  { %1803 = vmatpush1.bf16.msra.mxu0 %v1802_v57  ;;  %v1824_v57 = vpack.c.bf16 %v319_v52, %v315_v51  ;;  %v1844_v53 = vpack.c.bf16 %v359_v48, %v355_v47 }
  0x7f   :  { %2187 = vmatpush1.bf16.msra.mxu1 %v2186_v58  ;;  %1805 = vmatprep.subr.bf16.mxu0 %v1804_v59  ;;  %v314_v58 = vld [vmem:[%s4847_s1 + $0x900] sm:$0xff] }
  0x80   :  { %2189 = vmatprep.subr.bf16.mxu1 %v2188_v63  ;;  %v318_v59 = vld [vmem:[%s4847_s1 + $0x920] sm:$0xff]  ;;  %v323_v63 = vld [vmem:[%s4847_s1 + $0x948] sm:$0xff] }
  0x81   :  { %v1826_v3 = vpack.c.bf16 %v318_v59, %v314_v58  ;;  %v360_v58 = vld [vmem:[%s4847_s1 + $0xa70] sm:$0xff]  ;;  %v363_v59 = vld [vmem:[%s4847_s1 + $0xa88] sm:$0xff] }
  0x82   :  { %1807 = vmatpush1.bf16.msra.mxu0 %v1806_v5  ;;  %v1828_v5 = vpack.c.bf16 %v327_v0, %v323_v63  ;;  %v1848_v1 = vpack.c.bf16 %v367_v60, %v363_v59 }
  0x83   :  { %2191 = vmatpush1.bf16.msra.mxu1 %v2190_v6  ;;  %1809 = vmatprep.subr.bf16.mxu0 %v1808_v7  ;;  %v322_v6 = vld [vmem:[%s4847_s1 + $0x940] sm:$0xff] }
  0x84   :  { %2193 = vmatprep.subr.bf16.mxu1 %v2192_v11  ;;  %v326_v7 = vld [vmem:[%s4847_s1 + $0x960] sm:$0xff]  ;;  %v331_v11 = vld [vmem:[%s4847_s1 + $0x988] sm:$0xff] }
  0x85   :  { %952 = vmatmul.mubr.f32.vlgmr.msra.gmra.mrb[0].mxu0 %v16_v17  ;;  %v1830_v15 = vpack.c.bf16 %v326_v7, %v322_v6  ;;  %v368_v6 = vld [vmem:[%s4847_s1 + $0xab0] sm:$0xff]  ;;  %v371_v7 = vld [vmem:[%s4847_s1 + $0xac8] sm:$0xff] }
  0x86   :  { %1811 = vmatpush1.bf16.msra.mxu0 %v1810_v18  ;;  %1378 = vmatmul.mubr.f32.vlgmr.msra.gmra.mrb[0].mxu1 %v16_v17  ;;  %v1832_v17 = vpack.c.bf16 %v335_v12, %v331_v11  ;;  %v330_v18 = vld [vmem:[%s4847_s1 + $0x980] sm:$0xff]  ;;  %v1852_v13 = vpack.c.bf16 %v375_v8, %v371_v7 }
  0x87   :  { %2195 = vmatpush1.bf16.msra.mxu1 %v2194_v19  ;;  %1813 = vmatprep.subr.bf16.mxu0 %v1812_v20  ;;  %v334_v19 = vld [vmem:[%s4847_s1 + $0x9a0] sm:$0xff]  ;;  %v332_v20 = vld [vmem:[%s4847_s1 + $0x990] sm:$0xff] }
  0x88   :  { %2197 = vmatprep.subr.bf16.mxu1 %v2196_v24  ;;  %1022 = vmatprep.mubr.f32.mxu0 %v19_v30  ;;  %v343_v24 = vld [vmem:[%s4847_s1 + $0x9e8] sm:$0xff]  ;;  %v1834_v27 = vpack.c.bf16 %v334_v19, %v330_v18  ;;  %v2218_v28 = vpack.c.bf16 %v336_v22, %v332_v20  ;;  %v376_v18 = vld [vmem:[%s4847_s1 + $0xaf0] sm:$0xff]  ;;  %v385_v22 = vld [vmem:[%s4847_s1 + $0xb38] sm:$0xff] }
  0x89   :  { %1448 = vmatprep.mubr.f32.mxu1 %v19_v30  ;;  %v1836_v29 = vpack.c.bf16 %v343_v24, %v339_v23  ;;  %v338_v30 = vld [vmem:[%s4847_s1 + $0x9c0] sm:$0xff]  ;;  %v379_v19 = vld [vmem:[%s4847_s1 + $0xb08] sm:$0xff] }
  0x8a   :  { %1815 = vmatpush1.bf16.msra.mxu0 %v1814_v31  ;;  %v342_v31 = vld [vmem:[%s4847_s1 + $0x9e0] sm:$0xff]  ;;  %v383_v20 = vld [vmem:[%s4847_s1 + $0xb28] sm:$0xff] }
  0x8b   :  { %2199 = vmatpush1.bf16.msra.mxu1 %v2198_v32  ;;  %1817 = vmatprep.subr.bf16.mxu0 %v1816_v33  ;;  %v340_v32 = vld [vmem:[%s4847_s1 + $0x9d0] sm:$0xff]  ;;  %v2220_v33 = vpack.c.bf16 %v345_v26, %v341_v25  ;;  %v1838_v39 = vpack.c.bf16 %v342_v31, %v338_v30  ;;  %v1856_v25 = vpack.c.bf16 %v383_v20, %v379_v19  ;;  %v378_v26 = vld [vmem:[%s4847_s1 + $0xb00] sm:$0xff]  ;;  %v387_v31 = vld [vmem:[%s4847_s1 + $0xb48] sm:$0xff] }
  0x8c   :  { %2201 = vmatprep.subr.bf16.mxu1 %v2200_v37  ;;  %v349_v37 = vld [vmem:[%s4847_s1 + $0xa18] sm:$0xff]  ;;  %v2222_v40 = vpack.c.bf16 %v344_v34, %v340_v32  ;;  %v384_v30 = vld [vmem:[%s4847_s1 + $0xb30] sm:$0xff]  ;;  %v391_v32 = vld [vmem:[%s4847_s1 + $0xb68] sm:$0xff] }
  0x8d   :  { %v393_v34 = vld [vmem:[%s4847_s1 + $0xb78] sm:$0xff]  ;;  %v18_v19 = vld [vmem:[%s4848_s0 + $0x20] sm:$0xff] }
  0x8e   :  { %1819 = vmatpush1.bf16.msra.mxu0 %v1818_v43  ;;  %v350_v43 = vld [vmem:[%s4847_s1 + $0xa20] sm:$0xff] }
  0x8f   :  { %2203 = vmatpush1.bf16.msra.mxu1 %v2202_v44  ;;  %1821 = vmatprep.subr.bf16.mxu0 %v1820_v45  ;;  %v348_v44 = vld [vmem:[%s4847_s1 + $0xa10] sm:$0xff]  ;;  %v2224_v45 = vpack.c.bf16 %v353_v38, %v349_v37  ;;  %v1842_v51 = vpack.c.bf16 %v350_v43, %v346_v42  ;;  %v1860_v37 = vpack.c.bf16 %v391_v32, %v387_v31  ;;  %v386_v38 = vld [vmem:[%s4847_s1 + $0xb40] sm:$0xff]  ;;  %v395_v43 = vld [vmem:[%s4847_s1 + $0xb88] sm:$0xff] }
  0x90   :  { %2205 = vmatprep.subr.bf16.mxu1 %v2204_v49  ;;  %v357_v49 = vld [vmem:[%s4847_s1 + $0xa58] sm:$0xff]  ;;  %v2226_v52 = vpack.c.bf16 %v352_v46, %v348_v44  ;;  %v392_v42 = vld [vmem:[%s4847_s1 + $0xb70] sm:$0xff]  ;;  %v399_v44 = vld [vmem:[%s4847_s1 + $0xba8] sm:$0xff] }
  0x91   :  { %v401_v46 = vld [vmem:[%s4847_s1 + $0xbb8] sm:$0xff] }
  0x92   :  { %1823 = vmatpush1.bf16.msra.mxu0 %v1822_v55  ;;  %v358_v55 = vld [vmem:[%s4847_s1 + $0xa60] sm:$0xff]  ;;  %v433_v31 = vld [vmem:[%s4847_s1 + $0xcb8] sm:$0xff] }
  0x93   :  { %2207 = vmatpush1.bf16.msra.mxu1 %v2206_v56  ;;  %1825 = vmatprep.subr.bf16.mxu0 %v1824_v57  ;;  %v356_v56 = vld [vmem:[%s4847_s1 + $0xa50] sm:$0xff]  ;;  %v2228_v57 = vpack.c.bf16 %v361_v50, %v357_v49  ;;  %v1846_v63 = vpack.c.bf16 %v358_v55, %v354_v54  ;;  %v1864_v49 = vpack.c.bf16 %v399_v44, %v395_v43  ;;  %v394_v50 = vld [vmem:[%s4847_s1 + $0xb80] sm:$0xff]  ;;  %v403_v55 = vld [vmem:[%s4847_s1 + $0xbc8] sm:$0xff] }
  0x94   :  { %2209 = vmatprep.subr.bf16.mxu1 %v2208_v61  ;;  %v365_v61 = vld [vmem:[%s4847_s1 + $0xa98] sm:$0xff]  ;;  %v2230_v0 = vpack.c.bf16 %v360_v58, %v356_v56  ;;  %v400_v54 = vld [vmem:[%s4847_s1 + $0xbb0] sm:$0xff]  ;;  %v407_v56 = vld [vmem:[%s4847_s1 + $0xbe8] sm:$0xff] }
  0x95   :  { %v409_v58 = vld [vmem:[%s4847_s1 + $0xbf8] sm:$0xff] }
  0x96   :  { %1827 = vmatpush1.bf16.msra.mxu0 %v1826_v3  ;;  %v366_v3 = vld [vmem:[%s4847_s1 + $0xaa0] sm:$0xff]  ;;  %v21_v32 = vld [vmem:[%s4848_s0 + $0x38] sm:$0xff] }
  0x97   :  { %2211 = vmatpush1.bf16.msra.mxu1 %v2210_v4  ;;  %1829 = vmatprep.subr.bf16.mxu0 %v1828_v5  ;;  %v364_v4 = vld [vmem:[%s4847_s1 + $0xa90] sm:$0xff]  ;;  %v2232_v5 = vpack.c.bf16 %v369_v62, %v365_v61  ;;  %v1850_v11 = vpack.c.bf16 %v366_v3, %v362_v2  ;;  %v1868_v61 = vpack.c.bf16 %v407_v56, %v403_v55  ;;  %v402_v62 = vld [vmem:[%s4847_s1 + $0xbc0] sm:$0xff]  ;;  %v411_v3 = vld [vmem:[%s4847_s1 + $0xc08] sm:$0xff] }
  0x98   :  { %2213 = vmatprep.subr.bf16.mxu1 %v2212_v9  ;;  %v373_v9 = vld [vmem:[%s4847_s1 + $0xad8] sm:$0xff]  ;;  %v2234_v12 = vpack.c.bf16 %v368_v6, %v364_v4  ;;  %v408_v2 = vld [vmem:[%s4847_s1 + $0xbf0] sm:$0xff]  ;;  %v415_v4 = vld [vmem:[%s4847_s1 + $0xc28] sm:$0xff] }
  0x99   :  { %v417_v6 = vld [vmem:[%s4847_s1 + $0xc38] sm:$0xff] }
  0x9a   :  { %1831 = vmatpush1.bf16.msra.mxu0 %v1830_v15  ;;  %v374_v15 = vld [vmem:[%s4847_s1 + $0xae0] sm:$0xff]  ;;  %v437_v43 = vld [vmem:[%s4847_s1 + $0xcd8] sm:$0xff] }
  0x9b   :  { %2215 = vmatpush1.bf16.msra.mxu1 %v2214_v16  ;;  %1833 = vmatprep.subr.bf16.mxu0 %v1832_v17  ;;  %v372_v16 = vld [vmem:[%s4847_s1 + $0xad0] sm:$0xff]  ;;  %v2236_v17 = vpack.c.bf16 %v377_v10, %v373_v9  ;;  %v1854_v23 = vpack.c.bf16 %v374_v15, %v370_v14  ;;  %v1872_v9 = vpack.c.bf16 %v415_v4, %v411_v3  ;;  %v410_v10 = vld [vmem:[%s4847_s1 + $0xc00] sm:$0xff]  ;;  %v419_v15 = vld [vmem:[%s4847_s1 + $0xc48] sm:$0xff] }
  0x9c   :  { %2217 = vmatprep.subr.bf16.mxu1 %v2216_v21  ;;  %v381_v21 = vld [vmem:[%s4847_s1 + $0xb18] sm:$0xff]  ;;  %v2238_v24 = vpack.c.bf16 %v376_v18, %v372_v16  ;;  %v416_v14 = vld [vmem:[%s4847_s1 + $0xc30] sm:$0xff]  ;;  %v423_v16 = vld [vmem:[%s4847_s1 + $0xc68] sm:$0xff] }
  0x9d   :  { %v425_v18 = vld [vmem:[%s4847_s1 + $0xc78] sm:$0xff] }
  0x9e   :  { %1835 = vmatpush1.bf16.msra.mxu0 %v1834_v27  ;;  %v382_v27 = vld [vmem:[%s4847_s1 + $0xb20] sm:$0xff]  ;;  %v441_v44 = vld [vmem:[%s4847_s1 + $0xcf8] sm:$0xff] }
  0x9f   :  { %2219 = vmatpush1.bf16.msra.mxu1 %v2218_v28  ;;  %1837 = vmatprep.subr.bf16.mxu0 %v1836_v29  ;;  %v380_v28 = vld [vmem:[%s4847_s1 + $0xb10] sm:$0xff]  ;;  %v2240_v29 = vpack.c.bf16 %v385_v22, %v381_v21  ;;  %v1858_v35 = vpack.c.bf16 %v382_v27, %v378_v26  ;;  %v1876_v22 = vpack.c.bf16 %v423_v16, %v419_v15  ;;  %v445_v55 = vld [vmem:[%s4847_s1 + $0xd18] sm:$0xff] }
  0xa0   :  { %2221 = vmatprep.subr.bf16.mxu1 %v2220_v33  ;;  %v389_v33 = vld [vmem:[%s4847_s1 + $0xb58] sm:$0xff]  ;;  %v2242_v36 = vpack.c.bf16 %v384_v30, %v380_v28  ;;  %v424_v27 = vld [vmem:[%s4847_s1 + $0xc70] sm:$0xff]  ;;  %v427_v28 = vld [vmem:[%s4847_s1 + $0xc88] sm:$0xff] }
  0xa1   :  { %v429_v30 = vld [vmem:[%s4847_s1 + $0xc98] sm:$0xff] }
  0xa2   :  { %1839 = vmatpush1.bf16.msra.mxu0 %v1838_v39  ;;  %v390_v39 = vld [vmem:[%s4847_s1 + $0xb60] sm:$0xff]  ;;  %v449_v56 = vld [vmem:[%s4847_s1 + $0xd38] sm:$0xff] }
  0xa3   :  { %2223 = vmatpush1.bf16.msra.mxu1 %v2222_v40  ;;  %1841 = vmatprep.subr.bf16.mxu0 %v1840_v41  ;;  %v388_v40 = vld [vmem:[%s4847_s1 + $0xb50] sm:$0xff]  ;;  %v2244_v41 = vpack.c.bf16 %v393_v34, %v389_v33  ;;  %v1862_v47 = vpack.c.bf16 %v390_v39, %v386_v38  ;;  %v2264_v39 = vpack.c.bf16 %v433_v31, %v429_v30  ;;  %v453_v3 = vld [vmem:[%s4847_s1 + $0xd58] sm:$0xff] }
  0xa4   :  { %2225 = vmatprep.subr.bf16.mxu1 %v2224_v45  ;;  %v397_v45 = vld [vmem:[%s4847_s1 + $0xb98] sm:$0xff]  ;;  %v2246_v48 = vpack.c.bf16 %v392_v42, %v388_v40  ;;  %v428_v38 = vld [vmem:[%s4847_s1 + $0xc90] sm:$0xff]  ;;  %v439_v42 = vld [vmem:[%s4847_s1 + $0xce8] sm:$0xff] }
  0xa5   :  { %v432_v40 = vld [vmem:[%s4847_s1 + $0xcb0] sm:$0xff]  ;;  %v457_v4 = vld [vmem:[%s4847_s1 + $0xd78] sm:$0xff] }
  0xa6   :  { %1843 = vmatpush1.bf16.msra.mxu0 %v1842_v51  ;;  %v398_v51 = vld [vmem:[%s4847_s1 + $0xba0] sm:$0xff]  ;;  %v461_v15 = vld [vmem:[%s4847_s1 + $0xd98] sm:$0xff] }
  0xa7   :  { %2227 = vmatpush1.bf16.msra.mxu1 %v2226_v52  ;;  %1845 = vmatprep.subr.bf16.mxu0 %v1844_v53  ;;  %v396_v52 = vld [vmem:[%s4847_s1 + $0xb90] sm:$0xff]  ;;  %v2248_v53 = vpack.c.bf16 %v401_v46, %v397_v45  ;;  %v1866_v59 = vpack.c.bf16 %v398_v51, %v394_v50  ;;  %v2266_v46 = vpack.c.bf16 %v432_v40, %v428_v38  ;;  %v465_v16 = vld [vmem:[%s4847_s1 + $0xdb8] sm:$0xff]  ;;  %v479_v38 = vld [vmem:[%s4847_s1 + $0xe28] sm:$0xff] }
  0xa8   :  { %2229 = vmatprep.subr.bf16.mxu1 %v2228_v57  ;;  %v405_v57 = vld [vmem:[%s4847_s1 + $0xbd8] sm:$0xff]  ;;  %v2250_v60 = vpack.c.bf16 %v400_v54, %v396_v52  ;;  %v436_v50 = vld [vmem:[%s4847_s1 + $0xcd0] sm:$0xff]  ;;  %v2268_v51 = vpack.c.bf16 %v441_v44, %v437_v43  ;;  %v447_v54 = vld [vmem:[%s4847_s1 + $0xd28] sm:$0xff] }
  0xa9   :  { %v440_v52 = vld [vmem:[%s4847_s1 + $0xcf0] sm:$0xff]  ;;  %v481_v40 = vld [vmem:[%s4847_s1 + $0xe38] sm:$0xff]  ;;  %v474_v44 = vld [vmem:[%s4847_s1 + $0xe00] sm:$0xff] }
  0xaa   :  { %1847 = vmatpush1.bf16.msra.mxu0 %v1846_v63  ;;  %v406_v63 = vld [vmem:[%s4847_s1 + $0xbe0] sm:$0xff] }
  0xab   :  { %2231 = vmatpush1.bf16.msra.mxu1 %v2230_v0  ;;  %1849 = vmatprep.subr.bf16.mxu0 %v1848_v1  ;;  %v404_v0 = vld [vmem:[%s4847_s1 + $0xbd0] sm:$0xff]  ;;  %v2252_v1 = vpack.c.bf16 %v409_v58, %v405_v57  ;;  %v1870_v7 = vpack.c.bf16 %v406_v63, %v402_v62  ;;  %v2270_v58 = vpack.c.bf16 %v440_v52, %v436_v50  ;;  %v487_v50 = vld [vmem:[%s4847_s1 + $0xe68] sm:$0xff]  ;;  %v489_v52 = vld [vmem:[%s4847_s1 + $0xe78] sm:$0xff] }
  0xac   :  { %2233 = vmatprep.subr.bf16.mxu1 %v2232_v5  ;;  %v413_v5 = vld [vmem:[%s4847_s1 + $0xc18] sm:$0xff]  ;;  %v2254_v8 = vpack.c.bf16 %v408_v2, %v404_v0  ;;  %v444_v62 = vld [vmem:[%s4847_s1 + $0xd10] sm:$0xff]  ;;  %v2272_v63 = vpack.c.bf16 %v449_v56, %v445_v55  ;;  %v455_v2 = vld [vmem:[%s4847_s1 + $0xd68] sm:$0xff] }
  0xad   :  { %v448_v0 = vld [vmem:[%s4847_s1 + $0xd30] sm:$0xff]  ;;  %v482_v56 = vld [vmem:[%s4847_s1 + $0xe40] sm:$0xff] }
  0xae   :  { %1851 = vmatpush1.bf16.msra.mxu0 %v1850_v11  ;;  %v414_v11 = vld [vmem:[%s4847_s1 + $0xc20] sm:$0xff] }
  0xaf   :  { %2235 = vmatpush1.bf16.msra.mxu1 %v2234_v12  ;;  %1853 = vmatprep.subr.bf16.mxu0 %v1852_v13  ;;  %v412_v12 = vld [vmem:[%s4847_s1 + $0xc10] sm:$0xff]  ;;  %v2256_v13 = vpack.c.bf16 %v417_v6, %v413_v5  ;;  %v1874_v20 = vpack.c.bf16 %v414_v11, %v410_v10  ;;  %v2274_v6 = vpack.c.bf16 %v448_v0, %v444_v62  ;;  %v495_v62 = vld [vmem:[%s4847_s1 + $0xea8] sm:$0xff]  ;;  %v497_v0 = vld [vmem:[%s4847_s1 + $0xeb8] sm:$0xff] }
  0xb0   :  { %2237 = vmatprep.subr.bf16.mxu1 %v2236_v17  ;;  %v421_v17 = vld [vmem:[%s4847_s1 + $0xc58] sm:$0xff]  ;;  %v2258_v21 = vpack.c.bf16 %v416_v14, %v412_v12  ;;  %v452_v10 = vld [vmem:[%s4847_s1 + $0xd50] sm:$0xff]  ;;  %v2276_v11 = vpack.c.bf16 %v457_v4, %v453_v3  ;;  %v463_v14 = vld [vmem:[%s4847_s1 + $0xda8] sm:$0xff] }
  0xb1   :  { %v2260_v26 = vpack.c.bf16 %v425_v18, %v421_v17  ;;  %v456_v12 = vld [vmem:[%s4847_s1 + $0xd70] sm:$0xff]  ;;  %v490_v4 = vld [vmem:[%s4847_s1 + $0xe80] sm:$0xff] }
  0xb2   :  { %1855 = vmatpush1.bf16.msra.mxu0 %v1854_v23  ;;  %v418_v23 = vld [vmem:[%s4847_s1 + $0xc40] sm:$0xff]  ;;  %v2278_v18 = vpack.c.bf16 %v456_v12, %v452_v10  ;;  %v503_v10 = vld [vmem:[%s4847_s1 + $0xee8] sm:$0xff]  ;;  %v505_v12 = vld [vmem:[%s4847_s1 + $0xef8] sm:$0xff] }
  0xb3   :  { %2239 = vmatpush1.bf16.msra.mxu1 %v2238_v24  ;;  %1857 = vmatprep.subr.bf16.mxu0 %v1856_v25  ;;  %v422_v24 = vld [vmem:[%s4847_s1 + $0xc60] sm:$0xff]  ;;  %v420_v25 = vld [vmem:[%s4847_s1 + $0xc50] sm:$0xff] }
  0xb4   :  { %2241 = vmatprep.subr.bf16.mxu1 %v2240_v29  ;;  %v431_v29 = vld [vmem:[%s4847_s1 + $0xca8] sm:$0xff]  ;;  %v1878_v33 = vpack.c.bf16 %v422_v24, %v418_v23  ;;  %v2262_v34 = vpack.c.bf16 %v424_v27, %v420_v25  ;;  %v2280_v23 = vpack.c.bf16 %v465_v16, %v461_v15  ;;  %v464_v24 = vld [vmem:[%s4847_s1 + $0xdb0] sm:$0xff]  ;;  %v469_v27 = vld [vmem:[%s4847_s1 + $0xdd8] sm:$0xff] }
  0xb5   :  { %v467_v25 = vld [vmem:[%s4847_s1 + $0xdc8] sm:$0xff]  ;;  %v498_v16 = vld [vmem:[%s4847_s1 + $0xec0] sm:$0xff] }
  0xb6   :  { %1859 = vmatpush1.bf16.msra.mxu0 %v1858_v35  ;;  %v1880_v35 = vpack.c.bf16 %v431_v29, %v427_v28  ;;  %v473_v28 = vld [vmem:[%s4847_s1 + $0xdf8] sm:$0xff] }
  0xb7   :  { %2243 = vmatpush1.bf16.msra.mxu1 %v2242_v36  ;;  %1861 = vmatprep.subr.bf16.mxu0 %v1860_v37  ;;  %v426_v36 = vld [vmem:[%s4847_s1 + $0xc80] sm:$0xff] }
  0xb8   :  { %2245 = vmatprep.subr.bf16.mxu1 %v2244_v41  ;;  %v430_v37 = vld [vmem:[%s4847_s1 + $0xca0] sm:$0xff]  ;;  %v435_v41 = vld [vmem:[%s4847_s1 + $0xcc8] sm:$0xff] }
  0xb9   :  { %v1882_v45 = vpack.c.bf16 %v430_v37, %v426_v36  ;;  %v472_v36 = vld [vmem:[%s4847_s1 + $0xdf0] sm:$0xff]  ;;  %v475_v37 = vld [vmem:[%s4847_s1 + $0xe08] sm:$0xff] }
  0xba   :  { %1863 = vmatpush1.bf16.msra.mxu0 %v1862_v47  ;;  %v1884_v47 = vpack.c.bf16 %v439_v42, %v435_v41  ;;  %v1904_v43 = vpack.c.bf16 %v479_v38, %v475_v37 }
  0xbb   :  { %2247 = vmatpush1.bf16.msra.mxu1 %v2246_v48  ;;  %1865 = vmatprep.subr.bf16.mxu0 %v1864_v49  ;;  %v434_v48 = vld [vmem:[%s4847_s1 + $0xcc0] sm:$0xff] }
  0xbc   :  { %2249 = vmatprep.subr.bf16.mxu1 %v2248_v53  ;;  %v438_v49 = vld [vmem:[%s4847_s1 + $0xce0] sm:$0xff]  ;;  %v443_v53 = vld [vmem:[%s4847_s1 + $0xd08] sm:$0xff] }
  0xbd   :  { %v1886_v57 = vpack.c.bf16 %v438_v49, %v434_v48  ;;  %v480_v48 = vld [vmem:[%s4847_s1 + $0xe30] sm:$0xff]  ;;  %v483_v49 = vld [vmem:[%s4847_s1 + $0xe48] sm:$0xff] }
  0xbe   :  { %1867 = vmatpush1.bf16.msra.mxu0 %v1866_v59  ;;  %v1888_v59 = vpack.c.bf16 %v447_v54, %v443_v53  ;;  %v1908_v55 = vpack.c.bf16 %v487_v50, %v483_v49 }
  0xbf   :  { %2251 = vmatpush1.bf16.msra.mxu1 %v2250_v60  ;;  %1869 = vmatprep.subr.bf16.mxu0 %v1868_v61  ;;  %v442_v60 = vld [vmem:[%s4847_s1 + $0xd00] sm:$0xff] }
  0xc0   :  { %2253 = vmatprep.subr.bf16.mxu1 %v2252_v1  ;;  %v446_v61 = vld [vmem:[%s4847_s1 + $0xd20] sm:$0xff]  ;;  %v451_v1 = vld [vmem:[%s4847_s1 + $0xd48] sm:$0xff] }
  0xc1   :  { %v1890_v5 = vpack.c.bf16 %v446_v61, %v442_v60  ;;  %v488_v60 = vld [vmem:[%s4847_s1 + $0xe70] sm:$0xff]  ;;  %v491_v61 = vld [vmem:[%s4847_s1 + $0xe88] sm:$0xff] }
  0xc2   :  { %1871 = vmatpush1.bf16.msra.mxu0 %v1870_v7  ;;  %v1892_v7 = vpack.c.bf16 %v455_v2, %v451_v1  ;;  %v1912_v3 = vpack.c.bf16 %v495_v62, %v491_v61 }
  0xc3   :  { %2255 = vmatpush1.bf16.msra.mxu1 %v2254_v8  ;;  %1873 = vmatprep.subr.bf16.mxu0 %v1872_v9  ;;  %v450_v8 = vld [vmem:[%s4847_s1 + $0xd40] sm:$0xff] }
  0xc4   :  { %2257 = vmatprep.subr.bf16.mxu1 %v2256_v13  ;;  %v454_v9 = vld [vmem:[%s4847_s1 + $0xd60] sm:$0xff]  ;;  %v459_v13 = vld [vmem:[%s4847_s1 + $0xd88] sm:$0xff] }
  0xc5   :  { %1023 = vmatmul.mubr.f32.vlgmr.msra.gmra.mrb[0].mxu0 %v18_v19  ;;  %v1894_v17 = vpack.c.bf16 %v454_v9, %v450_v8  ;;  %v496_v8 = vld [vmem:[%s4847_s1 + $0xeb0] sm:$0xff]  ;;  %v499_v9 = vld [vmem:[%s4847_s1 + $0xec8] sm:$0xff] }
  0xc6   :  { %1875 = vmatpush1.bf16.msra.mxu0 %v1874_v20  ;;  %1449 = vmatmul.mubr.f32.vlgmr.msra.gmra.mrb[0].mxu1 %v18_v19  ;;  %v1896_v19 = vpack.c.bf16 %v463_v14, %v459_v13  ;;  %v458_v20 = vld [vmem:[%s4847_s1 + $0xd80] sm:$0xff]  ;;  %v1916_v15 = vpack.c.bf16 %v503_v10, %v499_v9 }
  0xc7   :  { %2259 = vmatpush1.bf16.msra.mxu1 %v2258_v21  ;;  %1877 = vmatprep.subr.bf16.mxu0 %v1876_v22  ;;  %v462_v21 = vld [vmem:[%s4847_s1 + $0xda0] sm:$0xff]  ;;  %v460_v22 = vld [vmem:[%s4847_s1 + $0xd90] sm:$0xff] }
  0xc8   :  { %2261 = vmatprep.subr.bf16.mxu1 %v2260_v26  ;;  %1093 = vmatprep.mubr.f32.mxu0 %v21_v32  ;;  %v471_v26 = vld [vmem:[%s4847_s1 + $0xde8] sm:$0xff]  ;;  %v1898_v29 = vpack.c.bf16 %v462_v21, %v458_v20  ;;  %v2282_v30 = vpack.c.bf16 %v464_v24, %v460_v22  ;;  %v504_v20 = vld [vmem:[%s4847_s1 + $0xef0] sm:$0xff]  ;;  %v513_v24 = vld [vmem:[%s4847_s1 + $0xf38] sm:$0xff] }
  0xc9   :  { %1519 = vmatprep.mubr.f32.mxu1 %v21_v32  ;;  %v1900_v31 = vpack.c.bf16 %v471_v26, %v467_v25  ;;  %v466_v32 = vld [vmem:[%s4847_s1 + $0xdc0] sm:$0xff]  ;;  %v507_v21 = vld [vmem:[%s4847_s1 + $0xf08] sm:$0xff] }
  0xca   :  { %1879 = vmatpush1.bf16.msra.mxu0 %v1878_v33  ;;  %v470_v33 = vld [vmem:[%s4847_s1 + $0xde0] sm:$0xff]  ;;  %v511_v22 = vld [vmem:[%s4847_s1 + $0xf28] sm:$0xff] }
  0xcb   :  { %2263 = vmatpush1.bf16.msra.mxu1 %v2262_v34  ;;  %1881 = vmatprep.subr.bf16.mxu0 %v1880_v35  ;;  %v468_v34 = vld [vmem:[%s4847_s1 + $0xdd0] sm:$0xff]  ;;  %v2284_v35 = vpack.c.bf16 %v473_v28, %v469_v27  ;;  %v1902_v41 = vpack.c.bf16 %v470_v33, %v466_v32  ;;  %v1920_v27 = vpack.c.bf16 %v511_v22, %v507_v21  ;;  %v506_v28 = vld [vmem:[%s4847_s1 + $0xf00] sm:$0xff]  ;;  %v515_v33 = vld [vmem:[%s4847_s1 + $0xf48] sm:$0xff] }
  0xcc   :  { %2265 = vmatprep.subr.bf16.mxu1 %v2264_v39  ;;  %v477_v39 = vld [vmem:[%s4847_s1 + $0xe18] sm:$0xff]  ;;  %v2286_v42 = vpack.c.bf16 %v472_v36, %v468_v34  ;;  %v512_v32 = vld [vmem:[%s4847_s1 + $0xf30] sm:$0xff]  ;;  %v519_v34 = vld [vmem:[%s4847_s1 + $0xf68] sm:$0xff] }
  0xcd   :  { %v521_v36 = vld [vmem:[%s4847_s1 + $0xf78] sm:$0xff]  ;;  %v20_v21 = vld [vmem:[%s4848_s0 + $0x30] sm:$0xff] }
  0xce   :  { %1883 = vmatpush1.bf16.msra.mxu0 %v1882_v45  ;;  %v478_v45 = vld [vmem:[%s4847_s1 + $0xe20] sm:$0xff] }
  0xcf   :  { %2267 = vmatpush1.bf16.msra.mxu1 %v2266_v46  ;;  %1885 = vmatprep.subr.bf16.mxu0 %v1884_v47  ;;  %v476_v46 = vld [vmem:[%s4847_s1 + $0xe10] sm:$0xff]  ;;  %v2288_v47 = vpack.c.bf16 %v481_v40, %v477_v39  ;;  %v1906_v53 = vpack.c.bf16 %v478_v45, %v474_v44  ;;  %v1924_v39 = vpack.c.bf16 %v519_v34, %v515_v33  ;;  %v514_v40 = vld [vmem:[%s4847_s1 + $0xf40] sm:$0xff]  ;;  %v523_v45 = vld [vmem:[%s4847_s1 + $0xf88] sm:$0xff] }
  0xd0   :  { %2269 = vmatprep.subr.bf16.mxu1 %v2268_v51  ;;  %v485_v51 = vld [vmem:[%s4847_s1 + $0xe58] sm:$0xff]  ;;  %v2290_v54 = vpack.c.bf16 %v480_v48, %v476_v46  ;;  %v520_v44 = vld [vmem:[%s4847_s1 + $0xf70] sm:$0xff]  ;;  %v527_v46 = vld [vmem:[%s4847_s1 + $0xfa8] sm:$0xff] }
  0xd1   :  { %v529_v48 = vld [vmem:[%s4847_s1 + $0xfb8] sm:$0xff]  ;;  %v23_v34 = vld [vmem:[%s4848_s0 + $0x48] sm:$0xff] }
  0xd2   :  { %1887 = vmatpush1.bf16.msra.mxu0 %v1886_v57  ;;  %v486_v57 = vld [vmem:[%s4847_s1 + $0xe60] sm:$0xff]  ;;  %v561_v33 = vld [vmem:[%s4847_s1 + $0x10b8] sm:$0xff] }
  0xd3   :  { %2271 = vmatpush1.bf16.msra.mxu1 %v2270_v58  ;;  %1889 = vmatprep.subr.bf16.mxu0 %v1888_v59  ;;  %v484_v58 = vld [vmem:[%s4847_s1 + $0xe50] sm:$0xff]  ;;  %v2292_v59 = vpack.c.bf16 %v489_v52, %v485_v51  ;;  %v1910_v1 = vpack.c.bf16 %v486_v57, %v482_v56  ;;  %v1928_v51 = vpack.c.bf16 %v527_v46, %v523_v45  ;;  %v522_v52 = vld [vmem:[%s4847_s1 + $0xf80] sm:$0xff]  ;;  %v531_v57 = vld [vmem:[%s4847_s1 + $0xfc8] sm:$0xff] }
  0xd4   :  { %2273 = vmatprep.subr.bf16.mxu1 %v2272_v63  ;;  %v493_v63 = vld [vmem:[%s4847_s1 + $0xe98] sm:$0xff]  ;;  %v2294_v2 = vpack.c.bf16 %v488_v60, %v484_v58  ;;  %v528_v56 = vld [vmem:[%s4847_s1 + $0xfb0] sm:$0xff]  ;;  %v535_v58 = vld [vmem:[%s4847_s1 + $0xfe8] sm:$0xff] }
  0xd5   :  { %v537_v60 = vld [vmem:[%s4847_s1 + $0xff8] sm:$0xff] }
  0xd6   :  { %1891 = vmatpush1.bf16.msra.mxu0 %v1890_v5  ;;  %v494_v5 = vld [vmem:[%s4847_s1 + $0xea0] sm:$0xff]  ;;  %v565_v45 = vld [vmem:[%s4847_s1 + $0x10d8] sm:$0xff] }
  0xd7   :  { %2275 = vmatpush1.bf16.msra.mxu1 %v2274_v6  ;;  %1893 = vmatprep.subr.bf16.mxu0 %v1892_v7  ;;  %v492_v6 = vld [vmem:[%s4847_s1 + $0xe90] sm:$0xff]  ;;  %v2296_v7 = vpack.c.bf16 %v497_v0, %v493_v63  ;;  %v1914_v13 = vpack.c.bf16 %v494_v5, %v490_v4  ;;  %v1932_v63 = vpack.c.bf16 %v535_v58, %v531_v57  ;;  %v530_v0 = vld [vmem:[%s4847_s1 + $0xfc0] sm:$0xff]  ;;  %v539_v5 = vld [vmem:[%s4847_s1 + $0x1008] sm:$0xff] }
  0xd8   :  { %2277 = vmatprep.subr.bf16.mxu1 %v2276_v11  ;;  %v501_v11 = vld [vmem:[%s4847_s1 + $0xed8] sm:$0xff]  ;;  %v2298_v14 = vpack.c.bf16 %v496_v8, %v492_v6  ;;  %v536_v4 = vld [vmem:[%s4847_s1 + $0xff0] sm:$0xff]  ;;  %v543_v6 = vld [vmem:[%s4847_s1 + $0x1028] sm:$0xff] }
  0xd9   :  { %v545_v8 = vld [vmem:[%s4847_s1 + $0x1038] sm:$0xff] }
  0xda   :  { %1895 = vmatpush1.bf16.msra.mxu0 %v1894_v17  ;;  %v502_v17 = vld [vmem:[%s4847_s1 + $0xee0] sm:$0xff]  ;;  %v569_v46 = vld [vmem:[%s4847_s1 + $0x10f8] sm:$0xff] }
  0xdb   :  { %2279 = vmatpush1.bf16.msra.mxu1 %v2278_v18  ;;  %1897 = vmatprep.subr.bf16.mxu0 %v1896_v19  ;;  %v500_v18 = vld [vmem:[%s4847_s1 + $0xed0] sm:$0xff]  ;;  %v2300_v19 = vpack.c.bf16 %v505_v12, %v501_v11  ;;  %v1918_v25 = vpack.c.bf16 %v502_v17, %v498_v16  ;;  %v1936_v11 = vpack.c.bf16 %v543_v6, %v539_v5  ;;  %v538_v12 = vld [vmem:[%s4847_s1 + $0x1000] sm:$0xff]  ;;  %v547_v17 = vld [vmem:[%s4847_s1 + $0x1048] sm:$0xff] }
  0xdc   :  { %2281 = vmatprep.subr.bf16.mxu1 %v2280_v23  ;;  %v509_v23 = vld [vmem:[%s4847_s1 + $0xf18] sm:$0xff]  ;;  %v2302_v26 = vpack.c.bf16 %v504_v20, %v500_v18  ;;  %v544_v16 = vld [vmem:[%s4847_s1 + $0x1030] sm:$0xff]  ;;  %v551_v18 = vld [vmem:[%s4847_s1 + $0x1068] sm:$0xff] }
  0xdd   :  { %v553_v20 = vld [vmem:[%s4847_s1 + $0x1078] sm:$0xff] }
  0xde   :  { %1899 = vmatpush1.bf16.msra.mxu0 %v1898_v29  ;;  %v510_v29 = vld [vmem:[%s4847_s1 + $0xf20] sm:$0xff]  ;;  %v573_v57 = vld [vmem:[%s4847_s1 + $0x1118] sm:$0xff] }
  0xdf   :  { %2283 = vmatpush1.bf16.msra.mxu1 %v2282_v30  ;;  %1901 = vmatprep.subr.bf16.mxu0 %v1900_v31  ;;  %v508_v30 = vld [vmem:[%s4847_s1 + $0xf10] sm:$0xff]  ;;  %v2304_v31 = vpack.c.bf16 %v513_v24, %v509_v23  ;;  %v1922_v37 = vpack.c.bf16 %v510_v29, %v506_v28  ;;  %v1940_v24 = vpack.c.bf16 %v551_v18, %v547_v17  ;;  %v577_v58 = vld [vmem:[%s4847_s1 + $0x1138] sm:$0xff] }
  0xe0   :  { %2285 = vmatprep.subr.bf16.mxu1 %v2284_v35  ;;  %v517_v35 = vld [vmem:[%s4847_s1 + $0xf58] sm:$0xff]  ;;  %v2306_v38 = vpack.c.bf16 %v512_v32, %v508_v30  ;;  %v552_v29 = vld [vmem:[%s4847_s1 + $0x1070] sm:$0xff]  ;;  %v555_v30 = vld [vmem:[%s4847_s1 + $0x1088] sm:$0xff] }
  0xe1   :  { %v557_v32 = vld [vmem:[%s4847_s1 + $0x1098] sm:$0xff] }
  0xe2   :  { %1903 = vmatpush1.bf16.msra.mxu0 %v1902_v41  ;;  %v518_v41 = vld [vmem:[%s4847_s1 + $0xf60] sm:$0xff]  ;;  %v581_v5 = vld [vmem:[%s4847_s1 + $0x1158] sm:$0xff] }
  0xe3   :  { %2287 = vmatpush1.bf16.msra.mxu1 %v2286_v42  ;;  %1905 = vmatprep.subr.bf16.mxu0 %v1904_v43  ;;  %v516_v42 = vld [vmem:[%s4847_s1 + $0xf50] sm:$0xff]  ;;  %v2308_v43 = vpack.c.bf16 %v521_v36, %v517_v35  ;;  %v1926_v49 = vpack.c.bf16 %v518_v41, %v514_v40  ;;  %v2328_v41 = vpack.c.bf16 %v561_v33, %v557_v32  ;;  %v585_v6 = vld [vmem:[%s4847_s1 + $0x1178] sm:$0xff] }
  0xe4   :  { %2289 = vmatprep.subr.bf16.mxu1 %v2288_v47  ;;  %v525_v47 = vld [vmem:[%s4847_s1 + $0xf98] sm:$0xff]  ;;  %v2310_v50 = vpack.c.bf16 %v520_v44, %v516_v42  ;;  %v556_v40 = vld [vmem:[%s4847_s1 + $0x1090] sm:$0xff]  ;;  %v567_v44 = vld [vmem:[%s4847_s1 + $0x10e8] sm:$0xff] }
  0xe5   :  { %v560_v42 = vld [vmem:[%s4847_s1 + $0x10b0] sm:$0xff]  ;;  %v589_v17 = vld [vmem:[%s4847_s1 + $0x1198] sm:$0xff] }
  0xe6   :  { %1907 = vmatpush1.bf16.msra.mxu0 %v1906_v53  ;;  %v526_v53 = vld [vmem:[%s4847_s1 + $0xfa0] sm:$0xff]  ;;  %v593_v18 = vld [vmem:[%s4847_s1 + $0x11b8] sm:$0xff] }
  0xe7   :  { %2291 = vmatpush1.bf16.msra.mxu1 %v2290_v54  ;;  %1909 = vmatprep.subr.bf16.mxu0 %v1908_v55  ;;  %v524_v54 = vld [vmem:[%s4847_s1 + $0xf90] sm:$0xff]  ;;  %v2312_v55 = vpack.c.bf16 %v529_v48, %v525_v47  ;;  %v1930_v61 = vpack.c.bf16 %v526_v53, %v522_v52  ;;  %v2330_v48 = vpack.c.bf16 %v560_v42, %v556_v40  ;;  %v607_v40 = vld [vmem:[%s4847_s1 + $0x1228] sm:$0xff]  ;;  %v609_v42 = vld [vmem:[%s4847_s1 + $0x1238] sm:$0xff] }
  0xe8   :  { %2293 = vmatprep.subr.bf16.mxu1 %v2292_v59  ;;  %v533_v59 = vld [vmem:[%s4847_s1 + $0xfd8] sm:$0xff]  ;;  %v2314_v62 = vpack.c.bf16 %v528_v56, %v524_v54  ;;  %v564_v52 = vld [vmem:[%s4847_s1 + $0x10d0] sm:$0xff]  ;;  %v2332_v53 = vpack.c.bf16 %v569_v46, %v565_v45  ;;  %v575_v56 = vld [vmem:[%s4847_s1 + $0x1128] sm:$0xff] }
  0xe9   :  { %v568_v54 = vld [vmem:[%s4847_s1 + $0x10f0] sm:$0xff]  ;;  %v602_v46 = vld [vmem:[%s4847_s1 + $0x1200] sm:$0xff] }
  0xea   :  { %1911 = vmatpush1.bf16.msra.mxu0 %v1910_v1  ;;  %v534_v1 = vld [vmem:[%s4847_s1 + $0xfe0] sm:$0xff] }
  0xeb   :  { %2295 = vmatpush1.bf16.msra.mxu1 %v2294_v2  ;;  %1913 = vmatprep.subr.bf16.mxu0 %v1912_v3  ;;  %v532_v2 = vld [vmem:[%s4847_s1 + $0xfd0] sm:$0xff]  ;;  %v2316_v3 = vpack.c.bf16 %v537_v60, %v533_v59  ;;  %v1934_v9 = vpack.c.bf16 %v534_v1, %v530_v0  ;;  %v2334_v60 = vpack.c.bf16 %v568_v54, %v564_v52  ;;  %v615_v52 = vld [vmem:[%s4847_s1 + $0x1268] sm:$0xff]  ;;  %v617_v54 = vld [vmem:[%s4847_s1 + $0x1278] sm:$0xff] }
  0xec   :  { %2297 = vmatprep.subr.bf16.mxu1 %v2296_v7  ;;  %v541_v7 = vld [vmem:[%s4847_s1 + $0x1018] sm:$0xff]  ;;  %v2318_v10 = vpack.c.bf16 %v536_v4, %v532_v2  ;;  %v572_v0 = vld [vmem:[%s4847_s1 + $0x1110] sm:$0xff]  ;;  %v2336_v1 = vpack.c.bf16 %v577_v58, %v573_v57  ;;  %v583_v4 = vld [vmem:[%s4847_s1 + $0x1168] sm:$0xff] }
  0xed   :  { %v576_v2 = vld [vmem:[%s4847_s1 + $0x1130] sm:$0xff]  ;;  %v610_v58 = vld [vmem:[%s4847_s1 + $0x1240] sm:$0xff] }
  0xee   :  { %1915 = vmatpush1.bf16.msra.mxu0 %v1914_v13  ;;  %v542_v13 = vld [vmem:[%s4847_s1 + $0x1020] sm:$0xff] }
  0xef   :  { %2299 = vmatpush1.bf16.msra.mxu1 %v2298_v14  ;;  %1917 = vmatprep.subr.bf16.mxu0 %v1916_v15  ;;  %v540_v14 = vld [vmem:[%s4847_s1 + $0x1010] sm:$0xff]  ;;  %v2320_v15 = vpack.c.bf16 %v545_v8, %v541_v7  ;;  %v1938_v22 = vpack.c.bf16 %v542_v13, %v538_v12  ;;  %v2338_v8 = vpack.c.bf16 %v576_v2, %v572_v0  ;;  %v623_v0 = vld [vmem:[%s4847_s1 + $0x12a8] sm:$0xff]  ;;  %v625_v2 = vld [vmem:[%s4847_s1 + $0x12b8] sm:$0xff] }
  0xf0   :  { %2301 = vmatprep.subr.bf16.mxu1 %v2300_v19  ;;  %v549_v19 = vld [vmem:[%s4847_s1 + $0x1058] sm:$0xff]  ;;  %v2322_v23 = vpack.c.bf16 %v544_v16, %v540_v14  ;;  %v580_v12 = vld [vmem:[%s4847_s1 + $0x1150] sm:$0xff]  ;;  %v2340_v13 = vpack.c.bf16 %v585_v6, %v581_v5  ;;  %v591_v16 = vld [vmem:[%s4847_s1 + $0x11a8] sm:$0xff] }
  0xf1   :  { %v2324_v28 = vpack.c.bf16 %v553_v20, %v549_v19  ;;  %v584_v14 = vld [vmem:[%s4847_s1 + $0x1170] sm:$0xff]  ;;  %v618_v6 = vld [vmem:[%s4847_s1 + $0x1280] sm:$0xff] }
  0xf2   :  { %1919 = vmatpush1.bf16.msra.mxu0 %v1918_v25  ;;  %v546_v25 = vld [vmem:[%s4847_s1 + $0x1040] sm:$0xff]  ;;  %v2342_v20 = vpack.c.bf16 %v584_v14, %v580_v12  ;;  %v631_v12 = vld [vmem:[%s4847_s1 + $0x12e8] sm:$0xff]  ;;  %v633_v14 = vld [vmem:[%s4847_s1 + $0x12f8] sm:$0xff] }
  0xf3   :  { %2303 = vmatpush1.bf16.msra.mxu1 %v2302_v26  ;;  %1921 = vmatprep.subr.bf16.mxu0 %v1920_v27  ;;  %v550_v26 = vld [vmem:[%s4847_s1 + $0x1060] sm:$0xff]  ;;  %v548_v27 = vld [vmem:[%s4847_s1 + $0x1050] sm:$0xff] }
  0xf4   :  { %2305 = vmatprep.subr.bf16.mxu1 %v2304_v31  ;;  %v559_v31 = vld [vmem:[%s4847_s1 + $0x10a8] sm:$0xff]  ;;  %v1942_v35 = vpack.c.bf16 %v550_v26, %v546_v25  ;;  %v2326_v36 = vpack.c.bf16 %v552_v29, %v548_v27  ;;  %v2344_v25 = vpack.c.bf16 %v593_v18, %v589_v17  ;;  %v592_v26 = vld [vmem:[%s4847_s1 + $0x11b0] sm:$0xff]  ;;  %v597_v29 = vld [vmem:[%s4847_s1 + $0x11d8] sm:$0xff] }
  0xf5   :  { %v595_v27 = vld [vmem:[%s4847_s1 + $0x11c8] sm:$0xff]  ;;  %v626_v18 = vld [vmem:[%s4847_s1 + $0x12c0] sm:$0xff] }
  0xf6   :  { %1923 = vmatpush1.bf16.msra.mxu0 %v1922_v37  ;;  %v1944_v37 = vpack.c.bf16 %v559_v31, %v555_v30  ;;  %v601_v30 = vld [vmem:[%s4847_s1 + $0x11f8] sm:$0xff] }
  0xf7   :  { %2307 = vmatpush1.bf16.msra.mxu1 %v2306_v38  ;;  %1925 = vmatprep.subr.bf16.mxu0 %v1924_v39  ;;  %v554_v38 = vld [vmem:[%s4847_s1 + $0x1080] sm:$0xff] }
  0xf8   :  { %2309 = vmatprep.subr.bf16.mxu1 %v2308_v43  ;;  %v558_v39 = vld [vmem:[%s4847_s1 + $0x10a0] sm:$0xff]  ;;  %v563_v43 = vld [vmem:[%s4847_s1 + $0x10c8] sm:$0xff] }
  0xf9   :  { %v1946_v47 = vpack.c.bf16 %v558_v39, %v554_v38  ;;  %v600_v38 = vld [vmem:[%s4847_s1 + $0x11f0] sm:$0xff]  ;;  %v603_v39 = vld [vmem:[%s4847_s1 + $0x1208] sm:$0xff] }
  0xfa   :  { %1927 = vmatpush1.bf16.msra.mxu0 %v1926_v49  ;;  %v1948_v49 = vpack.c.bf16 %v567_v44, %v563_v43  ;;  %v1968_v45 = vpack.c.bf16 %v607_v40, %v603_v39 }
  0xfb   :  { %2311 = vmatpush1.bf16.msra.mxu1 %v2310_v50  ;;  %1929 = vmatprep.subr.bf16.mxu0 %v1928_v51  ;;  %v562_v50 = vld [vmem:[%s4847_s1 + $0x10c0] sm:$0xff] }
  0xfc   :  { %2313 = vmatprep.subr.bf16.mxu1 %v2312_v55  ;;  %v566_v51 = vld [vmem:[%s4847_s1 + $0x10e0] sm:$0xff]  ;;  %v571_v55 = vld [vmem:[%s4847_s1 + $0x1108] sm:$0xff] }
  0xfd   :  { %v1950_v59 = vpack.c.bf16 %v566_v51, %v562_v50  ;;  %v608_v50 = vld [vmem:[%s4847_s1 + $0x1230] sm:$0xff]  ;;  %v611_v51 = vld [vmem:[%s4847_s1 + $0x1248] sm:$0xff] }
  0xfe   :  { %1931 = vmatpush1.bf16.msra.mxu0 %v1930_v61  ;;  %v1952_v61 = vpack.c.bf16 %v575_v56, %v571_v55  ;;  %v1972_v57 = vpack.c.bf16 %v615_v52, %v611_v51 }
  0xff   :  { %2315 = vmatpush1.bf16.msra.mxu1 %v2314_v62  ;;  %1933 = vmatprep.subr.bf16.mxu0 %v1932_v63  ;;  %v570_v62 = vld [vmem:[%s4847_s1 + $0x1100] sm:$0xff] }
 0x100   :  { %2317 = vmatprep.subr.bf16.mxu1 %v2316_v3  ;;  %v574_v63 = vld [vmem:[%s4847_s1 + $0x1120] sm:$0xff]  ;;  %v579_v3 = vld [vmem:[%s4847_s1 + $0x1148] sm:$0xff] }
 0x101   :  { %v1954_v7 = vpack.c.bf16 %v574_v63, %v570_v62  ;;  %v616_v62 = vld [vmem:[%s4847_s1 + $0x1270] sm:$0xff]  ;;  %v619_v63 = vld [vmem:[%s4847_s1 + $0x1288] sm:$0xff] }
 0x102   :  { %1935 = vmatpush1.bf16.msra.mxu0 %v1934_v9  ;;  %v1956_v9 = vpack.c.bf16 %v583_v4, %v579_v3  ;;  %v1976_v5 = vpack.c.bf16 %v623_v0, %v619_v63 }
 0x103   :  { %2319 = vmatpush1.bf16.msra.mxu1 %v2318_v10  ;;  %1937 = vmatprep.subr.bf16.mxu0 %v1936_v11  ;;  %v578_v10 = vld [vmem:[%s4847_s1 + $0x1140] sm:$0xff] }
 0x104   :  { %2321 = vmatprep.subr.bf16.mxu1 %v2320_v15  ;;  %v582_v11 = vld [vmem:[%s4847_s1 + $0x1160] sm:$0xff]  ;;  %v587_v15 = vld [vmem:[%s4847_s1 + $0x1188] sm:$0xff] }
 0x105   :  { %1094 = vmatmul.mubr.f32.vlgmr.msra.gmra.mrb[0].mxu0 %v20_v21  ;;  %v1958_v19 = vpack.c.bf16 %v582_v11, %v578_v10  ;;  %v624_v10 = vld [vmem:[%s4847_s1 + $0x12b0] sm:$0xff]  ;;  %v627_v11 = vld [vmem:[%s4847_s1 + $0x12c8] sm:$0xff] }
 0x106   :  { %1939 = vmatpush1.bf16.msra.mxu0 %v1938_v22  ;;  %1520 = vmatmul.mubr.f32.vlgmr.msra.gmra.mrb[0].mxu1 %v20_v21  ;;  %v1960_v21 = vpack.c.bf16 %v591_v16, %v587_v15  ;;  %v586_v22 = vld [vmem:[%s4847_s1 + $0x1180] sm:$0xff]  ;;  %v1980_v17 = vpack.c.bf16 %v631_v12, %v627_v11 }
 0x107   :  { %2323 = vmatpush1.bf16.msra.mxu1 %v2322_v23  ;;  %1941 = vmatprep.subr.bf16.mxu0 %v1940_v24  ;;  %v590_v23 = vld [vmem:[%s4847_s1 + $0x11a0] sm:$0xff]  ;;  %v588_v24 = vld [vmem:[%s4847_s1 + $0x1190] sm:$0xff] }
 0x108   :  { %2325 = vmatprep.subr.bf16.mxu1 %v2324_v28  ;;  %1164 = vmatprep.mubr.f32.mxu0 %v23_v34  ;;  %v599_v28 = vld [vmem:[%s4847_s1 + $0x11e8] sm:$0xff]  ;;  %v1962_v31 = vpack.c.bf16 %v590_v23, %v586_v22  ;;  %v2346_v32 = vpack.c.bf16 %v592_v26, %v588_v24  ;;  %v632_v22 = vld [vmem:[%s4847_s1 + $0x12f0] sm:$0xff]  ;;  %v641_v26 = vld [vmem:[%s4847_s1 + $0x1338] sm:$0xff] }
 0x109   :  { %1590 = vmatprep.mubr.f32.mxu1 %v23_v34  ;;  %v1964_v33 = vpack.c.bf16 %v599_v28, %v595_v27  ;;  %v594_v34 = vld [vmem:[%s4847_s1 + $0x11c0] sm:$0xff]  ;;  %v635_v23 = vld [vmem:[%s4847_s1 + $0x1308] sm:$0xff] }
 0x10a   :  { %1943 = vmatpush1.bf16.msra.mxu0 %v1942_v35  ;;  %v598_v35 = vld [vmem:[%s4847_s1 + $0x11e0] sm:$0xff]  ;;  %v639_v24 = vld [vmem:[%s4847_s1 + $0x1328] sm:$0xff] }
 0x10b   :  { %2327 = vmatpush1.bf16.msra.mxu1 %v2326_v36  ;;  %1945 = vmatprep.subr.bf16.mxu0 %v1944_v37  ;;  %v596_v36 = vld [vmem:[%s4847_s1 + $0x11d0] sm:$0xff]  ;;  %v2348_v37 = vpack.c.bf16 %v601_v30, %v597_v29  ;;  %v1966_v43 = vpack.c.bf16 %v598_v35, %v594_v34  ;;  %v1984_v29 = vpack.c.bf16 %v639_v24, %v635_v23  ;;  %v634_v30 = vld [vmem:[%s4847_s1 + $0x1300] sm:$0xff]  ;;  %v643_v35 = vld [vmem:[%s4847_s1 + $0x1348] sm:$0xff] }
 0x10c   :  { %2329 = vmatprep.subr.bf16.mxu1 %v2328_v41  ;;  %v605_v41 = vld [vmem:[%s4847_s1 + $0x1218] sm:$0xff]  ;;  %v2350_v44 = vpack.c.bf16 %v600_v38, %v596_v36  ;;  %v640_v34 = vld [vmem:[%s4847_s1 + $0x1330] sm:$0xff]  ;;  %v647_v36 = vld [vmem:[%s4847_s1 + $0x1368] sm:$0xff] }
 0x10d   :  { %v649_v38 = vld [vmem:[%s4847_s1 + $0x1378] sm:$0xff]  ;;  %v22_v23 = vld [vmem:[%s4848_s0 + $0x40] sm:$0xff] }
 0x10e   :  { %1947 = vmatpush1.bf16.msra.mxu0 %v1946_v47  ;;  %v606_v47 = vld [vmem:[%s4847_s1 + $0x1220] sm:$0xff] }
 0x10f   :  { %2331 = vmatpush1.bf16.msra.mxu1 %v2330_v48  ;;  %1949 = vmatprep.subr.bf16.mxu0 %v1948_v49  ;;  %v604_v48 = vld [vmem:[%s4847_s1 + $0x1210] sm:$0xff]  ;;  %v2352_v49 = vpack.c.bf16 %v609_v42, %v605_v41  ;;  %v1970_v55 = vpack.c.bf16 %v606_v47, %v602_v46  ;;  %v1988_v41 = vpack.c.bf16 %v647_v36, %v643_v35  ;;  %v642_v42 = vld [vmem:[%s4847_s1 + $0x1340] sm:$0xff]  ;;  %v651_v47 = vld [vmem:[%s4847_s1 + $0x1388] sm:$0xff] }
 0x110   :  { %2333 = vmatprep.subr.bf16.mxu1 %v2332_v53  ;;  %v613_v53 = vld [vmem:[%s4847_s1 + $0x1258] sm:$0xff]  ;;  %v2354_v56 = vpack.c.bf16 %v608_v50, %v604_v48  ;;  %v648_v46 = vld [vmem:[%s4847_s1 + $0x1370] sm:$0xff]  ;;  %v655_v48 = vld [vmem:[%s4847_s1 + $0x13a8] sm:$0xff] }
 0x111   :  { %v657_v50 = vld [vmem:[%s4847_s1 + $0x13b8] sm:$0xff] }
 0x112   :  { %1951 = vmatpush1.bf16.msra.mxu0 %v1950_v59  ;;  %v614_v59 = vld [vmem:[%s4847_s1 + $0x1260] sm:$0xff]  ;;  %v689_v35 = vld [vmem:[%s4847_s1 + $0x14b8] sm:$0xff] }
 0x113   :  { %2335 = vmatpush1.bf16.msra.mxu1 %v2334_v60  ;;  %1953 = vmatprep.subr.bf16.mxu0 %v1952_v61  ;;  %v612_v60 = vld [vmem:[%s4847_s1 + $0x1250] sm:$0xff]  ;;  %v2356_v61 = vpack.c.bf16 %v617_v54, %v613_v53  ;;  %v1974_v3 = vpack.c.bf16 %v614_v59, %v610_v58  ;;  %v1992_v53 = vpack.c.bf16 %v655_v48, %v651_v47  ;;  %v650_v54 = vld [vmem:[%s4847_s1 + $0x1380] sm:$0xff]  ;;  %v659_v59 = vld [vmem:[%s4847_s1 + $0x13c8] sm:$0xff] }
 0x114   :  { %2337 = vmatprep.subr.bf16.mxu1 %v2336_v1  ;;  %v621_v1 = vld [vmem:[%s4847_s1 + $0x1298] sm:$0xff]  ;;  %v2358_v4 = vpack.c.bf16 %v616_v62, %v612_v60  ;;  %v656_v58 = vld [vmem:[%s4847_s1 + $0x13b0] sm:$0xff]  ;;  %v663_v60 = vld [vmem:[%s4847_s1 + $0x13e8] sm:$0xff] }
 0x115   :  { %v665_v62 = vld [vmem:[%s4847_s1 + $0x13f8] sm:$0xff] }
 0x116   :  { %1955 = vmatpush1.bf16.msra.mxu0 %v1954_v7  ;;  %v622_v7 = vld [vmem:[%s4847_s1 + $0x12a0] sm:$0xff]  ;;  %v25_v36 = vld [vmem:[%s4848_s0 + $0x58] sm:$0xff] }
 0x117   :  { %2339 = vmatpush1.bf16.msra.mxu1 %v2338_v8  ;;  %1957 = vmatprep.subr.bf16.mxu0 %v1956_v9  ;;  %v620_v8 = vld [vmem:[%s4847_s1 + $0x1290] sm:$0xff]  ;;  %v2360_v9 = vpack.c.bf16 %v625_v2, %v621_v1  ;;  %v1978_v15 = vpack.c.bf16 %v622_v7, %v618_v6  ;;  %v1996_v1 = vpack.c.bf16 %v663_v60, %v659_v59  ;;  %v658_v2 = vld [vmem:[%s4847_s1 + $0x13c0] sm:$0xff]  ;;  %v667_v7 = vld [vmem:[%s4847_s1 + $0x1408] sm:$0xff] }
 0x118   :  { %2341 = vmatprep.subr.bf16.mxu1 %v2340_v13  ;;  %v629_v13 = vld [vmem:[%s4847_s1 + $0x12d8] sm:$0xff]  ;;  %v2362_v16 = vpack.c.bf16 %v624_v10, %v620_v8  ;;  %v664_v6 = vld [vmem:[%s4847_s1 + $0x13f0] sm:$0xff]  ;;  %v671_v8 = vld [vmem:[%s4847_s1 + $0x1428] sm:$0xff] }
 0x119   :  { %v673_v10 = vld [vmem:[%s4847_s1 + $0x1438] sm:$0xff] }
 0x11a   :  { %1959 = vmatpush1.bf16.msra.mxu0 %v1958_v19  ;;  %v630_v19 = vld [vmem:[%s4847_s1 + $0x12e0] sm:$0xff]  ;;  %v693_v47 = vld [vmem:[%s4847_s1 + $0x14d8] sm:$0xff] }
 0x11b   :  { %2343 = vmatpush1.bf16.msra.mxu1 %v2342_v20  ;;  %1961 = vmatprep.subr.bf16.mxu0 %v1960_v21  ;;  %v628_v20 = vld [vmem:[%s4847_s1 + $0x12d0] sm:$0xff]  ;;  %v2364_v21 = vpack.c.bf16 %v633_v14, %v629_v13  ;;  %v1982_v27 = vpack.c.bf16 %v630_v19, %v626_v18  ;;  %v2000_v13 = vpack.c.bf16 %v671_v8, %v667_v7  ;;  %v666_v14 = vld [vmem:[%s4847_s1 + $0x1400] sm:$0xff]  ;;  %v675_v19 = vld [vmem:[%s4847_s1 + $0x1448] sm:$0xff] }
 0x11c   :  { %2345 = vmatprep.subr.bf16.mxu1 %v2344_v25  ;;  %v637_v25 = vld [vmem:[%s4847_s1 + $0x1318] sm:$0xff]  ;;  %v2366_v28 = vpack.c.bf16 %v632_v22, %v628_v20  ;;  %v672_v18 = vld [vmem:[%s4847_s1 + $0x1430] sm:$0xff]  ;;  %v679_v20 = vld [vmem:[%s4847_s1 + $0x1468] sm:$0xff] }
 0x11d   :  { %v681_v22 = vld [vmem:[%s4847_s1 + $0x1478] sm:$0xff] }
 0x11e   :  { %1963 = vmatpush1.bf16.msra.mxu0 %v1962_v31  ;;  %v638_v31 = vld [vmem:[%s4847_s1 + $0x1320] sm:$0xff]  ;;  %v697_v48 = vld [vmem:[%s4847_s1 + $0x14f8] sm:$0xff] }
 0x11f   :  { %2347 = vmatpush1.bf16.msra.mxu1 %v2346_v32  ;;  %1965 = vmatprep.subr.bf16.mxu0 %v1964_v33  ;;  %v636_v32 = vld [vmem:[%s4847_s1 + $0x1310] sm:$0xff]  ;;  %v2368_v33 = vpack.c.bf16 %v641_v26, %v637_v25  ;;  %v1986_v39 = vpack.c.bf16 %v638_v31, %v634_v30  ;;  %v2004_v26 = vpack.c.bf16 %v679_v20, %v675_v19  ;;  %v701_v59 = vld [vmem:[%s4847_s1 + $0x1518] sm:$0xff] }
 0x120   :  { %2349 = vmatprep.subr.bf16.mxu1 %v2348_v37  ;;  %v645_v37 = vld [vmem:[%s4847_s1 + $0x1358] sm:$0xff]  ;;  %v2370_v40 = vpack.c.bf16 %v640_v34, %v636_v32  ;;  %v680_v31 = vld [vmem:[%s4847_s1 + $0x1470] sm:$0xff]  ;;  %v683_v32 = vld [vmem:[%s4847_s1 + $0x1488] sm:$0xff] }
 0x121   :  { %v685_v34 = vld [vmem:[%s4847_s1 + $0x1498] sm:$0xff] }
 0x122   :  { %1967 = vmatpush1.bf16.msra.mxu0 %v1966_v43  ;;  %v646_v43 = vld [vmem:[%s4847_s1 + $0x1360] sm:$0xff]  ;;  %v705_v60 = vld [vmem:[%s4847_s1 + $0x1538] sm:$0xff] }
 0x123   :  { %2351 = vmatpush1.bf16.msra.mxu1 %v2350_v44  ;;  %1969 = vmatprep.subr.bf16.mxu0 %v1968_v45  ;;  %v644_v44 = vld [vmem:[%s4847_s1 + $0x1350] sm:$0xff]  ;;  %v2372_v45 = vpack.c.bf16 %v649_v38, %v645_v37  ;;  %v1990_v51 = vpack.c.bf16 %v646_v43, %v642_v42  ;;  %v2392_v43 = vpack.c.bf16 %v689_v35, %v685_v34  ;;  %v709_v7 = vld [vmem:[%s4847_s1 + $0x1558] sm:$0xff] }
 0x124   :  { %2353 = vmatprep.subr.bf16.mxu1 %v2352_v49  ;;  %v653_v49 = vld [vmem:[%s4847_s1 + $0x1398] sm:$0xff]  ;;  %v2374_v52 = vpack.c.bf16 %v648_v46, %v644_v44  ;;  %v684_v42 = vld [vmem:[%s4847_s1 + $0x1490] sm:$0xff]  ;;  %v695_v46 = vld [vmem:[%s4847_s1 + $0x14e8] sm:$0xff] }
 0x125   :  { %v688_v44 = vld [vmem:[%s4847_s1 + $0x14b0] sm:$0xff]  ;;  %v713_v8 = vld [vmem:[%s4847_s1 + $0x1578] sm:$0xff] }
 0x126   :  { %1971 = vmatpush1.bf16.msra.mxu0 %v1970_v55  ;;  %v654_v55 = vld [vmem:[%s4847_s1 + $0x13a0] sm:$0xff]  ;;  %v717_v19 = vld [vmem:[%s4847_s1 + $0x1598] sm:$0xff] }
 0x127   :  { %2355 = vmatpush1.bf16.msra.mxu1 %v2354_v56  ;;  %1973 = vmatprep.subr.bf16.mxu0 %v1972_v57  ;;  %v652_v56 = vld [vmem:[%s4847_s1 + $0x1390] sm:$0xff]  ;;  %v2376_v57 = vpack.c.bf16 %v657_v50, %v653_v49  ;;  %v1994_v63 = vpack.c.bf16 %v654_v55, %v650_v54  ;;  %v2394_v50 = vpack.c.bf16 %v688_v44, %v684_v42  ;;  %v721_v20 = vld [vmem:[%s4847_s1 + $0x15b8] sm:$0xff]  ;;  %v735_v42 = vld [vmem:[%s4847_s1 + $0x1628] sm:$0xff] }
 0x128   :  { %2357 = vmatprep.subr.bf16.mxu1 %v2356_v61  ;;  %v661_v61 = vld [vmem:[%s4847_s1 + $0x13d8] sm:$0xff]  ;;  %v2378_v0 = vpack.c.bf16 %v656_v58, %v652_v56  ;;  %v692_v54 = vld [vmem:[%s4847_s1 + $0x14d0] sm:$0xff]  ;;  %v2396_v55 = vpack.c.bf16 %v697_v48, %v693_v47  ;;  %v703_v58 = vld [vmem:[%s4847_s1 + $0x1528] sm:$0xff] }
 0x129   :  { %v696_v56 = vld [vmem:[%s4847_s1 + $0x14f0] sm:$0xff]  ;;  %v737_v44 = vld [vmem:[%s4847_s1 + $0x1638] sm:$0xff]  ;;  %v730_v48 = vld [vmem:[%s4847_s1 + $0x1600] sm:$0xff] }
 0x12a   :  { %1975 = vmatpush1.bf16.msra.mxu0 %v1974_v3  ;;  %v662_v3 = vld [vmem:[%s4847_s1 + $0x13e0] sm:$0xff] }
 0x12b   :  { %2359 = vmatpush1.bf16.msra.mxu1 %v2358_v4  ;;  %1977 = vmatprep.subr.bf16.mxu0 %v1976_v5  ;;  %v660_v4 = vld [vmem:[%s4847_s1 + $0x13d0] sm:$0xff]  ;;  %v2380_v5 = vpack.c.bf16 %v665_v62, %v661_v61  ;;  %v1998_v11 = vpack.c.bf16 %v662_v3, %v658_v2  ;;  %v2398_v62 = vpack.c.bf16 %v696_v56, %v692_v54  ;;  %v743_v54 = vld [vmem:[%s4847_s1 + $0x1668] sm:$0xff]  ;;  %v745_v56 = vld [vmem:[%s4847_s1 + $0x1678] sm:$0xff] }
 0x12c   :  { %2361 = vmatprep.subr.bf16.mxu1 %v2360_v9  ;;  %v669_v9 = vld [vmem:[%s4847_s1 + $0x1418] sm:$0xff]  ;;  %v2382_v12 = vpack.c.bf16 %v664_v6, %v660_v4  ;;  %v700_v2 = vld [vmem:[%s4847_s1 + $0x1510] sm:$0xff]  ;;  %v2400_v3 = vpack.c.bf16 %v705_v60, %v701_v59  ;;  %v711_v6 = vld [vmem:[%s4847_s1 + $0x1568] sm:$0xff] }
 0x12d   :  { %v704_v4 = vld [vmem:[%s4847_s1 + $0x1530] sm:$0xff]  ;;  %v738_v60 = vld [vmem:[%s4847_s1 + $0x1640] sm:$0xff] }
 0x12e   :  { %1979 = vmatpush1.bf16.msra.mxu0 %v1978_v15  ;;  %v670_v15 = vld [vmem:[%s4847_s1 + $0x1420] sm:$0xff] }
 0x12f   :  { %2363 = vmatpush1.bf16.msra.mxu1 %v2362_v16  ;;  %1981 = vmatprep.subr.bf16.mxu0 %v1980_v17  ;;  %v668_v16 = vld [vmem:[%s4847_s1 + $0x1410] sm:$0xff]  ;;  %v2384_v17 = vpack.c.bf16 %v673_v10, %v669_v9  ;;  %v2002_v24 = vpack.c.bf16 %v670_v15, %v666_v14  ;;  %v2402_v10 = vpack.c.bf16 %v704_v4, %v700_v2  ;;  %v751_v2 = vld [vmem:[%s4847_s1 + $0x16a8] sm:$0xff]  ;;  %v753_v4 = vld [vmem:[%s4847_s1 + $0x16b8] sm:$0xff] }
 0x130   :  { %2365 = vmatprep.subr.bf16.mxu1 %v2364_v21  ;;  %v677_v21 = vld [vmem:[%s4847_s1 + $0x1458] sm:$0xff]  ;;  %v2386_v25 = vpack.c.bf16 %v672_v18, %v668_v16  ;;  %v708_v14 = vld [vmem:[%s4847_s1 + $0x1550] sm:$0xff]  ;;  %v2404_v15 = vpack.c.bf16 %v713_v8, %v709_v7  ;;  %v719_v18 = vld [vmem:[%s4847_s1 + $0x15a8] sm:$0xff] }
 0x131   :  { %v2388_v30 = vpack.c.bf16 %v681_v22, %v677_v21  ;;  %v712_v16 = vld [vmem:[%s4847_s1 + $0x1570] sm:$0xff]  ;;  %v746_v8 = vld [vmem:[%s4847_s1 + $0x1680] sm:$0xff] }
 0x132   :  { %1983 = vmatpush1.bf16.msra.mxu0 %v1982_v27  ;;  %v674_v27 = vld [vmem:[%s4847_s1 + $0x1440] sm:$0xff]  ;;  %v2406_v22 = vpack.c.bf16 %v712_v16, %v708_v14  ;;  %v759_v14 = vld [vmem:[%s4847_s1 + $0x16e8] sm:$0xff]  ;;  %v761_v16 = vld [vmem:[%s4847_s1 + $0x16f8] sm:$0xff] }
 0x133   :  { %2367 = vmatpush1.bf16.msra.mxu1 %v2366_v28  ;;  %1985 = vmatprep.subr.bf16.mxu0 %v1984_v29  ;;  %v678_v28 = vld [vmem:[%s4847_s1 + $0x1460] sm:$0xff]  ;;  %v676_v29 = vld [vmem:[%s4847_s1 + $0x1450] sm:$0xff] }
 0x134   :  { %2369 = vmatprep.subr.bf16.mxu1 %v2368_v33  ;;  %v687_v33 = vld [vmem:[%s4847_s1 + $0x14a8] sm:$0xff]  ;;  %v2006_v37 = vpack.c.bf16 %v678_v28, %v674_v27  ;;  %v2390_v38 = vpack.c.bf16 %v680_v31, %v676_v29  ;;  %v2408_v27 = vpack.c.bf16 %v721_v20, %v717_v19  ;;  %v720_v28 = vld [vmem:[%s4847_s1 + $0x15b0] sm:$0xff]  ;;  %v725_v31 = vld [vmem:[%s4847_s1 + $0x15d8] sm:$0xff] }
 0x135   :  { %v723_v29 = vld [vmem:[%s4847_s1 + $0x15c8] sm:$0xff]  ;;  %v754_v20 = vld [vmem:[%s4847_s1 + $0x16c0] sm:$0xff] }
 0x136   :  { %1987 = vmatpush1.bf16.msra.mxu0 %v1986_v39  ;;  %v2008_v39 = vpack.c.bf16 %v687_v33, %v683_v32  ;;  %v729_v32 = vld [vmem:[%s4847_s1 + $0x15f8] sm:$0xff] }
 0x137   :  { %2371 = vmatpush1.bf16.msra.mxu1 %v2370_v40  ;;  %1989 = vmatprep.subr.bf16.mxu0 %v1988_v41  ;;  %v682_v40 = vld [vmem:[%s4847_s1 + $0x1480] sm:$0xff] }
 0x138   :  { %2373 = vmatprep.subr.bf16.mxu1 %v2372_v45  ;;  %v686_v41 = vld [vmem:[%s4847_s1 + $0x14a0] sm:$0xff]  ;;  %v691_v45 = vld [vmem:[%s4847_s1 + $0x14c8] sm:$0xff] }
 0x139   :  { %v2010_v49 = vpack.c.bf16 %v686_v41, %v682_v40  ;;  %v728_v40 = vld [vmem:[%s4847_s1 + $0x15f0] sm:$0xff]  ;;  %v731_v41 = vld [vmem:[%s4847_s1 + $0x1608] sm:$0xff] }
 0x13a   :  { %1991 = vmatpush1.bf16.msra.mxu0 %v1990_v51  ;;  %v2012_v51 = vpack.c.bf16 %v695_v46, %v691_v45  ;;  %v2032_v47 = vpack.c.bf16 %v735_v42, %v731_v41 }
 0x13b   :  { %2375 = vmatpush1.bf16.msra.mxu1 %v2374_v52  ;;  %1993 = vmatprep.subr.bf16.mxu0 %v1992_v53  ;;  %v690_v52 = vld [vmem:[%s4847_s1 + $0x14c0] sm:$0xff] }
 0x13c   :  { %2377 = vmatprep.subr.bf16.mxu1 %v2376_v57  ;;  %v694_v53 = vld [vmem:[%s4847_s1 + $0x14e0] sm:$0xff]  ;;  %v699_v57 = vld [vmem:[%s4847_s1 + $0x1508] sm:$0xff] }
 0x13d   :  { %v2014_v61 = vpack.c.bf16 %v694_v53, %v690_v52  ;;  %v736_v52 = vld [vmem:[%s4847_s1 + $0x1630] sm:$0xff]  ;;  %v739_v53 = vld [vmem:[%s4847_s1 + $0x1648] sm:$0xff] }
 0x13e   :  { %1995 = vmatpush1.bf16.msra.mxu0 %v1994_v63  ;;  %v2016_v63 = vpack.c.bf16 %v703_v58, %v699_v57  ;;  %v2036_v59 = vpack.c.bf16 %v743_v54, %v739_v53 }
 0x13f   :  { %2379 = vmatpush1.bf16.msra.mxu1 %v2378_v0  ;;  %1997 = vmatprep.subr.bf16.mxu0 %v1996_v1  ;;  %v698_v0 = vld [vmem:[%s4847_s1 + $0x1500] sm:$0xff] }
 0x140   :  { %2381 = vmatprep.subr.bf16.mxu1 %v2380_v5  ;;  %v702_v1 = vld [vmem:[%s4847_s1 + $0x1520] sm:$0xff]  ;;  %v707_v5 = vld [vmem:[%s4847_s1 + $0x1548] sm:$0xff] }
 0x141   :  { %v2018_v9 = vpack.c.bf16 %v702_v1, %v698_v0  ;;  %v744_v0 = vld [vmem:[%s4847_s1 + $0x1670] sm:$0xff]  ;;  %v747_v1 = vld [vmem:[%s4847_s1 + $0x1688] sm:$0xff] }
 0x142   :  { %1999 = vmatpush1.bf16.msra.mxu0 %v1998_v11  ;;  %v2020_v11 = vpack.c.bf16 %v711_v6, %v707_v5  ;;  %v2040_v7 = vpack.c.bf16 %v751_v2, %v747_v1 }
 0x143   :  { %2383 = vmatpush1.bf16.msra.mxu1 %v2382_v12  ;;  %2001 = vmatprep.subr.bf16.mxu0 %v2000_v13  ;;  %v706_v12 = vld [vmem:[%s4847_s1 + $0x1540] sm:$0xff] }
 0x144   :  { %2385 = vmatprep.subr.bf16.mxu1 %v2384_v17  ;;  %v710_v13 = vld [vmem:[%s4847_s1 + $0x1560] sm:$0xff]  ;;  %v715_v17 = vld [vmem:[%s4847_s1 + $0x1588] sm:$0xff] }
 0x145   :  { %1165 = vmatmul.mubr.f32.vlgmr.msra.gmra.mrb[0].mxu0 %v22_v23  ;;  %v2022_v21 = vpack.c.bf16 %v710_v13, %v706_v12  ;;  %v752_v12 = vld [vmem:[%s4847_s1 + $0x16b0] sm:$0xff]  ;;  %v755_v13 = vld [vmem:[%s4847_s1 + $0x16c8] sm:$0xff] }
 0x146   :  { %2003 = vmatpush1.bf16.msra.mxu0 %v2002_v24  ;;  %1591 = vmatmul.mubr.f32.vlgmr.msra.gmra.mrb[0].mxu1 %v22_v23  ;;  %v2024_v23 = vpack.c.bf16 %v719_v18, %v715_v17  ;;  %v714_v24 = vld [vmem:[%s4847_s1 + $0x1580] sm:$0xff]  ;;  %v2044_v19 = vpack.c.bf16 %v759_v14, %v755_v13 }
 0x147   :  { %2387 = vmatpush1.bf16.msra.mxu1 %v2386_v25  ;;  %2005 = vmatprep.subr.bf16.mxu0 %v2004_v26  ;;  %v718_v25 = vld [vmem:[%s4847_s1 + $0x15a0] sm:$0xff]  ;;  %v716_v26 = vld [vmem:[%s4847_s1 + $0x1590] sm:$0xff] }
 0x148   :  { %2389 = vmatprep.subr.bf16.mxu1 %v2388_v30  ;;  %1235 = vmatprep.mubr.f32.mxu0 %v25_v36  ;;  %v727_v30 = vld [vmem:[%s4847_s1 + $0x15e8] sm:$0xff]  ;;  %v2026_v33 = vpack.c.bf16 %v718_v25, %v714_v24  ;;  %v2410_v34 = vpack.c.bf16 %v720_v28, %v716_v26  ;;  %v760_v24 = vld [vmem:[%s4847_s1 + $0x16f0] sm:$0xff]  ;;  %v769_v28 = vld [vmem:[%s4847_s1 + $0x1738] sm:$0xff] }
 0x149   :  { %1661 = vmatprep.mubr.f32.mxu1 %v25_v36  ;;  %v2028_v35 = vpack.c.bf16 %v727_v30, %v723_v29  ;;  %v722_v36 = vld [vmem:[%s4847_s1 + $0x15c0] sm:$0xff]  ;;  %v763_v25 = vld [vmem:[%s4847_s1 + $0x1708] sm:$0xff] }
 0x14a   :  { %2007 = vmatpush1.bf16.msra.mxu0 %v2006_v37  ;;  %v726_v37 = vld [vmem:[%s4847_s1 + $0x15e0] sm:$0xff]  ;;  %v767_v26 = vld [vmem:[%s4847_s1 + $0x1728] sm:$0xff] }
 0x14b   :  { %2391 = vmatpush1.bf16.msra.mxu1 %v2390_v38  ;;  %2009 = vmatprep.subr.bf16.mxu0 %v2008_v39  ;;  %v724_v38 = vld [vmem:[%s4847_s1 + $0x15d0] sm:$0xff]  ;;  %v2412_v39 = vpack.c.bf16 %v729_v32, %v725_v31  ;;  %v2030_v45 = vpack.c.bf16 %v726_v37, %v722_v36  ;;  %v2048_v31 = vpack.c.bf16 %v767_v26, %v763_v25  ;;  %v762_v32 = vld [vmem:[%s4847_s1 + $0x1700] sm:$0xff]  ;;  %v771_v37 = vld [vmem:[%s4847_s1 + $0x1748] sm:$0xff] }
 0x14c   :  { %2393 = vmatprep.subr.bf16.mxu1 %v2392_v43  ;;  %v733_v43 = vld [vmem:[%s4847_s1 + $0x1618] sm:$0xff]  ;;  %v2414_v46 = vpack.c.bf16 %v728_v40, %v724_v38  ;;  %v768_v36 = vld [vmem:[%s4847_s1 + $0x1730] sm:$0xff]  ;;  %v775_v38 = vld [vmem:[%s4847_s1 + $0x1768] sm:$0xff] }
 0x14d   :  { %v777_v40 = vld [vmem:[%s4847_s1 + $0x1778] sm:$0xff] }
 0x14e   :  { %2011 = vmatpush1.bf16.msra.mxu0 %v2010_v49  ;;  %v734_v49 = vld [vmem:[%s4847_s1 + $0x1620] sm:$0xff] }
 0x14f   :  { %2395 = vmatpush1.bf16.msra.mxu1 %v2394_v50  ;;  %2013 = vmatprep.subr.bf16.mxu0 %v2012_v51  ;;  %v732_v50 = vld [vmem:[%s4847_s1 + $0x1610] sm:$0xff]  ;;  %v2416_v51 = vpack.c.bf16 %v737_v44, %v733_v43  ;;  %v2034_v57 = vpack.c.bf16 %v734_v49, %v730_v48  ;;  %v2052_v43 = vpack.c.bf16 %v775_v38, %v771_v37  ;;  %v770_v44 = vld [vmem:[%s4847_s1 + $0x1740] sm:$0xff]  ;;  %v779_v49 = vld [vmem:[%s4847_s1 + $0x1788] sm:$0xff] }
 0x150   :  { %2397 = vmatprep.subr.bf16.mxu1 %v2396_v55  ;;  %v741_v55 = vld [vmem:[%s4847_s1 + $0x1658] sm:$0xff]  ;;  %v2418_v58 = vpack.c.bf16 %v736_v52, %v732_v50  ;;  %v776_v48 = vld [vmem:[%s4847_s1 + $0x1770] sm:$0xff]  ;;  %v783_v50 = vld [vmem:[%s4847_s1 + $0x17a8] sm:$0xff] }
 0x151   :  { %v785_v52 = vld [vmem:[%s4847_s1 + $0x17b8] sm:$0xff] }
 0x152   :  { %2015 = vmatpush1.bf16.msra.mxu0 %v2014_v61  ;;  %v742_v61 = vld [vmem:[%s4847_s1 + $0x1660] sm:$0xff] }
 0x153   :  { %2399 = vmatpush1.bf16.msra.mxu1 %v2398_v62  ;;  %2017 = vmatprep.subr.bf16.mxu0 %v2016_v63  ;;  %v740_v62 = vld [vmem:[%s4847_s1 + $0x1650] sm:$0xff]  ;;  %v2420_v63 = vpack.c.bf16 %v745_v56, %v741_v55  ;;  %v2038_v5 = vpack.c.bf16 %v742_v61, %v738_v60  ;;  %v2056_v55 = vpack.c.bf16 %v783_v50, %v779_v49  ;;  %v778_v56 = vld [vmem:[%s4847_s1 + $0x1780] sm:$0xff]  ;;  %v787_v61 = vld [vmem:[%s4847_s1 + $0x17c8] sm:$0xff] }
 0x154   :  { %2401 = vmatprep.subr.bf16.mxu1 %v2400_v3  ;;  %v749_v3 = vld [vmem:[%s4847_s1 + $0x1698] sm:$0xff]  ;;  %v2422_v6 = vpack.c.bf16 %v744_v0, %v740_v62  ;;  %v784_v60 = vld [vmem:[%s4847_s1 + $0x17b0] sm:$0xff]  ;;  %v791_v62 = vld [vmem:[%s4847_s1 + $0x17e8] sm:$0xff] }
 0x155   :  { %v793_v0 = vld [vmem:[%s4847_s1 + $0x17f8] sm:$0xff] }
 0x156   :  { %2019 = vmatpush1.bf16.msra.mxu0 %v2018_v9  ;;  %v750_v9 = vld [vmem:[%s4847_s1 + $0x16a0] sm:$0xff] }
 0x157   :  { %2403 = vmatpush1.bf16.msra.mxu1 %v2402_v10  ;;  %2021 = vmatprep.subr.bf16.mxu0 %v2020_v11  ;;  %v748_v10 = vld [vmem:[%s4847_s1 + $0x1690] sm:$0xff]  ;;  %v2424_v11 = vpack.c.bf16 %v753_v4, %v749_v3  ;;  %v2042_v17 = vpack.c.bf16 %v750_v9, %v746_v8  ;;  %v2060_v3 = vpack.c.bf16 %v791_v62, %v787_v61  ;;  %v786_v4 = vld [vmem:[%s4847_s1 + $0x17c0] sm:$0xff] }
 0x158   :  { %2405 = vmatprep.subr.bf16.mxu1 %v2404_v15  ;;  %v757_v15 = vld [vmem:[%s4847_s1 + $0x16d8] sm:$0xff]  ;;  %v2426_v18 = vpack.c.bf16 %v752_v12, %v748_v10  ;;  %v792_v8 = vld [vmem:[%s4847_s1 + $0x17f0] sm:$0xff]  ;;  %v796_v12 = vlaneseq }
 0x15a   :  { %2023 = vmatpush1.bf16.msra.mxu0 %v2022_v21  ;;  %v758_v21 = vld [vmem:[%s4847_s1 + $0x16e0] sm:$0xff]  ;;  %v797_v13 = vshrl.u32 %v796_v12, 7 }
 0x15b   :  { %2407 = vmatpush1.bf16.msra.mxu1 %v2406_v22  ;;  %2025 = vmatprep.subr.bf16.mxu0 %v2024_v23  ;;  %v756_v22 = vld [vmem:[%s4847_s1 + $0x16d0] sm:$0xff]  ;;  %v2428_v23 = vpack.c.bf16 %v761_v16, %v757_v15  ;;  %v2046_v29 = vpack.c.bf16 %v758_v21, %v754_v20  ;;  %v794_v15 = vld [vmem:[%s4849_s2] sm:$0xf] }
 0x15c   :  { %2409 = vmatprep.subr.bf16.mxu1 %v2408_v27  ;;  %v765_v27 = vld [vmem:[%s4847_s1 + $0x1718] sm:$0xff]  ;;  %v2430_v30 = vpack.c.bf16 %v760_v24, %v756_v22  ;;  %v798_v14 = vsub.s32 0, %v797_v13  ;;  %v806_v16 = vsub.s32 2, %v797_v13 }
 0x15e   :  { %2027 = vmatpush1.bf16.msra.mxu0 %v2026_v33  ;;  %v766_v33 = vld [vmem:[%s4847_s1 + $0x1720] sm:$0xff]  ;;  %v807_v20 = vrot.slane %v794_v15, %v806_v16 }
 0x15f   :  { %2411 = vmatpush1.bf16.msra.mxu1 %v2410_v34  ;;  %2029 = vmatprep.subr.bf16.mxu0 %v2028_v35  ;;  %v764_v34 = vld [vmem:[%s4847_s1 + $0x1710] sm:$0xff]  ;;  %v2432_v35 = vpack.c.bf16 %v769_v28, %v765_v27  ;;  %v2050_v41 = vpack.c.bf16 %v766_v33, %v762_v32 }
 0x160   :  { %2413 = vmatprep.subr.bf16.mxu1 %v2412_v39  ;;  %v773_v39 = vld [vmem:[%s4847_s1 + $0x1758] sm:$0xff]  ;;  %v2434_v42 = vpack.c.bf16 %v768_v36, %v764_v34 }
 0x162   :  { %2031 = vmatpush1.bf16.msra.mxu0 %v2030_v45  ;;  %v774_v45 = vld [vmem:[%s4847_s1 + $0x1760] sm:$0xff] }
 0x163   :  { %2415 = vmatpush1.bf16.msra.mxu1 %v2414_v46  ;;  %2033 = vmatprep.subr.bf16.mxu0 %v2032_v47  ;;  %v772_v46 = vld [vmem:[%s4847_s1 + $0x1750] sm:$0xff]  ;;  %v2436_v47 = vpack.c.bf16 %v777_v40, %v773_v39  ;;  %v2054_v53 = vpack.c.bf16 %v774_v45, %v770_v44 }
 0x164   :  { %2417 = vmatprep.subr.bf16.mxu1 %v2416_v51  ;;  %v781_v51 = vld [vmem:[%s4847_s1 + $0x1798] sm:$0xff]  ;;  %v2438_v54 = vpack.c.bf16 %v776_v48, %v772_v46 }
 0x166   :  { %2035 = vmatpush1.bf16.msra.mxu0 %v2034_v57  ;;  %v782_v57 = vld [vmem:[%s4847_s1 + $0x17a0] sm:$0xff] }
 0x167   :  { %2419 = vmatpush1.bf16.msra.mxu1 %v2418_v58  ;;  %2037 = vmatprep.subr.bf16.mxu0 %v2036_v59  ;;  %v780_v58 = vld [vmem:[%s4847_s1 + $0x1790] sm:$0xff]  ;;  %v2440_v59 = vpack.c.bf16 %v785_v52, %v781_v51  ;;  %v2058_v1 = vpack.c.bf16 %v782_v57, %v778_v56 }
 0x168   :  { %2421 = vmatprep.subr.bf16.mxu1 %v2420_v63  ;;  %v789_v63 = vld [vmem:[%s4847_s1 + $0x17d8] sm:$0xff]  ;;  %v2442_v2 = vpack.c.bf16 %v784_v60, %v780_v58 }
 0x16a   :  { %2039 = vmatpush1.bf16.msra.mxu0 %v2038_v5  ;;  %v790_v5 = vld [vmem:[%s4847_s1 + $0x17e0] sm:$0xff] }
 0x16b   :  { %2423 = vmatpush1.bf16.msra.mxu1 %v2422_v6  ;;  %2041 = vmatprep.subr.bf16.mxu0 %v2040_v7  ;;  %v2444_v6 = vpack.c.bf16 %v793_v0, %v789_v63  ;;  %v788_v7 = vld [vmem:[%s4847_s1 + $0x17d0] sm:$0xff]  ;;  %v2062_v9 = vpack.c.bf16 %v790_v5, %v786_v4 }
 0x16c   :  { %2425 = vmatprep.subr.bf16.mxu1 %v2424_v11  ;;  %v2446_v10 = vpack.c.bf16 %v792_v8, %v788_v7  ;;  %v24_v11 = vld [vmem:[%s4848_s0 + $0x50] sm:$0xff] }
 0x16e   :  { %2043 = vmatpush1.bf16.msra.mxu0 %v2042_v17  ;;  %v802_v17 = vsub.s32 1, %v797_v13 }
 0x16f   :  { %2427 = vmatpush1.bf16.msra.mxu1 %v2426_v18  ;;  %2045 = vmatprep.subr.bf16.mxu0 %v2044_v19  ;;  %v810_v18 = vsub.s32 3, %v797_v13  ;;  %v799_v19 = vrot.slane %v794_v15, %v798_v14 }
 0x170   :  { %2429 = vmatprep.subr.bf16.mxu1 %v2428_v23  ;;  %v803_v21 = vrot.slane %v794_v15, %v802_v17 }
 0x171   :  { %v811_v22 = vrot.slane %v794_v15, %v810_v18 }
 0x172   :  { %2047 = vmatpush1.bf16.msra.mxu0 %v2046_v29 }
 0x173   :  { %2431 = vmatpush1.bf16.msra.mxu1 %v2430_v30  ;;  %2049 = vmatprep.subr.bf16.mxu0 %v2048_v31 }
 0x174   :  { %2433 = vmatprep.subr.bf16.mxu1 %v2432_v35 }
 0x176   :  { %2051 = vmatpush1.bf16.msra.mxu0 %v2050_v41 }
 0x177   :  { %2435 = vmatpush1.bf16.msra.mxu1 %v2434_v42  ;;  %2053 = vmatprep.subr.bf16.mxu0 %v2052_v43 }
 0x178   :  { %2437 = vmatprep.subr.bf16.mxu1 %v2436_v47 }
 0x17a   :  { %2055 = vmatpush1.bf16.msra.mxu0 %v2054_v53 }
 0x17b   :  { %2439 = vmatpush1.bf16.msra.mxu1 %v2438_v54  ;;  %2057 = vmatprep.subr.bf16.mxu0 %v2056_v55 }
 0x17c   :  { %2441 = vmatprep.subr.bf16.mxu1 %v2440_v59 }
 0x17e   :  { %2059 = vmatpush1.bf16.msra.mxu0 %v2058_v1 }
 0x17f   :  { %2443 = vmatpush1.bf16.msra.mxu1 %v2442_v2  ;;  %2061 = vmatprep.subr.bf16.mxu0 %v2060_v3 }
 0x180   :  { %2445 = vmatprep.subr.bf16.mxu1 %v2444_v6 }
 0x182   :  { %2063 = vmatpush1.bf16.msra.mxu0 %v2062_v9 }
 0x183   :  { %2447 = vmatpush1.bf16.msra.mxu1 %v2446_v10 }
 0x185   :  { %1236 = vmatmul.mubr.f32.vlgmr.msra.gmra.mrb[0].mxu0 %v24_v11 }
 0x186   :  { %1662 = vmatmul.mubr.f32.vlgmr.msra.gmra.mrb[0].mxu1 %v24_v11 }
 0x258   :  { %v1237_v23 = vpop.f32.mrb[0].mxu0 }
 0x259   :  { %v2448_v24 = vadd.f32 %v1237_v23, %v799_v19  ;;  %v1663_v25 = vpop.f32.mrb[0].mxu1  ;;  %v1239_v26 = vpop.f32.mrb[1].mxu0 }
 0x25a   :  { %v2450_v27 = vadd.f32 %v1663_v25, %v807_v20  ;;  %v2449_v28 = vadd.f32 %v1239_v26, %v803_v21  ;;  %v1665_v29 = vpop.f32.mrb[1].mxu1 }
 0x25b   :  { %v1668_v30 = vmax.f32 %v2448_v24, 0.0  ;;  %v2451_v31 = vadd.f32 %v1665_v29, %v811_v22 }
 0x25c   :  { %v1670_v32 = vmax.f32 %v2450_v27, 0.0  ;;  %v1669_v33 = vmax.f32 %v2449_v28, 0.0 }
 0x25d   :  { %1672 = vst [vmem:[%s4850_s3] sm:$0xff] %v1668_v30  ;;  %v1671_v34 = vmax.f32 %v2451_v31, 0.0 }
 0x25e   :  { %1674 = vst [vmem:[%s4850_s3 + $0x10] sm:$0xff] %v1670_v32  ;;  %1673 = vst [vmem:[%s4850_s3 + $0x8] sm:$0xff] %v1669_v33 }
 0x25f   :  { %1675 = vst [vmem:[%s4850_s3 + $0x18] sm:$0xff] %v1671_v34 }

</bundles_post_ra>
